<compile_context>
chip_gen: v7x
topology: tpu7x:2x2x1
jax: 0.10.0
libtpu: 0.0.40
codegen_flags: <defaults>
</compile_context>

<pallas_src>
import math

import jax
import jax.numpy as jnp
from jax.experimental import pallas as pl
from jax.experimental.pallas import tpu as pltpu

HIDDEN = (30, 90, 90, 30, 10)
LANE = 128


def _round_up(x, m):
    return ((x + m - 1) // m) * m


def _elu(h):
    # ELU(alpha=1): x if x > 0 else exp(x) - 1   (f32; exp goes to the EUP slot)
    return jnp.where(h > 0.0, h, jnp.exp(h) - 1.0)


# ---------------------------------------------------------------------------
# Fused kernel: row-wise sort + 6-layer MLP
# ---------------------------------------------------------------------------
def _sorted_mlp_kernel(x_ref,
                       w1, b1, w2, b2, w3, b3, w4, b4, w5, b5, w6, b6,
                       out_ref):
    # x_ref: (Bt, N) f32 ; out_ref: (Bt, out_pad) f32 (lane-dense, zero-padded)
    x = x_ref[...]
    bt, n = x.shape

    # ---- stable ascending sort of each row (rank sort) ----------------------
    # rank[b, i] = #{ j : x[b,j] < x[b,i]  or  (x[b,j] == x[b,i] and j < i) }
    xi = x[:, :, None]                                            # i on sublanes
    xj = x[:, None, :]                                            # j on lanes
    i_idx = jax.lax.broadcasted_iota(jnp.int32, (bt, n, n), 1)
    j_idx = jax.lax.broadcasted_iota(jnp.int32, (bt, n, n), 2)
    before = jnp.logical_or(xj < xi,
                            jnp.logical_and(xj == xi, j_idx < i_idx))
    rank = jnp.sum(before.astype(jnp.float32), axis=2)            # (Bt, N) exact ints

    # sorted[b, k] = sum_i x[b, i] * (rank[b, i] == k)   (k on sublanes, i on lanes)
    k_idx = jax.lax.broadcasted_iota(jnp.int32, (bt, n, n), 1).astype(jnp.float32)
    take = (rank[:, None, :] == k_idx).astype(jnp.float32)        # (Bt, k, i) one-hot
    x_sorted = jnp.sum(take * x[:, None, :], axis=2)              # (Bt, N)

    # ---- fused MLP: N -> 30 -> 90 -> 90 -> 30 -> 10 -> out_pad ---------------
    h = x_sorted
    for w_ref, b_ref in ((w1, b1), (w2, b2), (w3, b3), (w4, b4), (w5, b5)):
        h = _elu(jnp.dot(h, w_ref[...], preferred_element_type=jnp.float32)
                 + b_ref[...])
    out = jnp.dot(h, w6[...], preferred_element_type=jnp.float32) + b6[...]
    out_ref[...] = out.astype(out_ref.dtype)


# ---------------------------------------------------------------------------
# Wrapper
# ---------------------------------------------------------------------------
def sorted_mlp_ds1t(x, mask, params, *, block_b=128):
    # x: (B, N, 1) f32 ; mask accepted but unused (matches the PyTorch forward).
    del mask
    B, N, last = x.shape
    assert last == 1, "expected trailing singleton feature dim"
    x2 = x.reshape(B, N)          # squeeze(-1); sort over dim=1 is unaffected

    weights = [params["w1"], params["b1"], params["w2"], params["b2"],
               params["w3"], params["b3"], params["w4"], params["b4"],
               params["w5"], params["b5"], params["w_out"], params["b_out"]]
    out_pad = params["w_out"].shape[1]

    # Batch tile: fill MXU rows, but keep the (Bt, N, N) sort intermediates
    # small (few MiB of VMEM/vregs).  Must be a multiple of 8 unless Bt == B.
    bt = block_b
    while bt > 8 and bt * N * N * 4 * 3 > (8 << 20):
        bt //= 2
    bt = max(8, (bt // 8) * 8)
    if B <= bt:
        bt = B

    def full_spec(shape):
        return pl.BlockSpec(shape, lambda i: tuple(0 for _ in shape))

    out = pl.pallas_call(
        _sorted_mlp_kernel,
        out_shape=jax.ShapeDtypeStruct((B, out_pad), jnp.float32),
        grid=(pl.cdiv(B, bt),),
        in_specs=[pl.BlockSpec((bt, N), lambda i: (i, 0))]
                 + [full_spec(w.shape) for w in weights],
        out_specs=pl.BlockSpec((bt, out_pad), lambda i: (i, 0)),
        compiler_params=pltpu.CompilerParams(dimension_semantics=("parallel",)),
    )(x2, *weights)

    return out[:, :params["output_dim"]]


# ---------------------------------------------------------------------------
# Parameters (deterministic PyTorch-Linear-style uniform init)
# ---------------------------------------------------------------------------
def _linear_params(key, d_in, d_out):
    kw, kb = jax.random.split(key)
    bound = 1.0 / math.sqrt(d_in)
    w = jax.random.uniform(kw, (d_in, d_out), jnp.float32, -bound, bound)
    b = jax.random.uniform(kb, (1, d_out), jnp.float32, -bound, bound)
    return w, b


def init_params(key, input_dim, output_dim):
    dims = (input_dim,) + HIDDEN + (output_dim,)
    keys = jax.random.split(key, len(dims) - 1)
    params = {}
    for li, (d_in, d_out) in enumerate(zip(dims[:-1], dims[1:]), start=1):
        w, b = _linear_params(keys[li - 1], d_in, d_out)
        params[f"w{li}"] = w
        params[f"b{li}"] = b
    # Lane-dense final layer: zero-pad output features to a multiple of 128 so
    # the kernel's single HBM store is an unmasked full-lane write.
    out_pad = _round_up(output_dim, LANE)
    params["w_out"] = jnp.pad(params.pop("w6"), ((0, 0), (0, out_pad - output_dim)))
    params["b_out"] = jnp.pad(params.pop("b6"), ((0, 0), (0, out_pad - output_dim)))
    params["output_dim"] = output_dim
    return params


# ---------------------------------------------------------------------------
if __name__ == "__main__":
    B, INPUT_DIM, OUTPUT_DIM = 16, 16, 1
    key = jax.random.PRNGKey(0)
    kx, kp = jax.random.split(key)
    x = jax.random.normal(kx, (B, INPUT_DIM, 1), jnp.float32)
    mask = jnp.ones((B, INPUT_DIM), jnp.float32)   # unused, as in the PyTorch forward
    params = init_params(kp, INPUT_DIM, OUTPUT_DIM)

    out = sorted_mlp_ds1t(x, mask, params)
    out = jax.block_until_ready(out)
    assert out.shape == (B, OUTPUT_DIM), out.shape
    assert bool(jnp.all(jnp.isfinite(out)))

    # Pure-JAX reference of the same forward for a correctness cross-check.
    def ref_forward(xr, p):
        h = jnp.sort(xr[..., 0], axis=1)
        for i in range(1, 6):
            h = h @ p[f"w{i}"] + p[f"b{i}"]
            h = jnp.where(h > 0.0, h, jnp.exp(h) - 1.0)
        h = h @ p["w_out"] + p["b_out"]
        return h[:, :p["output_dim"]]

    ref = ref_forward(x, params)
    assert jnp.allclose(out, ref, atol=1e-5, rtol=1e-5), \
        float(jnp.max(jnp.abs(out - ref)))
    print("KERNEL_OK")
</pallas_src>

<mosaic_0001>
module attributes {stable_mosaic.version = 11 : i64} {
  func.func @_sorted_mlp_kernel(%arg0: i32, %arg1: memref<16x16xf32, #tpu.memory_space<vmem>>, %arg2: memref<16x30xf32, #tpu.memory_space<vmem>>, %arg3: memref<1x30xf32, #tpu.memory_space<vmem>>, %arg4: memref<30x90xf32, #tpu.memory_space<vmem>>, %arg5: memref<1x90xf32, #tpu.memory_space<vmem>>, %arg6: memref<90x90xf32, #tpu.memory_space<vmem>>, %arg7: memref<1x90xf32, #tpu.memory_space<vmem>>, %arg8: memref<90x30xf32, #tpu.memory_space<vmem>>, %arg9: memref<1x30xf32, #tpu.memory_space<vmem>>, %arg10: memref<30x10xf32, #tpu.memory_space<vmem>>, %arg11: memref<1x10xf32, #tpu.memory_space<vmem>>, %arg12: memref<10x128xf32, #tpu.memory_space<vmem>>, %arg13: memref<1x128xf32, #tpu.memory_space<vmem>>, %arg14: memref<16x128xf32, #tpu.memory_space<vmem>>) attributes {dimension_semantics = [#tpu.dimension_semantics<parallel>], iteration_bounds = array<i64: 1>, scalar_prefetch = 0 : i64, scratch_operands = 0 : i64, tpu.core_type = #tpu.core_type<tc>, window_params = [{transform_indices = @transform_0, window_bounds = array<i64: 16, 16>}, {pipeline_mode = #tpu.pipeline_mode<synchronous>, transform_indices = @transform_1, window_bounds = array<i64: 16, 30>}, {pipeline_mode = #tpu.pipeline_mode<synchronous>, transform_indices = @transform_2, window_bounds = array<i64: 1, 30>}, {pipeline_mode = #tpu.pipeline_mode<synchronous>, transform_indices = @transform_3, window_bounds = array<i64: 30, 90>}, {pipeline_mode = #tpu.pipeline_mode<synchronous>, transform_indices = @transform_4, window_bounds = array<i64: 1, 90>}, {pipeline_mode = #tpu.pipeline_mode<synchronous>, transform_indices = @transform_5, window_bounds = array<i64: 90, 90>}, {pipeline_mode = #tpu.pipeline_mode<synchronous>, transform_indices = @transform_6, window_bounds = array<i64: 1, 90>}, {pipeline_mode = #tpu.pipeline_mode<synchronous>, transform_indices = @transform_7, window_bounds = array<i64: 90, 30>}, {pipeline_mode = #tpu.pipeline_mode<synchronous>, transform_indices = @transform_8, window_bounds = array<i64: 1, 30>}, {pipeline_mode = #tpu.pipeline_mode<synchronous>, transform_indices = @transform_9, window_bounds = array<i64: 30, 10>}, {pipeline_mode = #tpu.pipeline_mode<synchronous>, transform_indices = @transform_10, window_bounds = array<i64: 1, 10>}, {pipeline_mode = #tpu.pipeline_mode<synchronous>, transform_indices = @transform_11, window_bounds = array<i64: 10, 128>}, {pipeline_mode = #tpu.pipeline_mode<synchronous>, transform_indices = @transform_12, window_bounds = array<i64: 1, 128>}, {transform_indices = @transform_13, window_bounds = array<i64: 16, 128>}]} {
    %c0 = arith.constant 0 : index
    %c0_0 = arith.constant 0 : index
    %0 = vector.load %arg1[%c0, %c0_0] : memref<16x16xf32, #tpu.memory_space<vmem>>, vector<16x16xf32>
    %1 = vector.shape_cast %0 : vector<16x16xf32> to vector<16x16x1xf32>
    %2 = vector.shape_cast %0 : vector<16x16xf32> to vector<16x1x16xf32>
    %3 = tpu.iota {dimensions = array<i32: 1>} : vector<16x16x16xi32>
    %4 = tpu.iota {dimensions = array<i32: 2>} : vector<16x16x16xi32>
    %5 = vector.broadcast %2 : vector<16x1x16xf32> to vector<16x16x16xf32>
    %6 = vector.broadcast %1 : vector<16x16x1xf32> to vector<16x16x16xf32>
    %7 = arith.cmpf olt, %5, %6 : vector<16x16x16xf32>
    %8 = vector.broadcast %2 : vector<16x1x16xf32> to vector<16x16x16xf32>
    %9 = vector.broadcast %1 : vector<16x16x1xf32> to vector<16x16x16xf32>
    %10 = arith.cmpf oeq, %8, %9 : vector<16x16x16xf32>
    %11 = arith.cmpi slt, %4, %3 : vector<16x16x16xi32>
    %12 = arith.andi %10, %11 : vector<16x16x16xi1>
    %13 = arith.ori %7, %12 : vector<16x16x16xi1>
    %14 = arith.extui %13 : vector<16x16x16xi1> to vector<16x16x16xi32>
    %15 = arith.sitofp %14 : vector<16x16x16xi32> to vector<16x16x16xf32>
    %cst = arith.constant dense<0.000000e+00> : vector<16x16xf32>
    %16 = vector.multi_reduction <add>, %15, %cst [2] : vector<16x16x16xf32> to vector<16x16xf32>
    %17 = tpu.iota {dimensions = array<i32: 1>} : vector<16x16x16xi32>
    %18 = arith.sitofp %17 : vector<16x16x16xi32> to vector<16x16x16xf32>
    %19 = vector.shape_cast %16 : vector<16x16xf32> to vector<16x1x16xf32>
    %20 = vector.broadcast %19 : vector<16x1x16xf32> to vector<16x16x16xf32>
    %21 = arith.cmpf oeq, %20, %18 : vector<16x16x16xf32>
    %22 = arith.extui %21 : vector<16x16x16xi1> to vector<16x16x16xi32>
    %23 = arith.sitofp %22 : vector<16x16x16xi32> to vector<16x16x16xf32>
    %24 = vector.shape_cast %0 : vector<16x16xf32> to vector<16x1x16xf32>
    %25 = vector.broadcast %24 : vector<16x1x16xf32> to vector<16x16x16xf32>
    %26 = arith.mulf %23, %25 : vector<16x16x16xf32>
    %cst_1 = arith.constant dense<0.000000e+00> : vector<16x16xf32>
    %27 = vector.multi_reduction <add>, %26, %cst_1 [2] : vector<16x16x16xf32> to vector<16x16xf32>
    %c0_2 = arith.constant 0 : index
    %c0_3 = arith.constant 0 : index
    %28 = vector.load %arg2[%c0_2, %c0_3] : memref<16x30xf32, #tpu.memory_space<vmem>>, vector<16x30xf32>
    %cst_4 = arith.constant dense<0.000000e+00> : vector<16x30xf32>
    %29 = tpu.matmul %27, %28, %cst_4 {dimension_numbers = #tpu.dot_dimension_numbers<[1], [0], [0], [1], [0, 0, 1, 1], [], []>} : vector<16x16xf32>, vector<16x30xf32>, vector<16x30xf32> -> vector<16x30xf32>
    %c0_5 = arith.constant 0 : index
    %c0_6 = arith.constant 0 : index
    %30 = vector.load %arg3[%c0_5, %c0_6] : memref<1x30xf32, #tpu.memory_space<vmem>>, vector<1x30xf32>
    %31 = vector.broadcast %30 : vector<1x30xf32> to vector<16x30xf32>
    %32 = arith.addf %29, %31 : vector<16x30xf32>
    %cst_7 = arith.constant 0.000000e+00 : f32
    %33 = vector.broadcast %cst_7 : f32 to vector<16x30xf32>
    %34 = arith.cmpf ogt, %32, %33 : vector<16x30xf32>
    %35 = math.exp %32 : vector<16x30xf32>
    %cst_8 = arith.constant 1.000000e+00 : f32
    %36 = vector.broadcast %cst_8 : f32 to vector<16x30xf32>
    %37 = arith.subf %35, %36 : vector<16x30xf32>
    %38 = arith.select %34, %32, %37 : vector<16x30xi1>, vector<16x30xf32>
    %c0_9 = arith.constant 0 : index
    %c0_10 = arith.constant 0 : index
    %39 = vector.load %arg4[%c0_9, %c0_10] : memref<30x90xf32, #tpu.memory_space<vmem>>, vector<30x90xf32>
    %cst_11 = arith.constant dense<0.000000e+00> : vector<16x90xf32>
    %40 = tpu.matmul %38, %39, %cst_11 {dimension_numbers = #tpu.dot_dimension_numbers<[1], [0], [0], [1], [0, 0, 1, 1], [], []>} : vector<16x30xf32>, vector<30x90xf32>, vector<16x90xf32> -> vector<16x90xf32>
    %c0_12 = arith.constant 0 : index
    %c0_13 = arith.constant 0 : index
    %41 = vector.load %arg5[%c0_12, %c0_13] : memref<1x90xf32, #tpu.memory_space<vmem>>, vector<1x90xf32>
    %42 = vector.broadcast %41 : vector<1x90xf32> to vector<16x90xf32>
    %43 = arith.addf %40, %42 : vector<16x90xf32>
    %cst_14 = arith.constant 0.000000e+00 : f32
    %44 = vector.broadcast %cst_14 : f32 to vector<16x90xf32>
    %45 = arith.cmpf ogt, %43, %44 : vector<16x90xf32>
    %46 = math.exp %43 : vector<16x90xf32>
    %cst_15 = arith.constant 1.000000e+00 : f32
    %47 = vector.broadcast %cst_15 : f32 to vector<16x90xf32>
    %48 = arith.subf %46, %47 : vector<16x90xf32>
    %49 = arith.select %45, %43, %48 : vector<16x90xi1>, vector<16x90xf32>
    %c0_16 = arith.constant 0 : index
    %c0_17 = arith.constant 0 : index
    %50 = vector.load %arg6[%c0_16, %c0_17] : memref<90x90xf32, #tpu.memory_space<vmem>>, vector<90x90xf32>
    %cst_18 = arith.constant dense<0.000000e+00> : vector<16x90xf32>
    %51 = tpu.matmul %49, %50, %cst_18 {dimension_numbers = #tpu.dot_dimension_numbers<[1], [0], [0], [1], [0, 0, 1, 1], [], []>} : vector<16x90xf32>, vector<90x90xf32>, vector<16x90xf32> -> vector<16x90xf32>
    %c0_19 = arith.constant 0 : index
    %c0_20 = arith.constant 0 : index
    %52 = vector.load %arg7[%c0_19, %c0_20] : memref<1x90xf32, #tpu.memory_space<vmem>>, vector<1x90xf32>
    %53 = vector.broadcast %52 : vector<1x90xf32> to vector<16x90xf32>
    %54 = arith.addf %51, %53 : vector<16x90xf32>
    %cst_21 = arith.constant 0.000000e+00 : f32
    %55 = vector.broadcast %cst_21 : f32 to vector<16x90xf32>
    %56 = arith.cmpf ogt, %54, %55 : vector<16x90xf32>
    %57 = math.exp %54 : vector<16x90xf32>
    %cst_22 = arith.constant 1.000000e+00 : f32
    %58 = vector.broadcast %cst_22 : f32 to vector<16x90xf32>
    %59 = arith.subf %57, %58 : vector<16x90xf32>
    %60 = arith.select %56, %54, %59 : vector<16x90xi1>, vector<16x90xf32>
    %c0_23 = arith.constant 0 : index
    %c0_24 = arith.constant 0 : index
    %61 = vector.load %arg8[%c0_23, %c0_24] : memref<90x30xf32, #tpu.memory_space<vmem>>, vector<90x30xf32>
    %cst_25 = arith.constant dense<0.000000e+00> : vector<16x30xf32>
    %62 = tpu.matmul %60, %61, %cst_25 {dimension_numbers = #tpu.dot_dimension_numbers<[1], [0], [0], [1], [0, 0, 1, 1], [], []>} : vector<16x90xf32>, vector<90x30xf32>, vector<16x30xf32> -> vector<16x30xf32>
    %c0_26 = arith.constant 0 : index
    %c0_27 = arith.constant 0 : index
    %63 = vector.load %arg9[%c0_26, %c0_27] : memref<1x30xf32, #tpu.memory_space<vmem>>, vector<1x30xf32>
    %64 = vector.broadcast %63 : vector<1x30xf32> to vector<16x30xf32>
    %65 = arith.addf %62, %64 : vector<16x30xf32>
    %cst_28 = arith.constant 0.000000e+00 : f32
    %66 = vector.broadcast %cst_28 : f32 to vector<16x30xf32>
    %67 = arith.cmpf ogt, %65, %66 : vector<16x30xf32>
    %68 = math.exp %65 : vector<16x30xf32>
    %cst_29 = arith.constant 1.000000e+00 : f32
    %69 = vector.broadcast %cst_29 : f32 to vector<16x30xf32>
    %70 = arith.subf %68, %69 : vector<16x30xf32>
    %71 = arith.select %67, %65, %70 : vector<16x30xi1>, vector<16x30xf32>
    %c0_30 = arith.constant 0 : index
    %c0_31 = arith.constant 0 : index
    %72 = vector.load %arg10[%c0_30, %c0_31] : memref<30x10xf32, #tpu.memory_space<vmem>>, vector<30x10xf32>
    %cst_32 = arith.constant dense<0.000000e+00> : vector<16x10xf32>
    %73 = tpu.matmul %71, %72, %cst_32 {dimension_numbers = #tpu.dot_dimension_numbers<[1], [0], [0], [1], [0, 0, 1, 1], [], []>} : vector<16x30xf32>, vector<30x10xf32>, vector<16x10xf32> -> vector<16x10xf32>
    %c0_33 = arith.constant 0 : index
    %c0_34 = arith.constant 0 : index
    %74 = vector.load %arg11[%c0_33, %c0_34] : memref<1x10xf32, #tpu.memory_space<vmem>>, vector<1x10xf32>
    %75 = vector.broadcast %74 : vector<1x10xf32> to vector<16x10xf32>
    %76 = arith.addf %73, %75 : vector<16x10xf32>
    %cst_35 = arith.constant 0.000000e+00 : f32
    %77 = vector.broadcast %cst_35 : f32 to vector<16x10xf32>
    %78 = arith.cmpf ogt, %76, %77 : vector<16x10xf32>
    %79 = math.exp %76 : vector<16x10xf32>
    %cst_36 = arith.constant 1.000000e+00 : f32
    %80 = vector.broadcast %cst_36 : f32 to vector<16x10xf32>
    %81 = arith.subf %79, %80 : vector<16x10xf32>
    %82 = arith.select %78, %76, %81 : vector<16x10xi1>, vector<16x10xf32>
    %c0_37 = arith.constant 0 : index
    %c0_38 = arith.constant 0 : index
    %83 = vector.load %arg12[%c0_37, %c0_38] : memref<10x128xf32, #tpu.memory_space<vmem>>, vector<10x128xf32>
    %cst_39 = arith.constant dense<0.000000e+00> : vector<16x128xf32>
    %84 = tpu.matmul %82, %83, %cst_39 {dimension_numbers = #tpu.dot_dimension_numbers<[1], [0], [0], [1], [0, 0, 1, 1], [], []>} : vector<16x10xf32>, vector<10x128xf32>, vector<16x128xf32> -> vector<16x128xf32>
    %c0_40 = arith.constant 0 : index
    %c0_41 = arith.constant 0 : index
    %85 = vector.load %arg13[%c0_40, %c0_41] : memref<1x128xf32, #tpu.memory_space<vmem>>, vector<1x128xf32>
    %86 = vector.broadcast %85 : vector<1x128xf32> to vector<16x128xf32>
    %87 = arith.addf %84, %86 : vector<16x128xf32>
    %c0_42 = arith.constant 0 : index
    %c0_43 = arith.constant 0 : index
    %88 = vector.load %arg14[%c0_42, %c0_43] : memref<16x128xf32, #tpu.memory_space<vmem>>, vector<16x128xf32>
    tpu.vector_store %arg14[%c0_42, %c0_43], %87 {strides = array<i32>} : memref<16x128xf32, #tpu.memory_space<vmem>>, vector<16x128xf32>,
    return
  }
  func.func @transform_0(%arg0: i32) -> (i32, i32) {
    %c0_i32 = arith.constant 0 : i32
    %c0_i32_0 = arith.constant 0 : i32
    return %arg0, %c0_i32 : i32, i32
  }
  func.func @transform_1(%arg0: i32) -> (i32, i32) {
    %c0_i32 = arith.constant 0 : i32
    %c0_i32_0 = arith.constant 0 : i32
    %c0_i32_1 = arith.constant 0 : i32
    return %c0_i32, %c0_i32_0 : i32, i32
  }
  func.func @transform_2(%arg0: i32) -> (i32, i32) {
    %c0_i32 = arith.constant 0 : i32
    %c0_i32_0 = arith.constant 0 : i32
    %c0_i32_1 = arith.constant 0 : i32
    return %c0_i32, %c0_i32_0 : i32, i32
  }
  func.func @transform_3(%arg0: i32) -> (i32, i32) {
    %c0_i32 = arith.constant 0 : i32
    %c0_i32_0 = arith.constant 0 : i32
    %c0_i32_1 = arith.constant 0 : i32
    return %c0_i32, %c0_i32_0 : i32, i32
  }
  func.func @transform_4(%arg0: i32) -> (i32, i32) {
    %c0_i32 = arith.constant 0 : i32
    %c0_i32_0 = arith.constant 0 : i32
    %c0_i32_1 = arith.constant 0 : i32
    return %c0_i32, %c0_i32_0 : i32, i32
  }
  func.func @transform_5(%arg0: i32) -> (i32, i32) {
    %c0_i32 = arith.constant 0 : i32
    %c0_i32_0 = arith.constant 0 : i32
    %c0_i32_1 = arith.constant 0 : i32
    return %c0_i32, %c0_i32_0 : i32, i32
  }
  func.func @transform_6(%arg0: i32) -> (i32, i32) {
    %c0_i32 = arith.constant 0 : i32
    %c0_i32_0 = arith.constant 0 : i32
    %c0_i32_1 = arith.constant 0 : i32
    return %c0_i32, %c0_i32_0 : i32, i32
  }
  func.func @transform_7(%arg0: i32) -> (i32, i32) {
    %c0_i32 = arith.constant 0 : i32
    %c0_i32_0 = arith.constant 0 : i32
    %c0_i32_1 = arith.constant 0 : i32
    return %c0_i32, %c0_i32_0 : i32, i32
  }
  func.func @transform_8(%arg0: i32) -> (i32, i32) {
    %c0_i32 = arith.constant 0 : i32
    %c0_i32_0 = arith.constant 0 : i32
    %c0_i32_1 = arith.constant 0 : i32
    return %c0_i32, %c0_i32_0 : i32, i32
  }
  func.func @transform_9(%arg0: i32) -> (i32, i32) {
    %c0_i32 = arith.constant 0 : i32
    %c0_i32_0 = arith.constant 0 : i32
    %c0_i32_1 = arith.constant 0 : i32
    return %c0_i32, %c0_i32_0 : i32, i32
  }
  func.func @transform_10(%arg0: i32) -> (i32, i32) {
    %c0_i32 = arith.constant 0 : i32
    %c0_i32_0 = arith.constant 0 : i32
    %c0_i32_1 = arith.constant 0 : i32
    return %c0_i32, %c0_i32_0 : i32, i32
  }
  func.func @transform_11(%arg0: i32) -> (i32, i32) {
    %c0_i32 = arith.constant 0 : i32
    %c0_i32_0 = arith.constant 0 : i32
    %c0_i32_1 = arith.constant 0 : i32
    return %c0_i32, %c0_i32_0 : i32, i32
  }
  func.func @transform_12(%arg0: i32) -> (i32, i32) {
    %c0_i32 = arith.constant 0 : i32
    %c0_i32_0 = arith.constant 0 : i32
    %c0_i32_1 = arith.constant 0 : i32
    return %c0_i32, %c0_i32_0 : i32, i32
  }
  func.func @transform_13(%arg0: i32) -> (i32, i32) {
    %c0_i32 = arith.constant 0 : i32
    %c0_i32_0 = arith.constant 0 : i32
    return %arg0, %c0_i32 : i32, i32
  }
}

</mosaic_0001>

<bundles_post_ra>
// kernel: tpu_custom_call.1
= control target key start
LH: loop header
LB: loop body
LE: loop exit
PB: predicated region body
PF: predicated region fallthrough
CT: control target
= control target key end

     0   :  { %18 = vsyncpa [#allocation3], 0  ;;  %s15628_s0 = inlined_call_operand.vmem [shape: f32[16,16], index: 0, kind: input, shape index: {}]   ;;  %s15629_s1 = inlined_call_operand.hbm [shape: f32[16,30], index: 1, kind: input, shape index: {}]   ;;  %s15630_s2 = inlined_call_operand.vmem [shape: f32[1,30], index: 2, kind: input, shape index: {}]   ;;  %s15631_s3 = inlined_call_operand.vmem [shape: f32[30,90], index: 3, kind: input, shape index: {}]   ;;  %s15632_s4 = inlined_call_operand.vmem [shape: f32[1,90], index: 4, kind: input, shape index: {}]   ;;  %s15633_s5 = inlined_call_operand.vmem [shape: f32[90,90], index: 5, kind: input, shape index: {}]   ;;  %s15634_s6 = inlined_call_operand.hbm [shape: f32[1,90], index: 6, kind: input, shape index: {}]   ;;  %s15635_s7 = inlined_call_operand.vmem [shape: f32[90,30], index: 7, kind: input, shape index: {}]   ;;  %s15636_s8 = inlined_call_operand.hbm [shape: f32[1,30], index: 8, kind: input, shape index: {}]   ;;  %s15637_s9 = inlined_call_operand.vmem [shape: f32[30,10], index: 9, kind: input, shape index: {}]   ;;  %s15638_s10 = inlined_call_operand.vmem [shape: f32[1,10], index: 10, kind: input, shape index: {}]   ;;  %s15639_s11 = inlined_call_operand.vmem [shape: f32[10,128], index: 11, kind: input, shape index: {}]   ;;  %s15640_s12 = inlined_call_operand.vmem [shape: f32[1,128], index: 12, kind: input, shape index: {}]   ;;  %s15641_s13 = inlined_call_operand.hbm [shape: f32[16,128], index: 13, kind: output, shape index: {}]  }
   0x1   :  { %19 = vsyncpa [#allocation6], 0 }
   0x2   :  { %20 = vsyncpa [#allocation4], 0  ;;  %s9492_s25 = smov [#allocation5]   ;;  %s9493_s27 = smov [#allocation2]  }
   0x3   :  { %s49_s26 = sshll.u32 %s9492_s25, 4  ;;  %s28_s28 = sshll.u32 %s9493_s27, 4  ;;  %s50_s26 = int_to_ptr.vmem [resolvable:$true] %s49_s26  ;;  %s9572_s28 = int_to_ptr.vmem [resolvable:$true] %s28_s28 }
   0x4   :  { %s9398_s14 = scalar_lea.hbm %s15634_s6, 16 }
   0x5   :  { %p9399_p0 = scmp.ne.s32.totalorder %s15634_s6, %s9398_s14  ;;  %p9402_p1 = scmp.lt.u32.totalorder %s9398_s14, %s15634_s6 }
   0x7   :  { %p9404_p2 = pnand %p9402_p1, %p9399_p0 }
   0x9   :  { %9407 = shalt.err (!%p9404_p2)
}
   0xa   :  { %s9408_s19 = scalar_lea.vmem %s50_s26, 16  ;;  %s9412_s20 = scalar_lea.vmem %s50_s26, 32 }
   0xb   :  { %p9409_p3 = scmp.ne.s32.totalorder %s50_s26, %s9408_s19  ;;  %p9413_p4 = scmp.lt.s32.totalorder %s50_s26, %s50_s26 }
   0xc   :  { %p9414_p5 = scmp.lt.s32.totalorder %s9412_s20, %s9408_s19 }
   0xe   :  { %p9415_p6 = por %p9414_p5, %p9413_p4 }
  0x10   :  { %p9416_p7 = pnand %p9415_p6, %p9409_p3 }
  0x12   :  { %9419 = shalt.err (!%p9416_p7)
}
  0x13   :  { %52 = dma.hbm_to_vmem [thread:$0]  %s15634_s6, 16, %s50_s26, [#allocation6]  }
  0x14   :  { %s9420_s25 = scalar_lea.hbm %s15629_s1, 256 }
  0x15   :  { %p9421_p8 = scmp.ne.s32.totalorder %s15629_s1, %s9420_s25  ;;  %p9424_p9 = scmp.lt.u32.totalorder %s9420_s25, %s15629_s1 }
  0x17   :  { %p9426_p10 = pnand %p9424_p9, %p9421_p8 }
  0x19   :  { %9429 = shalt.err (!%p9426_p10)
}
  0x1a   :  { %s9430_s15 = scalar_lea.vmem %s9572_s28, 256  ;;  %p9435_p12 = scmp.lt.s32.totalorder %s9572_s28, %s9572_s28 }
  0x1b   :  { %p9431_p11 = scmp.ne.s32.totalorder %s9572_s28, %s9430_s15  ;;  %p9436_p13 = scmp.lt.s32.totalorder %s9430_s15, %s9430_s15 }
  0x1d   :  { %p9437_p0 = por %p9436_p13, %p9435_p12 }
  0x1f   :  { %p9438_p1 = pnand %p9437_p0, %p9431_p11 }
  0x21   :  { %9441 = shalt.err (!%p9438_p1)
}
  0x22   :  { %s9494_s6 = smov 128   ;;  %s9495_s26 = smov 8  }
  0x23   :  { %34 = dma.hbm_to_vmem [thread:$0]  %s15629_s1, 256, %s9572_s28, [#allocation3], %s9494_s6, %s9494_s6, %s9495_s26  }
  0x24   :  { %s9496_s18 = smov [#allocation7]   ;;  %s9442_s22 = scalar_lea.hbm %s15636_s8, 16 }
  0x25   :  { %s61_s19 = sshll.u32 %s9496_s18, 4  ;;  %p9443_p2 = scmp.ne.s32.totalorder %s15636_s8, %s9442_s22  ;;  %s62_s19 = int_to_ptr.vmem [resolvable:$true] %s61_s19 }
  0x26   :  { %p9446_p3 = scmp.lt.u32.totalorder %s9442_s22, %s15636_s8 }
  0x28   :  { %p9448_p4 = pnand %p9446_p3, %p9443_p2 }
  0x2a   :  { %9451 = shalt.err (!%p9448_p4)
}
  0x2b   :  { %s9452_s29 = scalar_lea.vmem %s62_s19, 16  ;;  %s9456_s1 = scalar_lea.vmem %s62_s19, 32 }
  0x2c   :  { %p9453_p5 = scmp.ne.s32.totalorder %s62_s19, %s9452_s29  ;;  %p9457_p6 = scmp.lt.s32.totalorder %s62_s19, %s62_s19 }
  0x2d   :  { %p9458_p7 = scmp.lt.s32.totalorder %s9456_s1, %s9452_s29 }
  0x2f   :  { %p9459_p8 = por %p9458_p7, %p9457_p6 }
  0x31   :  { %p9460_p9 = pnand %p9459_p8, %p9453_p5 }
  0x33   :  { %9463 = shalt.err (!%p9460_p9)
}
  0x34   :  { %64 = dma.hbm_to_vmem [thread:$0]  %s15636_s8, 16, %s62_s19, [#allocation6]  }
  0x35   :  { %9486 = dma.done.wait [#allocation3], 256  }
  0x36   :  { %9487 = vsyncadd [#allocation3], 4294967040 }
  0x37   :  { %9488 = dma.done.wait [#allocation6], 32  }
  0x38   :  { %9489 = vsyncadd [#allocation6], 4294967264  ;;  %v84_v0 = vlaneseq  ;;  %v9497_v13 = vmov 1966171168   ;;  %v9639_v15 = vld [vmem:[%s15628_s0] sm:$0xff]  ;;  %v9725_v55 = vld [vmem:[%s15628_s0 + $0x8] sm:$0xff] }
  0x39   :  { %v264_v14 = vunpack.c.l.s4 %v9497_v13  ;;  %v262_v44 = vcombine.high %v9639_v15, %v9639_v15  ;;  %vm639_vm6 = vcmask 130048   ;;  %s9501_s21 = smov [#allocation8]  }
  0x3a   :  { %v85_v1 = vshrl.u32 %v84_v0, 7  ;;  %v364_v32 = vand.u32 127, %v84_v0  ;;  %s8554_s22 = sshll.u32 %s9501_s21, 4  ;;  %s8555_s22 = int_to_ptr.vmem [resolvable:$true] %s8554_s22 }
  0x3b   :  { %v265_v29 = vunpack.c.0.s8 %v264_v14  ;;  %s9464_s23 = scalar_lea.vmem %s8555_s22, 256  ;;  %p9469_p11 = scmp.lt.s32.totalorder %s8555_s22, %s8555_s22 }
  0x3c   :  { %v9618_v2 = vsub.s32 0, %v85_v1  ;;  %v736_v3 = vcvt.s32.f32 %v85_v1  ;;  %v9620_v4 = vsub.s32 1, %v85_v1  ;;  %v362_v5 = vadd.s32 8, %v85_v1  ;;  %p9465_p10 = scmp.ne.s32.totalorder %s8555_s22, %s9464_s23  ;;  %p9470_p12 = scmp.lt.s32.totalorder %s9464_s23, %s9464_s23 }
  0x3d   :  { %v9622_v6 = vsub.s32 2, %v85_v1  ;;  %v9624_v7 = vsub.s32 3, %v85_v1  ;;  %v9626_v8 = vsub.s32 4, %v85_v1  ;;  %v9628_v9 = vsub.s32 5, %v85_v1 }
  0x3e   :  { %v9631_v10 = vrot.slane %v736_v3, %v9618_v2  ;;  %v737_v11 = vcvt.s32.f32 %v362_v5  ;;  %v9634_v12 = vrot.slane %v736_v3, %v9620_v4  ;;  %v87_v20 = vrot.slane %v9639_v15, %v9618_v2  ;;  %p9471_p13 = por %p9470_p12, %p9469_p11 }
  0x3f   :  { %v9642_v16 = vrot.slane %v736_v3, %v9622_v6  ;;  %v9645_v17 = vrot.slane %v736_v3, %v9624_v7  ;;  %v9648_v18 = vrot.slane %v736_v3, %v9626_v8  ;;  %v9651_v19 = vrot.slane %v736_v3, %v9628_v9 }
  0x40   :  { %15720 = vst [vmem:[#allocation12_spill] sm:$0xff] %v9631_v10  ;;  %v98_v21 = vrot.slane %v9639_v15, %v9620_v4  ;;  %v9658_v22 = vrot.slane %v737_v11, %v9620_v4  ;;  %v9661_v23 = vrot.slane %v737_v11, %v9622_v6  ;;  %v9664_v24 = vrot.slane %v737_v11, %v9624_v7  ;;  %p9472_p0 = pnand %p9471_p13, %p9465_p10 }
  0x41   :  { %15721 = vst [vmem:[#allocation13_spill] sm:$0xff] %v9645_v17  ;;  %v9666_v25 = vsub.s32 6, %v85_v1  ;;  %89 = vbcast.lane.b32.xlu0 %v87_v20, 256  ;;  %v9669_v26 = vrot.slane %v737_v11, %v9626_v8  ;;  %v9672_v27 = vrot.slane %v737_v11, %v9628_v9  ;;  %v9674_v28 = vsub.s32 7, %v85_v1 }
  0x42   :  { %15722 = vst [vmem:[#allocation14_spill] sm:$0xff] %v9664_v24  ;;  %100 = vbcast.lane.b32.xlu1 %v98_v21, 256  ;;  %v109_v35 = vrot.slane %v9639_v15, %v9622_v6  ;;  %v9690_v36 = vsub.s32 %v265_v29, %v85_v1  ;;  %v5064_v37 = vadd.s32 4294967288, %v364_v32  ;;  %vm9692_vm0 = vcmp.lt.s32.totalorder %v364_v32, %v85_v1 }
  0x43   :  { %v9677_v30 = vrot.slane %v736_v3, %v9666_v25  ;;  %v9680_v31 = vrot.slane %v737_v11, %v9666_v25  ;;  %v9683_v33 = vrot.slane %v736_v3, %v9674_v28  ;;  %v9686_v34 = vrot.slane %v737_v11, %v9674_v28 }
  0x44   :  { %v9696_v39 = vsub.s32 %v364_v32, %v85_v1  ;;  %vm9698_vm1 = vcmp.lt.s32.totalorder %v364_v32, %v362_v5  ;;  %v9703_v41 = vrot.slane %v737_v11, %v9618_v2  ;;  %v269_v42 = vrot.slane %v9639_v15, %v9690_v36 }
  0x45   :  { %15723 = vst [vmem:[#allocation15_spill] sm:$0xff] %v9683_v33  ;;  %15724 = vst [vmem:[#allocation16_spill] sm:$0xff] %v9686_v34  ;;  %93 = vbcast.lane.b32.xlu0 %v87_v20, 264  ;;  %v9707_v43 = vsub.s32 %v5064_v37, %v85_v1  ;;  %v120_v45 = vrot.slane %v9639_v15, %v9624_v7  ;;  %v276_v48 = vrot.slane %v262_v44, %v9690_v36 }
  0x46   :  { %104 = vbcast.lane.b32.xlu1 %v98_v21, 264  ;;  %15727 = vst [vmem:[#allocation17_spill] sm:$0xff] %v9696_v39  ;;  %v285_v46 = vrot.slane %v269_v42, %v9690_v36  ;;  %v277_v47 = vcombine.high %v269_v42, %v269_v42  ;;  %v131_v53 = vrot.slane %v9639_v15, %v9626_v8 }
  0x47   :  { %15730 = vst [vmem:[#allocation18_spill] sm:$0xff] %v9707_v43  ;;  %v292_v52 = vrot.slane %v276_v48, %v9690_v36  ;;  %v278_v54 = vcombine.high %v276_v48, %v276_v48  ;;  %v318_v62 = vrot.slane %v9725_v55, %v9690_v36  ;;  %v142_v11 = vrot.slane %v9639_v15, %v9628_v9 }
  0x48   :  { %v9716_v49 = vrot.slane %v285_v46, %v9618_v2  ;;  %v299_v50 = vrot.slane %v277_v47, %v9690_v36  ;;  %v307_v51 = vcombine.high %v285_v46, %v285_v46  ;;  %v153_v29 = vrot.slane %v9639_v15, %v9666_v25 }
  0x49   :  { %111 = vbcast.lane.b32.xlu0 %v109_v35, 256  ;;  %v9734_v59 = vrot.slane %v292_v52, %v9618_v2  ;;  %v306_v60 = vrot.slane %v278_v54, %v9690_v36  ;;  %v308_v61 = vcombine.high %v292_v52, %v292_v52  ;;  %v334_v5 = vrot.slane %v318_v62, %v9690_v36 }
  0x4a   :  { %115 = vbcast.lane.b32.xlu1 %v109_v35, 264  ;;  %v9728_v56 = vrot.slane %v299_v50, %v9618_v2  ;;  %v9731_v57 = vrot.slane %v307_v51, %v9618_v2  ;;  %v309_v58 = vcombine.high %v299_v50, %v299_v50  ;;  %v326_v20 = vcombine.high %v318_v62, %v318_v62 }
  0x4b   :  { %v9743_v0 = vrot.slane %v306_v60, %v9618_v2  ;;  %v9746_v1 = vrot.slane %v308_v61, %v9618_v2  ;;  %v310_v3 = vcombine.high %v306_v60, %v306_v60  ;;  %v9755_v14 = vrot.slane %v334_v5, %v9618_v2 }
  0x4c   :  { %v9740_v63 = vrot.slane %v309_v58, %v9618_v2  ;;  %v348_v21 = vrot.slane %v326_v20, %v9690_v36  ;;  %v356_v35 = vcombine.high %v334_v5, %v334_v5  ;;  %v164_v37 = vrot.slane %v9639_v15, %v9674_v28 }
  0x4d   :  { %122 = vbcast.lane.b32.xlu0 %v120_v45, 256  ;;  %v9752_v13 = vrot.slane %v310_v3, %v9618_v2  ;;  %v175_v46 = vrot.slane %v9725_v55, %v9618_v2  ;;  %v186_v15 = vrot.slane %v9725_v55, %v9620_v4  ;;  %v197_v54 = vrot.slane %v9725_v55, %v9622_v6 }
  0x4e   :  { %126 = vbcast.lane.b32.xlu1 %v120_v45, 264  ;;  %v9761_v32 = vrot.slane %v348_v21, %v9618_v2  ;;  %v9766_v42 = vrot.slane %v356_v35, %v9618_v2  ;;  %v358_v44 = vcombine.high %v348_v21, %v348_v21  ;;  %v311_v45 = vcombine.high %v9725_v55, %v9725_v55 }
  0x4f   :  { %v208_v4 = vrot.slane %v9725_v55, %v9624_v7  ;;  %v230_v3 = vrot.slane %v9725_v55, %v9628_v9  ;;  %v241_v7 = vrot.slane %v9725_v55, %v9666_v25  ;;  %v252_v5 = vrot.slane %v9725_v55, %v9674_v28 }
  0x50   :  { %v9773_v47 = vrot.slane %v358_v44, %v9618_v2  ;;  %v325_v48 = vrot.slane %v311_v45, %v9690_v36  ;;  %v15694_v25 = vmov 0.0  }
  0x51   :  { %133 = vbcast.lane.b32.xlu0 %v131_v53, 256 }
  0x52   :  { %137 = vbcast.lane.b32.xlu1 %v131_v53, 264  ;;  %v341_v50 = vrot.slane %v325_v48, %v9690_v36  ;;  %v327_v52 = vcombine.high %v325_v48, %v325_v48 }
  0x54   :  { %v9780_v51 = vrot.slane %v341_v50, %v9618_v2  ;;  %v355_v53 = vrot.slane %v327_v52, %v9690_v36  ;;  %v357_v60 = vcombine.high %v341_v50, %v341_v50  ;;  %v219_v36 = vrot.slane %v9725_v55, %v9626_v8 }
  0x55   :  { %144 = vbcast.lane.b32.xlu0 %v142_v11, 256 }
  0x56   :  { %148 = vbcast.lane.b32.xlu1 %v142_v11, 264  ;;  %v9786_v58 = vrot.slane %v355_v53, %v9618_v2  ;;  %v9791_v61 = vrot.slane %v357_v60, %v9618_v2  ;;  %v359_v62 = vcombine.high %v355_v53, %v355_v53 }
  0x58   :  { %v9796_v6 = vrot.slane %v359_v62, %v9618_v2 }
  0x59   :  { %155 = vbcast.lane.b32.xlu0 %v153_v29, 256 }
  0x5a   :  { %159 = vbcast.lane.b32.xlu1 %v153_v29, 264 }
  0x5d   :  { %166 = vbcast.lane.b32.xlu0 %v164_v37, 256 }
  0x5e   :  { %170 = vbcast.lane.b32.xlu1 %v164_v37, 264 }
  0x61   :  { %177 = vbcast.lane.b32.xlu0 %v175_v46, 256 }
  0x62   :  { %181 = vbcast.lane.b32.xlu1 %v175_v46, 264 }
  0x65   :  { %188 = vbcast.lane.b32.xlu0 %v186_v15, 256 }
  0x66   :  { %192 = vbcast.lane.b32.xlu1 %v186_v15, 264 }
  0x69   :  { %199 = vbcast.lane.b32.xlu0 %v197_v54, 256 }
  0x6a   :  { %203 = vbcast.lane.b32.xlu1 %v197_v54, 264 }
  0x6d   :  { %210 = vbcast.lane.b32.xlu0 %v208_v4, 256 }
  0x6e   :  { %214 = vbcast.lane.b32.xlu1 %v208_v4, 264 }
  0x71   :  { %221 = vbcast.lane.b32.xlu0 %v219_v36, 256 }
  0x72   :  { %225 = vbcast.lane.b32.xlu1 %v219_v36, 264 }
  0x75   :  { %232 = vbcast.lane.b32.xlu0 %v230_v3, 256 }
  0x76   :  { %236 = vbcast.lane.b32.xlu1 %v230_v3, 264 }
  0x79   :  { %243 = vbcast.lane.b32.xlu0 %v241_v7, 256 }
  0x7a   :  { %247 = vbcast.lane.b32.xlu1 %v241_v7, 264 }
  0x7d   :  { %254 = vbcast.lane.b32.xlu0 %v252_v5, 256 }
  0x7e   :  { %258 = vbcast.lane.b32.xlu1 %v252_v5, 264 }
  0xb3   :  { %v90_v8 = vpop.permute.xlu0 %89 }
  0xb4   :  { %v101_v2 = vpop.permute.xlu1 %100  ;;  %vm477_vm2 = vcmp.eq.f32.partialorder %v9716_v49, %v90_v8  ;;  %vm445_vm4 = vcmp.lt.f32.partialorder %v9716_v49, %v90_v8 }
  0xb5   :  { %vm479_vm3 = vcmp.eq.f32.partialorder %v9728_v56, %v101_v2  ;;  %vm511_vm5 = vmand %vm477_vm2, %vm9692_vm0  ;;  %vm447_vm7 = vcmp.lt.f32.partialorder %v9728_v56, %v101_v2 }
  0xb6   :  { %vm543_vm8 = vmor %vm445_vm4, %vm511_vm5 }
  0xb7   :  { %v94_v9 = vpop.permute.xlu0 %93  ;;  %v8567_v28 = vsel %vm543_vm8, 1.0, %v15694_v25  ;;  %vm513_vm9 = vmand %vm479_vm3, %vm9692_vm0 }
  0xb8   :  { %v105_v55 = vpop.permute.xlu1 %104  ;;  %vm478_vm10 = vcmp.eq.f32.partialorder %v9716_v49, %v94_v9  ;;  %v640_v11 = vsel %vm639_vm6, %v8567_v28, 0.0  ;;  %vm545_vm12 = vmor %vm447_vm7, %vm513_vm9  ;;  %vm446_vm13 = vcmp.lt.f32.partialorder %v9716_v49, %v94_v9 }
  0xb9   :  { %vm480_vm11 = vcmp.eq.f32.partialorder %v9728_v56, %v105_v55  ;;  %641 = vadd.xlane.f32.xlu0 %v640_v11  ;;  %v8569_v20 = vsel %vm545_vm12, 1.0, %v15694_v25  ;;  %vm512_vm14 = vmand %vm478_vm10, %vm9698_vm1  ;;  %vm448_vm15 = vcmp.lt.f32.partialorder %v9728_v56, %v105_v55 }
  0xba   :  { %v646_v21 = vsel %vm639_vm6, %v8569_v20, 0.0  ;;  %vm544_vm2 = vmor %vm446_vm13, %vm512_vm14 }
  0xbb   :  { %v112_v29 = vpop.permute.xlu0 %111  ;;  %v8568_v35 = vsel %vm544_vm2, 1.0, %v15694_v25  ;;  %vm514_vm3 = vmand %vm480_vm11, %vm9698_vm1 }
  0xbc   :  { %v116_v37 = vpop.permute.xlu1 %115  ;;  %vm481_vm4 = vcmp.eq.f32.partialorder %v9731_v57, %v112_v29  ;;  %v643_v44 = vsel %vm639_vm6, %v8568_v35, 0.0  ;;  %vm546_vm7 = vmor %vm448_vm15, %vm514_vm3  ;;  %vm449_vm8 = vcmp.lt.f32.partialorder %v9731_v57, %v112_v29 }
  0xbd   :  { %vm482_vm5 = vcmp.eq.f32.partialorder %v9731_v57, %v116_v37  ;;  %647 = vadd.xlane.f32.xlu0 %v646_v21  ;;  %644 = vadd.xlane.f32.xlu1 %v643_v44  ;;  %v8570_v45 = vsel %vm546_vm7, 1.0, %v15694_v25  ;;  %vm515_vm9 = vmand %vm481_vm4, %vm9692_vm0  ;;  %vm450_vm10 = vcmp.lt.f32.partialorder %v9731_v57, %v116_v37 }
  0xbe   :  { %v649_v46 = vsel %vm639_vm6, %v8570_v45, 0.0  ;;  %vm547_vm11 = vmor %vm449_vm8, %vm515_vm9 }
  0xbf   :  { %v123_v48 = vpop.permute.xlu0 %122  ;;  %v8571_v50 = vsel %vm547_vm11, 1.0, %v15694_v25  ;;  %vm516_vm12 = vmand %vm482_vm5, %vm9698_vm1 }
  0xc0   :  { %v127_v15 = vpop.permute.xlu1 %126  ;;  %vm483_vm13 = vcmp.eq.f32.partialorder %v9740_v63, %v123_v48  ;;  %v652_v52 = vsel %vm639_vm6, %v8571_v50, 0.0  ;;  %vm548_vm15 = vmor %vm450_vm10, %vm516_vm12  ;;  %vm451_vm2 = vcmp.lt.f32.partialorder %v9740_v63, %v123_v48 }
  0xc1   :  { %vm484_vm14 = vcmp.eq.f32.partialorder %v9740_v63, %v127_v15  ;;  %650 = vadd.xlane.f32.xlu0 %v649_v46  ;;  %653 = vadd.xlane.f32.xlu1 %v652_v52  ;;  %v8572_v53 = vsel %vm548_vm15, 1.0, %v15694_v25  ;;  %vm517_vm3 = vmand %vm483_vm13, %vm9692_vm0  ;;  %vm452_vm4 = vcmp.lt.f32.partialorder %v9740_v63, %v127_v15 }
  0xc2   :  { %v655_v54 = vsel %vm639_vm6, %v8572_v53, 0.0  ;;  %vm549_vm5 = vmor %vm451_vm2, %vm517_vm3 }
  0xc3   :  { %v134_v60 = vpop.permute.xlu0 %133  ;;  %v8573_v4 = vsel %vm549_vm5, 1.0, %v15694_v25  ;;  %vm518_vm7 = vmand %vm484_vm14, %vm9698_vm1 }
  0xc4   :  { %v138_v62 = vpop.permute.xlu1 %137  ;;  %vm485_vm8 = vcmp.eq.f32.partialorder %v9734_v59, %v134_v60  ;;  %v658_v36 = vsel %vm639_vm6, %v8573_v4, 0.0  ;;  %vm550_vm10 = vmor %vm452_vm4, %vm518_vm7  ;;  %vm453_vm11 = vcmp.lt.f32.partialorder %v9734_v59, %v134_v60 }
  0xc5   :  { %vm486_vm9 = vcmp.eq.f32.partialorder %v9734_v59, %v138_v62  ;;  %656 = vadd.xlane.f32.xlu0 %v655_v54  ;;  %659 = vadd.xlane.f32.xlu1 %v658_v36  ;;  %v8574_v3 = vsel %vm550_vm10, 1.0, %v15694_v25  ;;  %vm519_vm12 = vmand %vm485_vm8, %vm9692_vm0  ;;  %vm454_vm13 = vcmp.lt.f32.partialorder %v9734_v59, %v138_v62 }
  0xc6   :  { %v661_v7 = vsel %vm639_vm6, %v8574_v3, 0.0  ;;  %vm551_vm14 = vmor %vm453_vm11, %vm519_vm12 }
  0xc7   :  { %v145_v5 = vpop.permute.xlu0 %144  ;;  %v8575_v8 = vsel %vm551_vm14, 1.0, %v15694_v25  ;;  %vm520_vm15 = vmand %vm486_vm9, %vm9698_vm1 }
  0xc8   :  { %v149_v2 = vpop.permute.xlu1 %148  ;;  %vm487_vm2 = vcmp.eq.f32.partialorder %v9743_v0, %v145_v5  ;;  %v664_v9 = vsel %vm639_vm6, %v8575_v8, 0.0  ;;  %vm552_vm4 = vmor %vm454_vm13, %vm520_vm15  ;;  %vm455_vm5 = vcmp.lt.f32.partialorder %v9743_v0, %v145_v5 }
  0xc9   :  { %vm488_vm3 = vcmp.eq.f32.partialorder %v9743_v0, %v149_v2  ;;  %662 = vadd.xlane.f32.xlu0 %v661_v7  ;;  %665 = vadd.xlane.f32.xlu1 %v664_v9  ;;  %v8576_v28 = vsel %vm552_vm4, 1.0, %v15694_v25  ;;  %vm521_vm7 = vmand %vm487_vm2, %vm9692_vm0  ;;  %vm456_vm8 = vcmp.lt.f32.partialorder %v9743_v0, %v149_v2 }
  0xca   :  { %v667_v55 = vsel %vm639_vm6, %v8576_v28, 0.0  ;;  %vm553_vm9 = vmor %vm455_vm5, %vm521_vm7 }
  0xcb   :  { %v156_v11 = vpop.permute.xlu0 %155  ;;  %v8577_v20 = vsel %vm553_vm9, 1.0, %v15694_v25  ;;  %vm522_vm10 = vmand %vm488_vm3, %vm9698_vm1 }
  0xcc   :  { %v160_v21 = vpop.permute.xlu1 %159  ;;  %vm489_vm11 = vcmp.eq.f32.partialorder %v9746_v1, %v156_v11  ;;  %v670_v29 = vsel %vm639_vm6, %v8577_v20, 0.0  ;;  %vm554_vm13 = vmor %vm456_vm8, %vm522_vm10  ;;  %vm457_vm14 = vcmp.lt.f32.partialorder %v9746_v1, %v156_v11 }
  0xcd   :  { %vm490_vm12 = vcmp.eq.f32.partialorder %v9746_v1, %v160_v21  ;;  %668 = vadd.xlane.f32.xlu0 %v667_v55  ;;  %671 = vadd.xlane.f32.xlu1 %v670_v29  ;;  %v8578_v35 = vsel %vm554_vm13, 1.0, %v15694_v25  ;;  %vm523_vm15 = vmand %vm489_vm11, %vm9692_vm0  ;;  %vm458_vm2 = vcmp.lt.f32.partialorder %v9746_v1, %v160_v21 }
  0xce   :  { %v673_v37 = vsel %vm639_vm6, %v8578_v35, 0.0  ;;  %vm555_vm3 = vmor %vm457_vm14, %vm523_vm15 }
  0xcf   :  { %v167_v44 = vpop.permute.xlu0 %166  ;;  %v8579_v45 = vsel %vm555_vm3, 1.0, %v15694_v25  ;;  %vm524_vm4 = vmand %vm490_vm12, %vm9698_vm1 }
  0xd0   :  { %v171_v46 = vpop.permute.xlu1 %170  ;;  %vm491_vm5 = vcmp.eq.f32.partialorder %v9752_v13, %v167_v44  ;;  %v676_v48 = vsel %vm639_vm6, %v8579_v45, 0.0  ;;  %vm556_vm8 = vmor %vm458_vm2, %vm524_vm4  ;;  %vm459_vm9 = vcmp.lt.f32.partialorder %v9752_v13, %v167_v44 }
  0xd1   :  { %vm492_vm7 = vcmp.eq.f32.partialorder %v9752_v13, %v171_v46  ;;  %674 = vadd.xlane.f32.xlu0 %v673_v37  ;;  %677 = vadd.xlane.f32.xlu1 %v676_v48  ;;  %v8580_v50 = vsel %vm556_vm8, 1.0, %v15694_v25  ;;  %vm525_vm10 = vmand %vm491_vm5, %vm9692_vm0  ;;  %vm460_vm11 = vcmp.lt.f32.partialorder %v9752_v13, %v171_v46 }
  0xd2   :  { %v679_v15 = vsel %vm639_vm6, %v8580_v50, 0.0  ;;  %vm557_vm12 = vmor %vm459_vm9, %vm525_vm10 }
  0xd3   :  { %v178_v52 = vpop.permute.xlu0 %177  ;;  %v8581_v53 = vsel %vm557_vm12, 1.0, %v15694_v25  ;;  %vm526_vm13 = vmand %vm492_vm7, %vm9698_vm1 }
  0xd4   :  { %v182_v54 = vpop.permute.xlu1 %181  ;;  %vm493_vm14 = vcmp.eq.f32.partialorder %v9755_v14, %v178_v52  ;;  %v682_v60 = vsel %vm639_vm6, %v8581_v53, 0.0  ;;  %vm558_vm2 = vmor %vm460_vm11, %vm526_vm13  ;;  %vm461_vm3 = vcmp.lt.f32.partialorder %v9755_v14, %v178_v52 }
  0xd5   :  { %vm494_vm15 = vcmp.eq.f32.partialorder %v9755_v14, %v182_v54  ;;  %680 = vadd.xlane.f32.xlu0 %v679_v15  ;;  %683 = vadd.xlane.f32.xlu1 %v682_v60  ;;  %v8582_v4 = vsel %vm558_vm2, 1.0, %v15694_v25  ;;  %vm527_vm4 = vmand %vm493_vm14, %vm9692_vm0  ;;  %vm462_vm5 = vcmp.lt.f32.partialorder %v9755_v14, %v182_v54 }
  0xd6   :  { %v685_v62 = vsel %vm639_vm6, %v8582_v4, 0.0  ;;  %vm559_vm7 = vmor %vm461_vm3, %vm527_vm4 }
  0xd7   :  { %v189_v36 = vpop.permute.xlu0 %188  ;;  %v8583_v3 = vsel %vm559_vm7, 1.0, %v15694_v25  ;;  %vm528_vm8 = vmand %vm494_vm15, %vm9698_vm1 }
  0xd8   :  { %v193_v7 = vpop.permute.xlu1 %192  ;;  %vm495_vm9 = vcmp.eq.f32.partialorder %v9761_v32, %v189_v36  ;;  %v688_v5 = vsel %vm639_vm6, %v8583_v3, 0.0  ;;  %vm560_vm11 = vmor %vm462_vm5, %vm528_vm8  ;;  %vm463_vm12 = vcmp.lt.f32.partialorder %v9761_v32, %v189_v36 }
  0xd9   :  { %vm496_vm10 = vcmp.eq.f32.partialorder %v9761_v32, %v193_v7  ;;  %686 = vadd.xlane.f32.xlu0 %v685_v62  ;;  %689 = vadd.xlane.f32.xlu1 %v688_v5  ;;  %v8584_v8 = vsel %vm560_vm11, 1.0, %v15694_v25  ;;  %vm529_vm13 = vmand %vm495_vm9, %vm9692_vm0  ;;  %vm464_vm14 = vcmp.lt.f32.partialorder %v9761_v32, %v193_v7 }
  0xda   :  { %v691_v2 = vsel %vm639_vm6, %v8584_v8, 0.0  ;;  %vm561_vm15 = vmor %vm463_vm12, %vm529_vm13 }
  0xdb   :  { %v200_v9 = vpop.permute.xlu0 %199  ;;  %v8585_v28 = vsel %vm561_vm15, 1.0, %v15694_v25  ;;  %vm530_vm2 = vmand %vm496_vm10, %vm9698_vm1 }
  0xdc   :  { %v204_v55 = vpop.permute.xlu1 %203  ;;  %vm497_vm3 = vcmp.eq.f32.partialorder %v9766_v42, %v200_v9  ;;  %v694_v11 = vsel %vm639_vm6, %v8585_v28, 0.0  ;;  %vm562_vm5 = vmor %vm464_vm14, %vm530_vm2  ;;  %vm465_vm7 = vcmp.lt.f32.partialorder %v9766_v42, %v200_v9 }
  0xdd   :  { %vm498_vm4 = vcmp.eq.f32.partialorder %v9766_v42, %v204_v55  ;;  %692 = vadd.xlane.f32.xlu0 %v691_v2  ;;  %695 = vadd.xlane.f32.xlu1 %v694_v11  ;;  %v8586_v20 = vsel %vm562_vm5, 1.0, %v15694_v25  ;;  %vm531_vm8 = vmand %vm497_vm3, %vm9692_vm0  ;;  %vm466_vm9 = vcmp.lt.f32.partialorder %v9766_v42, %v204_v55 }
  0xde   :  { %v697_v21 = vsel %vm639_vm6, %v8586_v20, 0.0  ;;  %vm563_vm10 = vmor %vm465_vm7, %vm531_vm8 }
  0xdf   :  { %v211_v29 = vpop.permute.xlu0 %210  ;;  %v8587_v35 = vsel %vm563_vm10, 1.0, %v15694_v25  ;;  %vm532_vm11 = vmand %vm498_vm4, %vm9698_vm1 }
  0xe0   :  { %v215_v37 = vpop.permute.xlu1 %214  ;;  %vm499_vm12 = vcmp.eq.f32.partialorder %v9773_v47, %v211_v29  ;;  %v700_v44 = vsel %vm639_vm6, %v8587_v35, 0.0  ;;  %vm564_vm14 = vmor %vm466_vm9, %vm532_vm11  ;;  %vm467_vm15 = vcmp.lt.f32.partialorder %v9773_v47, %v211_v29 }
  0xe1   :  { %vm500_vm13 = vcmp.eq.f32.partialorder %v9773_v47, %v215_v37  ;;  %698 = vadd.xlane.f32.xlu0 %v697_v21  ;;  %701 = vadd.xlane.f32.xlu1 %v700_v44  ;;  %v8588_v45 = vsel %vm564_vm14, 1.0, %v15694_v25  ;;  %vm533_vm2 = vmand %vm499_vm12, %vm9692_vm0  ;;  %vm468_vm3 = vcmp.lt.f32.partialorder %v9773_v47, %v215_v37 }
  0xe2   :  { %v703_v46 = vsel %vm639_vm6, %v8588_v45, 0.0  ;;  %vm565_vm4 = vmor %vm467_vm15, %vm533_vm2 }
  0xe3   :  { %v222_v48 = vpop.permute.xlu0 %221  ;;  %v8589_v50 = vsel %vm565_vm4, 1.0, %v15694_v25  ;;  %vm534_vm5 = vmand %vm500_vm13, %vm9698_vm1 }
  0xe4   :  { %v226_v15 = vpop.permute.xlu1 %225  ;;  %vm501_vm7 = vcmp.eq.f32.partialorder %v9780_v51, %v222_v48  ;;  %v706_v52 = vsel %vm639_vm6, %v8589_v50, 0.0  ;;  %vm566_vm9 = vmor %vm468_vm3, %vm534_vm5  ;;  %vm469_vm10 = vcmp.lt.f32.partialorder %v9780_v51, %v222_v48  ;;  %v9499_v48 = vmov 0  }
  0xe5   :  { %vm502_vm8 = vcmp.eq.f32.partialorder %v9780_v51, %v226_v15  ;;  %704 = vadd.xlane.f32.xlu0 %v703_v46  ;;  %707 = vadd.xlane.f32.xlu1 %v706_v52  ;;  %v8590_v53 = vsel %vm566_vm9, 1.0, %v15694_v25  ;;  %vm535_vm11 = vmand %vm501_vm7, %vm9692_vm0  ;;  %vm470_vm12 = vcmp.lt.f32.partialorder %v9780_v51, %v226_v15 }
  0xe6   :  { %v709_v54 = vsel %vm639_vm6, %v8590_v53, 0.0  ;;  %vm567_vm13 = vmor %vm469_vm10, %vm535_vm11  ;;  %9374 = vset.pattern.permute.xlu0 %v9499_v48  ;;  %9375 = vset.pattern.permute.xlu1 %v9499_v48 }
  0xe7   :  { %v233_v60 = vpop.permute.xlu0 %232  ;;  %v8591_v4 = vsel %vm567_vm13, 1.0, %v15694_v25  ;;  %vm536_vm14 = vmand %vm502_vm8, %vm9698_vm1 }
  0xe8   :  { %v237_v62 = vpop.permute.xlu1 %236  ;;  %vm503_vm15 = vcmp.eq.f32.partialorder %v9786_v58, %v233_v60  ;;  %v712_v36 = vsel %vm639_vm6, %v8591_v4, 0.0  ;;  %vm568_vm3 = vmor %vm470_vm12, %vm536_vm14  ;;  %vm471_vm4 = vcmp.lt.f32.partialorder %v9786_v58, %v233_v60 }
  0xe9   :  { %vm504_vm2 = vcmp.eq.f32.partialorder %v9786_v58, %v237_v62  ;;  %710 = vadd.xlane.f32.xlu0 %v709_v54  ;;  %713 = vadd.xlane.f32.xlu1 %v712_v36  ;;  %v8592_v3 = vsel %vm568_vm3, 1.0, %v15694_v25  ;;  %vm537_vm5 = vmand %vm503_vm15, %vm9692_vm0  ;;  %vm472_vm7 = vcmp.lt.f32.partialorder %v9786_v58, %v237_v62 }
  0xea   :  { %v715_v7 = vsel %vm639_vm6, %v8592_v3, 0.0  ;;  %vm569_vm8 = vmor %vm471_vm4, %vm537_vm5 }
  0xeb   :  { %v244_v5 = vpop.permute.xlu0 %243  ;;  %v8593_v8 = vsel %vm569_vm8, 1.0, %v15694_v25  ;;  %vm538_vm9 = vmand %vm504_vm2, %vm9698_vm1 }
  0xec   :  { %v248_v2 = vpop.permute.xlu1 %247  ;;  %vm505_vm10 = vcmp.eq.f32.partialorder %v9791_v61, %v244_v5  ;;  %v718_v9 = vsel %vm639_vm6, %v8593_v8, 0.0  ;;  %vm570_vm12 = vmor %vm472_vm7, %vm538_vm9  ;;  %vm473_vm13 = vcmp.lt.f32.partialorder %v9791_v61, %v244_v5 }
  0xed   :  { %vm506_vm11 = vcmp.eq.f32.partialorder %v9791_v61, %v248_v2  ;;  %716 = vadd.xlane.f32.xlu0 %v715_v7  ;;  %719 = vadd.xlane.f32.xlu1 %v718_v9  ;;  %v8594_v28 = vsel %vm570_vm12, 1.0, %v15694_v25  ;;  %vm539_vm14 = vmand %vm505_vm10, %vm9692_vm0  ;;  %vm474_vm15 = vcmp.lt.f32.partialorder %v9791_v61, %v248_v2 }
  0xee   :  { %v721_v55 = vsel %vm639_vm6, %v8594_v28, 0.0  ;;  %vm571_vm2 = vmor %vm473_vm13, %vm539_vm14 }
  0xef   :  { %v255_v11 = vpop.permute.xlu0 %254  ;;  %v8595_v20 = vsel %vm571_vm2, 1.0, %v15694_v25  ;;  %vm540_vm3 = vmand %vm506_vm11, %vm9698_vm1 }
  0xf0   :  { %v259_v21 = vpop.permute.xlu1 %258  ;;  %vm507_vm4 = vcmp.eq.f32.partialorder %v9796_v6, %v255_v11  ;;  %v724_v29 = vsel %vm639_vm6, %v8595_v20, 0.0  ;;  %vm572_vm7 = vmor %vm474_vm15, %vm540_vm3  ;;  %vm475_vm8 = vcmp.lt.f32.partialorder %v9796_v6, %v255_v11 }
  0xf1   :  { %vm508_vm5 = vcmp.eq.f32.partialorder %v9796_v6, %v259_v21  ;;  %722 = vadd.xlane.f32.xlu0 %v721_v55  ;;  %725 = vadd.xlane.f32.xlu1 %v724_v29  ;;  %v8596_v35 = vsel %vm572_vm7, 1.0, %v15694_v25  ;;  %vm541_vm9 = vmand %vm507_vm4, %vm9692_vm0  ;;  %vm476_vm10 = vcmp.lt.f32.partialorder %v9796_v6, %v259_v21 }
  0xf2   :  { %v727_v37 = vsel %vm639_vm6, %v8596_v35, 0.0  ;;  %vm573_vm11 = vmor %vm475_vm8, %vm541_vm9 }
  0xf3   :  { %v8597_v44 = vsel %vm573_vm11, 1.0, %v15694_v25  ;;  %vm542_vm12 = vmand %vm508_vm5, %vm9698_vm1 }
  0xf4   :  { %v730_v45 = vsel %vm639_vm6, %v8597_v44, 0.0  ;;  %vm574_vm13 = vmor %vm476_vm10, %vm542_vm12 }
  0xf5   :  { %728 = vadd.xlane.f32.xlu0 %v727_v37  ;;  %731 = vadd.xlane.f32.xlu1 %v730_v45  ;;  %v8598_v46 = vsel %vm574_vm13, 1.0, %v15694_v25 }
  0xf6   :  { %v733_v38 = vsel %vm639_vm6, %v8598_v46, 0.0 }
  0xf9   :  { %734 = vadd.xlane.f32.xlu0 %v733_v38 }
 0x106   :  { %2357 = vbcast.lane.b32.xlu1 %v9716_v49, 256 }
 0x10a   :  { %2364 = vbcast.lane.b32.xlu1 %v9728_v56, 256 }
 0x10e   :  { %2368 = vbcast.lane.b32.xlu1 %v9728_v56, 264 }
 0x10f   :  { %2361 = vbcast.lane.b32.xlu0 %v9716_v49, 264 }
 0x112   :  { %2375 = vbcast.lane.b32.xlu1 %v9731_v57, 264 }
 0x113   :  { %2371 = vbcast.lane.b32.xlu0 %v9731_v57, 256 }
 0x116   :  { %2382 = vbcast.lane.b32.xlu1 %v9740_v63, 264 }
 0x117   :  { %2378 = vbcast.lane.b32.xlu0 %v9740_v63, 256 }
 0x11a   :  { %2389 = vbcast.lane.b32.xlu1 %v9734_v59, 264 }
 0x11b   :  { %2385 = vbcast.lane.b32.xlu0 %v9734_v59, 256 }
 0x11e   :  { %2396 = vbcast.lane.b32.xlu1 %v9743_v0, 264 }
 0x11f   :  { %2392 = vbcast.lane.b32.xlu0 %v9743_v0, 256 }
 0x122   :  { %2403 = vbcast.lane.b32.xlu1 %v9746_v1, 264 }
 0x123   :  { %2399 = vbcast.lane.b32.xlu0 %v9746_v1, 256 }
 0x126   :  { %2410 = vbcast.lane.b32.xlu1 %v9752_v13, 264 }
 0x127   :  { %2406 = vbcast.lane.b32.xlu0 %v9752_v13, 256 }
 0x12a   :  { %2417 = vbcast.lane.b32.xlu1 %v9755_v14, 264 }
 0x12b   :  { %2413 = vbcast.lane.b32.xlu0 %v9755_v14, 256 }
 0x12e   :  { %2424 = vbcast.lane.b32.xlu1 %v9761_v32, 264 }
 0x12f   :  { %2420 = vbcast.lane.b32.xlu0 %v9761_v32, 256 }
 0x132   :  { %2431 = vbcast.lane.b32.xlu1 %v9766_v42, 264 }
 0x133   :  { %2427 = vbcast.lane.b32.xlu0 %v9766_v42, 256 }
 0x136   :  { %2438 = vbcast.lane.b32.xlu1 %v9773_v47, 264 }
 0x137   :  { %2434 = vbcast.lane.b32.xlu0 %v9773_v47, 256 }
 0x13a   :  { %2445 = vbcast.lane.b32.xlu1 %v9780_v51, 264 }
 0x13b   :  { %2441 = vbcast.lane.b32.xlu0 %v9780_v51, 256 }
 0x13e   :  { %2452 = vbcast.lane.b32.xlu1 %v9786_v58, 264 }
 0x13f   :  { %2448 = vbcast.lane.b32.xlu0 %v9786_v58, 256 }
 0x142   :  { %2459 = vbcast.lane.b32.xlu1 %v9791_v61, 264 }
 0x143   :  { %2455 = vbcast.lane.b32.xlu0 %v9791_v61, 256 }
 0x146   :  { %v10026_v40 = vpop.xlane.xlu0 %641  ;;  %2466 = vbcast.lane.b32.xlu1 %v9796_v6, 264 }
 0x147   :  { %2462 = vbcast.lane.b32.xlu0 %v9796_v6, 256  ;;  %vm820_vm0 = vcmp.eq.f32.partialorder %v10026_v40, %v9631_v10  ;;  %vm822_vm2 = vcmp.eq.f32.partialorder %v10026_v40, %v9634_v12  ;;  %vm824_vm4 = vcmp.eq.f32.partialorder %v10026_v40, %v9642_v16  ;;  %vm826_vm7 = vcmp.eq.f32.partialorder %v10026_v40, %v9645_v17 }
 0x148   :  { %v8599_v55 = vsel %vm820_vm0, 1.0, %v15694_v25  ;;  %v8601_v45 = vsel %vm822_vm2, 1.0, %v15694_v25  ;;  %vm828_vm9 = vcmp.eq.f32.partialorder %v10026_v40, %v9648_v18  ;;  %vm830_vm11 = vcmp.eq.f32.partialorder %v10026_v40, %v9651_v19 }
 0x149   :  { %vm832_vm13 = vcmp.eq.f32.partialorder %v10026_v40, %v9677_v30 }
 0x14a   :  { %v10030_v49 = vpop.xlane.xlu1 %644  ;;  %v10032_v56 = vpop.xlane.xlu0 %647 }
 0x14b   :  { %vm823_vm1 = vcmp.eq.f32.partialorder %v10030_v49, %v9634_v12  ;;  %vm821_vm14 = vcmp.eq.f32.partialorder %v10030_v49, %v9631_v10  ;;  %vm825_vm15 = vcmp.eq.f32.partialorder %v10030_v49, %v9642_v16  ;;  %vm827_vm3 = vcmp.eq.f32.partialorder %v10030_v49, %v9645_v17 }
 0x14c   :  { %v8602_v21 = vsel %vm823_vm1, 1.0, %v15694_v25  ;;  %v8600_v29 = vsel %vm821_vm14, 1.0, %v15694_v25  ;;  %v8604_v44 = vsel %vm825_vm15, 1.0, %v15694_v25  ;;  %v8606_v48 = vsel %vm827_vm3, 1.0, %v15694_v25 }
 0x14d   :  { %vm829_vm5 = vcmp.eq.f32.partialorder %v10030_v49, %v9648_v18  ;;  %vm831_vm8 = vcmp.eq.f32.partialorder %v10030_v49, %v9651_v19  ;;  %vm833_vm10 = vcmp.eq.f32.partialorder %v10030_v49, %v9677_v30  ;;  %vm835_vm12 = vcmp.eq.f32.partialorder %v10030_v49, %v9683_v33 }
 0x14e   :  { %v10034_v57 = vpop.xlane.xlu1 %653  ;;  %v10036_v59 = vpop.xlane.xlu0 %650  ;;  %vm837_vm0 = vcmp.eq.f32.partialorder %v10030_v49, %v9703_v41  ;;  %vm834_vm1 = vcmp.eq.f32.partialorder %v10026_v40, %v9683_v33  ;;  %vm839_vm14 = vcmp.eq.f32.partialorder %v10030_v49, %v9658_v22  ;;  %vm836_vm15 = vcmp.eq.f32.partialorder %v10026_v40, %v9703_v41 }
 0x14f   :  { %vm841_vm2 = vcmp.eq.f32.partialorder %v10030_v49, %v9661_v23  ;;  %vm838_vm3 = vcmp.eq.f32.partialorder %v10026_v40, %v9658_v22 }
 0x152   :  { %v10038_v63 = vpop.xlane.xlu1 %659  ;;  %v10040_v0 = vpop.xlane.xlu0 %656 }
 0x156   :  { %v10042_v1 = vpop.xlane.xlu1 %665  ;;  %v10044_v13 = vpop.xlane.xlu0 %662 }
 0x15a   :  { %v10046_v14 = vpop.xlane.xlu1 %671  ;;  %v10048_v32 = vpop.xlane.xlu0 %668 }
 0x15e   :  { %v10050_v42 = vpop.xlane.xlu1 %677  ;;  %v10052_v47 = vpop.xlane.xlu0 %674 }
 0x15f   :  { %15731 = vst [vmem:[#allocation19_spill] sm:$0xff] %v10050_v42 }
 0x162   :  { %v10054_v51 = vpop.xlane.xlu1 %683  ;;  %v10056_v58 = vpop.xlane.xlu0 %680 }
 0x163   :  { %15732 = vst [vmem:[#allocation20_spill] sm:$0xff] %v10054_v51  ;;  %15733 = vst [vmem:[#allocation21_spill] sm:$0xff] %v10056_v58 }
 0x166   :  { %v10058_v61 = vpop.xlane.xlu1 %689  ;;  %v10060_v6 = vpop.xlane.xlu0 %686 }
 0x167   :  { %15734 = vst [vmem:[#allocation22_spill] sm:$0xff] %v10060_v6 }
 0x16a   :  { %v10062_v50 = vpop.xlane.xlu1 %695  ;;  %v10064_v15 = vpop.xlane.xlu0 %692 }
 0x16e   :  { %v10066_v52 = vpop.xlane.xlu1 %701  ;;  %v10068_v53 = vpop.xlane.xlu0 %698 }
 0x172   :  { %v10070_v54 = vpop.xlane.xlu1 %707  ;;  %v10072_v60 = vpop.xlane.xlu0 %704 }
 0x176   :  { %v10074_v4 = vpop.xlane.xlu1 %713  ;;  %v10076_v62 = vpop.xlane.xlu0 %710 }
 0x177   :  { %15735 = vst [vmem:[#allocation23_spill] sm:$0xff] %v10074_v4 }
 0x17a   :  { %v10078_v36 = vpop.xlane.xlu1 %719  ;;  %v10080_v3 = vpop.xlane.xlu0 %716 }
 0x17b   :  { %15736 = vst [vmem:[#allocation24_spill] sm:$0xff] %v10078_v36  ;;  %15737 = vst [vmem:[#allocation25_spill] sm:$0xff] %v10080_v3 }
 0x17e   :  { %v10082_v7 = vpop.xlane.xlu1 %725  ;;  %v10084_v5 = vpop.xlane.xlu0 %722 }
 0x17f   :  { %15738 = vst [vmem:[#allocation26_spill] sm:$0xff] %v10082_v7  ;;  %15739 = vst [vmem:[#allocation27_spill] sm:$0xff] %v10084_v5 }
 0x182   :  { %v10086_v8 = vpop.xlane.xlu1 %731  ;;  %v10088_v2 = vpop.xlane.xlu0 %728 }
 0x183   :  { %15740 = vst [vmem:[#allocation28_spill] sm:$0xff] %v10086_v8  ;;  %15741 = vst [vmem:[#allocation29_spill] sm:$0xff] %v10088_v2 }
 0x186   :  { %v10092_v9 = vpop.permute.xlu1 %2357  ;;  %v10094_v28 = vpop.xlane.xlu0 %734 }
 0x187   :  { %15742 = vst [vmem:[#allocation30_spill] sm:$0xff] %v10094_v28  ;;  %v2500_v11 = vmul.f32 %v8599_v55, %v10092_v9  ;;  %v2502_v38 = vmul.f32 %v8601_v45, %v10092_v9  ;;  %v8603_v55 = vsel %vm824_vm4, 1.0, %v15694_v25  ;;  %v8610_v45 = vsel %vm831_vm8, 1.0, %v15694_v25 }
 0x188   :  { %vm843_vm4 = vcmp.eq.f32.partialorder %v10030_v49, %v9664_v24  ;;  %vm842_vm8 = vcmp.eq.f32.partialorder %v10026_v40, %v9664_v24 }
 0x189   :  { %3525 = vperm.xlu0 %9374, %v2500_v11  }
 0x18a   :  { %v10102_v20 = vpop.permute.xlu0 %2361 }
 0x18b   :  { %v2503_v35 = vmul.f32 %v8602_v21, %v10102_v20  ;;  %v2501_v37 = vmul.f32 %v8600_v29, %v10102_v20  ;;  %v2505_v46 = vmul.f32 %v8604_v44, %v10102_v20  ;;  %v2507_v11 = vmul.f32 %v8606_v48, %v10102_v20 }
 0x18c   :  { %v2504_v21 = vmul.f32 %v8603_v55, %v10092_v9  ;;  %v8608_v29 = vsel %vm829_vm5, 1.0, %v15694_v25  ;;  %v8612_v55 = vsel %vm833_vm10, 1.0, %v15694_v25  ;;  %vm840_vm5 = vcmp.eq.f32.partialorder %v10026_v40, %v9661_v23 }
 0x18d   :  { %3534 = vperm.xlu0 %9374, %v2503_v35   ;;  %3528 = vperm.xlu1 %9375, %v2501_v37   ;;  %v8605_v35 = vsel %vm826_vm7, 1.0, %v15694_v25  ;;  %v2509_v37 = vmul.f32 %v8608_v29, %v10102_v20  ;;  %vm845_vm7 = vcmp.eq.f32.partialorder %v10030_v49, %v9669_v26  ;;  %vm844_vm10 = vcmp.eq.f32.partialorder %v10026_v40, %v9669_v26 }
 0x18e   :  { %v2506_v44 = vmul.f32 %v8605_v35, %v10092_v9  ;;  %v8614_v35 = vsel %vm835_vm12, 1.0, %v15694_v25  ;;  %vm846_vm12 = vcmp.eq.f32.partialorder %v10026_v40, %v9672_v27 }
 0x191   :  { %3540 = vperm.xlu0 %9374, %v2505_v46   ;;  %3531 = vperm.xlu1 %9375, %v2502_v38   ;;  %v8607_v46 = vsel %vm828_vm9, 1.0, %v15694_v25  ;;  %v2511_v38 = vmul.f32 %v8610_v45, %v10102_v20  ;;  %vm847_vm9 = vcmp.eq.f32.partialorder %v10030_v49, %v9672_v27 }
 0x192   :  { %v2508_v48 = vmul.f32 %v8607_v46, %v10092_v9  ;;  %v8616_v46 = vsel %vm837_vm0, 1.0, %v15694_v25  ;;  %vm848_vm0 = vcmp.eq.f32.partialorder %v10026_v40, %v9680_v31 }
 0x193   :  { %v8627_v39 = vsel %vm848_vm0, 1.0, %v15694_v25  ;;  %vm867_vm0 = vcmp.eq.f32.partialorder %v10036_v59, %v9683_v33 }
 0x195   :  { %3546 = vperm.xlu0 %9374, %v2507_v11   ;;  %3537 = vperm.xlu1 %9375, %v2504_v21   ;;  %v8609_v11 = vsel %vm830_vm11, 1.0, %v15694_v25  ;;  %v2513_v21 = vmul.f32 %v8612_v55, %v10102_v20  ;;  %vm849_vm11 = vcmp.eq.f32.partialorder %v10030_v49, %v9680_v31 }
 0x196   :  { %v2510_v29 = vmul.f32 %v8609_v11, %v10092_v9  ;;  %v8618_v11 = vsel %vm839_vm14, 1.0, %v15694_v25  ;;  %vm850_vm14 = vcmp.eq.f32.partialorder %v10026_v40, %v9686_v34 }
 0x199   :  { %3552 = vperm.xlu0 %9374, %v2509_v37   ;;  %3543 = vperm.xlu1 %9375, %v2506_v44   ;;  %v8611_v37 = vsel %vm832_vm13, 1.0, %v15694_v25  ;;  %v2515_v44 = vmul.f32 %v8614_v35, %v10102_v20  ;;  %vm851_vm13 = vcmp.eq.f32.partialorder %v10030_v49, %v9686_v34 }
 0x19a   :  { %v2512_v45 = vmul.f32 %v8611_v37, %v10092_v9  ;;  %v10176_v37 = vpop.permute.xlu1 %2364 }
 0x19d   :  { %3558 = vperm.xlu0 %9374, %v2511_v38   ;;  %3549 = vperm.xlu1 %9375, %v2508_v48   ;;  %v8613_v38 = vsel %vm834_vm1, 1.0, %v15694_v25  ;;  %v2517_v48 = vmul.f32 %v8616_v46, %v10102_v20  ;;  %vm853_vm1 = vcmp.eq.f32.partialorder %v10036_v59, %v9631_v10 }
 0x19e   :  { %v2514_v55 = vmul.f32 %v8613_v38, %v10092_v9  ;;  %v8632_v49 = vsel %vm853_vm1, 1.0, %v15694_v25  ;;  %vm864_vm1 = vcmp.eq.f32.partialorder %v10032_v56, %v9677_v30 }
 0x1a1   :  { %3564 = vperm.xlu0 %9374, %v2513_v21   ;;  %3555 = vperm.xlu1 %9375, %v2510_v29   ;;  %v8615_v21 = vsel %vm836_vm15, 1.0, %v15694_v25  ;;  %v2519_v29 = vmul.f32 %v8618_v11, %v10102_v20  ;;  %vm855_vm15 = vcmp.eq.f32.partialorder %v10036_v59, %v9634_v12 }
 0x1a2   :  { %v2516_v35 = vmul.f32 %v8615_v21, %v10092_v9  ;;  %v8634_v40 = vsel %vm855_vm15, 1.0, %v15694_v25  ;;  %vm866_vm15 = vcmp.eq.f32.partialorder %v10032_v56, %v9683_v33 }
 0x1a3   :  { %v8645_v6 = vsel %vm866_vm15, 1.0, %v15694_v25  ;;  %vm885_vm15 = vcmp.eq.f32.partialorder %v10040_v0, %v9631_v10 }
 0x1a5   :  { %3570 = vperm.xlu0 %9374, %v2515_v44   ;;  %3561 = vperm.xlu1 %9375, %v2512_v45   ;;  %v8620_v44 = vsel %vm841_vm2, 1.0, %v15694_v25  ;;  %v8617_v45 = vsel %vm838_vm3, 1.0, %v15694_v25  ;;  %vm852_vm2 = vcmp.eq.f32.partialorder %v10032_v56, %v9631_v10  ;;  %vm857_vm3 = vcmp.eq.f32.partialorder %v10036_v59, %v9642_v16 }
 0x1a6   :  { %v2521_v46 = vmul.f32 %v8620_v44, %v10102_v20  ;;  %v2518_v38 = vmul.f32 %v8617_v45, %v10092_v9  ;;  %v8624_v44 = vsel %vm845_vm7, 1.0, %v15694_v25  ;;  %v8621_v45 = vsel %vm842_vm8, 1.0, %v15694_v25 }
 0x1a7   :  { %vm856_vm7 = vcmp.eq.f32.partialorder %v10032_v56, %v9642_v16  ;;  %vm861_vm8 = vcmp.eq.f32.partialorder %v10036_v59, %v9648_v18 }
 0x1a9   :  { %3576 = vperm.xlu0 %9374, %v2517_v48   ;;  %3567 = vperm.xlu1 %9375, %v2514_v55   ;;  %v8622_v48 = vsel %vm843_vm4, 1.0, %v15694_v25  ;;  %v8619_v55 = vsel %vm840_vm5, 1.0, %v15694_v25  ;;  %vm854_vm4 = vcmp.eq.f32.partialorder %v10032_v56, %v9634_v12  ;;  %vm859_vm5 = vcmp.eq.f32.partialorder %v10036_v59, %v9645_v17 }
 0x1aa   :  { %v2523_v11 = vmul.f32 %v8622_v48, %v10102_v20  ;;  %v2520_v21 = vmul.f32 %v8619_v55, %v10092_v9  ;;  %v8626_v55 = vsel %vm847_vm9, 1.0, %v15694_v25  ;;  %vm858_vm9 = vcmp.eq.f32.partialorder %v10032_v56, %v9645_v17 }
 0x1ad   :  { %3582 = vperm.xlu0 %9374, %v2519_v29   ;;  %3573 = vperm.xlu1 %9375, %v2516_v35   ;;  %v10194_v29 = vpop.permute.xlu1 %2368  ;;  %v10196_v35 = vpop.permute.xlu0 %2371 }
 0x1ae   :  { %v2533_v8 = vmul.f32 %v8632_v49, %v10194_v29  ;;  %v8636_v49 = vsel %vm857_vm3, 1.0, %v15694_v25  ;;  %vm868_vm3 = vcmp.eq.f32.partialorder %v10032_v56, %v9703_v41 }
 0x1af   :  { %v8647_v36 = vsel %vm868_vm3, 1.0, %v15694_v25  ;;  %vm887_vm3 = vcmp.eq.f32.partialorder %v10040_v0, %v9634_v12 }
 0x1b1   :  { %3588 = vperm.xlu0 %9374, %v2521_v46   ;;  %3579 = vperm.xlu1 %9375, %v2518_v38   ;;  %v2525_v46 = vmul.f32 %v8624_v44, %v10102_v20  ;;  %v2522_v38 = vmul.f32 %v8621_v45, %v10092_v9  ;;  %v10206_v48 = vpop.permute.xlu1 %2375  ;;  %v10216_v45 = vpop.permute.xlu0 %2378 }
 0x1b5   :  { %3594 = vperm.xlu0 %9374, %v2523_v11   ;;  %3585 = vperm.xlu1 %9375, %v2520_v21   ;;  %v8623_v11 = vsel %vm844_vm10, 1.0, %v15694_v25  ;;  %v2527_v21 = vmul.f32 %v8626_v55, %v10102_v20  ;;  %vm863_vm10 = vcmp.eq.f32.partialorder %v10036_v59, %v9651_v19 }
 0x1b6   :  { %v2524_v44 = vmul.f32 %v8623_v11, %v10092_v9  ;;  %v10226_v11 = vpop.permute.xlu1 %2382 }
 0x1b9   :  { %3600 = vperm.xlu0 %9374, %v2525_v46   ;;  %3591 = vperm.xlu1 %9375, %v2522_v38   ;;  %v8628_v46 = vsel %vm849_vm11, 1.0, %v15694_v25  ;;  %v8625_v38 = vsel %vm846_vm12, 1.0, %v15694_v25  ;;  %vm860_vm11 = vcmp.eq.f32.partialorder %v10032_v56, %v9648_v18  ;;  %vm865_vm12 = vcmp.eq.f32.partialorder %v10036_v59, %v9677_v30 }
 0x1ba   :  { %v2529_v43 = vmul.f32 %v8628_v46, %v10102_v20  ;;  %v2526_v55 = vmul.f32 %v8625_v38, %v10092_v9  ;;  %v2528_v38 = vmul.f32 %v8627_v39, %v10092_v9  ;;  %v8639_v2 = vsel %vm860_vm11, 1.0, %v15694_v25 }
 0x1bb   :  { %vm879_vm11 = vcmp.eq.f32.partialorder %v10036_v59, %v9672_v27 }
 0x1bd   :  { %3606 = vperm.xlu0 %9374, %v2527_v21   ;;  %3597 = vperm.xlu1 %9375, %v2524_v44   ;;  %v10228_v21 = vpop.permute.xlu0 %2385  ;;  %v8630_v44 = vsel %vm851_vm13, 1.0, %v15694_v25  ;;  %vm862_vm13 = vcmp.eq.f32.partialorder %v10032_v56, %v9651_v19 }
 0x1be   :  { %v2531_v46 = vmul.f32 %v8630_v44, %v10102_v20  ;;  %v8631_v44 = vsel %vm852_vm2, 1.0, %v15694_v25  ;;  %vm871_vm2 = vcmp.eq.f32.partialorder %v10036_v59, %v9658_v22 }
 0x1c1   :  { %3612 = vperm.xlu0 %9374, %v2529_v43   ;;  %3603 = vperm.xlu1 %9375, %v2526_v55   ;;  %v10238_v43 = vpop.permute.xlu1 %2389  ;;  %v8629_v55 = vsel %vm850_vm14, 1.0, %v15694_v25  ;;  %v10248_v39 = vpop.permute.xlu0 %2392  ;;  %vm869_vm14 = vcmp.eq.f32.partialorder %v10036_v59, %v9703_v41 }
 0x1c2   :  { %v2530_v20 = vmul.f32 %v8629_v55, %v10092_v9  ;;  %v8633_v55 = vsel %vm854_vm4, 1.0, %v15694_v25  ;;  %vm873_vm4 = vcmp.eq.f32.partialorder %v10036_v59, %v9661_v23 }
 0x1c5   :  { %3618 = vperm.xlu0 %9374, %v2531_v46   ;;  %3609 = vperm.xlu1 %9375, %v2528_v38   ;;  %v2535_v46 = vmul.f32 %v8634_v40, %v10194_v29  ;;  %v2532_v38 = vmul.f32 %v8631_v44, %v10176_v37  ;;  %v10258_v9 = vpop.permute.xlu1 %2396  ;;  %v2534_v40 = vmul.f32 %v8633_v55, %v10176_v37 }
 0x1c9   :  { %3624 = vperm.xlu0 %9374, %v2533_v8   ;;  %3615 = vperm.xlu1 %9375, %v2530_v20   ;;  %v10260_v8 = vpop.permute.xlu0 %2399  ;;  %v2537_v20 = vmul.f32 %v8636_v49, %v10194_v29  ;;  %v10270_v44 = vpop.permute.xlu1 %2403 }
 0x1ca   :  { %15743 = vst [vmem:[#allocation31_spill] sm:$0xff] %v10260_v8  ;;  %15744 = vst [vmem:[#allocation32_spill] sm:$0xff] %v10270_v44 }
 0x1cd   :  { %3630 = vperm.xlu0 %9374, %v2535_v46   ;;  %3621 = vperm.xlu1 %9375, %v2532_v38   ;;  %v8638_v46 = vsel %vm859_vm5, 1.0, %v15694_v25  ;;  %v8635_v38 = vsel %vm856_vm7, 1.0, %v15694_v25  ;;  %v10280_v55 = vpop.permute.xlu0 %2406  ;;  %vm870_vm5 = vcmp.eq.f32.partialorder %v10032_v56, %v9658_v22  ;;  %vm875_vm7 = vcmp.eq.f32.partialorder %v10036_v59, %v9664_v24 }
 0x1ce   :  { %v2539_v28 = vmul.f32 %v8638_v46, %v10194_v29  ;;  %v2536_v49 = vmul.f32 %v8635_v38, %v10176_v37  ;;  %15745 = vst [vmem:[#allocation33_spill] sm:$0xff] %v10280_v55  ;;  %v10290_v38 = vpop.permute.xlu1 %2410  ;;  %v8641_v55 = vsel %vm862_vm13, 1.0, %v15694_v25  ;;  %vm881_vm13 = vcmp.eq.f32.partialorder %v10036_v59, %v9680_v31 }
 0x1cf   :  { %15746 = vst [vmem:[#allocation34_spill] sm:$0xff] %v10290_v38 }
 0x1d1   :  { %3636 = vperm.xlu0 %9374, %v2537_v20   ;;  %3627 = vperm.xlu1 %9375, %v2534_v40   ;;  %v8640_v20 = vsel %vm861_vm8, 1.0, %v15694_v25  ;;  %v8637_v40 = vsel %vm858_vm9, 1.0, %v15694_v25  ;;  %vm872_vm8 = vcmp.eq.f32.partialorder %v10032_v56, %v9661_v23  ;;  %vm877_vm9 = vcmp.eq.f32.partialorder %v10036_v59, %v9669_v26 }
 0x1d2   :  { %v2541_v7 = vmul.f32 %v8640_v20, %v10194_v29  ;;  %v2538_v46 = vmul.f32 %v8637_v40, %v10176_v37  ;;  %v2540_v40 = vmul.f32 %v8639_v2, %v10176_v37  ;;  %v8651_v42 = vsel %vm872_vm8, 1.0, %v15694_v25 }
 0x1d3   :  { %vm888_vm8 = vcmp.eq.f32.partialorder %v10034_v57, %v9642_v16 }
 0x1d5   :  { %3642 = vperm.xlu0 %9374, %v2539_v28   ;;  %3633 = vperm.xlu1 %9375, %v2536_v49   ;;  %v10292_v28 = vpop.permute.xlu0 %2413  ;;  %v8642_v49 = vsel %vm863_vm10, 1.0, %v15694_v25  ;;  %vm874_vm10 = vcmp.eq.f32.partialorder %v10032_v56, %v9664_v24 }
 0x1d6   :  { %v2543_v20 = vmul.f32 %v8642_v49, %v10194_v29  ;;  %v2542_v49 = vmul.f32 %v8641_v55, %v10176_v37  ;;  %v8653_v44 = vsel %vm874_vm10, 1.0, %v15694_v25  ;;  %vm890_vm10 = vcmp.eq.f32.partialorder %v10034_v57, %v9645_v17 }
 0x1d9   :  { %3648 = vperm.xlu0 %9374, %v2541_v7   ;;  %3639 = vperm.xlu1 %9375, %v2538_v46   ;;  %v10302_v7 = vpop.permute.xlu1 %2417  ;;  %v8644_v46 = vsel %vm865_vm12, 1.0, %v15694_v25  ;;  %v10312_v2 = vpop.permute.xlu0 %2420  ;;  %vm876_vm12 = vcmp.eq.f32.partialorder %v10032_v56, %v9669_v26 }
 0x1da   :  { %v2545_v51 = vmul.f32 %v8644_v46, %v10194_v29 }
 0x1dd   :  { %3654 = vperm.xlu0 %9374, %v2543_v20   ;;  %3645 = vperm.xlu1 %9375, %v2540_v40   ;;  %v8646_v20 = vsel %vm867_vm0, 1.0, %v15694_v25  ;;  %v8643_v40 = vsel %vm864_vm1, 1.0, %v15694_v25  ;;  %v10322_v55 = vpop.permute.xlu1 %2424  ;;  %vm878_vm0 = vcmp.eq.f32.partialorder %v10032_v56, %v9672_v27  ;;  %vm883_vm1 = vcmp.eq.f32.partialorder %v10036_v59, %v9686_v34 }
 0x1de   :  { %v2547_v38 = vmul.f32 %v8646_v20, %v10194_v29  ;;  %v2544_v46 = vmul.f32 %v8643_v40, %v10176_v37  ;;  %v2546_v40 = vmul.f32 %v8645_v6, %v10176_v37 }
 0x1e1   :  { %3660 = vperm.xlu0 %9374, %v2545_v51   ;;  %3651 = vperm.xlu1 %9375, %v2542_v49   ;;  %v10324_v51 = vpop.permute.xlu0 %2427  ;;  %v8648_v49 = vsel %vm869_vm14, 1.0, %v15694_v25  ;;  %vm880_vm14 = vcmp.eq.f32.partialorder %v10032_v56, %v9680_v31 }
 0x1e2   :  { %v2549_v20 = vmul.f32 %v8648_v49, %v10194_v29  ;;  %v2548_v49 = vmul.f32 %v8647_v36, %v10176_v37 }
 0x1e5   :  { %3666 = vperm.xlu0 %9374, %v2547_v38   ;;  %3657 = vperm.xlu1 %9375, %v2544_v46   ;;  %v10334_v38 = vpop.permute.xlu1 %2431  ;;  %v8650_v46 = vsel %vm871_vm2, 1.0, %v15694_v25  ;;  %v10344_v6 = vpop.permute.xlu0 %2434  ;;  %vm882_vm2 = vcmp.eq.f32.partialorder %v10032_v56, %v9686_v34 }
 0x1e6   :  { %v2551_v5 = vmul.f32 %v8650_v46, %v10194_v29  ;;  %15747 = vst [vmem:[#allocation35_spill] sm:$0xff] %v10344_v6 }
 0x1e9   :  { %3672 = vperm.xlu0 %9374, %v2549_v20   ;;  %3663 = vperm.xlu1 %9375, %v2546_v40   ;;  %v8652_v20 = vsel %vm873_vm4, 1.0, %v15694_v25  ;;  %v8649_v40 = vsel %vm870_vm5, 1.0, %v15694_v25  ;;  %v10354_v36 = vpop.permute.xlu1 %2438  ;;  %vm884_vm4 = vcmp.eq.f32.partialorder %v10034_v57, %v9631_v10  ;;  %vm889_vm5 = vcmp.eq.f32.partialorder %v10040_v0, %v9642_v16 }
 0x1ea   :  { %v2553_v8 = vmul.f32 %v8652_v20, %v10194_v29  ;;  %v2550_v46 = vmul.f32 %v8649_v40, %v10176_v37  ;;  %v2552_v40 = vmul.f32 %v8651_v42, %v10176_v37 }
 0x1ed   :  { %3678 = vperm.xlu0 %9374, %v2551_v5   ;;  %3669 = vperm.xlu1 %9375, %v2548_v49   ;;  %v10356_v5 = vpop.permute.xlu0 %2441  ;;  %v8654_v49 = vsel %vm875_vm7, 1.0, %v15694_v25  ;;  %vm886_vm7 = vcmp.eq.f32.partialorder %v10034_v57, %v9634_v12 }
 0x1ee   :  { %15748 = vst [vmem:[#allocation36_spill] sm:$0xff] %v10356_v5  ;;  %v2555_v20 = vmul.f32 %v8654_v49, %v10194_v29  ;;  %v2554_v49 = vmul.f32 %v8653_v44, %v10176_v37 }
 0x1f1   :  { %3684 = vperm.xlu0 %9374, %v2553_v8   ;;  %3675 = vperm.xlu1 %9375, %v2550_v46   ;;  %v10366_v8 = vpop.permute.xlu1 %2445  ;;  %v8656_v46 = vsel %vm877_vm9, 1.0, %v15694_v25  ;;  %v10376_v42 = vpop.permute.xlu0 %2448  ;;  %vm891_vm9 = vcmp.eq.f32.partialorder %v10040_v0, %v9645_v17 }
 0x1f2   :  { %15749 = vst [vmem:[#allocation37_spill] sm:$0xff] %v10366_v8  ;;  %v2557_v58 = vmul.f32 %v8656_v46, %v10194_v29  ;;  %15750 = vst [vmem:[#allocation38_spill] sm:$0xff] %v10376_v42  ;;  %v8657_v42 = vsel %vm878_vm0, 1.0, %v15694_v25  ;;  %vm894_vm0 = vcmp.eq.f32.partialorder %v10034_v57, %v9651_v19 }
 0x1f5   :  { %3690 = vperm.xlu0 %9374, %v2555_v20   ;;  %3681 = vperm.xlu1 %9375, %v2552_v40   ;;  %v8658_v20 = vsel %vm879_vm11, 1.0, %v15694_v25  ;;  %v8655_v40 = vsel %vm876_vm12, 1.0, %v15694_v25  ;;  %v10386_v44 = vpop.permute.xlu1 %2452  ;;  %vm893_vm11 = vcmp.eq.f32.partialorder %v10040_v0, %v9648_v18  ;;  %vm892_vm12 = vcmp.eq.f32.partialorder %v10034_v57, %v9648_v18 }
 0x1f6   :  { %v2559_v5 = vmul.f32 %v8658_v20, %v10194_v29  ;;  %v2556_v46 = vmul.f32 %v8655_v40, %v10176_v37  ;;  %15751 = vst [vmem:[#allocation39_spill] sm:$0xff] %v10386_v44  ;;  %v2558_v40 = vmul.f32 %v8657_v42, %v10176_v37  ;;  %v8664_v42 = vsel %vm885_vm15, 1.0, %v15694_v25 }
 0x1f7   :  { %vm899_vm15 = vcmp.eq.f32.partialorder %v10040_v0, %v9683_v33 }
 0x1f9   :  { %3696 = vperm.xlu0 %9374, %v2557_v58   ;;  %3687 = vperm.xlu1 %9375, %v2554_v49   ;;  %v10388_v58 = vpop.permute.xlu0 %2455  ;;  %v8660_v49 = vsel %vm881_vm13, 1.0, %v15694_v25  ;;  %vm895_vm13 = vcmp.eq.f32.partialorder %v10040_v0, %v9651_v19 }
 0x1fa   :  { %15752 = vst [vmem:[#allocation40_spill] sm:$0xff] %v10388_v58  ;;  %v2561_v20 = vmul.f32 %v8660_v49, %v10194_v29  ;;  %v8659_v58 = vsel %vm880_vm14, 1.0, %v15694_v25  ;;  %vm896_vm14 = vcmp.eq.f32.partialorder %v10034_v57, %v9677_v30 }
 0x1fb   :  { %v2560_v49 = vmul.f32 %v8659_v58, %v10176_v37 }
 0x1fd   :  { %3702 = vperm.xlu0 %9374, %v2559_v5   ;;  %3693 = vperm.xlu1 %9375, %v2556_v46   ;;  %v10398_v5 = vpop.permute.xlu1 %2459  ;;  %v8662_v46 = vsel %vm883_vm1, 1.0, %v15694_v25  ;;  %v10408_v59 = vpop.permute.xlu0 %2462  ;;  %vm897_vm1 = vcmp.eq.f32.partialorder %v10040_v0, %v9677_v30 }
 0x1fe   :  { %15753 = vst [vmem:[#allocation41_spill] sm:$0xff] %v10398_v5  ;;  %v2563_v44 = vmul.f32 %v8662_v46, %v10194_v29  ;;  %15754 = vst [vmem:[#allocation42_spill] sm:$0xff] %v10408_v59  ;;  %v8663_v46 = vsel %vm884_vm4, 1.0, %v15694_v25  ;;  %vm900_vm4 = vcmp.eq.f32.partialorder %v10034_v57, %v9703_v41 }
 0x201   :  { %3708 = vperm.xlu0 %9374, %v2561_v20   ;;  %3699 = vperm.xlu1 %9375, %v2558_v40   ;;  %v8661_v20 = vsel %vm882_vm2, 1.0, %v15694_v25  ;;  %v2565_v40 = vmul.f32 %v8664_v42, %v10206_v48  ;;  %v10418_v58 = vpop.permute.xlu1 %2466  ;;  %vm898_vm2 = vcmp.eq.f32.partialorder %v10034_v57, %v9683_v33 }
 0x202   :  { %v2562_v29 = vmul.f32 %v8661_v20, %v10176_v37  ;;  %15755 = vst [vmem:[#allocation43_spill] sm:$0xff] %v10418_v58  ;;  %v2564_v37 = vmul.f32 %v8663_v46, %v10196_v35 }
 0x205   :  { %3714 = vperm.xlu0 %9374, %v2563_v44   ;;  %3705 = vperm.xlu1 %9375, %v2560_v49   ;;  %v8666_v44 = vsel %vm887_vm3, 1.0, %v15694_v25  ;;  %vm901_vm3 = vcmp.eq.f32.partialorder %v10040_v0, %v9703_v41 }
 0x206   :  { %v2567_v49 = vmul.f32 %v8666_v44, %v10206_v48 }
 0x208   :  { %v10420_v56 = vpop.permute.xlu0 %3525 }
 0x209   :  { %15756 = vst [vmem:[#allocation44_spill] sm:$0xff] %v10420_v56  ;;  %3720 = vperm.xlu0 %9374, %v2565_v40   ;;  %3711 = vperm.xlu1 %9375, %v2562_v29   ;;  %v8668_v40 = vsel %vm889_vm5, 1.0, %v15694_v25  ;;  %v8665_v29 = vsel %vm886_vm7, 1.0, %v15694_v25  ;;  %vm903_vm5 = vcmp.eq.f32.partialorder %v10040_v0, %v9658_v22  ;;  %vm902_vm7 = vcmp.eq.f32.partialorder %v10034_v57, %v9658_v22 }
 0x20a   :  { %v2569_v44 = vmul.f32 %v8668_v40, %v10206_v48  ;;  %v2566_v46 = vmul.f32 %v8665_v29, %v10196_v35 }
 0x20c   :  { %v10430_v42 = vpop.permute.xlu1 %3528  ;;  %v10432_v20 = vpop.permute.xlu0 %3534 }
 0x20d   :  { %15757 = vst [vmem:[#allocation45_spill] sm:$0xff] %v10430_v42  ;;  %15758 = vst [vmem:[#allocation46_spill] sm:$0xff] %v10432_v20  ;;  %3726 = vperm.xlu0 %9374, %v2567_v49   ;;  %3717 = vperm.xlu1 %9375, %v2564_v37   ;;  %v8667_v49 = vsel %vm888_vm8, 1.0, %v15694_v25  ;;  %v8670_v37 = vsel %vm891_vm9, 1.0, %v15694_v25  ;;  %vm905_vm8 = vcmp.eq.f32.partialorder %v10040_v0, %v9661_v23 }
 0x20e   :  { %v2568_v40 = vmul.f32 %v8667_v49, %v10196_v35  ;;  %v2571_v29 = vmul.f32 %v8670_v37, %v10206_v48  ;;  %vm904_vm9 = vcmp.eq.f32.partialorder %v10034_v57, %v9661_v23 }
 0x210   :  { %v10442_v56 = vpop.permute.xlu1 %3531  ;;  %v10444_v42 = vpop.permute.xlu0 %3540 }
 0x211   :  { %15759 = vst [vmem:[#allocation47_spill] sm:$0xff] %v10442_v56  ;;  %15760 = vst [vmem:[#allocation48_spill] sm:$0xff] %v10444_v42  ;;  %3732 = vperm.xlu0 %9374, %v2569_v44   ;;  %3723 = vperm.xlu1 %9375, %v2566_v46   ;;  %v8669_v44 = vsel %vm890_vm10, 1.0, %v15694_v25  ;;  %v8672_v46 = vsel %vm893_vm11, 1.0, %v15694_v25  ;;  %vm907_vm10 = vcmp.eq.f32.partialorder %v10040_v0, %v9664_v24 }
 0x212   :  { %v2570_v49 = vmul.f32 %v8669_v44, %v10196_v35  ;;  %v2573_v37 = vmul.f32 %v8672_v46, %v10206_v48  ;;  %vm906_vm11 = vcmp.eq.f32.partialorder %v10034_v57, %v9664_v24 }
 0x214   :  { %v10454_v20 = vpop.permute.xlu1 %3537  ;;  %v10456_v56 = vpop.permute.xlu0 %3546 }
 0x215   :  { %15761 = vst [vmem:[#allocation49_spill] sm:$0xff] %v10454_v20  ;;  %15762 = vst [vmem:[#allocation50_spill] sm:$0xff] %v10456_v56  ;;  %3729 = vperm.xlu1 %9375, %v2568_v40   ;;  %3738 = vperm.xlu0 %9374, %v2571_v29   ;;  %v8671_v40 = vsel %vm892_vm12, 1.0, %v15694_v25  ;;  %v8674_v29 = vsel %vm895_vm13, 1.0, %v15694_v25  ;;  %vm909_vm12 = vcmp.eq.f32.partialorder %v10040_v0, %v9669_v26 }
 0x216   :  { %v2572_v44 = vmul.f32 %v8671_v40, %v10196_v35  ;;  %v2575_v46 = vmul.f32 %v8674_v29, %v10206_v48  ;;  %vm908_vm13 = vcmp.eq.f32.partialorder %v10034_v57, %v9669_v26 }
 0x218   :  { %v10466_v42 = vpop.permute.xlu1 %3543  ;;  %v10468_v20 = vpop.permute.xlu0 %3552 }
 0x219   :  { %15763 = vst [vmem:[#allocation51_spill] sm:$0xff] %v10466_v42  ;;  %15764 = vst [vmem:[#allocation52_spill] sm:$0xff] %v10468_v20  ;;  %3735 = vperm.xlu1 %9375, %v2570_v49   ;;  %3744 = vperm.xlu0 %9374, %v2573_v37   ;;  %v8673_v49 = vsel %vm894_vm0, 1.0, %v15694_v25  ;;  %v8676_v37 = vsel %vm897_vm1, 1.0, %v15694_v25  ;;  %vm911_vm0 = vcmp.eq.f32.partialorder %v10040_v0, %v9672_v27 }
 0x21a   :  { %v2574_v40 = vmul.f32 %v8673_v49, %v10196_v35  ;;  %v2577_v29 = vmul.f32 %v8676_v37, %v10206_v48  ;;  %vm910_vm1 = vcmp.eq.f32.partialorder %v10034_v57, %v9672_v27 }
 0x21c   :  { %v10478_v56 = vpop.permute.xlu1 %3549  ;;  %v10480_v42 = vpop.permute.xlu0 %3558 }
 0x21d   :  { %15765 = vst [vmem:[#allocation53_spill] sm:$0xff] %v10478_v56  ;;  %15766 = vst [vmem:[#allocation54_spill] sm:$0xff] %v10480_v42  ;;  %3741 = vperm.xlu1 %9375, %v2572_v44   ;;  %3750 = vperm.xlu0 %9374, %v2575_v46   ;;  %v8675_v44 = vsel %vm896_vm14, 1.0, %v15694_v25  ;;  %v8678_v46 = vsel %vm899_vm15, 1.0, %v15694_v25  ;;  %vm913_vm14 = vcmp.eq.f32.partialorder %v10040_v0, %v9680_v31 }
 0x21e   :  { %v2576_v49 = vmul.f32 %v8675_v44, %v10196_v35  ;;  %v2579_v37 = vmul.f32 %v8678_v46, %v10206_v48  ;;  %vm912_vm15 = vcmp.eq.f32.partialorder %v10034_v57, %v9680_v31 }
 0x220   :  { %v10490_v20 = vpop.permute.xlu1 %3555  ;;  %v10492_v56 = vpop.permute.xlu0 %3564 }
 0x221   :  { %15767 = vst [vmem:[#allocation55_spill] sm:$0xff] %v10490_v20  ;;  %15768 = vst [vmem:[#allocation56_spill] sm:$0xff] %v10492_v56  ;;  %3747 = vperm.xlu1 %9375, %v2574_v40   ;;  %3756 = vperm.xlu0 %9374, %v2577_v29   ;;  %v8677_v40 = vsel %vm898_vm2, 1.0, %v15694_v25  ;;  %v8680_v29 = vsel %vm901_vm3, 1.0, %v15694_v25  ;;  %vm915_vm2 = vcmp.eq.f32.partialorder %v10040_v0, %v9686_v34 }
 0x222   :  { %v2578_v44 = vmul.f32 %v8677_v40, %v10196_v35  ;;  %v2581_v46 = vmul.f32 %v8680_v29, %v10206_v48  ;;  %vm914_vm3 = vcmp.eq.f32.partialorder %v10034_v57, %v9686_v34 }
 0x224   :  { %v10502_v42 = vpop.permute.xlu1 %3561  ;;  %v10504_v20 = vpop.permute.xlu0 %3570 }
 0x225   :  { %15769 = vst [vmem:[#allocation57_spill] sm:$0xff] %v10502_v42  ;;  %15770 = vst [vmem:[#allocation58_spill] sm:$0xff] %v10504_v20  ;;  %3753 = vperm.xlu1 %9375, %v2576_v49   ;;  %3762 = vperm.xlu0 %9374, %v2579_v37   ;;  %v8679_v49 = vsel %vm900_vm4, 1.0, %v15694_v25  ;;  %v8682_v37 = vsel %vm903_vm5, 1.0, %v15694_v25  ;;  %vm917_vm4 = vcmp.eq.f32.partialorder %v10044_v13, %v9631_v10 }
 0x226   :  { %v2580_v40 = vmul.f32 %v8679_v49, %v10196_v35  ;;  %v2583_v29 = vmul.f32 %v8682_v37, %v10206_v48  ;;  %vm916_vm5 = vcmp.eq.f32.partialorder %v10038_v63, %v9631_v10 }
 0x228   :  { %v10514_v56 = vpop.permute.xlu1 %3567  ;;  %v10516_v42 = vpop.permute.xlu0 %3576 }
 0x229   :  { %15771 = vst [vmem:[#allocation59_spill] sm:$0xff] %v10514_v56  ;;  %15772 = vst [vmem:[#allocation60_spill] sm:$0xff] %v10516_v42  ;;  %3759 = vperm.xlu1 %9375, %v2578_v44   ;;  %3768 = vperm.xlu0 %9374, %v2581_v46   ;;  %v8681_v44 = vsel %vm902_vm7, 1.0, %v15694_v25  ;;  %v8684_v46 = vsel %vm905_vm8, 1.0, %v15694_v25  ;;  %vm919_vm7 = vcmp.eq.f32.partialorder %v10044_v13, %v9634_v12 }
 0x22a   :  { %v2582_v49 = vmul.f32 %v8681_v44, %v10196_v35  ;;  %v2585_v37 = vmul.f32 %v8684_v46, %v10206_v48  ;;  %vm918_vm8 = vcmp.eq.f32.partialorder %v10038_v63, %v9634_v12 }
 0x22c   :  { %v10526_v20 = vpop.permute.xlu1 %3573  ;;  %v10528_v56 = vpop.permute.xlu0 %3582 }
 0x22d   :  { %15773 = vst [vmem:[#allocation61_spill] sm:$0xff] %v10526_v20  ;;  %15774 = vst [vmem:[#allocation62_spill] sm:$0xff] %v10528_v56  ;;  %3765 = vperm.xlu1 %9375, %v2580_v40   ;;  %3774 = vperm.xlu0 %9374, %v2583_v29   ;;  %v8683_v40 = vsel %vm904_vm9, 1.0, %v15694_v25  ;;  %v8686_v29 = vsel %vm907_vm10, 1.0, %v15694_v25  ;;  %vm921_vm9 = vcmp.eq.f32.partialorder %v10044_v13, %v9642_v16 }
 0x22e   :  { %v2584_v44 = vmul.f32 %v8683_v40, %v10196_v35  ;;  %v2587_v46 = vmul.f32 %v8686_v29, %v10206_v48  ;;  %vm920_vm10 = vcmp.eq.f32.partialorder %v10038_v63, %v9642_v16 }
 0x230   :  { %v10538_v42 = vpop.permute.xlu1 %3579  ;;  %v10540_v20 = vpop.permute.xlu0 %3588 }
 0x231   :  { %15775 = vst [vmem:[#allocation63_spill] sm:$0xff] %v10538_v42  ;;  %15776 = vst [vmem:[#allocation64_spill] sm:$0xff] %v10540_v20  ;;  %3771 = vperm.xlu1 %9375, %v2582_v49   ;;  %3780 = vperm.xlu0 %9374, %v2585_v37   ;;  %v8685_v49 = vsel %vm906_vm11, 1.0, %v15694_v25  ;;  %v8688_v37 = vsel %vm909_vm12, 1.0, %v15694_v25  ;;  %vm923_vm11 = vcmp.eq.f32.partialorder %v10044_v13, %v9645_v17 }
 0x232   :  { %v2586_v40 = vmul.f32 %v8685_v49, %v10196_v35  ;;  %v2589_v29 = vmul.f32 %v8688_v37, %v10206_v48  ;;  %vm922_vm12 = vcmp.eq.f32.partialorder %v10038_v63, %v9645_v17 }
 0x234   :  { %v10550_v56 = vpop.permute.xlu1 %3585  ;;  %v10552_v42 = vpop.permute.xlu0 %3594 }
 0x235   :  { %15777 = vst [vmem:[#allocation65_spill] sm:$0xff] %v10550_v56  ;;  %15778 = vst [vmem:[#allocation66_spill] sm:$0xff] %v10552_v42  ;;  %3777 = vperm.xlu1 %9375, %v2584_v44   ;;  %3786 = vperm.xlu0 %9374, %v2587_v46   ;;  %v8687_v44 = vsel %vm908_vm13, 1.0, %v15694_v25  ;;  %v8690_v46 = vsel %vm911_vm0, 1.0, %v15694_v25  ;;  %vm925_vm13 = vcmp.eq.f32.partialorder %v10044_v13, %v9648_v18 }
 0x236   :  { %v2588_v49 = vmul.f32 %v8687_v44, %v10196_v35  ;;  %v2591_v37 = vmul.f32 %v8690_v46, %v10206_v48  ;;  %vm924_vm0 = vcmp.eq.f32.partialorder %v10038_v63, %v9648_v18 }
 0x238   :  { %v10562_v20 = vpop.permute.xlu1 %3591  ;;  %v10564_v56 = vpop.permute.xlu0 %3600 }
 0x239   :  { %15779 = vst [vmem:[#allocation67_spill] sm:$0xff] %v10562_v20  ;;  %15780 = vst [vmem:[#allocation68_spill] sm:$0xff] %v10564_v56  ;;  %3783 = vperm.xlu1 %9375, %v2586_v40   ;;  %3792 = vperm.xlu0 %9374, %v2589_v29   ;;  %v8689_v40 = vsel %vm910_vm1, 1.0, %v15694_v25  ;;  %v8692_v29 = vsel %vm913_vm14, 1.0, %v15694_v25  ;;  %vm927_vm1 = vcmp.eq.f32.partialorder %v10044_v13, %v9651_v19 }
 0x23a   :  { %v2590_v44 = vmul.f32 %v8689_v40, %v10196_v35  ;;  %v2593_v46 = vmul.f32 %v8692_v29, %v10206_v48  ;;  %vm926_vm14 = vcmp.eq.f32.partialorder %v10038_v63, %v9651_v19 }
 0x23c   :  { %v10574_v42 = vpop.permute.xlu1 %3597  ;;  %v10576_v20 = vpop.permute.xlu0 %3606 }
 0x23d   :  { %15781 = vst [vmem:[#allocation69_spill] sm:$0xff] %v10574_v42  ;;  %15782 = vst [vmem:[#allocation70_spill] sm:$0xff] %v10576_v20  ;;  %3789 = vperm.xlu1 %9375, %v2588_v49   ;;  %3798 = vperm.xlu0 %9374, %v2591_v37   ;;  %v8691_v49 = vsel %vm912_vm15, 1.0, %v15694_v25  ;;  %v8694_v37 = vsel %vm915_vm2, 1.0, %v15694_v25  ;;  %vm929_vm15 = vcmp.eq.f32.partialorder %v10044_v13, %v9677_v30  ;;  %v15966_v20 = vld [vmem:[#allocation24_spill] sm:$0xff] }
 0x23e   :  { %v2592_v40 = vmul.f32 %v8691_v49, %v10196_v35  ;;  %v2595_v29 = vmul.f32 %v8694_v37, %v10206_v48  ;;  %vm928_vm2 = vcmp.eq.f32.partialorder %v10038_v63, %v9677_v30 }
 0x240   :  { %v10586_v56 = vpop.permute.xlu1 %3603  ;;  %v10588_v42 = vpop.permute.xlu0 %3612 }
 0x241   :  { %15783 = vst [vmem:[#allocation71_spill] sm:$0xff] %v10586_v56  ;;  %15784 = vst [vmem:[#allocation72_spill] sm:$0xff] %v10588_v42  ;;  %3795 = vperm.xlu1 %9375, %v2590_v44   ;;  %3804 = vperm.xlu0 %9374, %v2593_v46   ;;  %v8693_v44 = vsel %vm914_vm3, 1.0, %v15694_v25  ;;  %v8696_v46 = vsel %vm917_vm4, 1.0, %v15694_v25  ;;  %vm931_vm3 = vcmp.eq.f32.partialorder %v10044_v13, %v9683_v33 }
 0x242   :  { %v2594_v49 = vmul.f32 %v8693_v44, %v10196_v35  ;;  %v2597_v48 = vmul.f32 %v8696_v46, %v10226_v11  ;;  %vm930_vm4 = vcmp.eq.f32.partialorder %v10038_v63, %v9683_v33 }
 0x244   :  { %v10598_v0 = vpop.permute.xlu1 %3609  ;;  %v10600_v56 = vpop.permute.xlu0 %3618 }
 0x245   :  { %15785 = vst [vmem:[#allocation73_spill] sm:$0xff] %v10598_v0  ;;  %15786 = vst [vmem:[#allocation74_spill] sm:$0xff] %v10600_v56  ;;  %3801 = vperm.xlu1 %9375, %v2592_v40   ;;  %3810 = vperm.xlu0 %9374, %v2595_v29   ;;  %v8695_v40 = vsel %vm916_vm5, 1.0, %v15694_v25  ;;  %v8698_v29 = vsel %vm919_vm7, 1.0, %v15694_v25  ;;  %vm933_vm5 = vcmp.eq.f32.partialorder %v10044_v13, %v9703_v41 }
 0x246   :  { %v2596_v35 = vmul.f32 %v8695_v40, %v10216_v45  ;;  %v2599_v44 = vmul.f32 %v8698_v29, %v10226_v11  ;;  %vm932_vm7 = vcmp.eq.f32.partialorder %v10038_v63, %v9703_v41 }
 0x248   :  { %v10610_v57 = vpop.permute.xlu1 %3615  ;;  %v10612_v37 = vpop.permute.xlu0 %3624 }
 0x249   :  { %15787 = vst [vmem:[#allocation75_spill] sm:$0xff] %v10610_v57  ;;  %15788 = vst [vmem:[#allocation76_spill] sm:$0xff] %v10612_v37  ;;  %3807 = vperm.xlu1 %9375, %v2594_v49   ;;  %3816 = vperm.xlu0 %9374, %v2597_v48   ;;  %v8697_v49 = vsel %vm918_vm8, 1.0, %v15694_v25  ;;  %v8700_v48 = vsel %vm921_vm9, 1.0, %v15694_v25  ;;  %vm935_vm8 = vcmp.eq.f32.partialorder %v10044_v13, %v9658_v22 }
 0x24a   :  { %v2598_v40 = vmul.f32 %v8697_v49, %v10216_v45  ;;  %v2601_v29 = vmul.f32 %v8700_v48, %v10226_v11  ;;  %vm934_vm9 = vcmp.eq.f32.partialorder %v10038_v63, %v9658_v22 }
 0x24c   :  { %v10622_v46 = vpop.permute.xlu1 %3621  ;;  %v10624_v57 = vpop.permute.xlu0 %3630 }
 0x24d   :  { %15789 = vst [vmem:[#allocation77_spill] sm:$0xff] %v10622_v46  ;;  %15790 = vst [vmem:[#allocation78_spill] sm:$0xff] %v10624_v57  ;;  %3813 = vperm.xlu1 %9375, %v2596_v35   ;;  %3822 = vperm.xlu0 %9374, %v2599_v44   ;;  %v8699_v35 = vsel %vm920_vm10, 1.0, %v15694_v25  ;;  %v8702_v44 = vsel %vm923_vm11, 1.0, %v15694_v25  ;;  %vm937_vm10 = vcmp.eq.f32.partialorder %v10044_v13, %v9661_v23 }
 0x24e   :  { %v2600_v49 = vmul.f32 %v8699_v35, %v10216_v45  ;;  %v2603_v48 = vmul.f32 %v8702_v44, %v10226_v11  ;;  %vm936_vm11 = vcmp.eq.f32.partialorder %v10038_v63, %v9661_v23 }
 0x250   :  { %v10634_v56 = vpop.permute.xlu1 %3627  ;;  %v10636_v42 = vpop.permute.xlu0 %3636 }
 0x251   :  { %15791 = vst [vmem:[#allocation79_spill] sm:$0xff] %v10634_v56  ;;  %15792 = vst [vmem:[#allocation80_spill] sm:$0xff] %v10636_v42  ;;  %3819 = vperm.xlu1 %9375, %v2598_v40   ;;  %3828 = vperm.xlu0 %9374, %v2601_v29   ;;  %v8701_v40 = vsel %vm922_vm12, 1.0, %v15694_v25  ;;  %v8704_v29 = vsel %vm925_vm13, 1.0, %v15694_v25  ;;  %vm939_vm12 = vcmp.eq.f32.partialorder %v10044_v13, %v9664_v24 }
 0x252   :  { %v2602_v35 = vmul.f32 %v8701_v40, %v10216_v45  ;;  %v2605_v44 = vmul.f32 %v8704_v29, %v10226_v11  ;;  %vm938_vm13 = vcmp.eq.f32.partialorder %v10038_v63, %v9664_v24 }
 0x254   :  { %v10646_v0 = vpop.permute.xlu1 %3633  ;;  %v10648_v46 = vpop.permute.xlu0 %3642 }
 0x255   :  { %15793 = vst [vmem:[#allocation81_spill] sm:$0xff] %v10646_v0  ;;  %15794 = vst [vmem:[#allocation82_spill] sm:$0xff] %v10648_v46  ;;  %3825 = vperm.xlu1 %9375, %v2600_v49   ;;  %3834 = vperm.xlu0 %9374, %v2603_v48   ;;  %v8703_v49 = vsel %vm924_vm0, 1.0, %v15694_v25  ;;  %v8706_v48 = vsel %vm927_vm1, 1.0, %v15694_v25  ;;  %vm941_vm0 = vcmp.eq.f32.partialorder %v10044_v13, %v9669_v26 }
 0x256   :  { %v2604_v40 = vmul.f32 %v8703_v49, %v10216_v45  ;;  %v2607_v29 = vmul.f32 %v8706_v48, %v10226_v11  ;;  %vm940_vm1 = vcmp.eq.f32.partialorder %v10038_v63, %v9669_v26 }
 0x258   :  { %v10658_v42 = vpop.permute.xlu1 %3639  ;;  %v10660_v0 = vpop.permute.xlu0 %3648 }
 0x259   :  { %15795 = vst [vmem:[#allocation83_spill] sm:$0xff] %v10658_v42  ;;  %15796 = vst [vmem:[#allocation84_spill] sm:$0xff] %v10660_v0  ;;  %3831 = vperm.xlu1 %9375, %v2602_v35   ;;  %3840 = vperm.xlu0 %9374, %v2605_v44   ;;  %v8705_v35 = vsel %vm926_vm14, 1.0, %v15694_v25  ;;  %v8708_v44 = vsel %vm929_vm15, 1.0, %v15694_v25  ;;  %vm943_vm14 = vcmp.eq.f32.partialorder %v10044_v13, %v9672_v27 }
 0x25a   :  { %v2606_v49 = vmul.f32 %v8705_v35, %v10216_v45  ;;  %v2609_v48 = vmul.f32 %v8708_v44, %v10226_v11  ;;  %vm942_vm15 = vcmp.eq.f32.partialorder %v10038_v63, %v9672_v27 }
 0x25c   :  { %v10670_v46 = vpop.permute.xlu1 %3645  ;;  %v10672_v42 = vpop.permute.xlu0 %3654 }
 0x25d   :  { %15797 = vst [vmem:[#allocation85_spill] sm:$0xff] %v10670_v46  ;;  %15798 = vst [vmem:[#allocation86_spill] sm:$0xff] %v10672_v42  ;;  %3837 = vperm.xlu1 %9375, %v2604_v40   ;;  %3846 = vperm.xlu0 %9374, %v2607_v29   ;;  %v8707_v40 = vsel %vm928_vm2, 1.0, %v15694_v25  ;;  %v8710_v29 = vsel %vm931_vm3, 1.0, %v15694_v25  ;;  %vm945_vm2 = vcmp.eq.f32.partialorder %v10044_v13, %v9680_v31 }
 0x25e   :  { %v2608_v35 = vmul.f32 %v8707_v40, %v10216_v45  ;;  %v2611_v44 = vmul.f32 %v8710_v29, %v10226_v11  ;;  %vm944_vm3 = vcmp.eq.f32.partialorder %v10038_v63, %v9680_v31 }
 0x260   :  { %v10682_v0 = vpop.permute.xlu1 %3651  ;;  %v10684_v46 = vpop.permute.xlu0 %3660 }
 0x261   :  { %15799 = vst [vmem:[#allocation87_spill] sm:$0xff] %v10682_v0  ;;  %15800 = vst [vmem:[#allocation88_spill] sm:$0xff] %v10684_v46  ;;  %3843 = vperm.xlu1 %9375, %v2606_v49   ;;  %3852 = vperm.xlu0 %9374, %v2609_v48   ;;  %v8709_v49 = vsel %vm930_vm4, 1.0, %v15694_v25  ;;  %v8712_v48 = vsel %vm933_vm5, 1.0, %v15694_v25  ;;  %vm947_vm4 = vcmp.eq.f32.partialorder %v10044_v13, %v9686_v34 }
 0x262   :  { %v2610_v40 = vmul.f32 %v8709_v49, %v10216_v45  ;;  %v2613_v29 = vmul.f32 %v8712_v48, %v10226_v11  ;;  %vm946_vm5 = vcmp.eq.f32.partialorder %v10038_v63, %v9686_v34  ;;  %v15988_v34 = vld [vmem:[#allocation20_spill] sm:$0xff] }
 0x264   :  { %v10694_v42 = vpop.permute.xlu1 %3657  ;;  %v10696_v0 = vpop.permute.xlu0 %3666 }
 0x265   :  { %15801 = vst [vmem:[#allocation89_spill] sm:$0xff] %v10694_v42  ;;  %15802 = vst [vmem:[#allocation90_spill] sm:$0xff] %v10696_v0  ;;  %3849 = vperm.xlu1 %9375, %v2608_v35   ;;  %3858 = vperm.xlu0 %9374, %v2611_v44   ;;  %v8711_v35 = vsel %vm932_vm7, 1.0, %v15694_v25  ;;  %v8714_v44 = vsel %vm935_vm8, 1.0, %v15694_v25  ;;  %vm949_vm7 = vcmp.eq.f32.partialorder %v10048_v32, %v9631_v10 }
 0x266   :  { %v2612_v49 = vmul.f32 %v8711_v35, %v10216_v45  ;;  %v2615_v48 = vmul.f32 %v8714_v44, %v10226_v11  ;;  %vm948_vm8 = vcmp.eq.f32.partialorder %v10042_v1, %v9631_v10 }
 0x268   :  { %v10706_v46 = vpop.permute.xlu1 %3663  ;;  %v10708_v42 = vpop.permute.xlu0 %3672 }
 0x269   :  { %15803 = vst [vmem:[#allocation91_spill] sm:$0xff] %v10706_v46  ;;  %15804 = vst [vmem:[#allocation92_spill] sm:$0xff] %v10708_v42  ;;  %3855 = vperm.xlu1 %9375, %v2610_v40   ;;  %3864 = vperm.xlu0 %9374, %v2613_v29   ;;  %v8713_v40 = vsel %vm934_vm9, 1.0, %v15694_v25  ;;  %v8716_v29 = vsel %vm937_vm10, 1.0, %v15694_v25  ;;  %vm951_vm9 = vcmp.eq.f32.partialorder %v10048_v32, %v9634_v12 }
 0x26a   :  { %v2614_v35 = vmul.f32 %v8713_v40, %v10216_v45  ;;  %v2617_v44 = vmul.f32 %v8716_v29, %v10226_v11  ;;  %vm950_vm10 = vcmp.eq.f32.partialorder %v10042_v1, %v9634_v12 }
 0x26c   :  { %v10718_v0 = vpop.permute.xlu1 %3669  ;;  %v10720_v46 = vpop.permute.xlu0 %3678 }
 0x26d   :  { %15805 = vst [vmem:[#allocation93_spill] sm:$0xff] %v10718_v0  ;;  %15806 = vst [vmem:[#allocation94_spill] sm:$0xff] %v10720_v46  ;;  %3861 = vperm.xlu1 %9375, %v2612_v49   ;;  %3870 = vperm.xlu0 %9374, %v2615_v48   ;;  %v8715_v49 = vsel %vm936_vm11, 1.0, %v15694_v25  ;;  %v8718_v48 = vsel %vm939_vm12, 1.0, %v15694_v25  ;;  %vm953_vm11 = vcmp.eq.f32.partialorder %v10048_v32, %v9642_v16 }
 0x26e   :  { %v2616_v40 = vmul.f32 %v8715_v49, %v10216_v45  ;;  %v2619_v29 = vmul.f32 %v8718_v48, %v10226_v11  ;;  %vm952_vm12 = vcmp.eq.f32.partialorder %v10042_v1, %v9642_v16 }
 0x270   :  { %v10730_v42 = vpop.permute.xlu1 %3675  ;;  %v10732_v0 = vpop.permute.xlu0 %3684 }
 0x271   :  { %15807 = vst [vmem:[#allocation95_spill] sm:$0xff] %v10730_v42  ;;  %15808 = vst [vmem:[#allocation96_spill] sm:$0xff] %v10732_v0  ;;  %3867 = vperm.xlu1 %9375, %v2614_v35   ;;  %3876 = vperm.xlu0 %9374, %v2617_v44   ;;  %v8717_v35 = vsel %vm938_vm13, 1.0, %v15694_v25  ;;  %v8720_v44 = vsel %vm941_vm0, 1.0, %v15694_v25  ;;  %vm955_vm13 = vcmp.eq.f32.partialorder %v10048_v32, %v9645_v17 }
 0x272   :  { %v2618_v49 = vmul.f32 %v8717_v35, %v10216_v45  ;;  %v2621_v48 = vmul.f32 %v8720_v44, %v10226_v11  ;;  %vm954_vm0 = vcmp.eq.f32.partialorder %v10042_v1, %v9645_v17 }
 0x274   :  { %v10742_v46 = vpop.permute.xlu1 %3681  ;;  %v10744_v42 = vpop.permute.xlu0 %3690 }
 0x275   :  { %15809 = vst [vmem:[#allocation97_spill] sm:$0xff] %v10742_v46  ;;  %15810 = vst [vmem:[#allocation98_spill] sm:$0xff] %v10744_v42  ;;  %3873 = vperm.xlu1 %9375, %v2616_v40   ;;  %3882 = vperm.xlu0 %9374, %v2619_v29   ;;  %v8719_v40 = vsel %vm940_vm1, 1.0, %v15694_v25  ;;  %v8722_v29 = vsel %vm943_vm14, 1.0, %v15694_v25  ;;  %vm957_vm1 = vcmp.eq.f32.partialorder %v10048_v32, %v9648_v18 }
 0x276   :  { %v2620_v35 = vmul.f32 %v8719_v40, %v10216_v45  ;;  %v2623_v44 = vmul.f32 %v8722_v29, %v10226_v11  ;;  %vm956_vm14 = vcmp.eq.f32.partialorder %v10042_v1, %v9648_v18 }
 0x278   :  { %v10754_v0 = vpop.permute.xlu1 %3687  ;;  %v10756_v46 = vpop.permute.xlu0 %3696 }
 0x279   :  { %15811 = vst [vmem:[#allocation99_spill] sm:$0xff] %v10754_v0  ;;  %15812 = vst [vmem:[#allocation100_spill] sm:$0xff] %v10756_v46  ;;  %3879 = vperm.xlu1 %9375, %v2618_v49   ;;  %3888 = vperm.xlu0 %9374, %v2621_v48   ;;  %v8721_v49 = vsel %vm942_vm15, 1.0, %v15694_v25  ;;  %v8724_v48 = vsel %vm945_vm2, 1.0, %v15694_v25  ;;  %vm959_vm15 = vcmp.eq.f32.partialorder %v10048_v32, %v9651_v19 }
 0x27a   :  { %v2622_v40 = vmul.f32 %v8721_v49, %v10216_v45  ;;  %v2625_v29 = vmul.f32 %v8724_v48, %v10226_v11  ;;  %vm958_vm2 = vcmp.eq.f32.partialorder %v10042_v1, %v9651_v19 }
 0x27c   :  { %v10766_v42 = vpop.permute.xlu1 %3693  ;;  %v10768_v0 = vpop.permute.xlu0 %3702 }
 0x27d   :  { %15813 = vst [vmem:[#allocation101_spill] sm:$0xff] %v10766_v42  ;;  %15814 = vst [vmem:[#allocation102_spill] sm:$0xff] %v10768_v0  ;;  %3885 = vperm.xlu1 %9375, %v2620_v35   ;;  %3894 = vperm.xlu0 %9374, %v2623_v44   ;;  %v8723_v35 = vsel %vm944_vm3, 1.0, %v15694_v25  ;;  %v8726_v44 = vsel %vm947_vm4, 1.0, %v15694_v25  ;;  %vm961_vm3 = vcmp.eq.f32.partialorder %v10048_v32, %v9677_v30  ;;  %v15934_v0 = vld [vmem:[#allocation19_spill] sm:$0xff] }
 0x27e   :  { %v2624_v49 = vmul.f32 %v8723_v35, %v10216_v45  ;;  %v2627_v48 = vmul.f32 %v8726_v44, %v10226_v11  ;;  %vm960_vm4 = vcmp.eq.f32.partialorder %v10042_v1, %v9677_v30 }
 0x280   :  { %v10778_v46 = vpop.permute.xlu1 %3699  ;;  %v10780_v42 = vpop.permute.xlu0 %3708 }
 0x281   :  { %15815 = vst [vmem:[#allocation103_spill] sm:$0xff] %v10778_v46  ;;  %15816 = vst [vmem:[#allocation104_spill] sm:$0xff] %v10780_v42  ;;  %3891 = vperm.xlu1 %9375, %v2622_v40   ;;  %3900 = vperm.xlu0 %9374, %v2625_v29   ;;  %v8725_v40 = vsel %vm946_vm5, 1.0, %v15694_v25  ;;  %v8728_v29 = vsel %vm949_vm7, 1.0, %v15694_v25  ;;  %vm963_vm5 = vcmp.eq.f32.partialorder %v10048_v32, %v9683_v33 }
 0x282   :  { %v2626_v35 = vmul.f32 %v8725_v40, %v10216_v45  ;;  %v2629_v11 = vmul.f32 %v8728_v29, %v10238_v43  ;;  %vm962_vm7 = vcmp.eq.f32.partialorder %v10042_v1, %v9683_v33 }
 0x284   :  { %v10790_v13 = vpop.permute.xlu1 %3705  ;;  %v10792_v46 = vpop.permute.xlu0 %3714 }
 0x285   :  { %15817 = vst [vmem:[#allocation105_spill] sm:$0xff] %v10790_v13  ;;  %15818 = vst [vmem:[#allocation106_spill] sm:$0xff] %v10792_v46  ;;  %3897 = vperm.xlu1 %9375, %v2624_v49   ;;  %3906 = vperm.xlu0 %9374, %v2627_v48   ;;  %v8727_v49 = vsel %vm948_vm8, 1.0, %v15694_v25  ;;  %v8730_v48 = vsel %vm951_vm9, 1.0, %v15694_v25  ;;  %vm965_vm8 = vcmp.eq.f32.partialorder %v10048_v32, %v9703_v41 }
 0x286   :  { %v2628_v45 = vmul.f32 %v8727_v49, %v10228_v21  ;;  %v2631_v40 = vmul.f32 %v8730_v48, %v10238_v43  ;;  %vm964_vm9 = vcmp.eq.f32.partialorder %v10042_v1, %v9703_v41 }
 0x288   :  { %v10802_v63 = vpop.permute.xlu1 %3711  ;;  %v10804_v44 = vpop.permute.xlu0 %3720 }
 0x289   :  { %15819 = vst [vmem:[#allocation107_spill] sm:$0xff] %v10802_v63  ;;  %15820 = vst [vmem:[#allocation108_spill] sm:$0xff] %v10804_v44  ;;  %3903 = vperm.xlu1 %9375, %v2626_v35   ;;  %3912 = vperm.xlu0 %9374, %v2629_v11   ;;  %v8729_v35 = vsel %vm950_vm10, 1.0, %v15694_v25  ;;  %v8732_v11 = vsel %vm953_vm11, 1.0, %v15694_v25  ;;  %vm967_vm10 = vcmp.eq.f32.partialorder %v10048_v32, %v9658_v22 }
 0x28a   :  { %v2630_v49 = vmul.f32 %v8729_v35, %v10228_v21  ;;  %v2633_v48 = vmul.f32 %v8732_v11, %v10238_v43  ;;  %vm966_vm11 = vcmp.eq.f32.partialorder %v10042_v1, %v9658_v22 }
 0x28c   :  { %v10814_v29 = vpop.permute.xlu1 %3717  ;;  %v10816_v63 = vpop.permute.xlu0 %3726 }
 0x28d   :  { %15821 = vst [vmem:[#allocation109_spill] sm:$0xff] %v10814_v29  ;;  %15822 = vst [vmem:[#allocation110_spill] sm:$0xff] %v10816_v63  ;;  %3909 = vperm.xlu1 %9375, %v2628_v45   ;;  %3918 = vperm.xlu0 %9374, %v2631_v40   ;;  %v8731_v45 = vsel %vm952_vm12, 1.0, %v15694_v25  ;;  %v8734_v40 = vsel %vm955_vm13, 1.0, %v15694_v25  ;;  %vm1077_vm12 = vcmp.eq.f32.partialorder %v10064_v15, %v9631_v10 }
 0x28e   :  { %v2632_v35 = vmul.f32 %v8731_v45, %v10228_v21  ;;  %v2635_v11 = vmul.f32 %v8734_v40, %v10238_v43  ;;  %vm1076_vm13 = vcmp.eq.f32.partialorder %v10058_v61, %v9631_v10 }
 0x290   :  { %v10826_v46 = vpop.permute.xlu1 %3723  ;;  %v10828_v42 = vpop.permute.xlu0 %3732 }
 0x291   :  { %15823 = vst [vmem:[#allocation111_spill] sm:$0xff] %v10826_v46  ;;  %15824 = vst [vmem:[#allocation112_spill] sm:$0xff] %v10828_v42  ;;  %3915 = vperm.xlu1 %9375, %v2630_v49   ;;  %3924 = vperm.xlu0 %9374, %v2633_v48   ;;  %v8733_v49 = vsel %vm954_vm0, 1.0, %v15694_v25  ;;  %v8736_v48 = vsel %vm957_vm1, 1.0, %v15694_v25  ;;  %vm1079_vm0 = vcmp.eq.f32.partialorder %v10064_v15, %v9634_v12 }
 0x292   :  { %v2634_v45 = vmul.f32 %v8733_v49, %v10228_v21  ;;  %v2637_v40 = vmul.f32 %v8736_v48, %v10238_v43  ;;  %vm1078_vm1 = vcmp.eq.f32.partialorder %v10058_v61, %v9634_v12 }
 0x294   :  { %v10838_v13 = vpop.permute.xlu1 %3729  ;;  %v10840_v29 = vpop.permute.xlu0 %3738 }
 0x295   :  { %15825 = vst [vmem:[#allocation113_spill] sm:$0xff] %v10838_v13  ;;  %15826 = vst [vmem:[#allocation114_spill] sm:$0xff] %v10840_v29  ;;  %3921 = vperm.xlu1 %9375, %v2632_v35   ;;  %3930 = vperm.xlu0 %9374, %v2635_v11   ;;  %v8735_v35 = vsel %vm956_vm14, 1.0, %v15694_v25  ;;  %v8738_v11 = vsel %vm959_vm15, 1.0, %v15694_v25  ;;  %vm1093_vm14 = vcmp.eq.f32.partialorder %v10064_v15, %v9703_v41 }
 0x296   :  { %v2636_v49 = vmul.f32 %v8735_v35, %v10228_v21  ;;  %v2639_v48 = vmul.f32 %v8738_v11, %v10238_v43  ;;  %vm1092_vm15 = vcmp.eq.f32.partialorder %v10058_v61, %v9703_v41 }
 0x298   :  { %v10850_v42 = vpop.permute.xlu1 %3735  ;;  %v10852_v13 = vpop.permute.xlu0 %3744 }
 0x299   :  { %15827 = vst [vmem:[#allocation115_spill] sm:$0xff] %v10850_v42  ;;  %15828 = vst [vmem:[#allocation116_spill] sm:$0xff] %v10852_v13  ;;  %3927 = vperm.xlu1 %9375, %v2634_v45   ;;  %3936 = vperm.xlu0 %9374, %v2637_v40   ;;  %v8737_v45 = vsel %vm958_vm2, 1.0, %v15694_v25  ;;  %v8740_v40 = vsel %vm961_vm3, 1.0, %v15694_v25  ;;  %vm1095_vm2 = vcmp.eq.f32.partialorder %v10064_v15, %v9658_v22 }
 0x29a   :  { %v2638_v35 = vmul.f32 %v8737_v45, %v10228_v21  ;;  %v2641_v11 = vmul.f32 %v8740_v40, %v10238_v43  ;;  %vm1094_vm3 = vcmp.eq.f32.partialorder %v10058_v61, %v9658_v22 }
 0x29c   :  { %v10862_v29 = vpop.permute.xlu1 %3741  ;;  %v10864_v42 = vpop.permute.xlu0 %3750 }
 0x29d   :  { %15829 = vst [vmem:[#allocation117_spill] sm:$0xff] %v10862_v29  ;;  %15830 = vst [vmem:[#allocation118_spill] sm:$0xff] %v10864_v42  ;;  %3933 = vperm.xlu1 %9375, %v2636_v49   ;;  %3942 = vperm.xlu0 %9374, %v2639_v48   ;;  %v8739_v49 = vsel %vm960_vm4, 1.0, %v15694_v25  ;;  %v8742_v48 = vsel %vm963_vm5, 1.0, %v15694_v25  ;;  %vm1109_vm4 = vcmp.eq.f32.partialorder %v10068_v53, %v9631_v10 }
 0x29e   :  { %v2640_v45 = vmul.f32 %v8739_v49, %v10228_v21  ;;  %v2643_v40 = vmul.f32 %v8742_v48, %v10238_v43  ;;  %vm1108_vm5 = vcmp.eq.f32.partialorder %v10062_v50, %v9631_v10 }
 0x2a0   :  { %v10874_v13 = vpop.permute.xlu1 %3747  ;;  %v10876_v29 = vpop.permute.xlu0 %3756 }
 0x2a1   :  { %15831 = vst [vmem:[#allocation119_spill] sm:$0xff] %v10874_v13  ;;  %15832 = vst [vmem:[#allocation120_spill] sm:$0xff] %v10876_v29  ;;  %3939 = vperm.xlu1 %9375, %v2638_v35   ;;  %3948 = vperm.xlu0 %9374, %v2641_v11   ;;  %v8741_v35 = vsel %vm962_vm7, 1.0, %v15694_v25  ;;  %v8744_v11 = vsel %vm965_vm8, 1.0, %v15694_v25  ;;  %vm1111_vm7 = vcmp.eq.f32.partialorder %v10068_v53, %v9634_v12 }
 0x2a2   :  { %v2642_v49 = vmul.f32 %v8741_v35, %v10228_v21  ;;  %v2645_v48 = vmul.f32 %v8744_v11, %v10238_v43  ;;  %vm1110_vm8 = vcmp.eq.f32.partialorder %v10062_v50, %v9634_v12 }
 0x2a4   :  { %v10886_v42 = vpop.permute.xlu1 %3753  ;;  %v10888_v13 = vpop.permute.xlu0 %3762 }
 0x2a5   :  { %15833 = vst [vmem:[#allocation121_spill] sm:$0xff] %v10886_v42  ;;  %15834 = vst [vmem:[#allocation122_spill] sm:$0xff] %v10888_v13  ;;  %3945 = vperm.xlu1 %9375, %v2640_v45   ;;  %3954 = vperm.xlu0 %9374, %v2643_v40   ;;  %v8743_v45 = vsel %vm964_vm9, 1.0, %v15694_v25  ;;  %v8746_v40 = vsel %vm967_vm10, 1.0, %v15694_v25  ;;  %vm1125_vm9 = vcmp.eq.f32.partialorder %v10068_v53, %v9703_v41 }
 0x2a6   :  { %v2644_v35 = vmul.f32 %v8743_v45, %v10228_v21  ;;  %v2647_v11 = vmul.f32 %v8746_v40, %v10238_v43  ;;  %vm1124_vm10 = vcmp.eq.f32.partialorder %v10062_v50, %v9703_v41 }
 0x2a8   :  { %v10898_v29 = vpop.permute.xlu1 %3759  ;;  %v10900_v42 = vpop.permute.xlu0 %3768 }
 0x2a9   :  { %15835 = vst [vmem:[#allocation123_spill] sm:$0xff] %v10898_v29  ;;  %15836 = vst [vmem:[#allocation124_spill] sm:$0xff] %v10900_v42  ;;  %3951 = vperm.xlu1 %9375, %v2642_v49   ;;  %3960 = vperm.xlu0 %9374, %v2645_v48   ;;  %v8745_v49 = vsel %vm966_vm11, 1.0, %v15694_v25  ;;  %v8856_v48 = vsel %vm1077_vm12, 1.0, %v15694_v25  ;;  %vm1127_vm11 = vcmp.eq.f32.partialorder %v10068_v53, %v9658_v22 }
 0x2aa   :  { %v2646_v45 = vmul.f32 %v8745_v49, %v10228_v21  ;;  %v2757_v40 = vmul.f32 %v8856_v48, %v10302_v7  ;;  %vm1126_vm12 = vcmp.eq.f32.partialorder %v10062_v50, %v9658_v22 }
 0x2ac   :  { %v10910_v13 = vpop.permute.xlu1 %3765  ;;  %v10912_v29 = vpop.permute.xlu0 %3774 }
 0x2ad   :  { %15837 = vst [vmem:[#allocation125_spill] sm:$0xff] %v10910_v13  ;;  %15838 = vst [vmem:[#allocation126_spill] sm:$0xff] %v10912_v29  ;;  %3957 = vperm.xlu1 %9375, %v2644_v35   ;;  %3966 = vperm.xlu0 %9374, %v2647_v11   ;;  %v8855_v35 = vsel %vm1076_vm13, 1.0, %v15694_v25  ;;  %v8858_v11 = vsel %vm1079_vm0, 1.0, %v15694_v25  ;;  %vm1081_vm13 = vcmp.eq.f32.partialorder %v10064_v15, %v9642_v16 }
 0x2ae   :  { %v2756_v49 = vmul.f32 %v8855_v35, %v10292_v28  ;;  %v2759_v48 = vmul.f32 %v8858_v11, %v10302_v7  ;;  %vm1080_vm0 = vcmp.eq.f32.partialorder %v10058_v61, %v9642_v16 }
 0x2b0   :  { %v10922_v42 = vpop.permute.xlu1 %3771  ;;  %v10924_v13 = vpop.permute.xlu0 %3780 }
 0x2b1   :  { %15839 = vst [vmem:[#allocation127_spill] sm:$0xff] %v10922_v42  ;;  %15840 = vst [vmem:[#allocation128_spill] sm:$0xff] %v10924_v13  ;;  %3963 = vperm.xlu1 %9375, %v2646_v45   ;;  %4296 = vperm.xlu0 %9374, %v2757_v40   ;;  %v8857_v45 = vsel %vm1078_vm1, 1.0, %v15694_v25  ;;  %v8872_v40 = vsel %vm1093_vm14, 1.0, %v15694_v25  ;;  %vm1097_vm1 = vcmp.eq.f32.partialorder %v10064_v15, %v9661_v23 }
 0x2b2   :  { %v2758_v35 = vmul.f32 %v8857_v45, %v10292_v28  ;;  %v2773_v11 = vmul.f32 %v8872_v40, %v10302_v7  ;;  %vm1096_vm14 = vcmp.eq.f32.partialorder %v10058_v61, %v9661_v23 }
 0x2b4   :  { %v10934_v29 = vpop.permute.xlu1 %3777  ;;  %v10936_v42 = vpop.permute.xlu0 %3786 }
 0x2b5   :  { %15841 = vst [vmem:[#allocation129_spill] sm:$0xff] %v10934_v29  ;;  %15842 = vst [vmem:[#allocation130_spill] sm:$0xff] %v10936_v42  ;;  %4293 = vperm.xlu1 %9375, %v2756_v49   ;;  %4302 = vperm.xlu0 %9374, %v2759_v48   ;;  %v8871_v49 = vsel %vm1092_vm15, 1.0, %v15694_v25  ;;  %v8874_v48 = vsel %vm1095_vm2, 1.0, %v15694_v25  ;;  %vm1113_vm15 = vcmp.eq.f32.partialorder %v10068_v53, %v9642_v16 }
 0x2b6   :  { %v2772_v45 = vmul.f32 %v8871_v49, %v10292_v28  ;;  %v2775_v40 = vmul.f32 %v8874_v48, %v10302_v7  ;;  %vm1112_vm2 = vcmp.eq.f32.partialorder %v10062_v50, %v9642_v16 }
 0x2b8   :  { %v10946_v13 = vpop.permute.xlu1 %3783  ;;  %v10948_v29 = vpop.permute.xlu0 %3792 }
 0x2b9   :  { %15843 = vst [vmem:[#allocation131_spill] sm:$0xff] %v10946_v13  ;;  %15844 = vst [vmem:[#allocation132_spill] sm:$0xff] %v10948_v29  ;;  %4299 = vperm.xlu1 %9375, %v2758_v35   ;;  %4344 = vperm.xlu0 %9374, %v2773_v11   ;;  %v8873_v35 = vsel %vm1094_vm3, 1.0, %v15694_v25  ;;  %v8888_v11 = vsel %vm1109_vm4, 1.0, %v15694_v25  ;;  %vm1129_vm3 = vcmp.eq.f32.partialorder %v10068_v53, %v9661_v23 }
 0x2ba   :  { %v2774_v49 = vmul.f32 %v8873_v35, %v10292_v28  ;;  %v2789_v48 = vmul.f32 %v8888_v11, %v10322_v55  ;;  %vm1128_vm4 = vcmp.eq.f32.partialorder %v10062_v50, %v9661_v23 }
 0x2bc   :  { %v10958_v42 = vpop.permute.xlu1 %3789  ;;  %v10960_v13 = vpop.permute.xlu0 %3798 }
 0x2bd   :  { %15845 = vst [vmem:[#allocation133_spill] sm:$0xff] %v10958_v42  ;;  %15846 = vst [vmem:[#allocation134_spill] sm:$0xff] %v10960_v13  ;;  %4341 = vperm.xlu1 %9375, %v2772_v45   ;;  %4350 = vperm.xlu0 %9374, %v2775_v40   ;;  %v8887_v45 = vsel %vm1108_vm5, 1.0, %v15694_v25  ;;  %v8890_v40 = vsel %vm1111_vm7, 1.0, %v15694_v25  ;;  %vm1141_vm5 = vcmp.eq.f32.partialorder %v10072_v60, %v9631_v10 }
 0x2be   :  { %v2788_v35 = vmul.f32 %v8887_v45, %v10312_v2  ;;  %v2791_v11 = vmul.f32 %v8890_v40, %v10322_v55  ;;  %vm1140_vm7 = vcmp.eq.f32.partialorder %v10066_v52, %v9631_v10 }
 0x2c0   :  { %v10970_v29 = vpop.permute.xlu1 %3795  ;;  %v10972_v42 = vpop.permute.xlu0 %3804 }
 0x2c1   :  { %15847 = vst [vmem:[#allocation135_spill] sm:$0xff] %v10970_v29  ;;  %15848 = vst [vmem:[#allocation136_spill] sm:$0xff] %v10972_v42  ;;  %4347 = vperm.xlu1 %9375, %v2774_v49   ;;  %4392 = vperm.xlu0 %9374, %v2789_v48   ;;  %v8889_v49 = vsel %vm1110_vm8, 1.0, %v15694_v25  ;;  %v8904_v48 = vsel %vm1125_vm9, 1.0, %v15694_v25  ;;  %vm1143_vm8 = vcmp.eq.f32.partialorder %v10072_v60, %v9634_v12 }
 0x2c2   :  { %v2790_v45 = vmul.f32 %v8889_v49, %v10312_v2  ;;  %v2805_v40 = vmul.f32 %v8904_v48, %v10322_v55  ;;  %vm1142_vm9 = vcmp.eq.f32.partialorder %v10066_v52, %v9634_v12 }
 0x2c4   :  { %v10982_v13 = vpop.permute.xlu1 %3801  ;;  %v10984_v29 = vpop.permute.xlu0 %3810 }
 0x2c5   :  { %15849 = vst [vmem:[#allocation137_spill] sm:$0xff] %v10982_v13  ;;  %15850 = vst [vmem:[#allocation138_spill] sm:$0xff] %v10984_v29  ;;  %4389 = vperm.xlu1 %9375, %v2788_v35   ;;  %4398 = vperm.xlu0 %9374, %v2791_v11   ;;  %v8903_v35 = vsel %vm1124_vm10, 1.0, %v15694_v25  ;;  %v8906_v11 = vsel %vm1127_vm11, 1.0, %v15694_v25  ;;  %vm1157_vm10 = vcmp.eq.f32.partialorder %v10072_v60, %v9703_v41 }
 0x2c6   :  { %v2804_v49 = vmul.f32 %v8903_v35, %v10312_v2  ;;  %v2807_v48 = vmul.f32 %v8906_v11, %v10322_v55  ;;  %vm1156_vm11 = vcmp.eq.f32.partialorder %v10066_v52, %v9703_v41 }
 0x2c8   :  { %v10994_v42 = vpop.permute.xlu1 %3807  ;;  %v10996_v13 = vpop.permute.xlu0 %3816 }
 0x2c9   :  { %15851 = vst [vmem:[#allocation139_spill] sm:$0xff] %v10994_v42  ;;  %15852 = vst [vmem:[#allocation140_spill] sm:$0xff] %v10996_v13  ;;  %4395 = vperm.xlu1 %9375, %v2790_v45   ;;  %4440 = vperm.xlu0 %9374, %v2805_v40   ;;  %v8905_v45 = vsel %vm1126_vm12, 1.0, %v15694_v25  ;;  %v8860_v40 = vsel %vm1081_vm13, 1.0, %v15694_v25  ;;  %vm1159_vm12 = vcmp.eq.f32.partialorder %v10072_v60, %v9658_v22 }
 0x2ca   :  { %v2806_v35 = vmul.f32 %v8905_v45, %v10312_v2  ;;  %v2761_v11 = vmul.f32 %v8860_v40, %v10302_v7  ;;  %vm1158_vm13 = vcmp.eq.f32.partialorder %v10066_v52, %v9658_v22 }
 0x2cc   :  { %v11006_v29 = vpop.permute.xlu1 %3813  ;;  %v11008_v42 = vpop.permute.xlu0 %3822 }
 0x2cd   :  { %15853 = vst [vmem:[#allocation141_spill] sm:$0xff] %v11006_v29  ;;  %15854 = vst [vmem:[#allocation142_spill] sm:$0xff] %v11008_v42  ;;  %4437 = vperm.xlu1 %9375, %v2804_v49   ;;  %4446 = vperm.xlu0 %9374, %v2807_v48   ;;  %v8859_v49 = vsel %vm1080_vm0, 1.0, %v15694_v25  ;;  %v8876_v48 = vsel %vm1097_vm1, 1.0, %v15694_v25  ;;  %vm1083_vm0 = vcmp.eq.f32.partialorder %v10064_v15, %v9645_v17 }
 0x2ce   :  { %v2760_v45 = vmul.f32 %v8859_v49, %v10292_v28  ;;  %v2777_v40 = vmul.f32 %v8876_v48, %v10302_v7  ;;  %vm1082_vm1 = vcmp.eq.f32.partialorder %v10058_v61, %v9645_v17 }
 0x2d0   :  { %v11018_v13 = vpop.permute.xlu1 %3819  ;;  %v11020_v29 = vpop.permute.xlu0 %3828 }
 0x2d1   :  { %15855 = vst [vmem:[#allocation143_spill] sm:$0xff] %v11018_v13  ;;  %15856 = vst [vmem:[#allocation144_spill] sm:$0xff] %v11020_v29  ;;  %4443 = vperm.xlu1 %9375, %v2806_v35   ;;  %4308 = vperm.xlu0 %9374, %v2761_v11   ;;  %v8875_v35 = vsel %vm1096_vm14, 1.0, %v15694_v25  ;;  %v8892_v11 = vsel %vm1113_vm15, 1.0, %v15694_v25  ;;  %vm1099_vm14 = vcmp.eq.f32.partialorder %v10064_v15, %v9664_v24 }
 0x2d2   :  { %v2776_v49 = vmul.f32 %v8875_v35, %v10292_v28  ;;  %v2793_v48 = vmul.f32 %v8892_v11, %v10322_v55  ;;  %vm1098_vm15 = vcmp.eq.f32.partialorder %v10058_v61, %v9664_v24 }
 0x2d4   :  { %v11030_v42 = vpop.permute.xlu1 %3825  ;;  %v11032_v13 = vpop.permute.xlu0 %3834 }
 0x2d5   :  { %15857 = vst [vmem:[#allocation145_spill] sm:$0xff] %v11030_v42  ;;  %15858 = vst [vmem:[#allocation146_spill] sm:$0xff] %v11032_v13  ;;  %4305 = vperm.xlu1 %9375, %v2760_v45   ;;  %4356 = vperm.xlu0 %9374, %v2777_v40   ;;  %v8891_v45 = vsel %vm1112_vm2, 1.0, %v15694_v25  ;;  %v8908_v40 = vsel %vm1129_vm3, 1.0, %v15694_v25  ;;  %vm1115_vm2 = vcmp.eq.f32.partialorder %v10068_v53, %v9645_v17 }
 0x2d6   :  { %v2792_v35 = vmul.f32 %v8891_v45, %v10312_v2  ;;  %v2809_v11 = vmul.f32 %v8908_v40, %v10322_v55  ;;  %vm1114_vm3 = vcmp.eq.f32.partialorder %v10062_v50, %v9645_v17 }
 0x2d8   :  { %v11042_v29 = vpop.permute.xlu1 %3831  ;;  %v11044_v42 = vpop.permute.xlu0 %3840 }
 0x2d9   :  { %15859 = vst [vmem:[#allocation147_spill] sm:$0xff] %v11042_v29  ;;  %15860 = vst [vmem:[#allocation148_spill] sm:$0xff] %v11044_v42  ;;  %4353 = vperm.xlu1 %9375, %v2776_v49   ;;  %4404 = vperm.xlu0 %9374, %v2793_v48   ;;  %v8907_v49 = vsel %vm1128_vm4, 1.0, %v15694_v25  ;;  %v8920_v48 = vsel %vm1141_vm5, 1.0, %v15694_v25  ;;  %vm1131_vm4 = vcmp.eq.f32.partialorder %v10068_v53, %v9664_v24 }
 0x2da   :  { %v2808_v45 = vmul.f32 %v8907_v49, %v10312_v2  ;;  %v2821_v40 = vmul.f32 %v8920_v48, %v10334_v38  ;;  %vm1130_vm5 = vcmp.eq.f32.partialorder %v10062_v50, %v9664_v24 }
 0x2dc   :  { %v11054_v13 = vpop.permute.xlu1 %3837  ;;  %v11056_v29 = vpop.permute.xlu0 %3846 }
 0x2dd   :  { %15861 = vst [vmem:[#allocation149_spill] sm:$0xff] %v11054_v13  ;;  %15862 = vst [vmem:[#allocation150_spill] sm:$0xff] %v11056_v29  ;;  %4401 = vperm.xlu1 %9375, %v2792_v35   ;;  %4452 = vperm.xlu0 %9374, %v2809_v11   ;;  %v8919_v35 = vsel %vm1140_vm7, 1.0, %v15694_v25  ;;  %v8922_v11 = vsel %vm1143_vm8, 1.0, %v15694_v25  ;;  %vm1145_vm7 = vcmp.eq.f32.partialorder %v10072_v60, %v9642_v16 }
 0x2de   :  { %v2820_v49 = vmul.f32 %v8919_v35, %v10324_v51  ;;  %v2823_v48 = vmul.f32 %v8922_v11, %v10334_v38  ;;  %vm1144_vm8 = vcmp.eq.f32.partialorder %v10066_v52, %v9642_v16 }
 0x2e0   :  { %v11066_v42 = vpop.permute.xlu1 %3843  ;;  %v11068_v13 = vpop.permute.xlu0 %3852 }
 0x2e1   :  { %15863 = vst [vmem:[#allocation151_spill] sm:$0xff] %v11066_v42  ;;  %15864 = vst [vmem:[#allocation152_spill] sm:$0xff] %v11068_v13  ;;  %4449 = vperm.xlu1 %9375, %v2808_v45   ;;  %4488 = vperm.xlu0 %9374, %v2821_v40   ;;  %v8921_v45 = vsel %vm1142_vm9, 1.0, %v15694_v25  ;;  %v8936_v40 = vsel %vm1157_vm10, 1.0, %v15694_v25  ;;  %vm1161_vm9 = vcmp.eq.f32.partialorder %v10072_v60, %v9661_v23 }
 0x2e2   :  { %v2822_v35 = vmul.f32 %v8921_v45, %v10324_v51  ;;  %v2837_v11 = vmul.f32 %v8936_v40, %v10334_v38  ;;  %vm1160_vm10 = vcmp.eq.f32.partialorder %v10066_v52, %v9661_v23 }
 0x2e4   :  { %v11078_v29 = vpop.permute.xlu1 %3849  ;;  %v11080_v42 = vpop.permute.xlu0 %3858 }
 0x2e5   :  { %15865 = vst [vmem:[#allocation153_spill] sm:$0xff] %v11078_v29  ;;  %15866 = vst [vmem:[#allocation154_spill] sm:$0xff] %v11080_v42  ;;  %4485 = vperm.xlu1 %9375, %v2820_v49   ;;  %4494 = vperm.xlu0 %9374, %v2823_v48   ;;  %v8935_v49 = vsel %vm1156_vm11, 1.0, %v15694_v25  ;;  %v8938_v48 = vsel %vm1159_vm12, 1.0, %v15694_v25  ;;  %vm1173_vm11 = vcmp.eq.f32.partialorder %v10076_v62, %v9631_v10 }
 0x2e6   :  { %v2836_v45 = vmul.f32 %v8935_v49, %v10324_v51  ;;  %v2839_v40 = vmul.f32 %v8938_v48, %v10334_v38  ;;  %vm1172_vm12 = vcmp.eq.f32.partialorder %v10070_v54, %v9631_v10 }
 0x2e8   :  { %v11090_v13 = vpop.permute.xlu1 %3855  ;;  %v11092_v29 = vpop.permute.xlu0 %3864 }
 0x2e9   :  { %15867 = vst [vmem:[#allocation155_spill] sm:$0xff] %v11090_v13  ;;  %15868 = vst [vmem:[#allocation156_spill] sm:$0xff] %v11092_v29  ;;  %4491 = vperm.xlu1 %9375, %v2822_v35   ;;  %4536 = vperm.xlu0 %9374, %v2837_v11   ;;  %v8937_v35 = vsel %vm1158_vm13, 1.0, %v15694_v25  ;;  %v8862_v11 = vsel %vm1083_vm0, 1.0, %v15694_v25  ;;  %vm1175_vm13 = vcmp.eq.f32.partialorder %v10076_v62, %v9634_v12 }
 0x2ea   :  { %v2838_v49 = vmul.f32 %v8937_v35, %v10324_v51  ;;  %v2763_v48 = vmul.f32 %v8862_v11, %v10302_v7  ;;  %vm1174_vm0 = vcmp.eq.f32.partialorder %v10070_v54, %v9634_v12 }
 0x2ec   :  { %v11102_v42 = vpop.permute.xlu1 %3861  ;;  %v11104_v13 = vpop.permute.xlu0 %3870 }
 0x2ed   :  { %15869 = vst [vmem:[#allocation157_spill] sm:$0xff] %v11102_v42  ;;  %15870 = vst [vmem:[#allocation158_spill] sm:$0xff] %v11104_v13  ;;  %4533 = vperm.xlu1 %9375, %v2836_v45   ;;  %4542 = vperm.xlu0 %9374, %v2839_v40   ;;  %v8861_v45 = vsel %vm1082_vm1, 1.0, %v15694_v25  ;;  %v8878_v40 = vsel %vm1099_vm14, 1.0, %v15694_v25  ;;  %vm1189_vm1 = vcmp.eq.f32.partialorder %v10076_v62, %v9703_v41 }
 0x2ee   :  { %v2762_v35 = vmul.f32 %v8861_v45, %v10292_v28  ;;  %v2779_v11 = vmul.f32 %v8878_v40, %v10302_v7  ;;  %vm1188_vm14 = vcmp.eq.f32.partialorder %v10070_v54, %v9703_v41 }
 0x2f0   :  { %v11114_v29 = vpop.permute.xlu1 %3867  ;;  %v11116_v42 = vpop.permute.xlu0 %3876 }
 0x2f1   :  { %15871 = vst [vmem:[#allocation159_spill] sm:$0xff] %v11114_v29  ;;  %15872 = vst [vmem:[#allocation160_spill] sm:$0xff] %v11116_v42  ;;  %4539 = vperm.xlu1 %9375, %v2838_v49   ;;  %4314 = vperm.xlu0 %9374, %v2763_v48   ;;  %v8877_v49 = vsel %vm1098_vm15, 1.0, %v15694_v25  ;;  %v8894_v48 = vsel %vm1115_vm2, 1.0, %v15694_v25  ;;  %vm1191_vm15 = vcmp.eq.f32.partialorder %v10076_v62, %v9658_v22 }
 0x2f2   :  { %v2778_v45 = vmul.f32 %v8877_v49, %v10292_v28  ;;  %v2795_v40 = vmul.f32 %v8894_v48, %v10322_v55  ;;  %vm1190_vm2 = vcmp.eq.f32.partialorder %v10070_v54, %v9658_v22 }
 0x2f4   :  { %v11126_v13 = vpop.permute.xlu1 %3873  ;;  %v11128_v29 = vpop.permute.xlu0 %3882 }
 0x2f5   :  { %15873 = vst [vmem:[#allocation161_spill] sm:$0xff] %v11126_v13  ;;  %15874 = vst [vmem:[#allocation162_spill] sm:$0xff] %v11128_v29  ;;  %4311 = vperm.xlu1 %9375, %v2762_v35   ;;  %4362 = vperm.xlu0 %9374, %v2779_v11   ;;  %v8893_v35 = vsel %vm1114_vm3, 1.0, %v15694_v25  ;;  %v8910_v11 = vsel %vm1131_vm4, 1.0, %v15694_v25  ;;  %vm969_vm3 = vcmp.eq.f32.partialorder %v10048_v32, %v9661_v23 }
 0x2f6   :  { %v2794_v49 = vmul.f32 %v8893_v35, %v10312_v2  ;;  %v2811_v48 = vmul.f32 %v8910_v11, %v10322_v55  ;;  %vm968_vm4 = vcmp.eq.f32.partialorder %v10042_v1, %v9661_v23 }
 0x2f8   :  { %v11138_v42 = vpop.permute.xlu1 %3879  ;;  %v11140_v13 = vpop.permute.xlu0 %3888 }
 0x2f9   :  { %15875 = vst [vmem:[#allocation163_spill] sm:$0xff] %v11138_v42  ;;  %15876 = vst [vmem:[#allocation164_spill] sm:$0xff] %v11140_v13  ;;  %4359 = vperm.xlu1 %9375, %v2778_v45   ;;  %4410 = vperm.xlu0 %9374, %v2795_v40   ;;  %v8909_v45 = vsel %vm1130_vm5, 1.0, %v15694_v25  ;;  %v8924_v40 = vsel %vm1145_vm7, 1.0, %v15694_v25  ;;  %vm981_vm5 = vcmp.eq.f32.partialorder %v10052_v47, %v9631_v10 }
 0x2fa   :  { %v2810_v35 = vmul.f32 %v8909_v45, %v10312_v2  ;;  %v2825_v11 = vmul.f32 %v8924_v40, %v10334_v38  ;;  %vm980_vm7 = vcmp.eq.f32.partialorder %v10046_v14, %v9631_v10 }
 0x2fc   :  { %v11150_v29 = vpop.permute.xlu1 %3885  ;;  %v11152_v42 = vpop.permute.xlu0 %3894 }
 0x2fd   :  { %15877 = vst [vmem:[#allocation165_spill] sm:$0xff] %v11150_v29  ;;  %15878 = vst [vmem:[#allocation166_spill] sm:$0xff] %v11152_v42  ;;  %4407 = vperm.xlu1 %9375, %v2794_v49   ;;  %4458 = vperm.xlu0 %9374, %v2811_v48   ;;  %v8923_v49 = vsel %vm1144_vm8, 1.0, %v15694_v25  ;;  %v8940_v48 = vsel %vm1161_vm9, 1.0, %v15694_v25  ;;  %vm983_vm8 = vcmp.eq.f32.partialorder %v10052_v47, %v9634_v12 }
 0x2fe   :  { %v2824_v45 = vmul.f32 %v8923_v49, %v10324_v51  ;;  %v2841_v40 = vmul.f32 %v8940_v48, %v10334_v38  ;;  %vm982_vm9 = vcmp.eq.f32.partialorder %v10046_v14, %v9634_v12 }
 0x300   :  { %v11162_v13 = vpop.permute.xlu1 %3891  ;;  %v11164_v29 = vpop.permute.xlu0 %3900 }
 0x301   :  { %15879 = vst [vmem:[#allocation167_spill] sm:$0xff] %v11162_v13  ;;  %15880 = vst [vmem:[#allocation168_spill] sm:$0xff] %v11164_v29  ;;  %4455 = vperm.xlu1 %9375, %v2810_v35   ;;  %4500 = vperm.xlu0 %9374, %v2825_v11   ;;  %v8939_v35 = vsel %vm1160_vm10, 1.0, %v15694_v25  ;;  %v8952_v11 = vsel %vm1173_vm11, 1.0, %v15694_v25  ;;  %vm997_vm10 = vcmp.eq.f32.partialorder %v10052_v47, %v9703_v41 }
 0x302   :  { %v2840_v49 = vmul.f32 %v8939_v35, %v10324_v51  ;;  %v2853_v48 = vmul.f32 %v8952_v11, %v10354_v36  ;;  %vm996_vm11 = vcmp.eq.f32.partialorder %v10046_v14, %v9703_v41 }
 0x304   :  { %v11174_v42 = vpop.permute.xlu1 %3897  ;;  %v11176_v13 = vpop.permute.xlu0 %3906 }
 0x305   :  { %15881 = vst [vmem:[#allocation169_spill] sm:$0xff] %v11174_v42  ;;  %15882 = vst [vmem:[#allocation170_spill] sm:$0xff] %v11176_v13  ;;  %4497 = vperm.xlu1 %9375, %v2824_v45   ;;  %4548 = vperm.xlu0 %9374, %v2841_v40   ;;  %v8951_v45 = vsel %vm1172_vm12, 1.0, %v15694_v25  ;;  %v8954_v40 = vsel %vm1175_vm13, 1.0, %v15694_v25  ;;  %vm999_vm12 = vcmp.eq.f32.partialorder %v10052_v47, %v9658_v22 }
 0x306   :  { %v2852_v35 = vmul.f32 %v8951_v45, %v10344_v6  ;;  %v2855_v11 = vmul.f32 %v8954_v40, %v10354_v36  ;;  %vm998_vm13 = vcmp.eq.f32.partialorder %v10046_v14, %v9658_v22 }
 0x308   :  { %v11186_v29 = vpop.permute.xlu1 %3903  ;;  %v11188_v42 = vpop.permute.xlu0 %3912 }
 0x309   :  { %15883 = vst [vmem:[#allocation171_spill] sm:$0xff] %v11186_v29  ;;  %15884 = vst [vmem:[#allocation172_spill] sm:$0xff] %v11188_v42  ;;  %4545 = vperm.xlu1 %9375, %v2840_v49   ;;  %4584 = vperm.xlu0 %9374, %v2853_v48   ;;  %v8953_v49 = vsel %vm1174_vm0, 1.0, %v15694_v25  ;;  %v8968_v48 = vsel %vm1189_vm1, 1.0, %v15694_v25  ;;  %vm1085_vm0 = vcmp.eq.f32.partialorder %v10064_v15, %v9648_v18 }
 0x30a   :  { %v2854_v45 = vmul.f32 %v8953_v49, %v10344_v6  ;;  %v2869_v40 = vmul.f32 %v8968_v48, %v10354_v36  ;;  %vm1084_vm1 = vcmp.eq.f32.partialorder %v10058_v61, %v9648_v18 }
 0x30c   :  { %v11198_v13 = vpop.permute.xlu1 %3909  ;;  %v11200_v29 = vpop.permute.xlu0 %3918 }
 0x30d   :  { %15885 = vst [vmem:[#allocation173_spill] sm:$0xff] %v11198_v13  ;;  %15886 = vst [vmem:[#allocation174_spill] sm:$0xff] %v11200_v29  ;;  %4581 = vperm.xlu1 %9375, %v2852_v35   ;;  %4590 = vperm.xlu0 %9374, %v2855_v11   ;;  %v8967_v35 = vsel %vm1188_vm14, 1.0, %v15694_v25  ;;  %v8970_v11 = vsel %vm1191_vm15, 1.0, %v15694_v25  ;;  %vm1101_vm14 = vcmp.eq.f32.partialorder %v10064_v15, %v9669_v26 }
 0x30e   :  { %v2868_v49 = vmul.f32 %v8967_v35, %v10344_v6  ;;  %v2871_v48 = vmul.f32 %v8970_v11, %v10354_v36  ;;  %vm1100_vm15 = vcmp.eq.f32.partialorder %v10058_v61, %v9669_v26 }
 0x310   :  { %v11210_v42 = vpop.permute.xlu1 %3915  ;;  %v11212_v13 = vpop.permute.xlu0 %3924 }
 0x311   :  { %15887 = vst [vmem:[#allocation175_spill] sm:$0xff] %v11210_v42  ;;  %15888 = vst [vmem:[#allocation176_spill] sm:$0xff] %v11212_v13  ;;  %4587 = vperm.xlu1 %9375, %v2854_v45   ;;  %4632 = vperm.xlu0 %9374, %v2869_v40   ;;  %v8969_v45 = vsel %vm1190_vm2, 1.0, %v15694_v25  ;;  %v8748_v40 = vsel %vm969_vm3, 1.0, %v15694_v25  ;;  %vm1117_vm2 = vcmp.eq.f32.partialorder %v10068_v53, %v9648_v18 }
 0x312   :  { %v2870_v35 = vmul.f32 %v8969_v45, %v10344_v6  ;;  %v2649_v11 = vmul.f32 %v8748_v40, %v10238_v43  ;;  %vm1116_vm3 = vcmp.eq.f32.partialorder %v10062_v50, %v9648_v18 }
 0x314   :  { %v11222_v29 = vpop.permute.xlu1 %3921  ;;  %v11224_v42 = vpop.permute.xlu0 %3930 }
 0x315   :  { %15889 = vst [vmem:[#allocation177_spill] sm:$0xff] %v11222_v29  ;;  %15890 = vst [vmem:[#allocation178_spill] sm:$0xff] %v11224_v42  ;;  %4629 = vperm.xlu1 %9375, %v2868_v49   ;;  %4638 = vperm.xlu0 %9374, %v2871_v48   ;;  %v8747_v49 = vsel %vm968_vm4, 1.0, %v15694_v25  ;;  %v8760_v48 = vsel %vm981_vm5, 1.0, %v15694_v25  ;;  %vm1133_vm4 = vcmp.eq.f32.partialorder %v10068_v53, %v9669_v26 }
 0x316   :  { %v2648_v45 = vmul.f32 %v8747_v49, %v10228_v21  ;;  %v2661_v40 = vmul.f32 %v8760_v48, %v10258_v9  ;;  %vm1132_vm5 = vcmp.eq.f32.partialorder %v10062_v50, %v9669_v26 }
 0x318   :  { %v11234_v13 = vpop.permute.xlu1 %3927  ;;  %v11236_v29 = vpop.permute.xlu0 %3936 }
 0x319   :  { %15891 = vst [vmem:[#allocation179_spill] sm:$0xff] %v11234_v13  ;;  %15892 = vst [vmem:[#allocation180_spill] sm:$0xff] %v11236_v29  ;;  %4635 = vperm.xlu1 %9375, %v2870_v35   ;;  %3972 = vperm.xlu0 %9374, %v2649_v11   ;;  %v8759_v35 = vsel %vm980_vm7, 1.0, %v15694_v25  ;;  %v8762_v11 = vsel %vm983_vm8, 1.0, %v15694_v25  ;;  %vm1147_vm7 = vcmp.eq.f32.partialorder %v10072_v60, %v9645_v17 }
 0x31a   :  { %v2660_v49 = vmul.f32 %v8759_v35, %v10248_v39  ;;  %v2663_v48 = vmul.f32 %v8762_v11, %v10258_v9  ;;  %vm1146_vm8 = vcmp.eq.f32.partialorder %v10066_v52, %v9645_v17 }
 0x31c   :  { %v11246_v42 = vpop.permute.xlu1 %3933  ;;  %v11248_v13 = vpop.permute.xlu0 %3942 }
 0x31d   :  { %15893 = vst [vmem:[#allocation181_spill] sm:$0xff] %v11246_v42  ;;  %15894 = vst [vmem:[#allocation182_spill] sm:$0xff] %v11248_v13  ;;  %3969 = vperm.xlu1 %9375, %v2648_v45   ;;  %4008 = vperm.xlu0 %9374, %v2661_v40   ;;  %v8761_v45 = vsel %vm982_vm9, 1.0, %v15694_v25  ;;  %v8776_v40 = vsel %vm997_vm10, 1.0, %v15694_v25  ;;  %vm1163_vm9 = vcmp.eq.f32.partialorder %v10072_v60, %v9664_v24 }
 0x31e   :  { %v2662_v35 = vmul.f32 %v8761_v45, %v10248_v39  ;;  %v2677_v11 = vmul.f32 %v8776_v40, %v10258_v9  ;;  %vm1162_vm10 = vcmp.eq.f32.partialorder %v10066_v52, %v9664_v24 }
 0x320   :  { %v11258_v29 = vpop.permute.xlu1 %3939  ;;  %v11260_v42 = vpop.permute.xlu0 %3948 }
 0x321   :  { %15895 = vst [vmem:[#allocation183_spill] sm:$0xff] %v11258_v29  ;;  %15896 = vst [vmem:[#allocation184_spill] sm:$0xff] %v11260_v42  ;;  %4005 = vperm.xlu1 %9375, %v2660_v49   ;;  %4014 = vperm.xlu0 %9374, %v2663_v48   ;;  %v8775_v49 = vsel %vm996_vm11, 1.0, %v15694_v25  ;;  %v8778_v48 = vsel %vm999_vm12, 1.0, %v15694_v25  ;;  %vm1177_vm11 = vcmp.eq.f32.partialorder %v10076_v62, %v9642_v16 }
 0x322   :  { %v2676_v45 = vmul.f32 %v8775_v49, %v10248_v39  ;;  %v2679_v40 = vmul.f32 %v8778_v48, %v10258_v9  ;;  %vm1176_vm12 = vcmp.eq.f32.partialorder %v10070_v54, %v9642_v16 }
 0x324   :  { %v11270_v13 = vpop.permute.xlu1 %3945  ;;  %v11272_v29 = vpop.permute.xlu0 %3954 }
 0x325   :  { %15897 = vst [vmem:[#allocation185_spill] sm:$0xff] %v11270_v13  ;;  %15898 = vst [vmem:[#allocation186_spill] sm:$0xff] %v11272_v29  ;;  %4011 = vperm.xlu1 %9375, %v2662_v35   ;;  %4056 = vperm.xlu0 %9374, %v2677_v11   ;;  %v8777_v35 = vsel %vm998_vm13, 1.0, %v15694_v25  ;;  %v8864_v11 = vsel %vm1085_vm0, 1.0, %v15694_v25  ;;  %vm1193_vm13 = vcmp.eq.f32.partialorder %v10076_v62, %v9661_v23 }
 0x326   :  { %v2678_v49 = vmul.f32 %v8777_v35, %v10248_v39  ;;  %v2765_v48 = vmul.f32 %v8864_v11, %v10302_v7  ;;  %vm1192_vm0 = vcmp.eq.f32.partialorder %v10070_v54, %v9661_v23 }
 0x328   :  { %v11282_v42 = vpop.permute.xlu1 %3951  ;;  %v11284_v13 = vpop.permute.xlu0 %3960 }
 0x329   :  { %15899 = vst [vmem:[#allocation187_spill] sm:$0xff] %v11282_v42  ;;  %15900 = vst [vmem:[#allocation188_spill] sm:$0xff] %v11284_v13  ;;  %4053 = vperm.xlu1 %9375, %v2676_v45   ;;  %4062 = vperm.xlu0 %9374, %v2679_v40   ;;  %v8863_v45 = vsel %vm1084_vm1, 1.0, %v15694_v25  ;;  %v8880_v40 = vsel %vm1101_vm14, 1.0, %v15694_v25  ;;  %vm1205_vm1 = vcmp.eq.f32.partialorder %v10080_v3, %v9631_v10 }
 0x32a   :  { %v2764_v35 = vmul.f32 %v8863_v45, %v10292_v28  ;;  %v2781_v11 = vmul.f32 %v8880_v40, %v10302_v7  ;;  %vm1204_vm14 = vcmp.eq.f32.partialorder %v10074_v4, %v9631_v10 }
 0x32c   :  { %v11294_v29 = vpop.permute.xlu1 %3957  ;;  %v11296_v42 = vpop.permute.xlu0 %3966 }
 0x32d   :  { %15901 = vst [vmem:[#allocation189_spill] sm:$0xff] %v11294_v29  ;;  %15902 = vst [vmem:[#allocation190_spill] sm:$0xff] %v11296_v42  ;;  %4059 = vperm.xlu1 %9375, %v2678_v49   ;;  %4320 = vperm.xlu0 %9374, %v2765_v48   ;;  %v8879_v49 = vsel %vm1100_vm15, 1.0, %v15694_v25  ;;  %v8896_v48 = vsel %vm1117_vm2, 1.0, %v15694_v25  ;;  %vm1207_vm15 = vcmp.eq.f32.partialorder %v10080_v3, %v9634_v12 }
 0x32e   :  { %v2780_v45 = vmul.f32 %v8879_v49, %v10292_v28  ;;  %v2797_v40 = vmul.f32 %v8896_v48, %v10322_v55  ;;  %vm1206_vm2 = vcmp.eq.f32.partialorder %v10074_v4, %v9634_v12 }
 0x330   :  { %v11306_v13 = vpop.permute.xlu1 %3963  ;;  %v11308_v29 = vpop.permute.xlu0 %4296 }
 0x331   :  { %15903 = vst [vmem:[#allocation191_spill] sm:$0xff] %v11306_v13  ;;  %15904 = vst [vmem:[#allocation192_spill] sm:$0xff] %v11308_v29  ;;  %4317 = vperm.xlu1 %9375, %v2764_v35   ;;  %4368 = vperm.xlu0 %9374, %v2781_v11   ;;  %v8895_v35 = vsel %vm1116_vm3, 1.0, %v15694_v25  ;;  %v8912_v11 = vsel %vm1133_vm4, 1.0, %v15694_v25  ;;  %vm1221_vm3 = vcmp.eq.f32.partialorder %v10080_v3, %v9703_v41 }
 0x332   :  { %v2796_v49 = vmul.f32 %v8895_v35, %v10312_v2  ;;  %v2813_v48 = vmul.f32 %v8912_v11, %v10322_v55  ;;  %vm1220_vm4 = vcmp.eq.f32.partialorder %v10074_v4, %v9703_v41 }
 0x334   :  { %v11318_v42 = vpop.permute.xlu1 %4293  ;;  %v11320_v13 = vpop.permute.xlu0 %4302 }
 0x335   :  { %15905 = vst [vmem:[#allocation193_spill] sm:$0xff] %v11318_v42  ;;  %15906 = vst [vmem:[#allocation194_spill] sm:$0xff] %v11320_v13  ;;  %4365 = vperm.xlu1 %9375, %v2780_v45   ;;  %4416 = vperm.xlu0 %9374, %v2797_v40   ;;  %v8911_v45 = vsel %vm1132_vm5, 1.0, %v15694_v25  ;;  %v8926_v40 = vsel %vm1147_vm7, 1.0, %v15694_v25  ;;  %vm1223_vm5 = vcmp.eq.f32.partialorder %v10080_v3, %v9658_v22 }
 0x336   :  { %v2812_v35 = vmul.f32 %v8911_v45, %v10312_v2  ;;  %v2827_v11 = vmul.f32 %v8926_v40, %v10334_v38  ;;  %vm1222_vm7 = vcmp.eq.f32.partialorder %v10074_v4, %v9658_v22 }
 0x338   :  { %v11330_v29 = vpop.permute.xlu1 %4299  ;;  %v11332_v42 = vpop.permute.xlu0 %4344 }
 0x339   :  { %15907 = vst [vmem:[#allocation195_spill] sm:$0xff] %v11330_v29  ;;  %15908 = vst [vmem:[#allocation196_spill] sm:$0xff] %v11332_v42  ;;  %4413 = vperm.xlu1 %9375, %v2796_v49   ;;  %4464 = vperm.xlu0 %9374, %v2813_v48   ;;  %v8925_v49 = vsel %vm1146_vm8, 1.0, %v15694_v25  ;;  %v8942_v48 = vsel %vm1163_vm9, 1.0, %v15694_v25  ;;  %vm971_vm8 = vcmp.eq.f32.partialorder %v10048_v32, %v9664_v24 }
 0x33a   :  { %v2826_v45 = vmul.f32 %v8925_v49, %v10324_v51  ;;  %v2843_v40 = vmul.f32 %v8942_v48, %v10334_v38  ;;  %vm970_vm9 = vcmp.eq.f32.partialorder %v10042_v1, %v9664_v24 }
 0x33c   :  { %v11342_v13 = vpop.permute.xlu1 %4341  ;;  %v11344_v29 = vpop.permute.xlu0 %4350 }
 0x33d   :  { %15909 = vst [vmem:[#allocation197_spill] sm:$0xff] %v11342_v13  ;;  %15910 = vst [vmem:[#allocation198_spill] sm:$0xff] %v11344_v29  ;;  %4461 = vperm.xlu1 %9375, %v2812_v35   ;;  %4506 = vperm.xlu0 %9374, %v2827_v11   ;;  %v8941_v35 = vsel %vm1162_vm10, 1.0, %v15694_v25  ;;  %v8956_v11 = vsel %vm1177_vm11, 1.0, %v15694_v25  ;;  %vm985_vm10 = vcmp.eq.f32.partialorder %v10052_v47, %v9642_v16 }
 0x33e   :  { %v2842_v49 = vmul.f32 %v8941_v35, %v10324_v51  ;;  %v2857_v48 = vmul.f32 %v8956_v11, %v10354_v36  ;;  %vm984_vm11 = vcmp.eq.f32.partialorder %v10046_v14, %v9642_v16 }
 0x340   :  { %v11354_v42 = vpop.permute.xlu1 %4347  ;;  %v11356_v13 = vpop.permute.xlu0 %4392 }
 0x341   :  { %15911 = vst [vmem:[#allocation199_spill] sm:$0xff] %v11354_v42  ;;  %15912 = vst [vmem:[#allocation200_spill] sm:$0xff] %v11356_v13  ;;  %4503 = vperm.xlu1 %9375, %v2826_v45   ;;  %4554 = vperm.xlu0 %9374, %v2843_v40   ;;  %v8955_v45 = vsel %vm1176_vm12, 1.0, %v15694_v25  ;;  %v8972_v40 = vsel %vm1193_vm13, 1.0, %v15694_v25  ;;  %vm1001_vm12 = vcmp.eq.f32.partialorder %v10052_v47, %v9661_v23 }
 0x342   :  { %v2856_v35 = vmul.f32 %v8955_v45, %v10344_v6  ;;  %v2873_v11 = vmul.f32 %v8972_v40, %v10354_v36  ;;  %vm1000_vm13 = vcmp.eq.f32.partialorder %v10046_v14, %v9661_v23 }
 0x344   :  { %v11366_v29 = vpop.permute.xlu1 %4389  ;;  %v11368_v42 = vpop.permute.xlu0 %4398 }
 0x345   :  { %15913 = vst [vmem:[#allocation201_spill] sm:$0xff] %v11366_v29  ;;  %15914 = vst [vmem:[#allocation202_spill] sm:$0xff] %v11368_v42  ;;  %4551 = vperm.xlu1 %9375, %v2842_v49   ;;  %4596 = vperm.xlu0 %9374, %v2857_v48   ;;  %v8971_v49 = vsel %vm1192_vm0, 1.0, %v15694_v25  ;;  %v8984_v48 = vsel %vm1205_vm1, 1.0, %v15694_v25  ;;  %vm1012_vm1 = vcmp.eq.f32.partialorder %v15934_v0, %v9631_v10 }
 0x346   :  { %v2872_v45 = vmul.f32 %v8971_v49, %v10344_v6  ;;  %v2885_v40 = vmul.f32 %v8984_v48, %v10366_v8 }
 0x348   :  { %v11378_v13 = vpop.permute.xlu1 %4395  ;;  %v11380_v29 = vpop.permute.xlu0 %4440 }
 0x349   :  { %15915 = vst [vmem:[#allocation203_spill] sm:$0xff] %v11378_v13  ;;  %15916 = vst [vmem:[#allocation204_spill] sm:$0xff] %v11380_v29  ;;  %4593 = vperm.xlu1 %9375, %v2856_v35   ;;  %4644 = vperm.xlu0 %9374, %v2873_v11   ;;  %v8983_v35 = vsel %vm1204_vm14, 1.0, %v15694_v25  ;;  %v8986_v11 = vsel %vm1207_vm15, 1.0, %v15694_v25  ;;  %v15919_v29 = vld [vmem:[#allocation36_spill] sm:$0xff]  ;;  %vm1014_vm15 = vcmp.eq.f32.partialorder %v15934_v0, %v9634_v12 }
 0x34a   :  { %v2884_v49 = vmul.f32 %v8983_v35, %v15919_v29  ;;  %v2887_v48 = vmul.f32 %v8986_v11, %v10366_v8 }
 0x34c   :  { %v11390_v42 = vpop.permute.xlu1 %4437  ;;  %v11392_v13 = vpop.permute.xlu0 %4446 }
 0x34d   :  { %15917 = vst [vmem:[#allocation205_spill] sm:$0xff] %v11390_v42  ;;  %15918 = vst [vmem:[#allocation206_spill] sm:$0xff] %v11392_v13  ;;  %4641 = vperm.xlu1 %9375, %v2872_v45   ;;  %4680 = vperm.xlu0 %9374, %v2885_v40   ;;  %v8985_v45 = vsel %vm1206_vm2, 1.0, %v15694_v25  ;;  %v9000_v40 = vsel %vm1221_vm3, 1.0, %v15694_v25  ;;  %vm1028_vm3 = vcmp.eq.f32.partialorder %v15934_v0, %v9703_v41 }
 0x34e   :  { %v2886_v35 = vmul.f32 %v8985_v45, %v15919_v29  ;;  %v2901_v11 = vmul.f32 %v9000_v40, %v10366_v8 }
 0x350   :  { %v11402_v44 = vpop.permute.xlu1 %4443  ;;  %v11404_v42 = vpop.permute.xlu0 %4308 }
 0x351   :  { %15920 = vst [vmem:[#allocation207_spill] sm:$0xff] %v11402_v44  ;;  %15921 = vst [vmem:[#allocation208_spill] sm:$0xff] %v11404_v42  ;;  %4677 = vperm.xlu1 %9375, %v2884_v49   ;;  %4686 = vperm.xlu0 %9374, %v2887_v48   ;;  %v8999_v49 = vsel %vm1220_vm4, 1.0, %v15694_v25  ;;  %v9002_v48 = vsel %vm1223_vm5, 1.0, %v15694_v25  ;;  %vm1030_vm5 = vcmp.eq.f32.partialorder %v15934_v0, %v9658_v22 }
 0x352   :  { %v2900_v45 = vmul.f32 %v8999_v49, %v15919_v29  ;;  %v2903_v40 = vmul.f32 %v9002_v48, %v10366_v8 }
 0x354   :  { %v11414_v13 = vpop.permute.xlu1 %4305  ;;  %v11416_v44 = vpop.permute.xlu0 %4356 }
 0x355   :  { %15922 = vst [vmem:[#allocation209_spill] sm:$0xff] %v11414_v13  ;;  %15923 = vst [vmem:[#allocation210_spill] sm:$0xff] %v11416_v44  ;;  %4683 = vperm.xlu1 %9375, %v2886_v35   ;;  %4728 = vperm.xlu0 %9374, %v2901_v11   ;;  %v9001_v35 = vsel %vm1222_vm7, 1.0, %v15694_v25  ;;  %v8750_v11 = vsel %vm971_vm8, 1.0, %v15694_v25  ;;  %vm1087_vm7 = vcmp.eq.f32.partialorder %v10064_v15, %v9651_v19 }
 0x356   :  { %v2902_v49 = vmul.f32 %v9001_v35, %v15919_v29  ;;  %v2651_v48 = vmul.f32 %v8750_v11, %v10238_v43  ;;  %vm1086_vm8 = vcmp.eq.f32.partialorder %v10058_v61, %v9651_v19 }
 0x358   :  { %v11426_v42 = vpop.permute.xlu1 %4353  ;;  %v11428_v13 = vpop.permute.xlu0 %4404 }
 0x359   :  { %15924 = vst [vmem:[#allocation211_spill] sm:$0xff] %v11426_v42  ;;  %15925 = vst [vmem:[#allocation212_spill] sm:$0xff] %v11428_v13  ;;  %4725 = vperm.xlu1 %9375, %v2900_v45   ;;  %4734 = vperm.xlu0 %9374, %v2903_v40   ;;  %v8749_v45 = vsel %vm970_vm9, 1.0, %v15694_v25  ;;  %v8764_v40 = vsel %vm985_vm10, 1.0, %v15694_v25  ;;  %vm1103_vm9 = vcmp.eq.f32.partialorder %v10064_v15, %v9672_v27 }
 0x35a   :  { %v2650_v35 = vmul.f32 %v8749_v45, %v10228_v21  ;;  %v2665_v11 = vmul.f32 %v8764_v40, %v10258_v9  ;;  %vm1102_vm10 = vcmp.eq.f32.partialorder %v10058_v61, %v9672_v27 }
 0x35c   :  { %v11438_v44 = vpop.permute.xlu1 %4401  ;;  %v11440_v42 = vpop.permute.xlu0 %4452 }
 0x35d   :  { %15926 = vst [vmem:[#allocation213_spill] sm:$0xff] %v11438_v44  ;;  %15927 = vst [vmem:[#allocation214_spill] sm:$0xff] %v11440_v42  ;;  %4731 = vperm.xlu1 %9375, %v2902_v49   ;;  %3978 = vperm.xlu0 %9374, %v2651_v48   ;;  %v8763_v49 = vsel %vm984_vm11, 1.0, %v15694_v25  ;;  %v8780_v48 = vsel %vm1001_vm12, 1.0, %v15694_v25  ;;  %v15930_v42 = vld [vmem:[#allocation21_spill] sm:$0xff]  ;;  %vm1119_vm11 = vcmp.eq.f32.partialorder %v10068_v53, %v9651_v19 }
 0x35e   :  { %v2664_v45 = vmul.f32 %v8763_v49, %v10248_v39  ;;  %v2681_v40 = vmul.f32 %v8780_v48, %v10258_v9  ;;  %vm1013_vm0 = vcmp.eq.f32.partialorder %v15930_v42, %v9631_v10  ;;  %vm1015_vm14 = vcmp.eq.f32.partialorder %v15930_v42, %v9634_v12 }
 0x35f   :  { %vm1029_vm2 = vcmp.eq.f32.partialorder %v15930_v42, %v9703_v41  ;;  %vm1031_vm4 = vcmp.eq.f32.partialorder %v15930_v42, %v9658_v22  ;;  %vm1118_vm12 = vcmp.eq.f32.partialorder %v10062_v50, %v9651_v19 }
 0x360   :  { %v11450_v13 = vpop.permute.xlu1 %4449  ;;  %v11452_v44 = vpop.permute.xlu0 %4488 }
 0x361   :  { %15928 = vst [vmem:[#allocation215_spill] sm:$0xff] %v11450_v13  ;;  %15929 = vst [vmem:[#allocation216_spill] sm:$0xff] %v11452_v44  ;;  %3975 = vperm.xlu1 %9375, %v2650_v35   ;;  %4020 = vperm.xlu0 %9374, %v2665_v11   ;;  %v8779_v35 = vsel %vm1000_vm13, 1.0, %v15694_v25  ;;  %v8792_v11 = vsel %vm1013_vm0, 1.0, %v15694_v25  ;;  %v15933_v44 = vld [vmem:[#allocation32_spill] sm:$0xff]  ;;  %vm1135_vm13 = vcmp.eq.f32.partialorder %v10068_v53, %v9672_v27 }
 0x362   :  { %v2680_v49 = vmul.f32 %v8779_v35, %v10248_v39  ;;  %v2693_v48 = vmul.f32 %v8792_v11, %v15933_v44  ;;  %vm1134_vm0 = vcmp.eq.f32.partialorder %v10062_v50, %v9672_v27 }
 0x364   :  { %v11462_v63 = vpop.permute.xlu1 %4485  ;;  %v11464_v13 = vpop.permute.xlu0 %4494 }
 0x365   :  { %15931 = vst [vmem:[#allocation217_spill] sm:$0xff] %v11462_v63  ;;  %15932 = vst [vmem:[#allocation218_spill] sm:$0xff] %v11464_v13  ;;  %4017 = vperm.xlu1 %9375, %v2664_v45   ;;  %4068 = vperm.xlu0 %9374, %v2681_v40   ;;  %v8791_v45 = vsel %vm1012_vm1, 1.0, %v15694_v25  ;;  %v8794_v40 = vsel %vm1015_vm14, 1.0, %v15694_v25  ;;  %v15937_v13 = vld [vmem:[#allocation31_spill] sm:$0xff]  ;;  %vm1149_vm1 = vcmp.eq.f32.partialorder %v10072_v60, %v9648_v18 }
 0x366   :  { %v2692_v35 = vmul.f32 %v8791_v45, %v15937_v13  ;;  %v2695_v11 = vmul.f32 %v8794_v40, %v15933_v44  ;;  %vm1148_vm14 = vcmp.eq.f32.partialorder %v10066_v52, %v9648_v18 }
 0x368   :  { %v11474_v46 = vpop.permute.xlu1 %4491  ;;  %v11476_v63 = vpop.permute.xlu0 %4536 }
 0x369   :  { %15935 = vst [vmem:[#allocation32_spill] sm:$0xff] %v11474_v46  ;;  %15936 = vst [vmem:[#allocation19_spill] sm:$0xff] %v11476_v63  ;;  %4065 = vperm.xlu1 %9375, %v2680_v49   ;;  %4104 = vperm.xlu0 %9374, %v2693_v48   ;;  %v8793_v49 = vsel %vm1014_vm15, 1.0, %v15694_v25  ;;  %v8808_v48 = vsel %vm1029_vm2, 1.0, %v15694_v25  ;;  %vm1165_vm15 = vcmp.eq.f32.partialorder %v10072_v60, %v9669_v26 }
 0x36a   :  { %v2694_v45 = vmul.f32 %v8793_v49, %v15937_v13  ;;  %v2709_v40 = vmul.f32 %v8808_v48, %v15933_v44  ;;  %vm1164_vm2 = vcmp.eq.f32.partialorder %v10066_v52, %v9669_v26 }
 0x36c   :  { %v11486_v37 = vpop.permute.xlu1 %4533  ;;  %v11488_v46 = vpop.permute.xlu0 %4542 }
 0x36d   :  { %15938 = vst [vmem:[#allocation219_spill] sm:$0xff] %v11486_v37  ;;  %15939 = vst [vmem:[#allocation220_spill] sm:$0xff] %v11488_v46  ;;  %4101 = vperm.xlu1 %9375, %v2692_v35   ;;  %4110 = vperm.xlu0 %9374, %v2695_v11   ;;  %v8807_v35 = vsel %vm1028_vm3, 1.0, %v15694_v25  ;;  %v8810_v11 = vsel %vm1031_vm4, 1.0, %v15694_v25  ;;  %vm1179_vm3 = vcmp.eq.f32.partialorder %v10076_v62, %v9645_v17 }
 0x36e   :  { %v2708_v49 = vmul.f32 %v8807_v35, %v15937_v13  ;;  %v2711_v48 = vmul.f32 %v8810_v11, %v15933_v44  ;;  %vm1178_vm4 = vcmp.eq.f32.partialorder %v10070_v54, %v9645_v17 }
 0x370   :  { %v11498_v63 = vpop.permute.xlu1 %4539  ;;  %v11500_v37 = vpop.permute.xlu0 %4314 }
 0x371   :  { %15940 = vst [vmem:[#allocation221_spill] sm:$0xff] %v11498_v63  ;;  %15941 = vst [vmem:[#allocation222_spill] sm:$0xff] %v11500_v37  ;;  %4107 = vperm.xlu1 %9375, %v2694_v45   ;;  %4152 = vperm.xlu0 %9374, %v2709_v40   ;;  %v8809_v45 = vsel %vm1030_vm5, 1.0, %v15694_v25  ;;  %v8866_v40 = vsel %vm1087_vm7, 1.0, %v15694_v25  ;;  %vm1195_vm5 = vcmp.eq.f32.partialorder %v10076_v62, %v9664_v24 }
 0x372   :  { %v2710_v35 = vmul.f32 %v8809_v45, %v15937_v13  ;;  %v2767_v11 = vmul.f32 %v8866_v40, %v10302_v7  ;;  %vm1194_vm7 = vcmp.eq.f32.partialorder %v10070_v54, %v9664_v24 }
 0x374   :  { %v11510_v46 = vpop.permute.xlu1 %4311  ;;  %v11512_v63 = vpop.permute.xlu0 %4362 }
 0x375   :  { %15942 = vst [vmem:[#allocation223_spill] sm:$0xff] %v11510_v46  ;;  %15943 = vst [vmem:[#allocation224_spill] sm:$0xff] %v11512_v63  ;;  %4149 = vperm.xlu1 %9375, %v2708_v49   ;;  %4158 = vperm.xlu0 %9374, %v2711_v48   ;;  %v8865_v49 = vsel %vm1086_vm8, 1.0, %v15694_v25  ;;  %v8882_v48 = vsel %vm1103_vm9, 1.0, %v15694_v25  ;;  %vm1209_vm8 = vcmp.eq.f32.partialorder %v10080_v3, %v9642_v16 }
 0x376   :  { %v2766_v45 = vmul.f32 %v8865_v49, %v10292_v28  ;;  %v2783_v40 = vmul.f32 %v8882_v48, %v10302_v7  ;;  %vm1208_vm9 = vcmp.eq.f32.partialorder %v10074_v4, %v9642_v16 }
 0x378   :  { %v11522_v37 = vpop.permute.xlu1 %4359  ;;  %v11524_v46 = vpop.permute.xlu0 %4410 }
 0x379   :  { %15944 = vst [vmem:[#allocation225_spill] sm:$0xff] %v11522_v37  ;;  %15945 = vst [vmem:[#allocation226_spill] sm:$0xff] %v11524_v46  ;;  %4155 = vperm.xlu1 %9375, %v2710_v35   ;;  %4326 = vperm.xlu0 %9374, %v2767_v11   ;;  %v8881_v35 = vsel %vm1102_vm10, 1.0, %v15694_v25  ;;  %v8898_v11 = vsel %vm1119_vm11, 1.0, %v15694_v25  ;;  %vm1225_vm10 = vcmp.eq.f32.partialorder %v10080_v3, %v9661_v23 }
 0x37a   :  { %v2782_v49 = vmul.f32 %v8881_v35, %v10292_v28  ;;  %v2799_v48 = vmul.f32 %v8898_v11, %v10322_v55  ;;  %vm1224_vm11 = vcmp.eq.f32.partialorder %v10074_v4, %v9661_v23 }
 0x37c   :  { %v11534_v63 = vpop.permute.xlu1 %4407  ;;  %v11536_v37 = vpop.permute.xlu0 %4458 }
 0x37d   :  { %15946 = vst [vmem:[#allocation227_spill] sm:$0xff] %v11534_v63  ;;  %15947 = vst [vmem:[#allocation228_spill] sm:$0xff] %v11536_v37  ;;  %4323 = vperm.xlu1 %9375, %v2766_v45   ;;  %4374 = vperm.xlu0 %9374, %v2783_v40   ;;  %v8897_v45 = vsel %vm1118_vm12, 1.0, %v15694_v25  ;;  %v8914_v40 = vsel %vm1135_vm13, 1.0, %v15694_v25  ;;  %vm1236_vm13 = vcmp.eq.f32.partialorder %v15966_v20, %v9631_v10 }
 0x37e   :  { %v2798_v35 = vmul.f32 %v8897_v45, %v10312_v2  ;;  %v2815_v11 = vmul.f32 %v8914_v40, %v10322_v55 }
 0x380   :  { %v11546_v46 = vpop.permute.xlu1 %4455  ;;  %v11548_v63 = vpop.permute.xlu0 %4500 }
 0x381   :  { %15948 = vst [vmem:[#allocation229_spill] sm:$0xff] %v11546_v46  ;;  %15949 = vst [vmem:[#allocation230_spill] sm:$0xff] %v11548_v63  ;;  %4371 = vperm.xlu1 %9375, %v2782_v49   ;;  %4422 = vperm.xlu0 %9374, %v2799_v48   ;;  %v8913_v49 = vsel %vm1134_vm0, 1.0, %v15694_v25  ;;  %v8928_v48 = vsel %vm1149_vm1, 1.0, %v15694_v25  ;;  %vm1238_vm1 = vcmp.eq.f32.partialorder %v15966_v20, %v9634_v12 }
 0x382   :  { %v2814_v45 = vmul.f32 %v8913_v49, %v10312_v2  ;;  %v2829_v40 = vmul.f32 %v8928_v48, %v10334_v38 }
 0x384   :  { %v11558_v37 = vpop.permute.xlu1 %4497  ;;  %v11560_v46 = vpop.permute.xlu0 %4548 }
 0x385   :  { %15950 = vst [vmem:[#allocation231_spill] sm:$0xff] %v11558_v37  ;;  %15951 = vst [vmem:[#allocation232_spill] sm:$0xff] %v11560_v46  ;;  %4419 = vperm.xlu1 %9375, %v2798_v35   ;;  %4470 = vperm.xlu0 %9374, %v2815_v11   ;;  %v8927_v35 = vsel %vm1148_vm14, 1.0, %v15694_v25  ;;  %v8944_v11 = vsel %vm1165_vm15, 1.0, %v15694_v25  ;;  %vm1252_vm15 = vcmp.eq.f32.partialorder %v15966_v20, %v9703_v41 }
 0x386   :  { %v2828_v49 = vmul.f32 %v8927_v35, %v10324_v51  ;;  %v2845_v48 = vmul.f32 %v8944_v11, %v10334_v38 }
 0x388   :  { %v11570_v63 = vpop.permute.xlu1 %4545  ;;  %v11572_v37 = vpop.permute.xlu0 %4584 }
 0x389   :  { %15952 = vst [vmem:[#allocation233_spill] sm:$0xff] %v11570_v63  ;;  %15953 = vst [vmem:[#allocation234_spill] sm:$0xff] %v11572_v37  ;;  %4467 = vperm.xlu1 %9375, %v2814_v45   ;;  %4512 = vperm.xlu0 %9374, %v2829_v40   ;;  %v8943_v45 = vsel %vm1164_vm2, 1.0, %v15694_v25  ;;  %v8958_v40 = vsel %vm1179_vm3, 1.0, %v15694_v25  ;;  %vm1254_vm3 = vcmp.eq.f32.partialorder %v15966_v20, %v9658_v22 }
 0x38a   :  { %v2844_v35 = vmul.f32 %v8943_v45, %v10324_v51  ;;  %v2859_v11 = vmul.f32 %v8958_v40, %v10354_v36 }
 0x38c   :  { %v11582_v46 = vpop.permute.xlu1 %4581  ;;  %v11584_v63 = vpop.permute.xlu0 %4590 }
 0x38d   :  { %15954 = vst [vmem:[#allocation235_spill] sm:$0xff] %v11582_v46  ;;  %15955 = vst [vmem:[#allocation236_spill] sm:$0xff] %v11584_v63  ;;  %4509 = vperm.xlu1 %9375, %v2828_v49   ;;  %4560 = vperm.xlu0 %9374, %v2845_v48   ;;  %v8957_v49 = vsel %vm1178_vm4, 1.0, %v15694_v25  ;;  %v8974_v48 = vsel %vm1195_vm5, 1.0, %v15694_v25  ;;  %vm973_vm4 = vcmp.eq.f32.partialorder %v10048_v32, %v9669_v26 }
 0x38e   :  { %v2858_v45 = vmul.f32 %v8957_v49, %v10344_v6  ;;  %v2875_v40 = vmul.f32 %v8974_v48, %v10354_v36  ;;  %vm972_vm5 = vcmp.eq.f32.partialorder %v10042_v1, %v9669_v26 }
 0x390   :  { %v11594_v37 = vpop.permute.xlu1 %4587  ;;  %v11596_v46 = vpop.permute.xlu0 %4632 }
 0x391   :  { %15956 = vst [vmem:[#allocation237_spill] sm:$0xff] %v11594_v37  ;;  %15957 = vst [vmem:[#allocation238_spill] sm:$0xff] %v11596_v46  ;;  %4557 = vperm.xlu1 %9375, %v2844_v35   ;;  %4602 = vperm.xlu0 %9374, %v2859_v11   ;;  %v8973_v35 = vsel %vm1194_vm7, 1.0, %v15694_v25  ;;  %v8988_v11 = vsel %vm1209_vm8, 1.0, %v15694_v25  ;;  %vm987_vm7 = vcmp.eq.f32.partialorder %v10052_v47, %v9645_v17 }
 0x392   :  { %v2874_v49 = vmul.f32 %v8973_v35, %v10344_v6  ;;  %v2889_v48 = vmul.f32 %v8988_v11, %v10366_v8  ;;  %vm986_vm8 = vcmp.eq.f32.partialorder %v10046_v14, %v9645_v17 }
 0x394   :  { %v11606_v63 = vpop.permute.xlu1 %4629  ;;  %v11608_v37 = vpop.permute.xlu0 %4638 }
 0x395   :  { %15958 = vst [vmem:[#allocation239_spill] sm:$0xff] %v11606_v63  ;;  %15959 = vst [vmem:[#allocation240_spill] sm:$0xff] %v11608_v37  ;;  %4599 = vperm.xlu1 %9375, %v2858_v45   ;;  %4650 = vperm.xlu0 %9374, %v2875_v40   ;;  %v8987_v45 = vsel %vm1208_vm9, 1.0, %v15694_v25  ;;  %v9004_v40 = vsel %vm1225_vm10, 1.0, %v15694_v25  ;;  %v15962_v37 = vld [vmem:[#allocation27_spill] sm:$0xff]  ;;  %vm1003_vm9 = vcmp.eq.f32.partialorder %v10052_v47, %v9664_v24 }
 0x396   :  { %v2888_v35 = vmul.f32 %v8987_v45, %v15919_v29  ;;  %v2905_v11 = vmul.f32 %v9004_v40, %v10366_v8  ;;  %vm1237_vm12 = vcmp.eq.f32.partialorder %v15962_v37, %v9631_v10  ;;  %vm1239_vm0 = vcmp.eq.f32.partialorder %v15962_v37, %v9634_v12 }
 0x397   :  { %vm1253_vm14 = vcmp.eq.f32.partialorder %v15962_v37, %v9703_v41  ;;  %vm1255_vm2 = vcmp.eq.f32.partialorder %v15962_v37, %v9658_v22  ;;  %vm1002_vm10 = vcmp.eq.f32.partialorder %v10046_v14, %v9664_v24 }
 0x398   :  { %v11618_v46 = vpop.permute.xlu1 %4635  ;;  %v11620_v63 = vpop.permute.xlu0 %3972 }
 0x399   :  { %15960 = vst [vmem:[#allocation241_spill] sm:$0xff] %v11618_v46  ;;  %15961 = vst [vmem:[#allocation242_spill] sm:$0xff] %v11620_v63  ;;  %4647 = vperm.xlu1 %9375, %v2874_v49   ;;  %4692 = vperm.xlu0 %9374, %v2889_v48   ;;  %v9003_v49 = vsel %vm1224_vm11, 1.0, %v15694_v25  ;;  %v9016_v48 = vsel %vm1237_vm12, 1.0, %v15694_v25  ;;  %v15965_v63 = vld [vmem:[#allocation39_spill] sm:$0xff]  ;;  %vm1017_vm11 = vcmp.eq.f32.partialorder %v15930_v42, %v9642_v16 }
 0x39a   :  { %v2904_v45 = vmul.f32 %v9003_v49, %v15919_v29  ;;  %v2917_v40 = vmul.f32 %v9016_v48, %v15965_v63  ;;  %vm1016_vm12 = vcmp.eq.f32.partialorder %v15934_v0, %v9642_v16 }
 0x39c   :  { %v11630_v57 = vpop.permute.xlu1 %3969  ;;  %v11632_v46 = vpop.permute.xlu0 %4008 }
 0x39d   :  { %15963 = vst [vmem:[#allocation243_spill] sm:$0xff] %v11630_v57  ;;  %15964 = vst [vmem:[#allocation244_spill] sm:$0xff] %v11632_v46  ;;  %4689 = vperm.xlu1 %9375, %v2888_v35   ;;  %4740 = vperm.xlu0 %9374, %v2905_v11   ;;  %v9015_v35 = vsel %vm1236_vm13, 1.0, %v15694_v25  ;;  %v9018_v11 = vsel %vm1239_vm0, 1.0, %v15694_v25  ;;  %v15969_v46 = vld [vmem:[#allocation38_spill] sm:$0xff]  ;;  %vm1033_vm13 = vcmp.eq.f32.partialorder %v15930_v42, %v9661_v23 }
 0x39e   :  { %v2916_v49 = vmul.f32 %v9015_v35, %v15969_v46  ;;  %v2919_v48 = vmul.f32 %v9018_v11, %v15965_v63  ;;  %vm1032_vm0 = vcmp.eq.f32.partialorder %v15934_v0, %v9661_v23 }
 0x3a0   :  { %v11642_v56 = vpop.permute.xlu1 %4005  ;;  %v11644_v57 = vpop.permute.xlu0 %4014 }
 0x3a1   :  { %15967 = vst [vmem:[#allocation39_spill] sm:$0xff] %v11642_v56  ;;  %15968 = vst [vmem:[#allocation245_spill] sm:$0xff] %v11644_v57  ;;  %4737 = vperm.xlu1 %9375, %v2904_v45   ;;  %4776 = vperm.xlu0 %9374, %v2917_v40   ;;  %v9017_v45 = vsel %vm1238_vm1, 1.0, %v15694_v25  ;;  %v9032_v40 = vsel %vm1253_vm14, 1.0, %v15694_v25  ;;  %vm1044_vm14 = vcmp.eq.f32.partialorder %v15988_v34, %v9631_v10 }
 0x3a2   :  { %v2918_v35 = vmul.f32 %v9017_v45, %v15969_v46  ;;  %v2933_v11 = vmul.f32 %v9032_v40, %v15965_v63 }
 0x3a4   :  { %v11654_v59 = vpop.permute.xlu1 %4011  ;;  %v11656_v56 = vpop.permute.xlu0 %4056 }
 0x3a5   :  { %15970 = vst [vmem:[#allocation38_spill] sm:$0xff] %v11654_v59  ;;  %15971 = vst [vmem:[#allocation246_spill] sm:$0xff] %v11656_v56  ;;  %4773 = vperm.xlu1 %9375, %v2916_v49   ;;  %4782 = vperm.xlu0 %9374, %v2919_v48   ;;  %v9031_v49 = vsel %vm1252_vm15, 1.0, %v15694_v25  ;;  %v9034_v48 = vsel %vm1255_vm2, 1.0, %v15694_v25  ;;  %vm1046_vm2 = vcmp.eq.f32.partialorder %v15988_v34, %v9634_v12 }
 0x3a6   :  { %v2932_v45 = vmul.f32 %v9031_v49, %v15969_v46  ;;  %v2935_v40 = vmul.f32 %v9034_v48, %v15965_v63 }
 0x3a8   :  { %v11666_v57 = vpop.permute.xlu1 %4053  ;;  %v11668_v59 = vpop.permute.xlu0 %4062 }
 0x3a9   :  { %15972 = vst [vmem:[#allocation247_spill] sm:$0xff] %v11666_v57  ;;  %15973 = vst [vmem:[#allocation248_spill] sm:$0xff] %v11668_v59  ;;  %4779 = vperm.xlu1 %9375, %v2918_v35   ;;  %4824 = vperm.xlu0 %9374, %v2933_v11   ;;  %v9033_v35 = vsel %vm1254_vm3, 1.0, %v15694_v25  ;;  %v8752_v11 = vsel %vm973_vm4, 1.0, %v15694_v25  ;;  %vm1060_vm4 = vcmp.eq.f32.partialorder %v15988_v34, %v9703_v41 }
 0x3aa   :  { %v2934_v49 = vmul.f32 %v9033_v35, %v15969_v46  ;;  %v2653_v48 = vmul.f32 %v8752_v11, %v10238_v43 }
 0x3ac   :  { %v11678_v56 = vpop.permute.xlu1 %4059  ;;  %v11680_v57 = vpop.permute.xlu0 %4320 }
 0x3ad   :  { %15974 = vst [vmem:[#allocation249_spill] sm:$0xff] %v11678_v56  ;;  %15975 = vst [vmem:[#allocation250_spill] sm:$0xff] %v11680_v57  ;;  %4821 = vperm.xlu1 %9375, %v2932_v45   ;;  %4830 = vperm.xlu0 %9374, %v2935_v40   ;;  %v8751_v45 = vsel %vm972_vm5, 1.0, %v15694_v25  ;;  %v8766_v40 = vsel %vm987_vm7, 1.0, %v15694_v25  ;;  %vm1062_vm7 = vcmp.eq.f32.partialorder %v15988_v34, %v9658_v22 }
 0x3ae   :  { %v2652_v35 = vmul.f32 %v8751_v45, %v10228_v21  ;;  %v2667_v11 = vmul.f32 %v8766_v40, %v10258_v9 }
 0x3b0   :  { %v11690_v59 = vpop.permute.xlu1 %4317  ;;  %v11692_v56 = vpop.permute.xlu0 %4368 }
 0x3b1   :  { %15976 = vst [vmem:[#allocation251_spill] sm:$0xff] %v11690_v59  ;;  %15977 = vst [vmem:[#allocation252_spill] sm:$0xff] %v11692_v56  ;;  %4827 = vperm.xlu1 %9375, %v2934_v49   ;;  %3984 = vperm.xlu0 %9374, %v2653_v48   ;;  %v8765_v49 = vsel %vm986_vm8, 1.0, %v15694_v25  ;;  %v8782_v48 = vsel %vm1003_vm9, 1.0, %v15694_v25  ;;  %vm1089_vm8 = vcmp.eq.f32.partialorder %v10064_v15, %v9677_v30 }
 0x3b2   :  { %v2666_v45 = vmul.f32 %v8765_v49, %v10248_v39  ;;  %v2683_v40 = vmul.f32 %v8782_v48, %v10258_v9  ;;  %vm1088_vm9 = vcmp.eq.f32.partialorder %v10058_v61, %v9677_v30 }
 0x3b4   :  { %v11702_v57 = vpop.permute.xlu1 %4365  ;;  %v11704_v59 = vpop.permute.xlu0 %4416 }
 0x3b5   :  { %15978 = vst [vmem:[#allocation253_spill] sm:$0xff] %v11702_v57  ;;  %15979 = vst [vmem:[#allocation254_spill] sm:$0xff] %v11704_v59  ;;  %3981 = vperm.xlu1 %9375, %v2652_v35   ;;  %4026 = vperm.xlu0 %9374, %v2667_v11   ;;  %v8781_v35 = vsel %vm1002_vm10, 1.0, %v15694_v25  ;;  %v8796_v11 = vsel %vm1017_vm11, 1.0, %v15694_v25  ;;  %vm1105_vm10 = vcmp.eq.f32.partialorder %v10064_v15, %v9680_v31 }
 0x3b6   :  { %v2682_v49 = vmul.f32 %v8781_v35, %v10248_v39  ;;  %v2697_v48 = vmul.f32 %v8796_v11, %v15933_v44  ;;  %vm1104_vm11 = vcmp.eq.f32.partialorder %v10058_v61, %v9680_v31 }
 0x3b8   :  { %v11714_v56 = vpop.permute.xlu1 %4413  ;;  %v11716_v57 = vpop.permute.xlu0 %4464 }
 0x3b9   :  { %15980 = vst [vmem:[#allocation255_spill] sm:$0xff] %v11714_v56  ;;  %15981 = vst [vmem:[#allocation256_spill] sm:$0xff] %v11716_v57  ;;  %4023 = vperm.xlu1 %9375, %v2666_v45   ;;  %4074 = vperm.xlu0 %9374, %v2683_v40   ;;  %v8795_v45 = vsel %vm1016_vm12, 1.0, %v15694_v25  ;;  %v8812_v40 = vsel %vm1033_vm13, 1.0, %v15694_v25  ;;  %v15984_v57 = vld [vmem:[#allocation22_spill] sm:$0xff]  ;;  %vm1121_vm12 = vcmp.eq.f32.partialorder %v10068_v53, %v9677_v30 }
 0x3ba   :  { %v2696_v35 = vmul.f32 %v8795_v45, %v15937_v13  ;;  %v2713_v11 = vmul.f32 %v8812_v40, %v15933_v44  ;;  %vm1045_vm1 = vcmp.eq.f32.partialorder %v15984_v57, %v9631_v10  ;;  %vm1047_vm15 = vcmp.eq.f32.partialorder %v15984_v57, %v9634_v12 }
 0x3bb   :  { %vm1061_vm3 = vcmp.eq.f32.partialorder %v15984_v57, %v9703_v41  ;;  %vm1063_vm5 = vcmp.eq.f32.partialorder %v15984_v57, %v9658_v22  ;;  %vm1120_vm13 = vcmp.eq.f32.partialorder %v10062_v50, %v9677_v30 }
 0x3bc   :  { %v11726_v59 = vpop.permute.xlu1 %4461  ;;  %v11728_v56 = vpop.permute.xlu0 %4506 }
 0x3bd   :  { %15982 = vst [vmem:[#allocation257_spill] sm:$0xff] %v11726_v59  ;;  %15983 = vst [vmem:[#allocation258_spill] sm:$0xff] %v11728_v56  ;;  %4071 = vperm.xlu1 %9375, %v2682_v49   ;;  %4116 = vperm.xlu0 %9374, %v2697_v48   ;;  %v8811_v49 = vsel %vm1032_vm0, 1.0, %v15694_v25  ;;  %v8824_v48 = vsel %vm1045_vm1, 1.0, %v15694_v25  ;;  %v15987_v56 = vld [vmem:[#allocation34_spill] sm:$0xff]  ;;  %vm1137_vm0 = vcmp.eq.f32.partialorder %v10068_v53, %v9680_v31 }
 0x3be   :  { %v2712_v45 = vmul.f32 %v8811_v49, %v15937_v13  ;;  %v2725_v40 = vmul.f32 %v8824_v48, %v15987_v56  ;;  %vm1136_vm1 = vcmp.eq.f32.partialorder %v10062_v50, %v9680_v31 }
 0x3c0   :  { %v11738_v58 = vpop.permute.xlu1 %4503  ;;  %v11740_v59 = vpop.permute.xlu0 %4554 }
 0x3c1   :  { %15985 = vst [vmem:[#allocation259_spill] sm:$0xff] %v11738_v58  ;;  %15986 = vst [vmem:[#allocation260_spill] sm:$0xff] %v11740_v59  ;;  %4113 = vperm.xlu1 %9375, %v2696_v35   ;;  %4164 = vperm.xlu0 %9374, %v2713_v11   ;;  %v8823_v35 = vsel %vm1044_vm14, 1.0, %v15694_v25  ;;  %v8826_v11 = vsel %vm1047_vm15, 1.0, %v15694_v25  ;;  %v15991_v59 = vld [vmem:[#allocation33_spill] sm:$0xff]  ;;  %vm1151_vm14 = vcmp.eq.f32.partialorder %v10072_v60, %v9651_v19 }
 0x3c2   :  { %v2724_v49 = vmul.f32 %v8823_v35, %v15991_v59  ;;  %v2727_v48 = vmul.f32 %v8826_v11, %v15987_v56  ;;  %vm1150_vm15 = vcmp.eq.f32.partialorder %v10066_v52, %v9651_v19 }
 0x3c4   :  { %v11750_v33 = vpop.permute.xlu1 %4551  ;;  %v11752_v58 = vpop.permute.xlu0 %4596 }
 0x3c5   :  { %15989 = vst [vmem:[#allocation34_spill] sm:$0xff] %v11750_v33  ;;  %15990 = vst [vmem:[#allocation261_spill] sm:$0xff] %v11752_v58  ;;  %4161 = vperm.xlu1 %9375, %v2712_v45   ;;  %4200 = vperm.xlu0 %9374, %v2725_v40   ;;  %v8825_v45 = vsel %vm1046_vm2, 1.0, %v15694_v25  ;;  %v8840_v40 = vsel %vm1061_vm3, 1.0, %v15694_v25  ;;  %vm1167_vm2 = vcmp.eq.f32.partialorder %v10072_v60, %v9672_v27 }
 0x3c6   :  { %v2726_v35 = vmul.f32 %v8825_v45, %v15991_v59  ;;  %v2741_v11 = vmul.f32 %v8840_v40, %v15987_v56  ;;  %vm1166_vm3 = vcmp.eq.f32.partialorder %v10066_v52, %v9672_v27 }
 0x3c8   :  { %v11762_v13 = vpop.permute.xlu1 %4593  ;;  %v11764_v33 = vpop.permute.xlu0 %4644 }
 0x3c9   :  { %15992 = vst [vmem:[#allocation33_spill] sm:$0xff] %v11762_v13  ;;  %15993 = vst [vmem:[#allocation262_spill] sm:$0xff] %v11764_v33  ;;  %4197 = vperm.xlu1 %9375, %v2724_v49   ;;  %4206 = vperm.xlu0 %9374, %v2727_v48   ;;  %v8839_v49 = vsel %vm1060_vm4, 1.0, %v15694_v25  ;;  %v8842_v48 = vsel %vm1063_vm5, 1.0, %v15694_v25  ;;  %vm1181_vm4 = vcmp.eq.f32.partialorder %v10076_v62, %v9648_v18 }
 0x3ca   :  { %v2740_v45 = vmul.f32 %v8839_v49, %v15991_v59  ;;  %v2743_v40 = vmul.f32 %v8842_v48, %v15987_v56  ;;  %vm1180_vm5 = vcmp.eq.f32.partialorder %v10070_v54, %v9648_v18 }
 0x3cc   :  { %v11774_v58 = vpop.permute.xlu1 %4641  ;;  %v11776_v13 = vpop.permute.xlu0 %4680 }
 0x3cd   :  { %15994 = vst [vmem:[#allocation263_spill] sm:$0xff] %v11774_v58  ;;  %15995 = vst [vmem:[#allocation264_spill] sm:$0xff] %v11776_v13  ;;  %4203 = vperm.xlu1 %9375, %v2726_v35   ;;  %4248 = vperm.xlu0 %9374, %v2741_v11   ;;  %v8841_v35 = vsel %vm1062_vm7, 1.0, %v15694_v25  ;;  %v8868_v11 = vsel %vm1089_vm8, 1.0, %v15694_v25  ;;  %vm1197_vm7 = vcmp.eq.f32.partialorder %v10076_v62, %v9669_v26 }
 0x3ce   :  { %v2742_v49 = vmul.f32 %v8841_v35, %v15991_v59  ;;  %v2769_v48 = vmul.f32 %v8868_v11, %v10302_v7  ;;  %vm1196_vm8 = vcmp.eq.f32.partialorder %v10070_v54, %v9669_v26 }
 0x3d0   :  { %v11786_v33 = vpop.permute.xlu1 %4677  ;;  %v11788_v58 = vpop.permute.xlu0 %4686 }
 0x3d1   :  { %15996 = vst [vmem:[#allocation265_spill] sm:$0xff] %v11786_v33  ;;  %15997 = vst [vmem:[#allocation266_spill] sm:$0xff] %v11788_v58  ;;  %4245 = vperm.xlu1 %9375, %v2740_v45   ;;  %4254 = vperm.xlu0 %9374, %v2743_v40   ;;  %v8867_v45 = vsel %vm1088_vm9, 1.0, %v15694_v25  ;;  %v8884_v40 = vsel %vm1105_vm10, 1.0, %v15694_v25  ;;  %vm1211_vm9 = vcmp.eq.f32.partialorder %v10080_v3, %v9645_v17 }
 0x3d2   :  { %v2768_v35 = vmul.f32 %v8867_v45, %v10292_v28  ;;  %v2785_v11 = vmul.f32 %v8884_v40, %v10302_v7  ;;  %vm1210_vm10 = vcmp.eq.f32.partialorder %v10074_v4, %v9645_v17 }
 0x3d4   :  { %v11798_v13 = vpop.permute.xlu1 %4683  ;;  %v11800_v33 = vpop.permute.xlu0 %4728 }
 0x3d5   :  { %15998 = vst [vmem:[#allocation267_spill] sm:$0xff] %v11798_v13  ;;  %15999 = vst [vmem:[#allocation268_spill] sm:$0xff] %v11800_v33  ;;  %4251 = vperm.xlu1 %9375, %v2742_v49   ;;  %4332 = vperm.xlu0 %9374, %v2769_v48   ;;  %v8883_v49 = vsel %vm1104_vm11, 1.0, %v15694_v25  ;;  %v8900_v48 = vsel %vm1121_vm12, 1.0, %v15694_v25  ;;  %vm1227_vm11 = vcmp.eq.f32.partialorder %v10080_v3, %v9664_v24 }
 0x3d6   :  { %v2784_v45 = vmul.f32 %v8883_v49, %v10292_v28  ;;  %v2801_v40 = vmul.f32 %v8900_v48, %v10322_v55  ;;  %vm1226_vm12 = vcmp.eq.f32.partialorder %v10074_v4, %v9664_v24 }
 0x3d8   :  { %v11810_v58 = vpop.permute.xlu1 %4725  ;;  %v11812_v13 = vpop.permute.xlu0 %4734 }
 0x3d9   :  { %16000 = vst [vmem:[#allocation269_spill] sm:$0xff] %v11810_v58  ;;  %16001 = vst [vmem:[#allocation270_spill] sm:$0xff] %v11812_v13  ;;  %4329 = vperm.xlu1 %9375, %v2768_v35   ;;  %4380 = vperm.xlu0 %9374, %v2785_v11   ;;  %v8899_v35 = vsel %vm1120_vm13, 1.0, %v15694_v25  ;;  %v8916_v11 = vsel %vm1137_vm0, 1.0, %v15694_v25  ;;  %vm1241_vm13 = vcmp.eq.f32.partialorder %v15962_v37, %v9642_v16 }
 0x3da   :  { %v2800_v49 = vmul.f32 %v8899_v35, %v10312_v2  ;;  %v2817_v48 = vmul.f32 %v8916_v11, %v10322_v55  ;;  %vm1240_vm0 = vcmp.eq.f32.partialorder %v15966_v20, %v9642_v16 }
 0x3dc   :  { %v11822_v33 = vpop.permute.xlu1 %4731  ;;  %v11824_v58 = vpop.permute.xlu0 %3978 }
 0x3dd   :  { %16002 = vst [vmem:[#allocation271_spill] sm:$0xff] %v11822_v33  ;;  %16003 = vst [vmem:[#allocation272_spill] sm:$0xff] %v11824_v58  ;;  %4377 = vperm.xlu1 %9375, %v2784_v45   ;;  %4428 = vperm.xlu0 %9374, %v2801_v40   ;;  %v8915_v45 = vsel %vm1136_vm1, 1.0, %v15694_v25  ;;  %v8930_v40 = vsel %vm1151_vm14, 1.0, %v15694_v25  ;;  %vm1257_vm1 = vcmp.eq.f32.partialorder %v15962_v37, %v9661_v23 }
 0x3de   :  { %v2816_v35 = vmul.f32 %v8915_v45, %v10312_v2  ;;  %v2831_v11 = vmul.f32 %v8930_v40, %v10334_v38  ;;  %vm1256_vm14 = vcmp.eq.f32.partialorder %v15966_v20, %v9661_v23 }
 0x3e0   :  { %v11834_v13 = vpop.permute.xlu1 %3975  ;;  %v11836_v33 = vpop.permute.xlu0 %4020 }
 0x3e1   :  { %16004 = vst [vmem:[#allocation273_spill] sm:$0xff] %v11834_v13  ;;  %16005 = vst [vmem:[#allocation274_spill] sm:$0xff] %v11836_v33  ;;  %4425 = vperm.xlu1 %9375, %v2800_v49   ;;  %4476 = vperm.xlu0 %9374, %v2817_v48   ;;  %v8929_v49 = vsel %vm1150_vm15, 1.0, %v15694_v25  ;;  %v8946_v48 = vsel %vm1167_vm2, 1.0, %v15694_v25 }
 0x3e2   :  { %v2830_v45 = vmul.f32 %v8929_v49, %v10324_v51  ;;  %v2847_v40 = vmul.f32 %v8946_v48, %v10334_v38 }
 0x3e4   :  { %v11846_v58 = vpop.permute.xlu1 %4017  ;;  %v11848_v13 = vpop.permute.xlu0 %4068 }
 0x3e5   :  { %16006 = vst [vmem:[#allocation275_spill] sm:$0xff] %v11846_v58  ;;  %16007 = vst [vmem:[#allocation276_spill] sm:$0xff] %v11848_v13  ;;  %4473 = vperm.xlu1 %9375, %v2816_v35   ;;  %4518 = vperm.xlu0 %9374, %v2831_v11   ;;  %v8945_v35 = vsel %vm1166_vm3, 1.0, %v15694_v25  ;;  %v8960_v11 = vsel %vm1181_vm4, 1.0, %v15694_v25 }
 0x3e6   :  { %v2846_v49 = vmul.f32 %v8945_v35, %v10324_v51  ;;  %v2861_v48 = vmul.f32 %v8960_v11, %v10354_v36 }
 0x3e8   :  { %v11858_v33 = vpop.permute.xlu1 %4065  ;;  %v11860_v58 = vpop.permute.xlu0 %4104 }
 0x3e9   :  { %16008 = vst [vmem:[#allocation277_spill] sm:$0xff] %v11858_v33  ;;  %16009 = vst [vmem:[#allocation278_spill] sm:$0xff] %v11860_v58  ;;  %4515 = vperm.xlu1 %9375, %v2830_v45   ;;  %4566 = vperm.xlu0 %9374, %v2847_v40   ;;  %v8959_v45 = vsel %vm1180_vm5, 1.0, %v15694_v25  ;;  %v8976_v40 = vsel %vm1197_vm7, 1.0, %v15694_v25 }
 0x3ea   :  { %v2860_v35 = vmul.f32 %v8959_v45, %v10344_v6  ;;  %v2877_v11 = vmul.f32 %v8976_v40, %v10354_v36 }
 0x3ec   :  { %v11870_v13 = vpop.permute.xlu1 %4101  ;;  %v11872_v33 = vpop.permute.xlu0 %4110 }
 0x3ed   :  { %16010 = vst [vmem:[#allocation279_spill] sm:$0xff] %v11870_v13  ;;  %16011 = vst [vmem:[#allocation280_spill] sm:$0xff] %v11872_v33  ;;  %4563 = vperm.xlu1 %9375, %v2846_v49   ;;  %4608 = vperm.xlu0 %9374, %v2861_v48   ;;  %v8975_v49 = vsel %vm1196_vm8, 1.0, %v15694_v25  ;;  %v8990_v48 = vsel %vm1211_vm9, 1.0, %v15694_v25 }
 0x3ee   :  { %v2876_v45 = vmul.f32 %v8975_v49, %v10344_v6  ;;  %v2891_v40 = vmul.f32 %v8990_v48, %v10366_v8 }
 0x3f0   :  { %v11882_v58 = vpop.permute.xlu1 %4107  ;;  %v11884_v13 = vpop.permute.xlu0 %4152 }
 0x3f1   :  { %16012 = vst [vmem:[#allocation281_spill] sm:$0xff] %v11882_v58  ;;  %16013 = vst [vmem:[#allocation282_spill] sm:$0xff] %v11884_v13  ;;  %4605 = vperm.xlu1 %9375, %v2860_v35   ;;  %4656 = vperm.xlu0 %9374, %v2877_v11   ;;  %v8989_v35 = vsel %vm1210_vm10, 1.0, %v15694_v25  ;;  %v9006_v11 = vsel %vm1227_vm11, 1.0, %v15694_v25  ;;  %vm975_vm10 = vcmp.eq.f32.partialorder %v10048_v32, %v9672_v27 }
 0x3f2   :  { %v2890_v49 = vmul.f32 %v8989_v35, %v15919_v29  ;;  %v2907_v48 = vmul.f32 %v9006_v11, %v10366_v8  ;;  %vm974_vm11 = vcmp.eq.f32.partialorder %v10042_v1, %v9672_v27 }
 0x3f4   :  { %v11894_v33 = vpop.permute.xlu1 %4149  ;;  %v11896_v58 = vpop.permute.xlu0 %4158 }
 0x3f5   :  { %16014 = vst [vmem:[#allocation283_spill] sm:$0xff] %v11894_v33  ;;  %16015 = vst [vmem:[#allocation284_spill] sm:$0xff] %v11896_v58  ;;  %4653 = vperm.xlu1 %9375, %v2876_v45   ;;  %4698 = vperm.xlu0 %9374, %v2891_v40   ;;  %v9005_v45 = vsel %vm1226_vm12, 1.0, %v15694_v25  ;;  %v9020_v40 = vsel %vm1241_vm13, 1.0, %v15694_v25  ;;  %vm989_vm12 = vcmp.eq.f32.partialorder %v10052_v47, %v9648_v18 }
 0x3f6   :  { %v2906_v35 = vmul.f32 %v9005_v45, %v15919_v29  ;;  %v2921_v11 = vmul.f32 %v9020_v40, %v15965_v63  ;;  %vm988_vm13 = vcmp.eq.f32.partialorder %v10046_v14, %v9648_v18 }
 0x3f8   :  { %v11906_v13 = vpop.permute.xlu1 %4155  ;;  %v11908_v33 = vpop.permute.xlu0 %4326 }
 0x3f9   :  { %16016 = vst [vmem:[#allocation285_spill] sm:$0xff] %v11906_v13  ;;  %16017 = vst [vmem:[#allocation286_spill] sm:$0xff] %v11908_v33  ;;  %4695 = vperm.xlu1 %9375, %v2890_v49   ;;  %4746 = vperm.xlu0 %9374, %v2907_v48   ;;  %v9019_v49 = vsel %vm1240_vm0, 1.0, %v15694_v25  ;;  %v9036_v48 = vsel %vm1257_vm1, 1.0, %v15694_v25  ;;  %v16020_v33 = vld [vmem:[#allocation29_spill] sm:$0xff]  ;;  %vm1005_vm0 = vcmp.eq.f32.partialorder %v10052_v47, %v9669_v26 }
 0x3fa   :  { %v2920_v45 = vmul.f32 %v9019_v49, %v15969_v46  ;;  %v2937_v40 = vmul.f32 %v9036_v48, %v15965_v63  ;;  %vm1269_vm15 = vcmp.eq.f32.partialorder %v16020_v33, %v9631_v10  ;;  %vm1271_vm3 = vcmp.eq.f32.partialorder %v16020_v33, %v9634_v12 }
 0x3fb   :  { %vm1285_vm5 = vcmp.eq.f32.partialorder %v16020_v33, %v9703_v41  ;;  %vm1287_vm8 = vcmp.eq.f32.partialorder %v16020_v33, %v9658_v22  ;;  %vm1004_vm1 = vcmp.eq.f32.partialorder %v10046_v14, %v9669_v26 }
 0x3fc   :  { %v11918_v58 = vpop.permute.xlu1 %4323  ;;  %v11920_v13 = vpop.permute.xlu0 %4374 }
 0x3fd   :  { %16018 = vst [vmem:[#allocation287_spill] sm:$0xff] %v11918_v58  ;;  %16019 = vst [vmem:[#allocation288_spill] sm:$0xff] %v11920_v13  ;;  %4743 = vperm.xlu1 %9375, %v2906_v35   ;;  %4788 = vperm.xlu0 %9374, %v2921_v11   ;;  %v9035_v35 = vsel %vm1256_vm14, 1.0, %v15694_v25  ;;  %v9048_v11 = vsel %vm1269_vm15, 1.0, %v15694_v25  ;;  %v16023_v13 = vld [vmem:[#allocation26_spill] sm:$0xff]  ;;  %vm1019_vm14 = vcmp.eq.f32.partialorder %v15930_v42, %v9645_v17 }
 0x3fe   :  { %v2936_v49 = vmul.f32 %v9035_v35, %v15969_v46  ;;  %v2949_v48 = vmul.f32 %v9048_v11, %v10398_v5  ;;  %vm1268_vm2 = vcmp.eq.f32.partialorder %v16023_v13, %v9631_v10  ;;  %vm1270_vm4 = vcmp.eq.f32.partialorder %v16023_v13, %v9634_v12 }
 0x3ff   :  { %vm1284_vm7 = vcmp.eq.f32.partialorder %v16023_v13, %v9703_v41  ;;  %vm1286_vm9 = vcmp.eq.f32.partialorder %v16023_v13, %v9658_v22  ;;  %vm1018_vm15 = vcmp.eq.f32.partialorder %v15934_v0, %v9645_v17 }
 0x400   :  { %v11930_v37 = vpop.permute.xlu1 %4371  ;;  %v11932_v58 = vpop.permute.xlu0 %4422 }
 0x401   :  { %16021 = vst [vmem:[#allocation289_spill] sm:$0xff] %v11930_v37  ;;  %16022 = vst [vmem:[#allocation290_spill] sm:$0xff] %v11932_v58  ;;  %4785 = vperm.xlu1 %9375, %v2920_v45   ;;  %4836 = vperm.xlu0 %9374, %v2937_v40   ;;  %v9047_v45 = vsel %vm1268_vm2, 1.0, %v15694_v25  ;;  %v9050_v40 = vsel %vm1271_vm3, 1.0, %v15694_v25  ;;  %v16026_v58 = vld [vmem:[#allocation40_spill] sm:$0xff]  ;;  %vm1035_vm2 = vcmp.eq.f32.partialorder %v15930_v42, %v9664_v24 }
 0x402   :  { %v2948_v35 = vmul.f32 %v9047_v45, %v16026_v58  ;;  %v2951_v11 = vmul.f32 %v9050_v40, %v10398_v5  ;;  %vm1034_vm3 = vcmp.eq.f32.partialorder %v15934_v0, %v9664_v24 }
 0x404   :  { %v11942_v20 = vpop.permute.xlu1 %4419  ;;  %v11944_v37 = vpop.permute.xlu0 %4470 }
 0x405   :  { %16024 = vst [vmem:[#allocation26_spill] sm:$0xff] %v11942_v20  ;;  %16025 = vst [vmem:[#allocation291_spill] sm:$0xff] %v11944_v37  ;;  %4833 = vperm.xlu1 %9375, %v2936_v49   ;;  %4872 = vperm.xlu0 %9374, %v2949_v48   ;;  %v9049_v49 = vsel %vm1270_vm4, 1.0, %v15694_v25  ;;  %v9064_v48 = vsel %vm1285_vm5, 1.0, %v15694_v25  ;;  %vm1049_vm4 = vcmp.eq.f32.partialorder %v15984_v57, %v9642_v16 }
 0x406   :  { %v2950_v45 = vmul.f32 %v9049_v49, %v16026_v58  ;;  %v2965_v40 = vmul.f32 %v9064_v48, %v10398_v5  ;;  %vm1048_vm5 = vcmp.eq.f32.partialorder %v15988_v34, %v9642_v16 }
 0x408   :  { %v11954_v10 = vpop.permute.xlu1 %4467  ;;  %v11956_v20 = vpop.permute.xlu0 %4512 }
 0x409   :  { %16027 = vst [vmem:[#allocation40_spill] sm:$0xff] %v11954_v10  ;;  %16028 = vst [vmem:[#allocation292_spill] sm:$0xff] %v11956_v20  ;;  %4869 = vperm.xlu1 %9375, %v2948_v35   ;;  %4878 = vperm.xlu0 %9374, %v2951_v11   ;;  %v9063_v35 = vsel %vm1284_vm7, 1.0, %v15694_v25  ;;  %v9066_v11 = vsel %vm1287_vm8, 1.0, %v15694_v25  ;;  %vm1065_vm7 = vcmp.eq.f32.partialorder %v15984_v57, %v9661_v23 }
 0x40a   :  { %v2964_v49 = vmul.f32 %v9063_v35, %v16026_v58  ;;  %v2967_v48 = vmul.f32 %v9066_v11, %v10398_v5  ;;  %vm1064_vm8 = vcmp.eq.f32.partialorder %v15988_v34, %v9661_v23 }
 0x40c   :  { %v11966_v37 = vpop.permute.xlu1 %4509  ;;  %v11968_v10 = vpop.permute.xlu0 %4560 }
 0x40d   :  { %16029 = vst [vmem:[#allocation293_spill] sm:$0xff] %v11966_v37  ;;  %16030 = vst [vmem:[#allocation294_spill] sm:$0xff] %v11968_v10  ;;  %4875 = vperm.xlu1 %9375, %v2950_v45   ;;  %4920 = vperm.xlu0 %9374, %v2965_v40   ;;  %v9065_v45 = vsel %vm1286_vm9, 1.0, %v15694_v25  ;;  %v8754_v40 = vsel %vm975_vm10, 1.0, %v15694_v25 }
 0x40e   :  { %v2966_v35 = vmul.f32 %v9065_v45, %v16026_v58  ;;  %v2655_v11 = vmul.f32 %v8754_v40, %v10238_v43 }
 0x410   :  { %v11978_v20 = vpop.permute.xlu1 %4557  ;;  %v11980_v37 = vpop.permute.xlu0 %4602 }
 0x411   :  { %16031 = vst [vmem:[#allocation295_spill] sm:$0xff] %v11978_v20  ;;  %16032 = vst [vmem:[#allocation296_spill] sm:$0xff] %v11980_v37  ;;  %4917 = vperm.xlu1 %9375, %v2964_v49   ;;  %4926 = vperm.xlu0 %9374, %v2967_v48   ;;  %v8753_v49 = vsel %vm974_vm11, 1.0, %v15694_v25  ;;  %v8768_v48 = vsel %vm989_vm12, 1.0, %v15694_v25 }
 0x412   :  { %v2654_v45 = vmul.f32 %v8753_v49, %v10228_v21  ;;  %v2669_v40 = vmul.f32 %v8768_v48, %v10258_v9 }
 0x414   :  { %v11990_v10 = vpop.permute.xlu1 %4599  ;;  %v11992_v20 = vpop.permute.xlu0 %4650 }
 0x415   :  { %16033 = vst [vmem:[#allocation297_spill] sm:$0xff] %v11990_v10  ;;  %16034 = vst [vmem:[#allocation298_spill] sm:$0xff] %v11992_v20  ;;  %4923 = vperm.xlu1 %9375, %v2966_v35   ;;  %3990 = vperm.xlu0 %9374, %v2655_v11   ;;  %v8767_v35 = vsel %vm988_vm13, 1.0, %v15694_v25  ;;  %v8784_v11 = vsel %vm1005_vm0, 1.0, %v15694_v25 }
 0x416   :  { %v2668_v49 = vmul.f32 %v8767_v35, %v10248_v39  ;;  %v2685_v48 = vmul.f32 %v8784_v11, %v10258_v9 }
 0x418   :  { %v12002_v37 = vpop.permute.xlu1 %4647  ;;  %v12004_v10 = vpop.permute.xlu0 %4692 }
 0x419   :  { %16035 = vst [vmem:[#allocation299_spill] sm:$0xff] %v12002_v37  ;;  %16036 = vst [vmem:[#allocation300_spill] sm:$0xff] %v12004_v10  ;;  %3987 = vperm.xlu1 %9375, %v2654_v45   ;;  %4032 = vperm.xlu0 %9374, %v2669_v40   ;;  %v8783_v45 = vsel %vm1004_vm1, 1.0, %v15694_v25  ;;  %v8798_v40 = vsel %vm1019_vm14, 1.0, %v15694_v25 }
 0x41a   :  { %v2684_v35 = vmul.f32 %v8783_v45, %v10248_v39  ;;  %v2699_v11 = vmul.f32 %v8798_v40, %v15933_v44 }
 0x41c   :  { %v12014_v20 = vpop.permute.xlu1 %4689  ;;  %v12016_v37 = vpop.permute.xlu0 %4740 }
 0x41d   :  { %16037 = vst [vmem:[#allocation301_spill] sm:$0xff] %v12014_v20  ;;  %16038 = vst [vmem:[#allocation302_spill] sm:$0xff] %v12016_v37  ;;  %4029 = vperm.xlu1 %9375, %v2668_v49   ;;  %4080 = vperm.xlu0 %9374, %v2685_v48   ;;  %v8797_v49 = vsel %vm1018_vm15, 1.0, %v15694_v25  ;;  %v8814_v48 = vsel %vm1035_vm2, 1.0, %v15694_v25  ;;  %v16041_v37 = vld [vmem:[#allocation31_spill] sm:$0xff]  ;;  %vm1153_vm15 = vcmp.eq.f32.partialorder %v10072_v60, %v9677_v30 }
 0x41e   :  { %v2698_v45 = vmul.f32 %v8797_v49, %v16041_v37  ;;  %v2715_v40 = vmul.f32 %v8814_v48, %v15933_v44  ;;  %vm1152_vm2 = vcmp.eq.f32.partialorder %v10066_v52, %v9677_v30 }
 0x420   :  { %v12026_v10 = vpop.permute.xlu1 %4737  ;;  %v12028_v20 = vpop.permute.xlu0 %4776 }
 0x421   :  { %16039 = vst [vmem:[#allocation303_spill] sm:$0xff] %v12026_v10  ;;  %16040 = vst [vmem:[#allocation304_spill] sm:$0xff] %v12028_v20  ;;  %4077 = vperm.xlu1 %9375, %v2684_v35   ;;  %4122 = vperm.xlu0 %9374, %v2699_v11   ;;  %v8813_v35 = vsel %vm1034_vm3, 1.0, %v15694_v25  ;;  %v8828_v11 = vsel %vm1049_vm4, 1.0, %v15694_v25  ;;  %vm1169_vm3 = vcmp.eq.f32.partialorder %v10072_v60, %v9680_v31 }
 0x422   :  { %v2714_v49 = vmul.f32 %v8813_v35, %v16041_v37  ;;  %v2729_v48 = vmul.f32 %v8828_v11, %v15987_v56  ;;  %vm1168_vm4 = vcmp.eq.f32.partialorder %v10066_v52, %v9680_v31 }
 0x424   :  { %v12038_v42 = vpop.permute.xlu1 %4773  ;;  %v12040_v10 = vpop.permute.xlu0 %4782 }
 0x425   :  { %16042 = vst [vmem:[#allocation31_spill] sm:$0xff] %v12038_v42  ;;  %16043 = vst [vmem:[#allocation305_spill] sm:$0xff] %v12040_v10  ;;  %4119 = vperm.xlu1 %9375, %v2698_v45   ;;  %4170 = vperm.xlu0 %9374, %v2715_v40   ;;  %v8827_v45 = vsel %vm1048_vm5, 1.0, %v15694_v25  ;;  %v8844_v40 = vsel %vm1065_vm7, 1.0, %v15694_v25  ;;  %v16046_v10 = vld [vmem:[#allocation15_spill] sm:$0xff]  ;;  %vm1183_vm5 = vcmp.eq.f32.partialorder %v10076_v62, %v9651_v19 }
 0x426   :  { %v2728_v35 = vmul.f32 %v8827_v45, %v15991_v59  ;;  %v2745_v11 = vmul.f32 %v8844_v40, %v15987_v56  ;;  %vm1091_vm9 = vcmp.eq.f32.partialorder %v10064_v15, %v16046_v10  ;;  %vm1090_vm10 = vcmp.eq.f32.partialorder %v10058_v61, %v16046_v10 }
 0x427   :  { %vm1123_vm13 = vcmp.eq.f32.partialorder %v10068_v53, %v16046_v10  ;;  %vm1122_vm0 = vcmp.eq.f32.partialorder %v10062_v50, %v16046_v10  ;;  %vm1182_vm7 = vcmp.eq.f32.partialorder %v10070_v54, %v9651_v19 }
 0x428   :  { %v12050_v20 = vpop.permute.xlu1 %4779  ;;  %v12052_v42 = vpop.permute.xlu0 %4824 }
 0x429   :  { %16044 = vst [vmem:[#allocation306_spill] sm:$0xff] %v12050_v20  ;;  %16045 = vst [vmem:[#allocation307_spill] sm:$0xff] %v12052_v42  ;;  %4167 = vperm.xlu1 %9375, %v2714_v49   ;;  %4212 = vperm.xlu0 %9374, %v2729_v48   ;;  %v8843_v49 = vsel %vm1064_vm8, 1.0, %v15694_v25  ;;  %v8870_v48 = vsel %vm1091_vm9, 1.0, %v15694_v25  ;;  %v16049_v42 = vld [vmem:[#allocation16_spill] sm:$0xff]  ;;  %vm1199_vm8 = vcmp.eq.f32.partialorder %v10076_v62, %v9672_v27 }
 0x42a   :  { %v2744_v45 = vmul.f32 %v8843_v49, %v15991_v59  ;;  %v2771_v40 = vmul.f32 %v8870_v48, %v10302_v7  ;;  %vm1107_vm11 = vcmp.eq.f32.partialorder %v10064_v15, %v16049_v42  ;;  %vm1106_vm12 = vcmp.eq.f32.partialorder %v10058_v61, %v16049_v42 }
 0x42b   :  { %vm1139_vm1 = vcmp.eq.f32.partialorder %v10068_v53, %v16049_v42  ;;  %vm1138_vm14 = vcmp.eq.f32.partialorder %v10062_v50, %v16049_v42  ;;  %vm1198_vm9 = vcmp.eq.f32.partialorder %v10070_v54, %v9672_v27 }
 0x42c   :  { %v12062_v57 = vpop.permute.xlu1 %4821  ;;  %v12064_v20 = vpop.permute.xlu0 %4830 }
 0x42d   :  { %16047 = vst [vmem:[#allocation15_spill] sm:$0xff] %v12062_v57  ;;  %16048 = vst [vmem:[#allocation308_spill] sm:$0xff] %v12064_v20  ;;  %4209 = vperm.xlu1 %9375, %v2728_v35   ;;  %4260 = vperm.xlu0 %9374, %v2745_v11   ;;  %v8869_v35 = vsel %vm1090_vm10, 1.0, %v15694_v25  ;;  %v8886_v11 = vsel %vm1107_vm11, 1.0, %v15694_v25  ;;  %vm1213_vm10 = vcmp.eq.f32.partialorder %v10080_v3, %v9648_v18 }
 0x42e   :  { %v2770_v49 = vmul.f32 %v8869_v35, %v10292_v28  ;;  %v2787_v48 = vmul.f32 %v8886_v11, %v10302_v7  ;;  %vm1212_vm11 = vcmp.eq.f32.partialorder %v10074_v4, %v9648_v18 }
 0x430   :  { %v12074_v34 = vpop.permute.xlu1 %4827  ;;  %v12076_v57 = vpop.permute.xlu0 %3984 }
 0x431   :  { %16050 = vst [vmem:[#allocation16_spill] sm:$0xff] %v12074_v34  ;;  %16051 = vst [vmem:[#allocation309_spill] sm:$0xff] %v12076_v57  ;;  %4257 = vperm.xlu1 %9375, %v2744_v45   ;;  %4338 = vperm.xlu0 %9374, %v2771_v40   ;;  %v8885_v45 = vsel %vm1106_vm12, 1.0, %v15694_v25  ;;  %v8902_v40 = vsel %vm1123_vm13, 1.0, %v15694_v25  ;;  %vm1229_vm12 = vcmp.eq.f32.partialorder %v10080_v3, %v9669_v26  ;;  %v16083_v34 = vld [vmem:[#allocation28_spill] sm:$0xff] }
 0x432   :  { %v2786_v35 = vmul.f32 %v8885_v45, %v10292_v28  ;;  %v2803_v7 = vmul.f32 %v8902_v40, %v10322_v55  ;;  %vm1228_vm13 = vcmp.eq.f32.partialorder %v10074_v4, %v9669_v26 }
 0x434   :  { %v12086_v15 = vpop.permute.xlu1 %3981  ;;  %v12088_v20 = vpop.permute.xlu0 %4026 }
 0x435   :  { %16052 = vst [vmem:[#allocation310_spill] sm:$0xff] %v12086_v15  ;;  %16053 = vst [vmem:[#allocation311_spill] sm:$0xff] %v12088_v20  ;;  %4335 = vperm.xlu1 %9375, %v2770_v49   ;;  %4386 = vperm.xlu0 %9374, %v2787_v48   ;;  %v8901_v49 = vsel %vm1122_vm0, 1.0, %v15694_v25  ;;  %v8918_v48 = vsel %vm1139_vm1, 1.0, %v15694_v25  ;;  %v16079_v20 = vld [vmem:[#allocation30_spill] sm:$0xff] }
 0x436   :  { %v2802_v28 = vmul.f32 %v8901_v49, %v10312_v2  ;;  %v2819_v45 = vmul.f32 %v8918_v48, %v10322_v55 }
 0x438   :  { %v12098_v61 = vpop.permute.xlu1 %4023  ;;  %v12100_v11 = vpop.permute.xlu0 %4074 }
 0x439   :  { %16054 = vst [vmem:[#allocation312_spill] sm:$0xff] %v12098_v61  ;;  %16055 = vst [vmem:[#allocation313_spill] sm:$0xff] %v12100_v11  ;;  %4383 = vperm.xlu1 %9375, %v2786_v35   ;;  %4434 = vperm.xlu0 %9374, %v2803_v7   ;;  %v8917_v35 = vsel %vm1138_vm14, 1.0, %v15694_v25  ;;  %v8932_v7 = vsel %vm1153_vm15, 1.0, %v15694_v25 }
 0x43a   :  { %v2818_v49 = vmul.f32 %v8917_v35, %v10312_v2  ;;  %v2833_v55 = vmul.f32 %v8932_v7, %v10334_v38 }
 0x43c   :  { %v12110_v53 = vpop.permute.xlu1 %4071  ;;  %v12112_v40 = vpop.permute.xlu0 %4116 }
 0x43d   :  { %16056 = vst [vmem:[#allocation314_spill] sm:$0xff] %v12110_v53  ;;  %16057 = vst [vmem:[#allocation315_spill] sm:$0xff] %v12112_v40  ;;  %4431 = vperm.xlu1 %9375, %v2802_v28   ;;  %4482 = vperm.xlu0 %9374, %v2819_v45   ;;  %v8931_v28 = vsel %vm1152_vm2, 1.0, %v15694_v25  ;;  %v8948_v45 = vsel %vm1169_vm3, 1.0, %v15694_v25  ;;  %vm1273_vm2 = vcmp.eq.f32.partialorder %v16020_v33, %v9642_v16 }
 0x43e   :  { %v2832_v2 = vmul.f32 %v8931_v28, %v10324_v51  ;;  %v2849_v35 = vmul.f32 %v8948_v45, %v10334_v38  ;;  %vm1272_vm3 = vcmp.eq.f32.partialorder %v16023_v13, %v9642_v16 }
 0x440   :  { %v12122_v50 = vpop.permute.xlu1 %4113  ;;  %v12124_v48 = vpop.permute.xlu0 %4164 }
 0x441   :  { %16058 = vst [vmem:[#allocation316_spill] sm:$0xff] %v12122_v50  ;;  %16059 = vst [vmem:[#allocation317_spill] sm:$0xff] %v12124_v48  ;;  %4479 = vperm.xlu1 %9375, %v2818_v49   ;;  %4524 = vperm.xlu0 %9374, %v2833_v55   ;;  %v8947_v49 = vsel %vm1168_vm4, 1.0, %v15694_v25  ;;  %v8962_v55 = vsel %vm1183_vm5, 1.0, %v15694_v25  ;;  %vm1289_vm4 = vcmp.eq.f32.partialorder %v16020_v33, %v9661_v23 }
 0x442   :  { %v2848_v28 = vmul.f32 %v8947_v49, %v10324_v51  ;;  %v2863_v45 = vmul.f32 %v8962_v55, %v10354_v36  ;;  %vm1288_vm5 = vcmp.eq.f32.partialorder %v16023_v13, %v9661_v23 }
 0x444   :  { %v12134_v7 = vpop.permute.xlu1 %4161  ;;  %v12136_v40 = vpop.permute.xlu0 %4200 }
 0x445   :  { %16060 = vst [vmem:[#allocation318_spill] sm:$0xff] %v12134_v7  ;;  %16061 = vst [vmem:[#allocation319_spill] sm:$0xff] %v12136_v40  ;;  %4521 = vperm.xlu1 %9375, %v2832_v2   ;;  %4572 = vperm.xlu0 %9374, %v2849_v35   ;;  %v8961_v2 = vsel %vm1182_vm7, 1.0, %v15694_v25  ;;  %v8978_v35 = vsel %vm1199_vm8, 1.0, %v15694_v25 }
 0x446   :  { %v2862_v49 = vmul.f32 %v8961_v2, %v10344_v6  ;;  %v2879_v55 = vmul.f32 %v8978_v35, %v10354_v36 }
 0x448   :  { %v12146_v48 = vpop.permute.xlu1 %4197  ;;  %v12148_v7 = vpop.permute.xlu0 %4206 }
 0x449   :  { %16062 = vst [vmem:[#allocation320_spill] sm:$0xff] %v12146_v48  ;;  %16063 = vst [vmem:[#allocation321_spill] sm:$0xff] %v12148_v7  ;;  %4569 = vperm.xlu1 %9375, %v2848_v28   ;;  %4614 = vperm.xlu0 %9374, %v2863_v45   ;;  %v8977_v28 = vsel %vm1198_vm9, 1.0, %v15694_v25  ;;  %v8992_v45 = vsel %vm1213_vm10, 1.0, %v15694_v25  ;;  %vm1303_vm9 = vcmp.eq.f32.partialorder %v16079_v20, %v9634_v12 }
 0x44a   :  { %v2878_v2 = vmul.f32 %v8977_v28, %v10344_v6  ;;  %v2893_v35 = vmul.f32 %v8992_v45, %v10366_v8  ;;  %vm1302_vm10 = vcmp.eq.f32.partialorder %v16083_v34, %v9634_v12 }
 0x44c   :  { %v12158_v40 = vpop.permute.xlu1 %4203  ;;  %v12160_v48 = vpop.permute.xlu0 %4248 }
 0x44d   :  { %16064 = vst [vmem:[#allocation322_spill] sm:$0xff] %v12158_v40  ;;  %16065 = vst [vmem:[#allocation323_spill] sm:$0xff] %v12160_v48  ;;  %4611 = vperm.xlu1 %9375, %v2862_v49   ;;  %4662 = vperm.xlu0 %9374, %v2879_v55   ;;  %v8991_v49 = vsel %vm1212_vm11, 1.0, %v15694_v25  ;;  %v9008_v55 = vsel %vm1229_vm12, 1.0, %v15694_v25  ;;  %v16068_v48 = vld [vmem:[#allocation27_spill] sm:$0xff]  ;;  %vm1317_vm11 = vcmp.eq.f32.partialorder %v16079_v20, %v9703_v41 }
 0x44e   :  { %v2892_v28 = vmul.f32 %v8991_v49, %v15919_v29  ;;  %v2909_v45 = vmul.f32 %v9008_v55, %v10366_v8  ;;  %vm1243_vm0 = vcmp.eq.f32.partialorder %v16068_v48, %v9645_v17  ;;  %vm1259_vm14 = vcmp.eq.f32.partialorder %v16068_v48, %v9664_v24 }
 0x44f   :  { %vm1316_vm12 = vcmp.eq.f32.partialorder %v16083_v34, %v9703_v41 }
 0x450   :  { %v12170_v7 = vpop.permute.xlu1 %4245  ;;  %v12172_v40 = vpop.permute.xlu0 %4254 }
 0x451   :  { %16066 = vst [vmem:[#allocation324_spill] sm:$0xff] %v12170_v7  ;;  %16067 = vst [vmem:[#allocation325_spill] sm:$0xff] %v12172_v40  ;;  %4659 = vperm.xlu1 %9375, %v2878_v2   ;;  %4704 = vperm.xlu0 %9374, %v2893_v35   ;;  %v9007_v2 = vsel %vm1228_vm13, 1.0, %v15694_v25  ;;  %v9022_v35 = vsel %vm1243_vm0, 1.0, %v15694_v25  ;;  %v16071_v40 = vld [vmem:[#allocation24_spill] sm:$0xff]  ;;  %vm1319_vm13 = vcmp.eq.f32.partialorder %v16079_v20, %v9658_v22 }
 0x452   :  { %v2908_v49 = vmul.f32 %v9007_v2, %v15919_v29  ;;  %v2923_v55 = vmul.f32 %v9022_v35, %v15965_v63  ;;  %vm1242_vm1 = vcmp.eq.f32.partialorder %v16071_v40, %v9645_v17  ;;  %vm1258_vm15 = vcmp.eq.f32.partialorder %v16071_v40, %v9664_v24 }
 0x453   :  { %vm1318_vm0 = vcmp.eq.f32.partialorder %v16083_v34, %v9658_v22 }
 0x454   :  { %v12182_v11 = vpop.permute.xlu1 %4251  ;;  %v12184_v7 = vpop.permute.xlu0 %4332 }
 0x455   :  { %16069 = vst [vmem:[#allocation27_spill] sm:$0xff] %v12182_v11  ;;  %16070 = vst [vmem:[#allocation326_spill] sm:$0xff] %v12184_v7  ;;  %4701 = vperm.xlu1 %9375, %v2892_v28   ;;  %4752 = vperm.xlu0 %9374, %v2909_v45   ;;  %v9021_v28 = vsel %vm1242_vm1, 1.0, %v15694_v25  ;;  %v9038_v45 = vsel %vm1259_vm14, 1.0, %v15694_v25  ;;  %vm977_vm1 = vcmp.eq.f32.partialorder %v10048_v32, %v9680_v31 }
 0x456   :  { %v2922_v2 = vmul.f32 %v9021_v28, %v15969_v46  ;;  %v2939_v35 = vmul.f32 %v9038_v45, %v15965_v63  ;;  %vm976_vm14 = vcmp.eq.f32.partialorder %v10042_v1, %v9680_v31 }
 0x458   :  { %v12194_v50 = vpop.permute.xlu1 %4329  ;;  %v12196_v11 = vpop.permute.xlu0 %4380 }
 0x459   :  { %16072 = vst [vmem:[#allocation24_spill] sm:$0xff] %v12194_v50  ;;  %16073 = vst [vmem:[#allocation327_spill] sm:$0xff] %v12196_v11  ;;  %4749 = vperm.xlu1 %9375, %v2908_v49   ;;  %4794 = vperm.xlu0 %9374, %v2923_v55   ;;  %v9037_v49 = vsel %vm1258_vm15, 1.0, %v15694_v25  ;;  %v9052_v55 = vsel %vm1273_vm2, 1.0, %v15694_v25  ;;  %vm991_vm15 = vcmp.eq.f32.partialorder %v10052_v47, %v9651_v19 }
 0x45a   :  { %v2938_v28 = vmul.f32 %v9037_v49, %v15969_v46  ;;  %v2953_v45 = vmul.f32 %v9052_v55, %v10398_v5  ;;  %vm990_vm2 = vcmp.eq.f32.partialorder %v10046_v14, %v9651_v19 }
 0x45c   :  { %v12206_v7 = vpop.permute.xlu1 %4377  ;;  %v12208_v50 = vpop.permute.xlu0 %4428 }
 0x45d   :  { %16074 = vst [vmem:[#allocation328_spill] sm:$0xff] %v12206_v7  ;;  %16075 = vst [vmem:[#allocation329_spill] sm:$0xff] %v12208_v50  ;;  %4791 = vperm.xlu1 %9375, %v2922_v2   ;;  %4842 = vperm.xlu0 %9374, %v2939_v35   ;;  %v9051_v2 = vsel %vm1272_vm3, 1.0, %v15694_v25  ;;  %v9068_v35 = vsel %vm1289_vm4, 1.0, %v15694_v25  ;;  %v16078_v50 = vld [vmem:[#allocation12_spill] sm:$0xff]  ;;  %vm1007_vm3 = vcmp.eq.f32.partialorder %v10052_v47, %v9672_v27 }
 0x45e   :  { %v2952_v49 = vmul.f32 %v9051_v2, %v16026_v58  ;;  %v2969_v55 = vmul.f32 %v9068_v35, %v10398_v5  ;;  %vm1301_vm7 = vcmp.eq.f32.partialorder %v16079_v20, %v16078_v50  ;;  %vm1300_vm8 = vcmp.eq.f32.partialorder %v16083_v34, %v16078_v50 }
 0x45f   :  { %vm1006_vm4 = vcmp.eq.f32.partialorder %v10046_v14, %v9672_v27 }
 0x460   :  { %v12218_v11 = vpop.permute.xlu1 %4425  ;;  %v12220_v7 = vpop.permute.xlu0 %4476 }
 0x461   :  { %16076 = vst [vmem:[#allocation330_spill] sm:$0xff] %v12218_v11  ;;  %16077 = vst [vmem:[#allocation331_spill] sm:$0xff] %v12220_v7  ;;  %4839 = vperm.xlu1 %9375, %v2938_v28   ;;  %4884 = vperm.xlu0 %9374, %v2953_v45   ;;  %v9067_v28 = vsel %vm1288_vm5, 1.0, %v15694_v25  ;;  %v9080_v45 = vsel %vm1301_vm7, 1.0, %v15694_v25  ;;  %v16082_v7 = vld [vmem:[#allocation43_spill] sm:$0xff]  ;;  %vm1020_vm7 = vcmp.eq.f32.partialorder %v15934_v0, %v9648_v18 }
 0x462   :  { %v2968_v2 = vmul.f32 %v9067_v28, %v16026_v58  ;;  %v2981_v35 = vmul.f32 %v9080_v45, %v16082_v7 }
 0x464   :  { %v12230_v53 = vpop.permute.xlu1 %4473  ;;  %v12232_v11 = vpop.permute.xlu0 %4518 }
 0x465   :  { %16080 = vst [vmem:[#allocation12_spill] sm:$0xff] %v12230_v53  ;;  %16081 = vst [vmem:[#allocation30_spill] sm:$0xff] %v12232_v11  ;;  %4881 = vperm.xlu1 %9375, %v2952_v49   ;;  %4932 = vperm.xlu0 %9374, %v2969_v55   ;;  %v9079_v49 = vsel %vm1300_vm8, 1.0, %v15694_v25  ;;  %v9082_v55 = vsel %vm1303_vm9, 1.0, %v15694_v25  ;;  %v16086_v11 = vld [vmem:[#allocation42_spill] sm:$0xff]  ;;  %vm1036_vm9 = vcmp.eq.f32.partialorder %v15934_v0, %v9669_v26 }
 0x466   :  { %v2980_v28 = vmul.f32 %v9079_v49, %v16086_v11  ;;  %v2983_v45 = vmul.f32 %v9082_v55, %v16082_v7 }
 0x468   :  { %v12242_v61 = vpop.permute.xlu1 %4515  ;;  %v12244_v53 = vpop.permute.xlu0 %4566 }
 0x469   :  { %16084 = vst [vmem:[#allocation43_spill] sm:$0xff] %v12242_v61  ;;  %16085 = vst [vmem:[#allocation28_spill] sm:$0xff] %v12244_v53  ;;  %4929 = vperm.xlu1 %9375, %v2968_v2   ;;  %4968 = vperm.xlu0 %9374, %v2981_v35   ;;  %v9081_v2 = vsel %vm1302_vm10, 1.0, %v15694_v25  ;;  %v9096_v35 = vsel %vm1317_vm11, 1.0, %v15694_v25 }
 0x46a   :  { %v2982_v49 = vmul.f32 %v9081_v2, %v16086_v11  ;;  %v2997_v55 = vmul.f32 %v9096_v35, %v16082_v7 }
 0x46c   :  { %v12254_v50 = vpop.permute.xlu1 %4563  ;;  %v12256_v61 = vpop.permute.xlu0 %4608 }
 0x46d   :  { %16087 = vst [vmem:[#allocation42_spill] sm:$0xff] %v12254_v50  ;;  %16088 = vst [vmem:[#allocation332_spill] sm:$0xff] %v12256_v61  ;;  %4965 = vperm.xlu1 %9375, %v2980_v28   ;;  %4974 = vperm.xlu0 %9374, %v2983_v45   ;;  %v9095_v28 = vsel %vm1316_vm12, 1.0, %v15694_v25  ;;  %v9098_v45 = vsel %vm1319_vm13, 1.0, %v15694_v25 }
 0x46e   :  { %v2996_v2 = vmul.f32 %v9095_v28, %v16086_v11  ;;  %v2999_v35 = vmul.f32 %v9098_v45, %v16082_v7 }
 0x470   :  { %v12266_v12 = vpop.permute.xlu1 %4605  ;;  %v12268_v50 = vpop.permute.xlu0 %4656 }
 0x471   :  { %16089 = vst [vmem:[#allocation333_spill] sm:$0xff] %v12266_v12  ;;  %16090 = vst [vmem:[#allocation334_spill] sm:$0xff] %v12268_v50  ;;  %4971 = vperm.xlu1 %9375, %v2982_v49   ;;  %5016 = vperm.xlu0 %9374, %v2997_v55   ;;  %v9097_v49 = vsel %vm1318_vm0, 1.0, %v15694_v25  ;;  %v8756_v55 = vsel %vm977_vm1, 1.0, %v15694_v25  ;;  %vm1155_vm0 = vcmp.eq.f32.partialorder %v10072_v60, %v16046_v10 }
 0x472   :  { %v2998_v28 = vmul.f32 %v9097_v49, %v16086_v11  ;;  %v2657_v45 = vmul.f32 %v8756_v55, %v10238_v43  ;;  %vm1154_vm1 = vcmp.eq.f32.partialorder %v10066_v52, %v16046_v10 }
 0x474   :  { %v12278_v41 = vpop.permute.xlu1 %4653  ;;  %v12280_v53 = vpop.permute.xlu0 %4698 }
 0x475   :  { %16091 = vst [vmem:[#allocation335_spill] sm:$0xff] %v12278_v41  ;;  %16092 = vst [vmem:[#allocation336_spill] sm:$0xff] %v12280_v53  ;;  %5013 = vperm.xlu1 %9375, %v2996_v2   ;;  %5022 = vperm.xlu0 %9374, %v2999_v35   ;;  %v8755_v2 = vsel %vm976_vm14, 1.0, %v15694_v25  ;;  %v8770_v35 = vsel %vm991_vm15, 1.0, %v15694_v25  ;;  %vm1171_vm14 = vcmp.eq.f32.partialorder %v10072_v60, %v16049_v42 }
 0x476   :  { %v2656_v49 = vmul.f32 %v8755_v2, %v10228_v21  ;;  %v2671_v55 = vmul.f32 %v8770_v35, %v10258_v9  ;;  %vm1170_vm15 = vcmp.eq.f32.partialorder %v10066_v52, %v16049_v42 }
 0x478   :  { %v12290_v22 = vpop.permute.xlu1 %4695  ;;  %v12292_v50 = vpop.permute.xlu0 %4746 }
 0x479   :  { %16093 = vst [vmem:[#allocation337_spill] sm:$0xff] %v12290_v22  ;;  %16094 = vst [vmem:[#allocation338_spill] sm:$0xff] %v12292_v50  ;;  %5019 = vperm.xlu1 %9375, %v2998_v28   ;;  %3996 = vperm.xlu0 %9374, %v2657_v45   ;;  %v8769_v28 = vsel %vm990_vm2, 1.0, %v15694_v25  ;;  %v8786_v45 = vsel %vm1007_vm3, 1.0, %v15694_v25  ;;  %v16097_v50 = vld [vmem:[#allocation21_spill] sm:$0xff]  ;;  %vm1185_vm2 = vcmp.eq.f32.partialorder %v10076_v62, %v9677_v30 }
 0x47a   :  { %v2670_v2 = vmul.f32 %v8769_v28, %v10248_v39  ;;  %v2687_v35 = vmul.f32 %v8786_v45, %v10258_v9  ;;  %vm1021_vm5 = vcmp.eq.f32.partialorder %v16097_v50, %v9648_v18  ;;  %vm1037_vm8 = vcmp.eq.f32.partialorder %v16097_v50, %v9669_v26 }
 0x47b   :  { %vm1184_vm3 = vcmp.eq.f32.partialorder %v10070_v54, %v9677_v30 }
 0x47c   :  { %v12302_v53 = vpop.permute.xlu1 %4743  ;;  %v12304_v22 = vpop.permute.xlu0 %4788 }
 0x47d   :  { %16095 = vst [vmem:[#allocation339_spill] sm:$0xff] %v12302_v53  ;;  %16096 = vst [vmem:[#allocation340_spill] sm:$0xff] %v12304_v22  ;;  %3993 = vperm.xlu1 %9375, %v2656_v49   ;;  %4038 = vperm.xlu0 %9374, %v2671_v55   ;;  %v8785_v49 = vsel %vm1006_vm4, 1.0, %v15694_v25  ;;  %v8800_v55 = vsel %vm1021_vm5, 1.0, %v15694_v25  ;;  %vm1201_vm4 = vcmp.eq.f32.partialorder %v10076_v62, %v9680_v31 }
 0x47e   :  { %v2686_v28 = vmul.f32 %v8785_v49, %v10248_v39  ;;  %v2701_v45 = vmul.f32 %v8800_v55, %v15933_v44  ;;  %vm1200_vm5 = vcmp.eq.f32.partialorder %v10070_v54, %v9680_v31 }
 0x480   :  { %v12314_v41 = vpop.permute.xlu1 %4785  ;;  %v12316_v53 = vpop.permute.xlu0 %4836 }
 0x481   :  { %16098 = vst [vmem:[#allocation21_spill] sm:$0xff] %v12314_v41  ;;  %16099 = vst [vmem:[#allocation341_spill] sm:$0xff] %v12316_v53  ;;  %4035 = vperm.xlu1 %9375, %v2670_v2   ;;  %4086 = vperm.xlu0 %9374, %v2687_v35   ;;  %v8799_v2 = vsel %vm1020_vm7, 1.0, %v15694_v25  ;;  %v8816_v35 = vsel %vm1037_vm8, 1.0, %v15694_v25  ;;  %v16102_v53 = vld [vmem:[#allocation22_spill] sm:$0xff]  ;;  %vm1215_vm7 = vcmp.eq.f32.partialorder %v10080_v3, %v9651_v19 }
 0x482   :  { %v2700_v49 = vmul.f32 %v8799_v2, %v16041_v37  ;;  %v2717_v55 = vmul.f32 %v8816_v35, %v15933_v44  ;;  %vm1051_vm10 = vcmp.eq.f32.partialorder %v16102_v53, %v9645_v17  ;;  %vm1067_vm12 = vcmp.eq.f32.partialorder %v16102_v53, %v9664_v24 }
 0x483   :  { %vm1214_vm8 = vcmp.eq.f32.partialorder %v10074_v4, %v9651_v19 }
 0x484   :  { %v12326_v22 = vpop.permute.xlu1 %4833  ;;  %v12328_v41 = vpop.permute.xlu0 %4872 }
 0x485   :  { %16100 = vst [vmem:[#allocation342_spill] sm:$0xff] %v12326_v22  ;;  %16101 = vst [vmem:[#allocation343_spill] sm:$0xff] %v12328_v41  ;;  %4083 = vperm.xlu1 %9375, %v2686_v28   ;;  %4128 = vperm.xlu0 %9374, %v2701_v45   ;;  %v8815_v28 = vsel %vm1036_vm9, 1.0, %v15694_v25  ;;  %v8830_v45 = vsel %vm1051_vm10, 1.0, %v15694_v25  ;;  %v16105_v41 = vld [vmem:[#allocation20_spill] sm:$0xff]  ;;  %vm1231_vm9 = vcmp.eq.f32.partialorder %v10080_v3, %v9672_v27 }
 0x486   :  { %v2716_v2 = vmul.f32 %v8815_v28, %v16041_v37  ;;  %v2731_v35 = vmul.f32 %v8830_v45, %v15987_v56  ;;  %vm1050_vm11 = vcmp.eq.f32.partialorder %v16105_v41, %v9645_v17  ;;  %vm1066_vm13 = vcmp.eq.f32.partialorder %v16105_v41, %v9664_v24 }
 0x487   :  { %vm1230_vm10 = vcmp.eq.f32.partialorder %v10074_v4, %v9672_v27 }
 0x488   :  { %v12338_v61 = vpop.permute.xlu1 %4869  ;;  %v12340_v22 = vpop.permute.xlu0 %4878 }
 0x489   :  { %16103 = vst [vmem:[#allocation22_spill] sm:$0xff] %v12338_v61  ;;  %16104 = vst [vmem:[#allocation344_spill] sm:$0xff] %v12340_v22  ;;  %4125 = vperm.xlu1 %9375, %v2700_v49   ;;  %4176 = vperm.xlu0 %9374, %v2717_v55   ;;  %v8829_v49 = vsel %vm1050_vm11, 1.0, %v15694_v25  ;;  %v8846_v55 = vsel %vm1067_vm12, 1.0, %v15694_v25  ;;  %vm1245_vm11 = vcmp.eq.f32.partialorder %v16068_v48, %v9648_v18  ;;  %vm5069_vm12 = vcmask 130112  }
 0x48a   :  { %v2730_v28 = vmul.f32 %v8829_v49, %v15991_v59  ;;  %v2747_v45 = vmul.f32 %v8846_v55, %v15987_v56 }
 0x48c   :  { %v12350_v12 = vpop.permute.xlu1 %4875  ;;  %v12352_v61 = vpop.permute.xlu0 %4920 }
 0x48d   :  { %16106 = vst [vmem:[#allocation20_spill] sm:$0xff] %v12350_v12  ;;  %16107 = vst [vmem:[#allocation345_spill] sm:$0xff] %v12352_v61  ;;  %4173 = vperm.xlu1 %9375, %v2716_v2   ;;  %4218 = vperm.xlu0 %9374, %v2731_v35   ;;  %v8845_v2 = vsel %vm1066_vm13, 1.0, %v15694_v25  ;;  %v8934_v35 = vsel %vm1155_vm0, 1.0, %v15694_v25  ;;  %vm7366_vm13 = vcmask 1041409   ;;  %vm1244_vm0 = vcmp.eq.f32.partialorder %v16071_v40, %v9648_v18 }
 0x48e   :  { %v2746_v49 = vmul.f32 %v8845_v2, %v15991_v59  ;;  %v2835_v55 = vmul.f32 %v8934_v35, %v10334_v38 }
 0x490   :  { %v12362_v22 = vpop.permute.xlu1 %4917  ;;  %v12364_v12 = vpop.permute.xlu0 %4926 }
 0x491   :  { %16108 = vst [vmem:[#allocation346_spill] sm:$0xff] %v12362_v22  ;;  %16109 = vst [vmem:[#allocation347_spill] sm:$0xff] %v12364_v12  ;;  %4215 = vperm.xlu1 %9375, %v2730_v28   ;;  %4266 = vperm.xlu0 %9374, %v2747_v45   ;;  %v8933_v28 = vsel %vm1154_vm1, 1.0, %v15694_v25  ;;  %v8950_v45 = vsel %vm1171_vm14, 1.0, %v15694_v25  ;;  %vm1261_vm1 = vcmp.eq.f32.partialorder %v16068_v48, %v9669_v26  ;;  %vm7368_vm14 = vcmask 1042434  }
 0x492   :  { %v2834_v2 = vmul.f32 %v8933_v28, %v10324_v51  ;;  %v2851_v35 = vmul.f32 %v8950_v45, %v10334_v38 }
 0x494   :  { %v12374_v61 = vpop.permute.xlu1 %4923  ;;  %v12376_v22 = vpop.permute.xlu0 %3990 }
 0x495   :  { %16110 = vst [vmem:[#allocation348_spill] sm:$0xff] %v12374_v61  ;;  %16111 = vst [vmem:[#allocation349_spill] sm:$0xff] %v12376_v22  ;;  %4263 = vperm.xlu1 %9375, %v2746_v49   ;;  %4530 = vperm.xlu0 %9374, %v2835_v55   ;;  %v8949_v49 = vsel %vm1170_vm15, 1.0, %v15694_v25  ;;  %v8964_v55 = vsel %vm1185_vm2, 1.0, %v15694_v25  ;;  %vm7370_vm15 = vcmask 1043459   ;;  %vm7372_vm2 = vcmask 1044484  }
 0x496   :  { %v2850_v28 = vmul.f32 %v8949_v49, %v10324_v51  ;;  %v2865_v38 = vmul.f32 %v8964_v55, %v10354_v36 }
 0x498   :  { %v12386_v60 = vpop.permute.xlu1 %3987  ;;  %v12388_v12 = vpop.permute.xlu0 %4032 }
 0x499   :  { %16112 = vst [vmem:[#allocation350_spill] sm:$0xff] %v12386_v60  ;;  %16113 = vst [vmem:[#allocation351_spill] sm:$0xff] %v12388_v12  ;;  %4527 = vperm.xlu1 %9375, %v2834_v2   ;;  %4578 = vperm.xlu0 %9374, %v2851_v35   ;;  %v8963_v2 = vsel %vm1184_vm3, 1.0, %v15694_v25  ;;  %v8980_v35 = vsel %vm1201_vm4, 1.0, %v15694_v25  ;;  %v16124_v12 = vmov 0.0   ;;  %vm1260_vm3 = vcmp.eq.f32.partialorder %v16071_v40, %v9669_v26 }
 0x49a   :  { %v2864_v51 = vmul.f32 %v8963_v2, %v10344_v6  ;;  %v2881_v49 = vmul.f32 %v8980_v35, %v10354_v36  ;;  %vm1275_vm4 = vcmp.eq.f32.partialorder %v16020_v33, %v9645_v17 }
 0x49c   :  { %v12398_v52 = vpop.permute.xlu1 %4029  ;;  %v12400_v45 = vpop.permute.xlu0 %4080 }
 0x49d   :  { %16114 = vst [vmem:[#allocation352_spill] sm:$0xff] %v12398_v52  ;;  %16115 = vst [vmem:[#allocation353_spill] sm:$0xff] %v12400_v45  ;;  %4575 = vperm.xlu1 %9375, %v2850_v28   ;;  %4620 = vperm.xlu0 %9374, %v2865_v38   ;;  %v8979_v28 = vsel %vm1200_vm5, 1.0, %v15694_v25  ;;  %v8994_v38 = vsel %vm1215_vm7, 1.0, %v15694_v25  ;;  %v16122_v25 = vld [vmem:[#allocation18_spill] sm:$0xff]  ;;  %vm1274_vm5 = vcmp.eq.f32.partialorder %v16023_v13, %v9645_v17 }
 0x49e   :  { %v2880_v2 = vmul.f32 %v8979_v28, %v10344_v6  ;;  %v2895_v35 = vmul.f32 %v8994_v38, %v10366_v8  ;;  %v16123_v45 = vld [vmem:[#allocation46_spill] sm:$0xff]  ;;  %v8993_v38 = vsel %vm1214_vm8, 1.0, %v16124_v12  ;;  %vm1291_vm7 = vcmp.eq.f32.partialorder %v16020_v33, %v9664_v24 }
 0x49f   :  { %v5078_v28 = vrot.slane %v16123_v45, %v16122_v25  ;;  %v2894_v52 = vmul.f32 %v8993_v38, %v15919_v29  ;;  %v16126_v45 = vld [vmem:[#allocation45_spill] sm:$0xff]  ;;  %v16129_v38 = vld [vmem:[#allocation48_spill] sm:$0xff]  ;;  %vm1290_vm8 = vcmp.eq.f32.partialorder %v16023_v13, %v9664_v24 }
 0x4a0   :  { %v12410_v55 = vpop.permute.xlu1 %4077  ;;  %v12412_v61 = vpop.permute.xlu0 %4122  ;;  %v5087_v15 = vrot.slane %v16129_v38, %v16122_v25  ;;  %v16134_v38 = vld [vmem:[#allocation52_spill] sm:$0xff] }
 0x4a1   :  { %16116 = vst [vmem:[#allocation354_spill] sm:$0xff] %v12410_v55  ;;  %16117 = vst [vmem:[#allocation355_spill] sm:$0xff] %v12412_v61  ;;  %4617 = vperm.xlu1 %9375, %v2864_v51   ;;  %4668 = vperm.xlu0 %9374, %v2881_v49   ;;  %v16120_v51 = vld [vmem:[#allocation17_spill] sm:$0xff]  ;;  %v16121_v49 = vld [vmem:[#allocation47_spill] sm:$0xff]  ;;  %v9010_v55 = vsel %vm1231_vm9, 1.0, %v16124_v12  ;;  %vm1305_vm9 = vcmp.eq.f32.partialorder %v16079_v20, %v9642_v16 }
 0x4a2   :  { %v5074_v61 = vrot.slane %v16121_v49, %v16120_v51  ;;  %v2911_v57 = vmul.f32 %v9010_v55, %v10366_v8  ;;  %v5068_v49 = vrot.slane %v16126_v45, %v16122_v25  ;;  %v16130_v8 = vld [vmem:[#allocation49_spill] sm:$0xff] }
 0x4a3   :  { %v5083_v4 = vrot.slane %v16130_v8, %v16120_v51  ;;  %v16132_v45 = vld [vmem:[#allocation53_spill] sm:$0xff] }
 0x4a4   :  { %v12422_v22 = vpop.permute.xlu1 %4119  ;;  %v12424_v60 = vpop.permute.xlu0 %4170  ;;  %v5079_v55 = vsel %vm5069_vm12, %v5078_v28, %v5074_v61  ;;  %v5101_v6 = vrot.slane %v16132_v45, %v16120_v51 }
 0x4a5   :  { %16118 = vst [vmem:[#allocation356_spill] sm:$0xff] %v12422_v22  ;;  %16119 = vst [vmem:[#allocation357_spill] sm:$0xff] %v12424_v60  ;;  %4665 = vperm.xlu1 %9375, %v2880_v2   ;;  %4710 = vperm.xlu0 %9374, %v2895_v35   ;;  %v16125_v2 = vld [vmem:[#allocation44_spill] sm:$0xff] }
 0x4a6   :  { %v5063_v35 = vrot.slane %v16125_v2, %v16120_v51  ;;  %v16131_v2 = vld [vmem:[#allocation51_spill] sm:$0xff] }
 0x4a7   :  { %v5092_v3 = vrot.slane %v16131_v2, %v16120_v51  ;;  %v5105_v2 = vrot.slane %v16134_v38, %v16122_v25 }
 0x4a8   :  { %v12442_v60 = vpop.permute.xlu1 %4167  ;;  %v12444_v22 = vpop.permute.xlu0 %4212  ;;  %v5070_v8 = vsel %vm5069_vm12, %v5068_v49, %v5063_v35 }
 0x4a9   :  { %16127 = vst [vmem:[#allocation17_spill] sm:$0xff] %v12442_v60  ;;  %16128 = vst [vmem:[#allocation47_spill] sm:$0xff] %v12444_v22  ;;  %4707 = vperm.xlu1 %9375, %v2894_v52   ;;  %4758 = vperm.xlu0 %9374, %v2911_v57   ;;  %v9009_v60 = vsel %vm1230_vm10, 1.0, %v16124_v12  ;;  %v9024_v22 = vsel %vm1245_vm11, 1.0, %v16124_v12  ;;  %v16133_v57 = vld [vmem:[#allocation50_spill] sm:$0xff]  ;;  %v5106_v49 = vsel %vm5069_vm12, %v5105_v2, %v5101_v6  ;;  %v16141_v2 = vld [vmem:[#allocation63_spill] sm:$0xff] }
 0x4aa   :  { %v2910_v61 = vmul.f32 %v9009_v60, %v15919_v29  ;;  %v2925_v28 = vmul.f32 %v9024_v22, %v15965_v63  ;;  %v5096_v52 = vrot.slane %v16133_v57, %v16122_v25  ;;  %v7367_v22 = vsel %vm7366_vm13, %v5079_v55, %v5070_v8  ;;  %v16139_v8 = vld [vmem:[#allocation54_spill] sm:$0xff] }
 0x4ab   :  { %v5088_v29 = vsel %vm5069_vm12, %v5087_v15, %v5083_v4  ;;  %v9023_v57 = vsel %vm1244_vm0, 1.0, %v16124_v12  ;;  %v9040_v55 = vsel %vm1261_vm1, 1.0, %v16124_v12  ;;  %vm1304_vm10 = vcmp.eq.f32.partialorder %v16083_v34, %v9642_v16 }
 0x4ac   :  { %v12468_v45 = vpop.permute.xlu1 %4209  ;;  %v12470_v60 = vpop.permute.xlu0 %4260  ;;  %v5097_v35 = vsel %vm5069_vm12, %v5096_v52, %v5092_v3  ;;  %v2924_v4 = vmul.f32 %v9023_v57, %v15969_v46  ;;  %v2941_v15 = vmul.f32 %v9040_v55, %v15965_v63  ;;  %v7369_v3 = vsel %vm7368_vm14, %v5088_v29, %v7367_v22 }
 0x4ad   :  { %16135 = vst [vmem:[#allocation18_spill] sm:$0xff] %v12468_v45  ;;  %16136 = vst [vmem:[#allocation46_spill] sm:$0xff] %v12470_v60  ;;  %4755 = vperm.xlu1 %9375, %v2910_v61   ;;  %4800 = vperm.xlu0 %9374, %v2925_v28   ;;  %v7371_v28 = vsel %vm7370_vm15, %v5097_v35, %v7369_v3  ;;  %v5114_v52 = vrot.slane %v16139_v8, %v16122_v25  ;;  %v9039_v55 = vsel %vm1260_vm3, 1.0, %v16124_v12  ;;  %v16142_v35 = vld [vmem:[#allocation55_spill] sm:$0xff]  ;;  %v16144_v3 = vld [vmem:[#allocation61_spill] sm:$0xff] }
 0x4ae   :  { %v12499_v38 = vsel %vm7372_vm2, %v5106_v49, %v7371_v28  ;;  %v5146_v57 = vrot.slane %v16141_v2, %v16120_v51  ;;  %v9054_v29 = vsel %vm1275_vm4, 1.0, %v16124_v12  ;;  %v2940_v22 = vmul.f32 %v9039_v55, %v15969_v46  ;;  %v16145_v8 = vld [vmem:[#allocation62_spill] sm:$0xff] }
 0x4af   :  { %16140 = vst [vmem:[#allocation48_spill] sm:$0xff] %v12499_v38  ;;  %v2955_v60 = vmul.f32 %v9054_v29, %v10398_v5  ;;  %v5110_v49 = vrot.slane %v16142_v35, %v16120_v51  ;;  %v5137_v28 = vrot.slane %v16144_v3, %v16120_v51  ;;  %v5150_v2 = vrot.slane %v16145_v8, %v16122_v25  ;;  %v16150_v35 = vld [vmem:[#allocation65_spill] sm:$0xff]  ;;  %v16151_v3 = vld [vmem:[#allocation67_spill] sm:$0xff] }
 0x4b0   :  { %v12491_v6 = vpop.permute.xlu1 %4257  ;;  %v12493_v61 = vpop.permute.xlu0 %4338  ;;  %v5155_v17 = vrot.slane %v16150_v35, %v16120_v51  ;;  %v5164_v8 = vrot.slane %v16151_v3, %v16120_v51  ;;  %vm1321_vm11 = vcmp.eq.f32.partialorder %v16079_v20, %v9661_v23  ;;  %vm1320_vm0 = vcmp.eq.f32.partialorder %v16083_v34, %v9661_v23 }
 0x4b1   :  { %16137 = vst [vmem:[#allocation44_spill] sm:$0xff] %v12491_v6  ;;  %16138 = vst [vmem:[#allocation45_spill] sm:$0xff] %v12493_v61  ;;  %4797 = vperm.xlu1 %9375, %v2924_v4   ;;  %4848 = vperm.xlu0 %9374, %v2941_v15   ;;  %v16143_v4 = vld [vmem:[#allocation56_spill] sm:$0xff]  ;;  %vm979_vm1 = vcmp.eq.f32.partialorder %v10048_v32, %v16049_v42  ;;  %vm978_vm3 = vcmp.eq.f32.partialorder %v10042_v1, %v16049_v42 }
 0x4b2   :  { %v5123_v15 = vrot.slane %v16143_v4, %v16122_v25  ;;  %v16148_v6 = vld [vmem:[#allocation60_spill] sm:$0xff]  ;;  %v5151_v4 = vsel %vm5069_vm12, %v5150_v2, %v5146_v57  ;;  %v16153_v2 = vld [vmem:[#allocation66_spill] sm:$0xff]  ;;  %vm993_vm4 = vcmp.eq.f32.partialorder %v10052_v47, %v9677_v30 }
 0x4b3   :  { %v5141_v45 = vrot.slane %v16148_v6, %v16122_v25  ;;  %v16149_v61 = vld [vmem:[#allocation64_spill] sm:$0xff]  ;;  %v5168_v35 = vrot.slane %v16153_v2, %v16122_v25  ;;  %v9084_v2 = vsel %vm1305_vm9, 1.0, %v16124_v12  ;;  %vm1023_vm9 = vcmp.eq.f32.partialorder %v16097_v50, %v9651_v19 }
 0x4b4   :  { %v12519_v55 = vpop.permute.xlu1 %4335  ;;  %v12521_v29 = vpop.permute.xlu0 %4386  ;;  %v5159_v38 = vrot.slane %v16149_v61, %v16122_v25  ;;  %v16152_v61 = vld [vmem:[#allocation57_spill] sm:$0xff]  ;;  %v16172_v32 = vld [vmem:[#allocation80_spill] sm:$0xff] }
 0x4b5   :  { %16146 = vst [vmem:[#allocation49_spill] sm:$0xff] %v12519_v55  ;;  %16147 = vst [vmem:[#allocation51_spill] sm:$0xff] %v12521_v29  ;;  %4845 = vperm.xlu1 %9375, %v2940_v22   ;;  %4890 = vperm.xlu0 %9374, %v2955_v60   ;;  %v9053_v55 = vsel %vm1274_vm5, 1.0, %v16124_v12  ;;  %v9070_v29 = vsel %vm1291_vm7, 1.0, %v16124_v12  ;;  %v12541_v60 = vsel %vm5069_vm12, %v5114_v52, %v5110_v49  ;;  %v16181_v1 = vld [vmem:[#allocation72_spill] sm:$0xff] }
 0x4b6   :  { %v2954_v33 = vmul.f32 %v9053_v55, %v16026_v58  ;;  %v2971_v6 = vmul.f32 %v9070_v29, %v10398_v5  ;;  %v5119_v57 = vrot.slane %v16152_v61, %v16120_v51  ;;  %v5142_v22 = vsel %vm5069_vm12, %v5141_v45, %v5137_v28  ;;  %v16156_v5 = vld [vmem:[#allocation69_spill] sm:$0xff]  ;;  %v16157_v45 = vld [vmem:[#allocation68_spill] sm:$0xff] }
 0x4b7   :  { %v7380_v3 = vsel %vm7366_vm13, %v5151_v4, %v5142_v22  ;;  %v5160_v24 = vsel %vm5069_vm12, %v5159_v38, %v5155_v17  ;;  %v5173_v52 = vrot.slane %v16156_v5, %v16120_v51  ;;  %v5169_v49 = vsel %vm5069_vm12, %v5168_v35, %v5164_v8  ;;  %v16165_v5 = vld [vmem:[#allocation78_spill] sm:$0xff] }
 0x4b8   :  { %v12548_v55 = vpop.permute.xlu1 %4383  ;;  %v12550_v29 = vpop.permute.xlu0 %4434  ;;  %v5177_v28 = vrot.slane %v16157_v45, %v16122_v25  ;;  %v9069_v61 = vsel %vm1290_vm8, 1.0, %v16124_v12  ;;  %v2985_v4 = vmul.f32 %v9084_v2, %v16082_v7  ;;  %v12568_v17 = vsel %vm5069_vm12, %v5123_v15, %v5119_v57  ;;  %v16164_v57 = vld [vmem:[#allocation70_spill] sm:$0xff] }
 0x4b9   :  { %16154 = vst [vmem:[#allocation53_spill] sm:$0xff] %v12548_v55  ;;  %16155 = vst [vmem:[#allocation50_spill] sm:$0xff] %v12550_v29  ;;  %4887 = vperm.xlu1 %9375, %v2954_v33   ;;  %4938 = vperm.xlu0 %9374, %v2971_v6   ;;  %v2970_v29 = vmul.f32 %v9069_v61, %v16026_v58  ;;  %v7381_v6 = vsel %vm7368_vm14, %v5160_v24, %v7380_v3  ;;  %v16163_v61 = vld [vmem:[#allocation79_spill] sm:$0xff]  ;;  %v9083_v24 = vsel %vm1304_vm10, 1.0, %v16124_v12 }
 0x4ba   :  { %16158 = vst [vmem:[#allocation52_spill] sm:$0xff] %v12568_v17  ;;  %v7382_v16 = vsel %vm7370_vm15, %v5169_v49, %v7381_v6  ;;  %v5178_v45 = vsel %vm5069_vm12, %v5177_v28, %v5173_v52  ;;  %v5218_v15 = vrot.slane %v16163_v61, %v16120_v51  ;;  %v5186_v2 = vrot.slane %v16164_v57, %v16122_v25  ;;  %v16167_v52 = vld [vmem:[#allocation71_spill] sm:$0xff]  ;;  %v16169_v6 = vld [vmem:[#allocation77_spill] sm:$0xff] }
 0x4bb   :  { %v5222_v8 = vrot.slane %v16165_v5, %v16122_v25  ;;  %v9100_v3 = vsel %vm1321_vm11, 1.0, %v16124_v12  ;;  %v5182_v28 = vrot.slane %v16167_v52, %v16120_v51  ;;  %v5209_v61 = vrot.slane %v16169_v6, %v16120_v51  ;;  %v16174_v52 = vld [vmem:[#allocation83_spill] sm:$0xff] }
 0x4bc   :  { %v12575_v22 = vpop.permute.xlu1 %4431  ;;  %v12577_v35 = vpop.permute.xlu0 %4482  ;;  %v3001_v49 = vmul.f32 %v9100_v3, %v16082_v7  ;;  %v5231_v3 = vrot.slane %v16172_v32, %v16122_v25  ;;  %vm992_vm5 = vcmp.eq.f32.partialorder %v10046_v14, %v9677_v30  ;;  %vm1009_vm7 = vcmp.eq.f32.partialorder %v10052_v47, %v9680_v31 }
 0x4bd   :  { %16161 = vst [vmem:[#allocation54_spill] sm:$0xff] %v12575_v22  ;;  %16162 = vst [vmem:[#allocation63_spill] sm:$0xff] %v12577_v35  ;;  %4935 = vperm.xlu1 %9375, %v2970_v29   ;;  %4980 = vperm.xlu0 %9374, %v2985_v4   ;;  %v2984_v35 = vmul.f32 %v9083_v24, %v16086_v11  ;;  %v12596_v29 = vsel %vm7372_vm2, %v5178_v45, %v7382_v16  ;;  %v16168_v4 = vld [vmem:[#allocation76_spill] sm:$0xff]  ;;  %v16173_v16 = vld [vmem:[#allocation81_spill] sm:$0xff] }
 0x4be   :  { %16166 = vst [vmem:[#allocation55_spill] sm:$0xff] %v12596_v29  ;;  %v5213_v5 = vrot.slane %v16168_v4, %v16122_v25  ;;  %v5223_v23 = vsel %vm5069_vm12, %v5222_v8, %v5218_v15  ;;  %v5227_v45 = vrot.slane %v16173_v16, %v16120_v51  ;;  %v5236_v4 = vrot.slane %v16174_v52, %v16120_v51  ;;  %v16175_v22 = vld [vmem:[#allocation85_spill] sm:$0xff]  ;;  %v16178_v52 = vld [vmem:[#allocation84_spill] sm:$0xff] }
 0x4bf   :  { %v5245_v6 = vrot.slane %v16175_v22, %v16120_v51  ;;  %v16177_v22 = vld [vmem:[#allocation82_spill] sm:$0xff]  ;;  %v5249_v55 = vrot.slane %v16178_v52, %v16122_v25  ;;  %vm1008_vm8 = vcmp.eq.f32.partialorder %v10046_v14, %v9680_v31  ;;  %vm1022_vm10 = vcmp.eq.f32.partialorder %v15934_v0, %v9651_v19 }
 0x4c0   :  { %v12604_v57 = vpop.permute.xlu1 %4479  ;;  %v12606_v24 = vpop.permute.xlu0 %4524  ;;  %v5214_v32 = vsel %vm5069_vm12, %v5213_v5, %v5209_v61  ;;  %v5240_v16 = vrot.slane %v16177_v22, %v16122_v25  ;;  %v5232_v17 = vsel %vm5069_vm12, %v5231_v3, %v5227_v45  ;;  %v8772_v22 = vsel %vm993_vm4, 1.0, %v16124_v12 }
 0x4c1   :  { %16170 = vst [vmem:[#allocation56_spill] sm:$0xff] %v12604_v57  ;;  %16171 = vst [vmem:[#allocation61_spill] sm:$0xff] %v12606_v24  ;;  %4977 = vperm.xlu1 %9375, %v2984_v35   ;;  %5028 = vperm.xlu0 %9374, %v3001_v49   ;;  %v9099_v57 = vsel %vm1320_vm0, 1.0, %v16124_v12  ;;  %v8758_v24 = vsel %vm979_vm1, 1.0, %v16124_v12  ;;  %v16176_v35 = vld [vmem:[#allocation73_spill] sm:$0xff]  ;;  %v7387_v29 = vsel %vm7366_vm13, %v5223_v23, %v5214_v32 }
 0x4c2   :  { %v3000_v8 = vmul.f32 %v9099_v57, %v16086_v11  ;;  %v2659_v15 = vmul.f32 %v8758_v24, %v10238_v43  ;;  %v5191_v49 = vrot.slane %v16176_v35, %v16120_v51  ;;  %v5195_v24 = vrot.slane %v16181_v1, %v16122_v25 }
 0x4c3   :  { %v5241_v5 = vsel %vm5069_vm12, %v5240_v16, %v5236_v4  ;;  %v5250_v61 = vsel %vm5069_vm12, %v5249_v55, %v5245_v6  ;;  %v8757_v35 = vsel %vm978_vm3, 1.0, %v16124_v12  ;;  %v12651_v23 = vsel %vm5069_vm12, %v5186_v2, %v5182_v28  ;;  %v16188_v2 = vld [vmem:[#allocation86_spill] sm:$0xff]  ;;  %v16190_v16 = vld [vmem:[#allocation95_spill] sm:$0xff] }
 0x4c4   :  { %v12632_v57 = vpop.permute.xlu1 %4521  ;;  %v12634_v43 = vpop.permute.xlu0 %4572  ;;  %v2658_v52 = vmul.f32 %v8757_v35, %v10228_v21  ;;  %16182 = vst [vmem:[#allocation64_spill] sm:$0xff] %v12651_v23  ;;  %v12654_v3 = vsel %vm5069_vm12, %v5195_v24, %v5191_v49  ;;  %v7388_v4 = vsel %vm7368_vm14, %v5232_v17, %v7387_v29  ;;  %v5258_v28 = vrot.slane %v16188_v2, %v16122_v25 }
 0x4c5   :  { %16179 = vst [vmem:[#allocation62_spill] sm:$0xff] %v12632_v57  ;;  %16180 = vst [vmem:[#allocation60_spill] sm:$0xff] %v12634_v43  ;;  %5025 = vperm.xlu1 %9375, %v3000_v8   ;;  %4002 = vperm.xlu0 %9374, %v2659_v15   ;;  %v2673_v43 = vmul.f32 %v8772_v22, %v10258_v9  ;;  %v7389_v32 = vsel %vm7370_vm15, %v5241_v5, %v7388_v4  ;;  %v8771_v29 = vsel %vm992_vm5, 1.0, %v16124_v12  ;;  %v16198_v15 = vld [vmem:[#allocation96_spill] sm:$0xff] }
 0x4c6   :  { %16183 = vst [vmem:[#allocation65_spill] sm:$0xff] %v12654_v3  ;;  %v12669_v49 = vsel %vm7372_vm2, %v5250_v61, %v7389_v32  ;;  %v5290_v17 = vrot.slane %v16190_v16, %v16120_v51  ;;  %v8788_v1 = vsel %vm1009_vm7, 1.0, %v16124_v12  ;;  %v2672_v24 = vmul.f32 %v8771_v29, %v10248_v39  ;;  %v16192_v61 = vld [vmem:[#allocation88_spill] sm:$0xff]  ;;  %v16194_v32 = vld [vmem:[#allocation94_spill] sm:$0xff]  ;;  %v16206_v3 = vld [vmem:[#allocation101_spill] sm:$0xff] }
 0x4c7   :  { %16189 = vst [vmem:[#allocation66_spill] sm:$0xff] %v12669_v49  ;;  %v2689_v35 = vmul.f32 %v8788_v1, %v10258_v9  ;;  %v5267_v22 = vrot.slane %v16192_v61, %v16122_v25  ;;  %v5294_v2 = vrot.slane %v16194_v32, %v16122_v25  ;;  %v16197_v1 = vld [vmem:[#allocation92_spill] sm:$0xff]  ;;  %vm1039_vm11 = vcmp.eq.f32.partialorder %v16097_v50, %v9672_v27 }
 0x4c8   :  { %v12659_v21 = vpop.permute.xlu1 %4569  ;;  %v12661_v6 = vpop.permute.xlu0 %4614  ;;  %v5285_v45 = vrot.slane %v16197_v1, %v16122_v25  ;;  %vm1038_vm0 = vcmp.eq.f32.partialorder %v15934_v0, %v9672_v27  ;;  %vm1053_vm1 = vcmp.eq.f32.partialorder %v16102_v53, %v9648_v18  ;;  %vm1052_vm3 = vcmp.eq.f32.partialorder %v16105_v41, %v9648_v18 }
 0x4c9   :  { %16185 = vst [vmem:[#allocation67_spill] sm:$0xff] %v12659_v21  ;;  %16186 = vst [vmem:[#allocation57_spill] sm:$0xff] %v12661_v6  ;;  %3999 = vperm.xlu1 %9375, %v2658_v52   ;;  %4044 = vperm.xlu0 %9374, %v2673_v43   ;;  %v16191_v43 = vld [vmem:[#allocation87_spill] sm:$0xff]  ;;  %v16193_v52 = vld [vmem:[#allocation93_spill] sm:$0xff]  ;;  %v5303_v6 = vrot.slane %v16198_v15, %v16122_v25  ;;  %v5295_v61 = vsel %vm5069_vm12, %v5294_v2, %v5290_v17 }
 0x4ca   :  { %v5254_v5 = vrot.slane %v16191_v43, %v16120_v51  ;;  %v5281_v4 = vrot.slane %v16193_v52, %v16120_v51  ;;  %v16199_v43 = vld [vmem:[#allocation97_spill] sm:$0xff]  ;;  %v16200_v52 = vld [vmem:[#allocation99_spill] sm:$0xff]  ;;  %v16203_v2 = vld [vmem:[#allocation98_spill] sm:$0xff]  ;;  %vm1069_vm4 = vcmp.eq.f32.partialorder %v16102_v53, %v9669_v26  ;;  %vm1068_vm5 = vcmp.eq.f32.partialorder %v16105_v41, %v9669_v26 }
 0x4cb   :  { %v5299_v21 = vrot.slane %v16199_v43, %v16120_v51  ;;  %v5308_v32 = vrot.slane %v16200_v52, %v16120_v51  ;;  %v16202_v17 = vld [vmem:[#allocation89_spill] sm:$0xff]  ;;  %v5312_v43 = vrot.slane %v16203_v2, %v16122_v25  ;;  %v8818_v2 = vsel %vm1039_vm11, 1.0, %v16124_v12 }
 0x4cc   :  { %v12689_v16 = vpop.permute.xlu1 %4611  ;;  %v12691_v29 = vpop.permute.xlu0 %4662  ;;  %v12711_v15 = vsel %vm5069_vm12, %v5258_v28, %v5254_v5  ;;  %v5317_v28 = vrot.slane %v16206_v3, %v16120_v51  ;;  %vm1187_vm7 = vcmp.eq.f32.partialorder %v10076_v62, %v16046_v10 }
 0x4cd   :  { %16195 = vst [vmem:[#allocation69_spill] sm:$0xff] %v12689_v16  ;;  %16196 = vst [vmem:[#allocation68_spill] sm:$0xff] %v12691_v29  ;;  %4041 = vperm.xlu1 %9375, %v2672_v24   ;;  %4092 = vperm.xlu0 %9374, %v2689_v35   ;;  %v8787_v16 = vsel %vm1008_vm8, 1.0, %v16124_v12  ;;  %v8802_v29 = vsel %vm1023_vm9, 1.0, %v16124_v12  ;;  %v5263_v24 = vrot.slane %v16202_v17, %v16120_v51  ;;  %v8801_v17 = vsel %vm1022_vm10, 1.0, %v16124_v12 }
 0x4ce   :  { %v2688_v57 = vmul.f32 %v8787_v16, %v10248_v39  ;;  %v2703_v1 = vmul.f32 %v8802_v29, %v15933_v44  ;;  %16201 = vst [vmem:[#allocation79_spill] sm:$0xff] %v12711_v15  ;;  %v5286_v35 = vsel %vm5069_vm12, %v5285_v45, %v5281_v4  ;;  %v5304_v49 = vsel %vm5069_vm12, %v5303_v6, %v5299_v21  ;;  %v16207_v45 = vld [vmem:[#allocation100_spill] sm:$0xff] }
 0x4cf   :  { %v7394_v52 = vsel %vm7366_vm13, %v5295_v61, %v5286_v35  ;;  %v5313_v5 = vsel %vm5069_vm12, %v5312_v43, %v5308_v32  ;;  %v5321_v4 = vrot.slane %v16207_v45, %v16122_v25  ;;  %v2719_v61 = vmul.f32 %v8818_v2, %v15933_v44  ;;  %v16213_v2 = vld [vmem:[#allocation111_spill] sm:$0xff]  ;;  %v16215_v32 = vld [vmem:[#allocation110_spill] sm:$0xff]  ;;  %v16231_v6 = vld [vmem:[#allocation104_spill] sm:$0xff] }
 0x4d0   :  { %v12718_v16 = vpop.permute.xlu1 %4659  ;;  %v12720_v29 = vpop.permute.xlu0 %4704  ;;  %v5339_v15 = vrot.slane %v16231_v6, %v16122_v25  ;;  %vm1186_vm8 = vcmp.eq.f32.partialorder %v10070_v54, %v16046_v10  ;;  %vm1203_vm9 = vcmp.eq.f32.partialorder %v10076_v62, %v16049_v42  ;;  %vm1202_vm10 = vcmp.eq.f32.partialorder %v10070_v54, %v16049_v42  ;;  %v16249_v54 = vld [vmem:[#allocation124_spill] sm:$0xff] }
 0x4d1   :  { %16204 = vst [vmem:[#allocation70_spill] sm:$0xff] %v12718_v16  ;;  %16205 = vst [vmem:[#allocation78_spill] sm:$0xff] %v12720_v29  ;;  %4089 = vperm.xlu1 %9375, %v2688_v57   ;;  %4134 = vperm.xlu0 %9374, %v2703_v1   ;;  %v2702_v29 = vmul.f32 %v8801_v17, %v16041_v37  ;;  %v12738_v57 = vsel %vm5069_vm12, %v5267_v22, %v5263_v24  ;;  %v16214_v24 = vld [vmem:[#allocation102_spill] sm:$0xff] }
 0x4d2   :  { %16208 = vst [vmem:[#allocation71_spill] sm:$0xff] %v12738_v57  ;;  %v7395_v1 = vsel %vm7368_vm14, %v5304_v49, %v7394_v52  ;;  %v5322_v17 = vsel %vm5069_vm12, %v5321_v4, %v5317_v28  ;;  %v5362_v22 = vrot.slane %v16213_v2, %v16120_v51  ;;  %v5330_v21 = vrot.slane %v16214_v24, %v16122_v25  ;;  %v16217_v28 = vld [vmem:[#allocation103_spill] sm:$0xff] }
 0x4d3   :  { %v7396_v45 = vsel %vm7370_vm15, %v5313_v5, %v7395_v1  ;;  %v5366_v16 = vrot.slane %v16215_v32, %v16122_v25  ;;  %v8817_v49 = vsel %vm1038_vm0, 1.0, %v16124_v12  ;;  %v8832_v52 = vsel %vm1053_vm1, 1.0, %v16124_v12  ;;  %v16219_v1 = vld [vmem:[#allocation109_spill] sm:$0xff] }
 0x4d4   :  { %v12745_v35 = vpop.permute.xlu1 %4701  ;;  %v12747_v43 = vpop.permute.xlu0 %4752  ;;  %v2733_v5 = vmul.f32 %v8832_v52, %v15987_v56  ;;  %v5326_v4 = vrot.slane %v16217_v28, %v16120_v51  ;;  %v5353_v2 = vrot.slane %v16219_v1, %v16120_v51  ;;  %v16224_v28 = vld [vmem:[#allocation115_spill] sm:$0xff] }
 0x4d5   :  { %16211 = vst [vmem:[#allocation76_spill] sm:$0xff] %v12745_v35  ;;  %16212 = vst [vmem:[#allocation77_spill] sm:$0xff] %v12747_v43  ;;  %4131 = vperm.xlu1 %9375, %v2702_v29   ;;  %4182 = vperm.xlu0 %9374, %v2719_v61   ;;  %v2718_v43 = vmul.f32 %v8817_v49, %v16041_v37  ;;  %v12766_v29 = vsel %vm7372_vm2, %v5322_v17, %v7396_v45  ;;  %v16218_v61 = vld [vmem:[#allocation108_spill] sm:$0xff]  ;;  %v16223_v45 = vld [vmem:[#allocation113_spill] sm:$0xff] }
 0x4d6   :  { %16216 = vst [vmem:[#allocation80_spill] sm:$0xff] %v12766_v29  ;;  %v5357_v32 = vrot.slane %v16218_v61, %v16122_v25  ;;  %v5367_v52 = vsel %vm5069_vm12, %v5366_v16, %v5362_v22  ;;  %v16222_v35 = vld [vmem:[#allocation112_spill] sm:$0xff]  ;;  %v5371_v17 = vrot.slane %v16223_v45, %v16120_v51  ;;  %v5380_v61 = vrot.slane %v16224_v28, %v16120_v51  ;;  %v16225_v29 = vld [vmem:[#allocation117_spill] sm:$0xff] }
 0x4d7   :  { %v5375_v57 = vrot.slane %v16222_v35, %v16122_v25  ;;  %v5389_v1 = vrot.slane %v16225_v29, %v16120_v51  ;;  %v16226_v35 = vld [vmem:[#allocation105_spill] sm:$0xff]  ;;  %v16227_v29 = vld [vmem:[#allocation114_spill] sm:$0xff]  ;;  %v16228_v28 = vld [vmem:[#allocation116_spill] sm:$0xff] }
 0x4d8   :  { %v12774_v24 = vpop.permute.xlu1 %4749  ;;  %v12776_v49 = vpop.permute.xlu0 %4794  ;;  %v5384_v45 = vrot.slane %v16227_v29, %v16122_v25  ;;  %v5393_v3 = vrot.slane %v16228_v28, %v16122_v25  ;;  %v8966_v29 = vsel %vm1187_vm7, 1.0, %v16124_v12  ;;  %vm1263_vm7 = vcmp.eq.f32.partialorder %v16068_v48, %v9672_v27 }
 0x4d9   :  { %16220 = vst [vmem:[#allocation81_spill] sm:$0xff] %v12774_v24  ;;  %16221 = vst [vmem:[#allocation83_spill] sm:$0xff] %v12776_v49  ;;  %4179 = vperm.xlu1 %9375, %v2718_v43   ;;  %4224 = vperm.xlu0 %9374, %v2733_v5   ;;  %v8831_v24 = vsel %vm1052_vm3, 1.0, %v16124_v12  ;;  %v8848_v49 = vsel %vm1069_vm4, 1.0, %v16124_v12  ;;  %v5335_v43 = vrot.slane %v16226_v35, %v16120_v51  ;;  %v8847_v35 = vsel %vm1068_vm5, 1.0, %v16124_v12 }
 0x4da   :  { %v2732_v16 = vmul.f32 %v8831_v24, %v15991_v59  ;;  %v2749_v22 = vmul.f32 %v8848_v49, %v15987_v56  ;;  %v5358_v5 = vsel %vm5069_vm12, %v5357_v32, %v5353_v2  ;;  %v5376_v8 = vsel %vm5069_vm12, %v5375_v57, %v5371_v17 }
 0x4db   :  { %v7401_v55 = vsel %vm7366_vm13, %v5367_v52, %v5358_v5  ;;  %v5385_v32 = vsel %vm5069_vm12, %v5384_v45, %v5380_v61  ;;  %v5394_v2 = vsel %vm5069_vm12, %v5393_v3, %v5389_v1  ;;  %v2748_v28 = vmul.f32 %v8847_v35, %v15991_v59  ;;  %v16241_v45 = vld [vmem:[#allocation35_spill] sm:$0xff] }
 0x4dc   :  { %v12802_v24 = vpop.permute.xlu1 %4791  ;;  %v12804_v49 = vpop.permute.xlu0 %4842  ;;  %v12821_v57 = vsel %vm5069_vm12, %v5330_v21, %v5326_v4  ;;  %v12824_v6 = vsel %vm5069_vm12, %v5339_v15, %v5335_v43  ;;  %v7402_v17 = vsel %vm7368_vm14, %v5376_v8, %v7401_v55  ;;  %v16238_v21 = vld [vmem:[#allocation118_spill] sm:$0xff]  ;;  %v16240_v43 = vld [vmem:[#allocation127_spill] sm:$0xff]  ;;  %v8965_v8 = vsel %vm1186_vm8, 1.0, %v16124_v12 }
 0x4dd   :  { %16229 = vst [vmem:[#allocation85_spill] sm:$0xff] %v12802_v24  ;;  %16230 = vst [vmem:[#allocation73_spill] sm:$0xff] %v12804_v49  ;;  %4221 = vperm.xlu1 %9375, %v2732_v16   ;;  %4272 = vperm.xlu0 %9374, %v2749_v22   ;;  %v2867_v49 = vmul.f32 %v8966_v29, %v10354_v36  ;;  %v7403_v62 = vsel %vm7370_vm15, %v5385_v32, %v7402_v17  ;;  %v8982_v5 = vsel %vm1203_vm9, 1.0, %v16124_v12  ;;  %v16242_v32 = vld [vmem:[#allocation25_spill] sm:$0xff]  ;;  %v16250_v22 = vld [vmem:[#allocation128_spill] sm:$0xff] }
 0x4de   :  { %16232 = vst [vmem:[#allocation82_spill] sm:$0xff] %v12821_v57  ;;  %16233 = vst [vmem:[#allocation84_spill] sm:$0xff] %v12824_v6  ;;  %v5402_v4 = vrot.slane %v16238_v21, %v16122_v25  ;;  %v12839_v15 = vsel %vm7372_vm2, %v5394_v2, %v7403_v62  ;;  %v5434_v55 = vrot.slane %v16240_v43, %v16120_v51  ;;  %v16245_v62 = vld [vmem:[#allocation125_spill] sm:$0xff]  ;;  %v16246_v43 = vld [vmem:[#allocation126_spill] sm:$0xff] }
 0x4df   :  { %16239 = vst [vmem:[#allocation95_spill] sm:$0xff] %v12839_v15  ;;  %v2866_v35 = vmul.f32 %v8965_v8, %v16241_v45  ;;  %v2883_v29 = vmul.f32 %v8982_v5, %v10354_v36  ;;  %vm1217_vm11 = vcmp.eq.f32.partialorder %v16242_v32, %v9677_v30  ;;  %v5425_v21 = vrot.slane %v16245_v62, %v16120_v51 }
 0x4e0   :  { %v12829_v61 = vpop.permute.xlu1 %4839  ;;  %v12831_v1 = vpop.permute.xlu0 %4884  ;;  %v5438_v8 = vrot.slane %v16246_v43, %v16122_v25  ;;  %v5429_v5 = vrot.slane %v16249_v54, %v16122_v25  ;;  %v8981_v62 = vsel %vm1202_vm10, 1.0, %v16124_v12  ;;  %v8996_v43 = vsel %vm1217_vm11, 1.0, %v16124_v12 }
 0x4e1   :  { %16235 = vst [vmem:[#allocation72_spill] sm:$0xff] %v12829_v61  ;;  %16236 = vst [vmem:[#allocation86_spill] sm:$0xff] %v12831_v1  ;;  %4269 = vperm.xlu1 %9375, %v2748_v28   ;;  %4626 = vperm.xlu0 %9374, %v2867_v49   ;;  %v16243_v49 = vld [vmem:[#allocation119_spill] sm:$0xff]  ;;  %v16244_v28 = vld [vmem:[#allocation120_spill] sm:$0xff]  ;;  %v5447_v1 = vrot.slane %v16250_v22, %v16122_v25  ;;  %v2882_v24 = vmul.f32 %v8981_v62, %v16241_v45 }
 0x4e2   :  { %v5398_v2 = vrot.slane %v16243_v49, %v16120_v51  ;;  %v5411_v17 = vrot.slane %v16244_v28, %v16122_v25  ;;  %v16251_v49 = vld [vmem:[#allocation129_spill] sm:$0xff]  ;;  %v5439_v28 = vsel %vm5069_vm12, %v5438_v8, %v5434_v55  ;;  %vm1233_vm1 = vcmp.eq.f32.partialorder %v16242_v32, %v9680_v31 }
 0x4e3   :  { %v5443_v61 = vrot.slane %v16251_v49, %v16120_v51  ;;  %v16254_v22 = vld [vmem:[#allocation37_spill] sm:$0xff]  ;;  %v5430_v6 = vsel %vm5069_vm12, %v5429_v5, %v5425_v21  ;;  %v9012_v5 = vsel %vm1233_vm1, 1.0, %v16124_v12  ;;  %vm1247_vm4 = vcmp.eq.f32.partialorder %v16068_v48, %v9651_v19  ;;  %v16265_v49 = vld [vmem:[#allocation132_spill] sm:$0xff] }
 0x4e4   :  { %v12859_v52 = vpop.permute.xlu1 %4881  ;;  %v12861_v36 = vpop.permute.xlu0 %4932  ;;  %v2897_v15 = vmul.f32 %v8996_v43, %v16254_v22  ;;  %v16256_v55 = vld [vmem:[#allocation121_spill] sm:$0xff]  ;;  %v7408_v45 = vsel %vm7366_vm13, %v5439_v28, %v5430_v6  ;;  %v16260_v43 = vld [vmem:[#allocation130_spill] sm:$0xff]  ;;  %vm1246_vm5 = vcmp.eq.f32.partialorder %v16071_v40, %v9651_v19  ;;  %vm1262_vm8 = vcmp.eq.f32.partialorder %v16071_v40, %v9672_v27 }
 0x4e5   :  { %16247 = vst [vmem:[#allocation87_spill] sm:$0xff] %v12859_v52  ;;  %16248 = vst [vmem:[#allocation88_spill] sm:$0xff] %v12861_v36  ;;  %4623 = vperm.xlu1 %9375, %v2866_v35   ;;  %4674 = vperm.xlu0 %9374, %v2883_v29   ;;  %v16252_v52 = vld [vmem:[#allocation23_spill] sm:$0xff]  ;;  %v12881_v35 = vsel %vm5069_vm12, %v5402_v4, %v5398_v2  ;;  %v5407_v29 = vrot.slane %v16256_v55, %v16120_v51  ;;  %v16261_v55 = vld [vmem:[#allocation36_spill] sm:$0xff] }
 0x4e6   :  { %vm1216_vm0 = vcmp.eq.f32.partialorder %v16252_v52, %v9677_v30  ;;  %v16253_v36 = vld [vmem:[#allocation131_spill] sm:$0xff]  ;;  %16255 = vst [vmem:[#allocation93_spill] sm:$0xff] %v12881_v35  ;;  %v5448_v62 = vsel %vm5069_vm12, %v5447_v1, %v5443_v61  ;;  %v5456_v4 = vrot.slane %v16260_v43, %v16122_v25  ;;  %vm1232_vm3 = vcmp.eq.f32.partialorder %v16252_v52, %v9680_v31  ;;  %v16281_v8 = vld [vmem:[#allocation137_spill] sm:$0xff] }
 0x4e7   :  { %v5452_v54 = vrot.slane %v16253_v36, %v16120_v51  ;;  %v8995_v2 = vsel %vm1216_vm0, 1.0, %v16124_v12  ;;  %v2913_v1 = vmul.f32 %v9012_v5, %v16254_v22  ;;  %v9011_v5 = vsel %vm1232_vm3, 1.0, %v16124_v12 }
 0x4e8   :  { %v12888_v3 = vpop.permute.xlu1 %4929  ;;  %v12890_v36 = vpop.permute.xlu0 %4968  ;;  %v2896_v21 = vmul.f32 %v8995_v2, %v16261_v55  ;;  %v7409_v2 = vsel %vm7368_vm14, %v5448_v62, %v7408_v45  ;;  %v9025_v45 = vsel %vm1246_vm5, 1.0, %v16124_v12  ;;  %vm1276_vm10 = vcmp.eq.f32.partialorder %v16023_v13, %v9648_v18 }
 0x4e9   :  { %16258 = vst [vmem:[#allocation94_spill] sm:$0xff] %v12888_v3  ;;  %16259 = vst [vmem:[#allocation92_spill] sm:$0xff] %v12890_v36  ;;  %4671 = vperm.xlu1 %9375, %v2882_v24   ;;  %4716 = vperm.xlu0 %9374, %v2897_v15   ;;  %v5457_v6 = vsel %vm5069_vm12, %v5456_v4, %v5452_v54  ;;  %v16262_v24 = vld [vmem:[#allocation133_spill] sm:$0xff]  ;;  %v12913_v15 = vsel %vm5069_vm12, %v5411_v17, %v5407_v29  ;;  %v9042_v43 = vsel %vm1263_vm7, 1.0, %v16124_v12 }
 0x4ea   :  { %v5461_v61 = vrot.slane %v16262_v24, %v16120_v51  ;;  %16263 = vst [vmem:[#allocation96_spill] sm:$0xff] %v12913_v15  ;;  %v5465_v36 = vrot.slane %v16265_v49, %v16122_v25  ;;  %v9026_v24 = vsel %vm1247_vm4, 1.0, %v16124_v12  ;;  %v7410_v17 = vsel %vm7370_vm15, %v5457_v6, %v7409_v2  ;;  %v16269_v6 = vld [vmem:[#allocation134_spill] sm:$0xff] }
 0x4eb   :  { %v2912_v29 = vmul.f32 %v9011_v5, %v16261_v55  ;;  %v2927_v49 = vmul.f32 %v9026_v24, %v15965_v63  ;;  %v5474_v2 = vrot.slane %v16269_v6, %v16122_v25  ;;  %v9055_v3 = vsel %vm1276_vm10, 1.0, %v16124_v12 }
 0x4ec   :  { %v12920_v54 = vpop.permute.xlu1 %4965  ;;  %v12922_v4 = vpop.permute.xlu0 %4974  ;;  %v5466_v62 = vsel %vm5069_vm12, %v5465_v36, %v5461_v61  ;;  %v16272_v36 = vld [vmem:[#allocation135_spill] sm:$0xff]  ;;  %vm1292_vm0 = vcmp.eq.f32.partialorder %v16023_v13, %v9669_v26  ;;  %vm995_vm7 = vcmp.eq.f32.partialorder %v10052_v47, %v16046_v10  ;;  %vm1010_vm10 = vcmp.eq.f32.partialorder %v10046_v14, %v16049_v42 }
 0x4ed   :  { %16266 = vst [vmem:[#allocation97_spill] sm:$0xff] %v12920_v54  ;;  %16267 = vst [vmem:[#allocation99_spill] sm:$0xff] %v12922_v4  ;;  %4713 = vperm.xlu1 %9375, %v2896_v21   ;;  %4764 = vperm.xlu0 %9374, %v2913_v1   ;;  %v2926_v21 = vmul.f32 %v9025_v45, %v15969_v46  ;;  %v16268_v1 = vld [vmem:[#allocation29_spill] sm:$0xff]  ;;  %v9041_v4 = vsel %vm1262_vm8, 1.0, %v16124_v12  ;;  %v5470_v61 = vrot.slane %v16272_v36, %v16120_v51 }
 0x4ee   :  { %vm1277_vm9 = vcmp.eq.f32.partialorder %v16268_v1, %v9648_v18  ;;  %vm1293_vm11 = vcmp.eq.f32.partialorder %v16268_v1, %v9669_v26  ;;  %v2943_v45 = vmul.f32 %v9042_v43, %v15965_v63  ;;  %v2942_v6 = vmul.f32 %v9041_v4, %v15969_v46  ;;  %v16276_v43 = vld [vmem:[#allocation136_spill] sm:$0xff] }
 0x4ef   :  { %v12958_v54 = vsel %vm7372_vm2, %v5466_v62, %v7410_v17  ;;  %v9072_v36 = vsel %vm1293_vm11, 1.0, %v16124_v12  ;;  %v5483_v4 = vrot.slane %v16276_v43, %v16122_v25  ;;  %v2956_v62 = vmul.f32 %v9055_v3, %v16026_v58 }
 0x4f0   :  { %v12945_v5 = vpop.permute.xlu1 %4971  ;;  %v12947_v24 = vpop.permute.xlu0 %5016  ;;  %16273 = vst [vmem:[#allocation101_spill] sm:$0xff] %v12958_v54  ;;  %v12981_v35 = vsel %vm5069_vm12, %v5474_v2, %v5470_v61  ;;  %v9071_v43 = vsel %vm1292_vm0, 1.0, %v16124_v12  ;;  %vm994_vm8 = vcmp.eq.f32.partialorder %v10046_v14, %v16046_v10  ;;  %vm1025_vm11 = vcmp.eq.f32.partialorder %v16097_v50, %v9677_v30  ;;  %v16287_v14 = vld [vmem:[#allocation140_spill] sm:$0xff] }
 0x4f1   :  { %16270 = vst [vmem:[#allocation89_spill] sm:$0xff] %v12945_v5  ;;  %16271 = vst [vmem:[#allocation98_spill] sm:$0xff] %v12947_v24  ;;  %4761 = vperm.xlu1 %9375, %v2912_v29   ;;  %4806 = vperm.xlu0 %9374, %v2927_v49   ;;  %v9056_v5 = vsel %vm1277_vm9, 1.0, %v16124_v12  ;;  %v16274_v24 = vld [vmem:[#allocation41_spill] sm:$0xff]  ;;  %v2972_v3 = vmul.f32 %v9071_v43, %v16026_v58  ;;  %vm1011_vm9 = vcmp.eq.f32.partialorder %v10052_v47, %v16049_v42 }
 0x4f2   :  { %v2957_v15 = vmul.f32 %v9056_v5, %v16274_v24  ;;  %v16275_v29 = vld [vmem:[#allocation13_spill] sm:$0xff]  ;;  %v2973_v54 = vmul.f32 %v9072_v36, %v16274_v24  ;;  %v16279_v5 = vld [vmem:[#allocation14_spill] sm:$0xff]  ;;  %16280 = vst [vmem:[#allocation102_spill] sm:$0xff] %v12981_v35  ;;  %vm1024_vm0 = vcmp.eq.f32.partialorder %v15934_v0, %v9677_v30 }
 0x4f3   :  { %vm1307_vm1 = vcmp.eq.f32.partialorder %v16079_v20, %v16275_v29  ;;  %vm1306_vm3 = vcmp.eq.f32.partialorder %v16083_v34, %v16275_v29  ;;  %vm1323_vm4 = vcmp.eq.f32.partialorder %v16079_v20, %v16279_v5  ;;  %v5479_v29 = vrot.slane %v16281_v8, %v16120_v51 }
 0x4f4   :  { %v12972_v17 = vpop.permute.xlu1 %5013  ;;  %v12974_v49 = vpop.permute.xlu0 %5022  ;;  %vm1322_vm5 = vcmp.eq.f32.partialorder %v16083_v34, %v16279_v5  ;;  %v9086_v36 = vsel %vm1307_vm1, 1.0, %v16124_v12  ;;  %vm1041_vm1 = vcmp.eq.f32.partialorder %v16097_v50, %v9680_v31 }
 0x4f5   :  { %16277 = vst [vmem:[#allocation100_spill] sm:$0xff] %v12972_v17  ;;  %16278 = vst [vmem:[#allocation111_spill] sm:$0xff] %v12974_v49  ;;  %4803 = vperm.xlu1 %9375, %v2926_v21   ;;  %4854 = vperm.xlu0 %9374, %v2943_v45   ;;  %v9085_v49 = vsel %vm1306_vm3, 1.0, %v16124_v12  ;;  %v2987_v2 = vmul.f32 %v9086_v36, %v16082_v7  ;;  %v9102_v21 = vsel %vm1323_vm4, 1.0, %v16124_v12  ;;  %v9101_v36 = vsel %vm1322_vm5, 1.0, %v16124_v12 }
 0x4f6   :  { %v12995_v8 = vmul.f32 %v9085_v49, %v16086_v11  ;;  %v13007_v17 = vmul.f32 %v9102_v21, %v16082_v7  ;;  %v13013_v49 = vsel %vm5069_vm12, %v5483_v4, %v5479_v29  ;;  %v13016_v35 = vmul.f32 %v9101_v36, %v16086_v11 }
 0x4f7   :  { %16285 = vst [vmem:[#allocation108_spill] sm:$0xff] %v13013_v49  ;;  %v8774_v45 = vsel %vm995_vm7, 1.0, %v16124_v12  ;;  %v8790_v4 = vsel %vm1011_vm9, 1.0, %v16124_v12  ;;  %v5501_v29 = vrot.slane %v16287_v14, %v16122_v25  ;;  %vm1040_vm3 = vcmp.eq.f32.partialorder %v15934_v0, %v9680_v31 }
 0x4f8   :  { %v13002_v5 = vpop.permute.xlu1 %5019  ;;  %v13004_v43 = vpop.permute.xlu0 %3996  ;;  %v13022_v21 = vmul.f32 %v8774_v45, %v10258_v9  ;;  %v8804_v14 = vsel %vm1025_vm11, 1.0, %v16124_v12  ;;  %vm1055_vm4 = vcmp.eq.f32.partialorder %v16102_v53, %v9651_v19  ;;  %vm1054_vm5 = vcmp.eq.f32.partialorder %v16105_v41, %v9651_v19 }
 0x4f9   :  { %16283 = vst [vmem:[#allocation110_spill] sm:$0xff] %v13002_v5  ;;  %16284 = vst [vmem:[#allocation103_spill] sm:$0xff] %v13004_v43  ;;  %4851 = vperm.xlu1 %9375, %v2942_v6   ;;  %4896 = vperm.xlu0 %9374, %v2957_v15   ;;  %v8773_v43 = vsel %vm994_vm8, 1.0, %v16124_v12  ;;  %v13044_v5 = vmul.f32 %v8790_v4, %v10258_v9  ;;  %v8789_v15 = vsel %vm1010_vm10, 1.0, %v16124_v12  ;;  %v8803_v9 = vsel %vm1024_vm0, 1.0, %v16124_v12 }
 0x4fa   :  { %v13032_v6 = vmul.f32 %v8773_v43, %v10248_v39  ;;  %v16290_v43 = vld [vmem:[#allocation141_spill] sm:$0xff]  ;;  %v13052_v61 = vmul.f32 %v8789_v15, %v10248_v39  ;;  %v8820_v4 = vsel %vm1041_vm1, 1.0, %v16124_v12  ;;  %vm1071_vm7 = vcmp.eq.f32.partialorder %v16102_v53, %v9672_v27  ;;  %v16291_v39 = vld [vmem:[#allocation143_spill] sm:$0xff] }
 0x4fb   :  { %v5497_v49 = vrot.slane %v16290_v43, %v16120_v51  ;;  %v13075_v15 = vmul.f32 %v8803_v9, %v16041_v37  ;;  %v8819_v43 = vsel %vm1040_vm3, 1.0, %v16124_v12  ;;  %v13085_v16 = vmul.f32 %v8820_v4, %v15933_v44 }
 0x4fc   :  { %v13039_v45 = vpop.permute.xlu1 %3993  ;;  %v13041_v36 = vpop.permute.xlu0 %4038  ;;  %vm1070_vm8 = vcmp.eq.f32.partialorder %v16105_v41, %v9672_v27  ;;  %v8833_v9 = vsel %vm1054_vm5, 1.0, %v16124_v12  ;;  %v8850_v4 = vsel %vm1071_vm7, 1.0, %v16124_v12  ;;  %vm1219_vm9 = vcmp.eq.f32.partialorder %v16242_v32, %v16046_v10 }
 0x4fd   :  { %16288 = vst [vmem:[#allocation109_spill] sm:$0xff] %v13039_v45  ;;  %16289 = vst [vmem:[#allocation112_spill] sm:$0xff] %v13041_v36  ;;  %4893 = vperm.xlu1 %9375, %v2956_v62   ;;  %4944 = vperm.xlu0 %9374, %v2973_v54   ;;  %v5506_v54 = vrot.slane %v16291_v39, %v16120_v51  ;;  %v13072_v62 = vmul.f32 %v8804_v14, %v15933_v44  ;;  %v16292_v36 = vld [vmem:[#allocation142_spill] sm:$0xff] }
 0x4fe   :  { %v5510_v45 = vrot.slane %v16292_v36, %v16122_v25  ;;  %v13088_v39 = vmul.f32 %v8819_v43, %v16041_v37  ;;  %v5502_v14 = vsel %vm5069_vm12, %v5501_v29, %v5497_v49  ;;  %v8834_v36 = vsel %vm1055_vm4, 1.0, %v16124_v12 }
 0x4ff   :  { %v13106_v43 = vmul.f32 %v8834_v36, %v15987_v56  ;;  %vm1218_vm10 = vcmp.eq.f32.partialorder %v16252_v52, %v16046_v10  ;;  %vm1235_vm11 = vcmp.eq.f32.partialorder %v16242_v32, %v16049_v42  ;;  %v13118_v29 = vmul.f32 %v8833_v9, %v15991_v59 }
 0x500   :  { %v13080_v47 = vpop.permute.xlu1 %4035  ;;  %v13082_v28 = vpop.permute.xlu0 %4086  ;;  %v8849_v36 = vsel %vm1070_vm8, 1.0, %v16124_v12  ;;  %v13128_v33 = vmul.f32 %v8850_v4, %v15987_v56  ;;  %vm1234_vm0 = vcmp.eq.f32.partialorder %v16252_v52, %v16049_v42  ;;  %vm1249_vm1 = vcmp.eq.f32.partialorder %v16068_v48, %v9677_v30 }
 0x501   :  { %16293 = vst [vmem:[#allocation113_spill] sm:$0xff] %v13080_v47  ;;  %16294 = vst [vmem:[#allocation115_spill] sm:$0xff] %v13082_v28  ;;  %4941 = vperm.xlu1 %9375, %v2972_v3   ;;  %4986 = vperm.xlu0 %9374, %v2987_v2   ;;  %v5511_v3 = vsel %vm5069_vm12, %v5510_v45, %v5506_v54  ;;  %v16295_v2 = vld [vmem:[#allocation145_spill] sm:$0xff]  ;;  %v16296_v28 = vld [vmem:[#allocation144_spill] sm:$0xff]  ;;  %v13131_v32 = vmul.f32 %v8849_v36, %v15991_v59  ;;  %v8998_v45 = vsel %vm1219_vm9, 1.0, %v16124_v12 }
 0x502   :  { %v5515_v49 = vrot.slane %v16295_v2, %v16120_v51  ;;  %v5519_v47 = vrot.slane %v16296_v28, %v16122_v25  ;;  %v8997_v28 = vsel %vm1218_vm10, 1.0, %v16124_v12  ;;  %v9014_v54 = vsel %vm1235_vm11, 1.0, %v16124_v12 }
 0x503   :  { %v7415_v9 = vsel %vm7366_vm13, %v5511_v3, %v5502_v14  ;;  %v13144_v4 = vmul.f32 %v8998_v45, %v16254_v22  ;;  %v13147_v52 = vmul.f32 %v8997_v28, %v16261_v55  ;;  %vm1248_vm3 = vcmp.eq.f32.partialorder %v16071_v40, %v9677_v30  ;;  %v16300_v14 = vld [vmem:[#allocation146_spill] sm:$0xff] }
 0x504   :  { %v13123_v57 = vpop.permute.xlu1 %4083  ;;  %v13125_v23 = vpop.permute.xlu0 %4128  ;;  %v9013_v36 = vsel %vm1234_vm0, 1.0, %v16124_v12  ;;  %vm1265_vm4 = vcmp.eq.f32.partialorder %v16068_v48, %v9680_v31  ;;  %v5528_v3 = vrot.slane %v16300_v14, %v16122_v25  ;;  %v9027_v14 = vsel %vm1248_vm3, 1.0, %v16124_v12 }
 0x505   :  { %16297 = vst [vmem:[#allocation117_spill] sm:$0xff] %v13123_v57  ;;  %16298 = vst [vmem:[#allocation105_spill] sm:$0xff] %v13125_v23  ;;  %4983 = vperm.xlu1 %9375, %v12995_v8   ;;  %5034 = vperm.xlu0 %9374, %v13007_v17   ;;  %v5520_v17 = vsel %vm5069_vm12, %v5519_v47, %v5515_v49  ;;  %v16299_v8 = vld [vmem:[#allocation147_spill] sm:$0xff]  ;;  %v13164_v57 = vmul.f32 %v9014_v54, %v16254_v22  ;;  %v9028_v49 = vsel %vm1249_vm1, 1.0, %v16124_v12 }
 0x506   :  { %v5524_v2 = vrot.slane %v16299_v8, %v16120_v51  ;;  %v13167_v47 = vmul.f32 %v9013_v36, %v16261_v55  ;;  %v13173_v8 = vmul.f32 %v9028_v49, %v15965_v63  ;;  %vm1264_vm5 = vcmp.eq.f32.partialorder %v16071_v40, %v9680_v31 }
 0x507   :  { %vm1279_vm7 = vcmp.eq.f32.partialorder %v16268_v1, %v9651_v19  ;;  %v7416_v22 = vsel %vm7368_vm14, %v5520_v17, %v7415_v9  ;;  %v9044_v55 = vsel %vm1265_vm4, 1.0, %v16124_v12  ;;  %vm1278_vm8 = vcmp.eq.f32.partialorder %v16023_v13, %v9651_v19  ;;  %v16304_v9 = vld [vmem:[#allocation148_spill] sm:$0xff] }
 0x508   :  { %v13159_v45 = vpop.permute.xlu1 %4125  ;;  %v13161_v28 = vpop.permute.xlu0 %4176  ;;  %vm1295_vm9 = vcmp.eq.f32.partialorder %v16268_v1, %v9672_v27  ;;  %v13190_v36 = vmul.f32 %v9027_v14, %v15969_v46  ;;  %v13193_v49 = vmul.f32 %v9044_v55, %v15965_v63  ;;  %v5537_v17 = vrot.slane %v16304_v9, %v16122_v25 }
 0x509   :  { %16301 = vst [vmem:[#allocation114_spill] sm:$0xff] %v13159_v45  ;;  %16302 = vst [vmem:[#allocation116_spill] sm:$0xff] %v13161_v28  ;;  %5031 = vperm.xlu1 %9375, %v13016_v35   ;;  %4050 = vperm.xlu0 %9374, %v13022_v21   ;;  %v5529_v35 = vsel %vm5069_vm12, %v5528_v3, %v5524_v2  ;;  %v16303_v21 = vld [vmem:[#allocation149_spill] sm:$0xff]  ;;  %v9043_v45 = vsel %vm1264_vm5, 1.0, %v16124_v12  ;;  %v9058_v2 = vsel %vm1279_vm7, 1.0, %v16124_v12  ;;  %v9057_v55 = vsel %vm1278_vm8, 1.0, %v16124_v12 }
 0x50a   :  { %v5533_v54 = vrot.slane %v16303_v21, %v16120_v51  ;;  %vm1294_vm10 = vcmp.eq.f32.partialorder %v16023_v13, %v9672_v27  ;;  %v13208_v3 = vmul.f32 %v9043_v45, %v15969_v46  ;;  %v13211_v14 = vmul.f32 %v9058_v2, %v16274_v24 }
 0x50b   :  { %v9074_v21 = vsel %vm1295_vm9, 1.0, %v16124_v12  ;;  %vm1309_vm11 = vcmp.eq.f32.partialorder %v16079_v20, %v9648_v18  ;;  %vm1308_vm0 = vcmp.eq.f32.partialorder %v16083_v34, %v9648_v18  ;;  %vm1325_vm1 = vcmp.eq.f32.partialorder %v16079_v20, %v9669_v26 }
 0x50c   :  { %v13197_v28 = vpop.permute.xlu1 %4173  ;;  %v13199_v23 = vpop.permute.xlu0 %4218  ;;  %v13230_v45 = vmul.f32 %v9057_v55, %v16026_v58  ;;  %v13233_v9 = vmul.f32 %v9074_v21, %v16274_v24  ;;  %v9073_v2 = vsel %vm1294_vm10, 1.0, %v16124_v12  ;;  %vm1324_vm3 = vcmp.eq.f32.partialorder %v16083_v34, %v9669_v26 }
 0x50d   :  { %16305 = vst [vmem:[#allocation104_spill] sm:$0xff] %v13197_v28  ;;  %16306 = vst [vmem:[#allocation118_spill] sm:$0xff] %v13199_v23  ;;  %4047 = vperm.xlu1 %9375, %v13032_v6   ;;  %4098 = vperm.xlu0 %9374, %v13044_v5   ;;  %v7417_v6 = vsel %vm7370_vm15, %v5529_v35, %v7416_v22  ;;  %v5538_v5 = vsel %vm5069_vm12, %v5537_v17, %v5533_v54  ;;  %v16307_v22 = vld [vmem:[#allocation150_spill] sm:$0xff]  ;;  %v16308_v23 = vld [vmem:[#allocation151_spill] sm:$0xff]  ;;  %v9088_v17 = vsel %vm1309_vm11, 1.0, %v16124_v12 }
 0x50e   :  { %v5546_v35 = vrot.slane %v16307_v22, %v16122_v25  ;;  %v5542_v28 = vrot.slane %v16308_v23, %v16120_v51  ;;  %v13245_v54 = vmul.f32 %v9073_v2, %v16026_v58  ;;  %v9087_v55 = vsel %vm1308_vm0, 1.0, %v16124_v12 }
 0x50f   :  { %v9104_v23 = vsel %vm1325_vm1, 1.0, %v16124_v12  ;;  %vm1027_vm4 = vcmp.eq.f32.partialorder %v16097_v50, %v16046_v10  ;;  %v13257_v21 = vsel %vm7372_vm2, %v5538_v5, %v7417_v6  ;;  %v13260_v2 = vmul.f32 %v9088_v17, %v16082_v7 }
 0x510   :  { %v13240_v18 = vpop.permute.xlu1 %4215  ;;  %v13242_v38 = vpop.permute.xlu0 %4266  ;;  %16311 = vst [vmem:[#allocation25_spill] sm:$0xff] %v13257_v21  ;;  %v13263_v26 = vmul.f32 %v9087_v55, %v16086_v11  ;;  %vm1026_vm5 = vcmp.eq.f32.partialorder %v15934_v0, %v16046_v10  ;;  %vm1043_vm7 = vcmp.eq.f32.partialorder %v16097_v50, %v16049_v42  ;;  %v13276_v6 = vsel %vm5069_vm12, %v5546_v35, %v5542_v28 }
 0x511   :  { %16309 = vst [vmem:[#allocation127_spill] sm:$0xff] %v13240_v18  ;;  %16310 = vst [vmem:[#allocation35_spill] sm:$0xff] %v13242_v38  ;;  %4095 = vperm.xlu1 %9375, %v13052_v61   ;;  %4140 = vperm.xlu0 %9374, %v13072_v62   ;;  %v13266_v61 = vmul.f32 %v9104_v23, %v16082_v7  ;;  %v16312_v62 = vld [vmem:[#allocation152_spill] sm:$0xff]  ;;  %v9103_v38 = vsel %vm1324_vm3, 1.0, %v16124_v12  ;;  %v8806_v23 = vsel %vm1027_vm4, 1.0, %v16124_v12  ;;  %v8822_v28 = vsel %vm1043_vm7, 1.0, %v16124_v12 }
 0x512   :  { %v5555_v22 = vrot.slane %v16312_v62, %v16122_v25  ;;  %16313 = vst [vmem:[#allocation119_spill] sm:$0xff] %v13276_v6  ;;  %v13283_v55 = vmul.f32 %v9103_v38, %v16086_v11  ;;  %vm1042_vm8 = vcmp.eq.f32.partialorder %v15934_v0, %v16049_v42  ;;  %v16316_v62 = vld [vmem:[#allocation153_spill] sm:$0xff]  ;;  %v13293_v50 = vmul.f32 %v8806_v23, %v15933_v44 }
 0x513   :  { %v5551_v18 = vrot.slane %v16316_v62, %v16120_v51  ;;  %vm1057_vm9 = vcmp.eq.f32.partialorder %v16102_v53, %v9677_v30  ;;  %v8805_v38 = vsel %vm1026_vm5, 1.0, %v16124_v12  ;;  %vm1056_vm10 = vcmp.eq.f32.partialorder %v16105_v41, %v9677_v30 }
 0x514   :  { %v13278_v5 = vpop.permute.xlu1 %4263  ;;  %v13280_v17 = vpop.permute.xlu0 %4530  ;;  %vm1073_vm11 = vcmp.eq.f32.partialorder %v16102_v53, %v9680_v31  ;;  %v13309_v35 = vmul.f32 %v8822_v28, %v15933_v44  ;;  %v8821_v23 = vsel %vm1042_vm8, 1.0, %v16124_v12  ;;  %v8836_v6 = vsel %vm1057_vm9, 1.0, %v16124_v12 }
 0x515   :  { %16314 = vst [vmem:[#allocation120_spill] sm:$0xff] %v13278_v5  ;;  %16315 = vst [vmem:[#allocation125_spill] sm:$0xff] %v13280_v17  ;;  %4137 = vperm.xlu1 %9375, %v13075_v15   ;;  %4188 = vperm.xlu0 %9374, %v13085_v16   ;;  %v13306_v16 = vmul.f32 %v8805_v38, %v16041_v37  ;;  %v13317_v17 = vmul.f32 %v8821_v23, %v16041_v37  ;;  %v8835_v37 = vsel %vm1056_vm10, 1.0, %v16124_v12 }
 0x516   :  { %vm1072_vm0 = vcmp.eq.f32.partialorder %v16105_v41, %v9680_v31  ;;  %vm1251_vm1 = vcmp.eq.f32.partialorder %v16068_v48, %v16046_v10  ;;  %v13325_v44 = vsel %vm5069_vm12, %v5555_v22, %v5551_v18  ;;  %v13330_v38 = vmul.f32 %v8836_v6, %v15987_v56  ;;  %v16326_v22 = vld [vmem:[#allocation157_spill] sm:$0xff] }
 0x517   :  { %16320 = vst [vmem:[#allocation128_spill] sm:$0xff] %v13325_v44  ;;  %v8852_v28 = vsel %vm1073_vm11, 1.0, %v16124_v12  ;;  %v13341_v18 = vmul.f32 %v8835_v37, %v15991_v59  ;;  %vm1250_vm3 = vcmp.eq.f32.partialorder %v16071_v40, %v16046_v10  ;;  %vm1267_vm4 = vcmp.eq.f32.partialorder %v16068_v48, %v16049_v42  ;;  %v16322_v37 = vld [vmem:[#allocation156_spill] sm:$0xff] }
 0x518   :  { %v13312_v62 = vpop.permute.xlu1 %4527  ;;  %v13314_v5 = vpop.permute.xlu0 %4578  ;;  %v8851_v6 = vsel %vm1072_vm0, 1.0, %v16124_v12  ;;  %v9030_v23 = vsel %vm1251_vm1, 1.0, %v16124_v12  ;;  %vm1266_vm5 = vcmp.eq.f32.partialorder %v16071_v40, %v16049_v42  ;;  %vm1281_vm7 = vcmp.eq.f32.partialorder %v16268_v1, %v9677_v30 }
 0x519   :  { %16318 = vst [vmem:[#allocation126_spill] sm:$0xff] %v13312_v62  ;;  %16319 = vst [vmem:[#allocation124_spill] sm:$0xff] %v13314_v5  ;;  %4185 = vperm.xlu1 %9375, %v13088_v39   ;;  %4230 = vperm.xlu0 %9374, %v13106_v43   ;;  %v13344_v39 = vmul.f32 %v8852_v28, %v15987_v56  ;;  %v5573_v28 = vrot.slane %v16322_v37, %v16122_v25  ;;  %v9029_v40 = vsel %vm1250_vm3, 1.0, %v16124_v12 }
 0x51a   :  { %v13363_v62 = vmul.f32 %v8851_v6, %v15991_v59  ;;  %v13366_v48 = vmul.f32 %v9030_v23, %v15965_v63  ;;  %v5569_v44 = vrot.slane %v16326_v22, %v16120_v51  ;;  %v9046_v37 = vsel %vm1267_vm4, 1.0, %v16124_v12  ;;  %v16327_v6 = vld [vmem:[#allocation159_spill] sm:$0xff] }
 0x51b   :  { %vm1280_vm8 = vcmp.eq.f32.partialorder %v16023_v13, %v9677_v30  ;;  %v5578_v23 = vrot.slane %v16327_v6, %v16120_v51  ;;  %vm1297_vm9 = vcmp.eq.f32.partialorder %v16268_v1, %v9680_v31  ;;  %vm1296_vm10 = vcmp.eq.f32.partialorder %v16023_v13, %v9680_v31  ;;  %v16328_v6 = vld [vmem:[#allocation158_spill] sm:$0xff] }
 0x51c   :  { %v13358_v15 = vpop.permute.xlu1 %4575  ;;  %v13360_v5 = vpop.permute.xlu0 %4620  ;;  %16325 = vst [vmem:[#allocation131_spill] sm:$0xff] %v13366_v48  ;;  %v5582_v0 = vrot.slane %v16328_v6, %v16122_v25  ;;  %vm1311_vm11 = vcmp.eq.f32.partialorder %v16079_v20, %v9651_v19  ;;  %vm1310_vm0 = vcmp.eq.f32.partialorder %v16083_v34, %v9651_v19  ;;  %vm1327_vm1 = vcmp.eq.f32.partialorder %v16079_v20, %v9672_v27 }
 0x51d   :  { %16323 = vst [vmem:[#allocation129_spill] sm:$0xff] %v13358_v15  ;;  %16324 = vst [vmem:[#allocation23_spill] sm:$0xff] %v13360_v5  ;;  %4227 = vperm.xlu1 %9375, %v13118_v29   ;;  %4278 = vperm.xlu0 %9374, %v13128_v33   ;;  %v9045_v15 = vsel %vm1266_vm5, 1.0, %v16124_v12  ;;  %v13386_v33 = vmul.f32 %v9029_v40, %v15969_v46  ;;  %v13389_v29 = vmul.f32 %v9046_v37, %v15965_v63 }
 0x51e   :  { %v13392_v22 = vmul.f32 %v9045_v15, %v15969_v46  ;;  %v9060_v5 = vsel %vm1281_vm7, 1.0, %v16124_v12  ;;  %v9059_v40 = vsel %vm1280_vm8, 1.0, %v16124_v12  ;;  %v5574_v46 = vsel %vm5069_vm12, %v5573_v28, %v5569_v44 }
 0x51f   :  { %v13402_v48 = vmul.f32 %v9060_v5, %v16274_v24  ;;  %v13411_v63 = vmul.f32 %v9059_v40, %v16026_v58  ;;  %v9076_v5 = vsel %vm1297_vm9, 1.0, %v16124_v12  ;;  %v9075_v15 = vsel %vm1296_vm10, 1.0, %v16124_v12 }
 0x520   :  { %v13397_v43 = vpop.permute.xlu1 %4617  ;;  %v13399_v21 = vpop.permute.xlu0 %4668  ;;  %v5583_v37 = vsel %vm5069_vm12, %v5582_v0, %v5578_v23  ;;  %vm1326_vm3 = vcmp.eq.f32.partialorder %v16083_v34, %v9672_v27  ;;  %v13431_v44 = vmul.f32 %v9076_v5, %v16274_v24  ;;  %v13434_v28 = vmul.f32 %v9075_v15, %v16026_v58  ;;  %v16332_v23 = vld [vmem:[#allocation160_spill] sm:$0xff] }
 0x521   :  { %16329 = vst [vmem:[#allocation37_spill] sm:$0xff] %v13397_v43  ;;  %16330 = vst [vmem:[#allocation121_spill] sm:$0xff] %v13399_v21  ;;  %4275 = vperm.xlu1 %9375, %v13131_v32   ;;  %4722 = vperm.xlu0 %9374, %v13144_v4   ;;  %v16331_v32 = vld [vmem:[#allocation161_spill] sm:$0xff]  ;;  %v9090_v0 = vsel %vm1311_vm11, 1.0, %v16124_v12  ;;  %v5591_v6 = vrot.slane %v16332_v23, %v16122_v25  ;;  %vm1059_vm4 = vcmp.eq.f32.partialorder %v16102_v53, %v16046_v10 }
 0x522   :  { %v5587_v4 = vrot.slane %v16331_v32, %v16120_v51  ;;  %v13444_v43 = vmul.f32 %v9090_v0, %v16082_v7  ;;  %vm1058_vm5 = vcmp.eq.f32.partialorder %v16105_v41, %v16046_v10  ;;  %v7422_v5 = vsel %vm7366_vm13, %v5583_v37, %v5574_v46 }
 0x523   :  { %v9089_v15 = vsel %vm1310_vm0, 1.0, %v16124_v12  ;;  %v9106_v32 = vsel %vm1327_vm1, 1.0, %v16124_v12  ;;  %v9105_v0 = vsel %vm1326_vm3, 1.0, %v16124_v12  ;;  %vm1075_vm7 = vcmp.eq.f32.partialorder %v16102_v53, %v16049_v42 }
 0x524   :  { %v13439_v40 = vpop.permute.xlu1 %4665  ;;  %v13441_v21 = vpop.permute.xlu0 %4710  ;;  %v13466_v46 = vmul.f32 %v9089_v15, %v16086_v11  ;;  %vm1074_vm8 = vcmp.eq.f32.partialorder %v16105_v41, %v16049_v42  ;;  %v5592_v19 = vsel %vm5069_vm12, %v5591_v6, %v5587_v4  ;;  %v8838_v27 = vsel %vm1059_vm4, 1.0, %v16124_v12  ;;  %v16336_v15 = vld [vmem:[#allocation162_spill] sm:$0xff] }
 0x525   :  { %16333 = vst [vmem:[#allocation130_spill] sm:$0xff] %v13439_v40  ;;  %16334 = vst [vmem:[#allocation36_spill] sm:$0xff] %v13441_v21  ;;  %4719 = vperm.xlu1 %9375, %v13147_v52   ;;  %4770 = vperm.xlu0 %9374, %v13164_v57   ;;  %v13469_v57 = vmul.f32 %v9106_v32, %v16082_v7  ;;  %v16335_v52 = vld [vmem:[#allocation163_spill] sm:$0xff]  ;;  %v8837_v23 = vsel %vm1058_vm5, 1.0, %v16124_v12  ;;  %v5600_v21 = vrot.slane %v16336_v15, %v16122_v25 }
 0x526   :  { %v5596_v37 = vrot.slane %v16335_v52, %v16120_v51  ;;  %v13487_v53 = vmul.f32 %v9105_v0, %v16086_v11  ;;  %v13490_v41 = vmul.f32 %v8838_v27, %v15987_v56  ;;  %v13493_v4 = vmul.f32 %v8837_v23, %v15991_v59  ;;  %v16340_v27 = vld [vmem:[#allocation165_spill] sm:$0xff] }
 0x527   :  { %v8854_v6 = vsel %vm1075_vm7, 1.0, %v16124_v12  ;;  %v8853_v52 = vsel %vm1074_vm8, 1.0, %v16124_v12  ;;  %vm1283_vm9 = vcmp.eq.f32.partialorder %v16268_v1, %v16046_v10  ;;  %vm1282_vm10 = vcmp.eq.f32.partialorder %v16023_v13, %v16046_v10 }
 0x528   :  { %v13482_v32 = vpop.permute.xlu1 %4707  ;;  %v13484_v40 = vpop.permute.xlu0 %4758  ;;  %16339 = vst [vmem:[#allocation29_spill] sm:$0xff] %v13493_v4  ;;  %v7423_v0 = vsel %vm7368_vm14, %v5592_v19, %v7422_v5  ;;  %v5605_v23 = vrot.slane %v16340_v27, %v16120_v51  ;;  %vm1299_vm11 = vcmp.eq.f32.partialorder %v16268_v1, %v16049_v42  ;;  %vm1298_vm0 = vcmp.eq.f32.partialorder %v16023_v13, %v16049_v42  ;;  %v16344_v13 = vld [vmem:[#allocation166_spill] sm:$0xff] }
 0x529   :  { %16337 = vst [vmem:[#allocation133_spill] sm:$0xff] %v13482_v32  ;;  %16338 = vst [vmem:[#allocation132_spill] sm:$0xff] %v13484_v40  ;;  %4767 = vperm.xlu1 %9375, %v13167_v47   ;;  %4812 = vperm.xlu0 %9374, %v13173_v8   ;;  %v5601_v47 = vsel %vm5069_vm12, %v5600_v21, %v5596_v37  ;;  %v16341_v8 = vld [vmem:[#allocation164_spill] sm:$0xff]  ;;  %v13514_v40 = vmul.f32 %v8854_v6, %v15987_v56  ;;  %v9062_v27 = vsel %vm1283_vm9, 1.0, %v16124_v12 }
 0x52a   :  { %v5609_v15 = vrot.slane %v16341_v8, %v16122_v25  ;;  %v13517_v32 = vmul.f32 %v8853_v52, %v15991_v59  ;;  %v9061_v4 = vsel %vm1282_vm10, 1.0, %v16124_v12  ;;  %vm1313_vm1 = vcmp.eq.f32.partialorder %v16079_v20, %v9677_v30 }
 0x52b   :  { %vm1312_vm3 = vcmp.eq.f32.partialorder %v16083_v34, %v9677_v30  ;;  %v13532_v59 = vmul.f32 %v9062_v27, %v16274_v24  ;;  %v13535_v56 = vmul.f32 %v9061_v4, %v16026_v58  ;;  %v9078_v21 = vsel %vm1299_vm11, 1.0, %v16124_v12 }
 0x52c   :  { %v13519_v5 = vpop.permute.xlu1 %4755  ;;  %v13521_v19 = vpop.permute.xlu0 %4800  ;;  %v9077_v30 = vsel %vm1298_vm0, 1.0, %v16124_v12  ;;  %vm1329_vm4 = vcmp.eq.f32.partialorder %v16079_v20, %v9680_v31  ;;  %vm1328_vm5 = vcmp.eq.f32.partialorder %v16083_v34, %v9680_v31  ;;  %v13552_v37 = vmul.f32 %v9078_v21, %v16274_v24  ;;  %v16353_v31 = vld [vmem:[#allocation177_spill] sm:$0xff] }
 0x52d   :  { %16342 = vst [vmem:[#allocation134_spill] sm:$0xff] %v13519_v5  ;;  %16343 = vst [vmem:[#allocation135_spill] sm:$0xff] %v13521_v19  ;;  %4809 = vperm.xlu1 %9375, %v13190_v36   ;;  %4860 = vperm.xlu0 %9374, %v13193_v49   ;;  %v7424_v36 = vsel %vm7370_vm15, %v5601_v47, %v7423_v0  ;;  %v5610_v49 = vsel %vm5069_vm12, %v5609_v15, %v5605_v23  ;;  %v9092_v1 = vsel %vm1313_vm1, 1.0, %v16124_v12  ;;  %v16348_v15 = vld [vmem:[#allocation175_spill] sm:$0xff]  ;;  %vm7374_vm11 = vcmask 1045509  }
 0x52e   :  { %v9091_v4 = vsel %vm1312_vm3, 1.0, %v16124_v12  ;;  %vm1315_vm7 = vcmp.eq.f32.partialorder %v16079_v20, %v16046_v10  ;;  %v5618_v6 = vrot.slane %v16344_v13, %v16122_v25  ;;  %v13565_v23 = vmul.f32 %v9077_v30, %v16026_v58  ;;  %v16349_v30 = vld [vmem:[#allocation167_spill] sm:$0xff] }
 0x52f   :  { %v13568_v24 = vmul.f32 %v9092_v1, %v16082_v7  ;;  %v13571_v47 = vmul.f32 %v9091_v4, %v16086_v11  ;;  %v13574_v8 = vsel %vm7372_vm2, %v5610_v49, %v7424_v36  ;;  %v5650_v27 = vrot.slane %v16348_v15, %v16120_v51  ;;  %v16352_v4 = vld [vmem:[#allocation174_spill] sm:$0xff] }
 0x530   :  { %v13560_v52 = vpop.permute.xlu1 %4797  ;;  %v13562_v0 = vpop.permute.xlu0 %4848  ;;  %16347 = vst [vmem:[#allocation136_spill] sm:$0xff] %v13574_v8  ;;  %v9108_v58 = vsel %vm1329_vm4, 1.0, %v16124_v12  ;;  %v9107_v21 = vsel %vm1328_vm5, 1.0, %v16124_v12  ;;  %v5614_v36 = vrot.slane %v16349_v30, %v16120_v51  ;;  %vm1314_vm8 = vcmp.eq.f32.partialorder %v16083_v34, %v16046_v10 }
 0x531   :  { %16345 = vst [vmem:[#allocation41_spill] sm:$0xff] %v13560_v52  ;;  %16346 = vst [vmem:[#allocation13_spill] sm:$0xff] %v13562_v0  ;;  %4857 = vperm.xlu1 %9375, %v13208_v3   ;;  %4902 = vperm.xlu0 %9374, %v13211_v14   ;;  %v13591_v49 = vmul.f32 %v9108_v58, %v16082_v7  ;;  %v9094_v3 = vsel %vm1315_vm7, 1.0, %v16124_v12  ;;  %v16351_v14 = vld [vmem:[#allocation173_spill] sm:$0xff]  ;;  %v5654_v13 = vrot.slane %v16352_v4, %v16122_v25  ;;  %v16354_v58 = vld [vmem:[#allocation168_spill] sm:$0xff]  ;;  %vm7376_vm0 = vcmask 1046534  }
 0x532   :  { %v5641_v1 = vrot.slane %v16351_v14, %v16120_v51  ;;  %v5659_v15 = vrot.slane %v16353_v31, %v16120_v51  ;;  %vm1331_vm9 = vcmp.eq.f32.partialorder %v16079_v20, %v16049_v42  ;;  %v5627_v30 = vrot.slane %v16354_v58, %v16122_v25  ;;  %v16355_v0 = vld [vmem:[#allocation172_spill] sm:$0xff]  ;;  %v16360_v58 = vld [vmem:[#allocation179_spill] sm:$0xff] }
 0x533   :  { %16350 = vst [vmem:[#allocation14_spill] sm:$0xff] %v13591_v49  ;;  %v5645_v52 = vrot.slane %v16355_v0, %v16122_v25  ;;  %v13613_v14 = vmul.f32 %v9107_v21, %v16086_v11  ;;  %v13616_v4 = vmul.f32 %v9094_v3, %v16082_v7  ;;  %v5655_v31 = vsel %vm5069_vm12, %v5654_v13, %v5650_v27  ;;  %v16359_v20 = vld [vmem:[#allocation176_spill] sm:$0xff] }
 0x534   :  { %v13608_v19 = vpop.permute.xlu1 %4845  ;;  %v13610_v5 = vpop.permute.xlu0 %4890  ;;  %v5663_v8 = vrot.slane %v16359_v20, %v16122_v25  ;;  %v5668_v49 = vrot.slane %v16360_v58, %v16120_v51  ;;  %v13626_v0 = vsel %vm5069_vm12, %v5618_v6, %v5614_v36  ;;  %v9093_v21 = vsel %vm1314_vm8, 1.0, %v16124_v12  ;;  %v16362_v6 = vld [vmem:[#allocation181_spill] sm:$0xff] }
 0x535   :  { %16356 = vst [vmem:[#allocation137_spill] sm:$0xff] %v13608_v19  ;;  %16357 = vst [vmem:[#allocation140_spill] sm:$0xff] %v13610_v5  ;;  %4899 = vperm.xlu1 %9375, %v13230_v45   ;;  %4950 = vperm.xlu0 %9374, %v13233_v9   ;;  %v9110_v27 = vsel %vm1331_vm9, 1.0, %v16124_v12  ;;  %vm1330_vm10 = vcmp.eq.f32.partialorder %v16083_v34, %v16049_v42  ;;  %v5646_v3 = vsel %vm5069_vm12, %v5645_v52, %v5641_v1  ;;  %v16361_v45 = vld [vmem:[#allocation178_spill] sm:$0xff]  ;;  %v16363_v20 = vld [vmem:[#allocation169_spill] sm:$0xff]  ;;  %vm7378_vm1 = vcmask 1047559  }
 0x536   :  { %16358 = vst [vmem:[#allocation141_spill] sm:$0xff] %v13616_v4  ;;  %v5664_v13 = vsel %vm5069_vm12, %v5663_v8, %v5659_v15  ;;  %v5672_v9 = vrot.slane %v16361_v45, %v16122_v25  ;;  %v5677_v36 = vrot.slane %v16362_v6, %v16120_v51  ;;  %v5623_v58 = vrot.slane %v16363_v20, %v16120_v51  ;;  %v16366_v1 = vld [vmem:[#allocation180_spill] sm:$0xff]  ;;  %v16367_v45 = vld [vmem:[#allocation191_spill] sm:$0xff]  ;;  %v16373_v42 = vld [vmem:[#allocation190_spill] sm:$0xff] }
 0x537   :  { %v7429_v10 = vsel %vm7366_vm13, %v5655_v31, %v5646_v3  ;;  %v13649_v4 = vmul.f32 %v9093_v21, %v16086_v11  ;;  %v13652_v52 = vmul.f32 %v9110_v27, %v16082_v7  ;;  %v5681_v15 = vrot.slane %v16366_v1, %v16122_v25  ;;  %v16368_v7 = vld [vmem:[#allocation170_spill] sm:$0xff]  ;;  %v16369_v27 = vld [vmem:[#allocation183_spill] sm:$0xff]  ;;  %v16372_v1 = vld [vmem:[#allocation189_spill] sm:$0xff] }
 0x538   :  { %v13644_v5 = vpop.permute.xlu1 %4887  ;;  %v13646_v19 = vpop.permute.xlu0 %4938  ;;  %v5673_v8 = vsel %vm5069_vm12, %v5672_v9, %v5668_v49  ;;  %v5722_v6 = vrot.slane %v16367_v45, %v16120_v51  ;;  %v9109_v31 = vsel %vm1330_vm10, 1.0, %v16124_v12  ;;  %v7430_v49 = vsel %vm7368_vm14, %v5664_v13, %v7429_v10  ;;  %v16374_v13 = vld [vmem:[#allocation171_spill] sm:$0xff] }
 0x539   :  { %16364 = vst [vmem:[#allocation143_spill] sm:$0xff] %v13644_v5  ;;  %16365 = vst [vmem:[#allocation142_spill] sm:$0xff] %v13646_v19  ;;  %4947 = vperm.xlu1 %9375, %v13245_v54   ;;  %4992 = vperm.xlu0 %9374, %v13260_v2   ;;  %v5686_v3 = vrot.slane %v16369_v27, %v16120_v51  ;;  %v13671_v9 = vmul.f32 %v9109_v31, %v16086_v11  ;;  %v16371_v2 = vld [vmem:[#allocation185_spill] sm:$0xff]  ;;  %v16375_v31 = vld [vmem:[#allocation182_spill] sm:$0xff]  ;;  %vm8146_vm3 = vcmask 1041408   ;;  %vm8139_vm5 = vcmask 736256  }
 0x53a   :  { %v5682_v54 = vsel %vm5069_vm12, %v5681_v15, %v5677_v36  ;;  %v5695_v20 = vrot.slane %v16371_v2, %v16120_v51  ;;  %v5713_v34 = vrot.slane %v16372_v1, %v16120_v51  ;;  %v5726_v12 = vrot.slane %v16373_v42, %v16122_v25  ;;  %v16378_v2 = vld [vmem:[#allocation184_spill] sm:$0xff]  ;;  %v16396_v5 = vld [vmem:[#allocation207_spill] sm:$0xff] }
 0x53b   :  { %16370 = vst [vmem:[#allocation145_spill] sm:$0xff] %v13671_v9  ;;  %v13681_v45 = vsel %vm5069_vm12, %v5627_v30, %v5623_v58  ;;  %v7431_v11 = vsel %vm7370_vm15, %v5673_v8, %v7430_v49  ;;  %v5690_v36 = vrot.slane %v16375_v31, %v16122_v25  ;;  %v5699_v1 = vrot.slane %v16378_v2, %v16122_v25  ;;  %v16379_v42 = vld [vmem:[#allocation188_spill] sm:$0xff]  ;;  %v16380_v49 = vld [vmem:[#allocation193_spill] sm:$0xff] }
 0x53c   :  { %v13688_v15 = vpop.permute.xlu1 %4935  ;;  %v13690_v27 = vpop.permute.xlu0 %4980  ;;  %v5717_v21 = vrot.slane %v16379_v42, %v16122_v25  ;;  %v5727_v30 = vsel %vm5069_vm12, %v5726_v12, %v5722_v6  ;;  %v13700_v58 = vsel %vm7372_vm2, %v5682_v54, %v7431_v11  ;;  %v6217_v31 = vrot.slane %v16380_v49, %v16120_v51 }
 0x53d   :  { %16376 = vst [vmem:[#allocation144_spill] sm:$0xff] %v13688_v15  ;;  %16377 = vst [vmem:[#allocation147_spill] sm:$0xff] %v13690_v27  ;;  %4989 = vperm.xlu1 %9375, %v13263_v26   ;;  %5040 = vperm.xlu0 %9374, %v13266_v61   ;;  %v13703_v8 = vsel %vm5069_vm12, %v5690_v36, %v5686_v3  ;;  %v13708_v2 = vsel %vm5069_vm12, %v5699_v1, %v5695_v20  ;;  %v16383_v61 = vld [vmem:[#allocation195_spill] sm:$0xff]  ;;  %v16385_v36 = vld [vmem:[#allocation192_spill] sm:$0xff] }
 0x53e   :  { %16381 = vst [vmem:[#allocation146_spill] sm:$0xff] %v13708_v2  ;;  %v5718_v26 = vsel %vm5069_vm12, %v5717_v21, %v5713_v34  ;;  %v6226_v12 = vrot.slane %v16383_v61, %v16120_v51  ;;  %v6221_v49 = vrot.slane %v16385_v36, %v16122_v25  ;;  %v16386_v20 = vld [vmem:[#allocation199_spill] sm:$0xff]  ;;  %v16389_v21 = vld [vmem:[#allocation194_spill] sm:$0xff] }
 0x53f   :  { %v13718_v3 = vsel %vm7366_vm13, %v5727_v30, %v5718_v26  ;;  %v6298_v1 = vrot.slane %v16386_v20, %v16120_v51  ;;  %v6230_v34 = vrot.slane %v16389_v21, %v16122_v25  ;;  %v16390_v61 = vld [vmem:[#allocation203_spill] sm:$0xff]  ;;  %v16391_v30 = vld [vmem:[#allocation48_spill] sm:$0xff]  ;;  %v16392_v20 = vld [vmem:[#allocation197_spill] sm:$0xff] }
 0x540   :  { %v13724_v10 = vpop.permute.xlu1 %4977  ;;  %v13726_v6 = vpop.permute.xlu0 %5028  ;;  %v6370_v27 = vrot.slane %v16390_v61, %v16120_v51  ;;  %v7375_v26 = vsel %vm7374_vm11, %v12541_v60, %v16391_v30  ;;  %v6222_v36 = vsel %vm5069_vm12, %v6221_v49, %v6217_v31  ;;  %v6289_v11 = vrot.slane %v16392_v20, %v16120_v51  ;;  %v16394_v21 = vld [vmem:[#allocation201_spill] sm:$0xff]  ;;  %v16397_v60 = vld [vmem:[#allocation196_spill] sm:$0xff] }
 0x541   :  { %16387 = vst [vmem:[#allocation149_spill] sm:$0xff] %v13724_v10  ;;  %16388 = vst [vmem:[#allocation148_spill] sm:$0xff] %v13726_v6  ;;  %5037 = vperm.xlu1 %9375, %v13283_v55   ;;  %4146 = vperm.xlu0 %9374, %v13293_v50   ;;  %v16393_v10 = vld [vmem:[#allocation198_spill] sm:$0xff]  ;;  %v6361_v15 = vrot.slane %v16394_v21, %v16120_v51  ;;  %v6231_v61 = vsel %vm5069_vm12, %v6230_v34, %v6226_v12  ;;  %v16398_v30 = vld [vmem:[#allocation200_spill] sm:$0xff] }
 0x542   :  { %v6302_v19 = vrot.slane %v16393_v10, %v16122_v25  ;;  %v16395_v55 = vld [vmem:[#allocation202_spill] sm:$0xff]  ;;  %v6442_v6 = vrot.slane %v16396_v5, %v16120_v51  ;;  %v6293_v31 = vrot.slane %v16397_v60, %v16122_v25  ;;  %v6365_v10 = vrot.slane %v16398_v30, %v16122_v25  ;;  %v16401_v12 = vld [vmem:[#allocation59_spill] sm:$0xff]  ;;  %v16405_v60 = vld [vmem:[#allocation205_spill] sm:$0xff] }
 0x543   :  { %v6374_v50 = vrot.slane %v16395_v55, %v16122_v25  ;;  %v16402_v34 = vrot.slane %v16401_v12, %v16120_v51  ;;  %v16403_v55 = vld [vmem:[#allocation58_spill] sm:$0xff]  ;;  %v7485_v12 = vsel %vm7366_vm13, %v6231_v61, %v6222_v36 }
 0x544   :  { %v6303_v49 = vsel %vm5069_vm12, %v6302_v19, %v6298_v1  ;;  %v13754_v20 = vpop.permute.xlu1 %5025  ;;  %v13756_v21 = vpop.permute.xlu0 %4002  ;;  %v16404_v2 = vrot.slane %v16403_v55, %v16122_v25  ;;  %v6433_v19 = vrot.slane %v16405_v60, %v16120_v51  ;;  %v16406_v1 = vld [vmem:[#allocation206_spill] sm:$0xff]  ;;  %v6366_v55 = vsel %vm5069_vm12, %v6365_v10, %v6361_v15  ;;  %v16411_v15 = vld [vmem:[#allocation213_spill] sm:$0xff] }
 0x545   :  { %16399 = vst [vmem:[#allocation150_spill] sm:$0xff] %v13754_v20  ;;  %16400 = vst [vmem:[#allocation151_spill] sm:$0xff] %v13756_v21  ;;  %v6375_v9 = vsel %vm5069_vm12, %v6374_v50, %v6370_v27  ;;  %v6446_v30 = vrot.slane %v16406_v1, %v16122_v25  ;;  %4143 = vperm.xlu1 %9375, %v13306_v16   ;;  %4194 = vperm.xlu0 %9374, %v13309_v35   ;;  %v16408_v50 = vld [vmem:[#allocation204_spill] sm:$0xff]  ;;  %v16409_v1 = vld [vmem:[#allocation209_spill] sm:$0xff] }
 0x546   :  { %v5133_v5 = vsel %vm5069_vm12, %v16404_v2, %v16402_v34  ;;  %v6294_v21 = vsel %vm5069_vm12, %v6293_v31, %v6289_v11  ;;  %v16407_v2 = vld [vmem:[#allocation52_spill] sm:$0xff]  ;;  %v6437_v34 = vrot.slane %v16408_v50, %v16122_v25  ;;  %v6235_v16 = vrot.slane %v16409_v1, %v16120_v51  ;;  %v16410_v35 = vld [vmem:[#allocation211_spill] sm:$0xff]  ;;  %v16415_v50 = vld [vmem:[#allocation210_spill] sm:$0xff] }
 0x547   :  { %v7377_v27 = vsel %vm7376_vm0, %v16407_v2, %v7375_v26  ;;  %v6447_v60 = vsel %vm5069_vm12, %v6446_v30, %v6442_v6  ;;  %v6307_v20 = vrot.slane %v16410_v35, %v16120_v51  ;;  %v7492_v36 = vsel %vm7366_vm13, %v6303_v49, %v6294_v21  ;;  %v16414_v30 = vld [vmem:[#allocation208_spill] sm:$0xff]  ;;  %v16418_v1 = vld [vmem:[#allocation55_spill] sm:$0xff] }
 0x548   :  { %v7499_v11 = vsel %vm7366_vm13, %v6375_v9, %v6366_v55  ;;  %v6379_v61 = vrot.slane %v16411_v15, %v16120_v51  ;;  %v13788_v31 = vpop.permute.xlu1 %3999  ;;  %v13790_v26 = vpop.permute.xlu0 %4044  ;;  %v13793_v10 = vsel %vm7378_vm1, %v5133_v5, %v7377_v27  ;;  %v6438_v6 = vsel %vm5069_vm12, %v6437_v34, %v6433_v19  ;;  %v16416_v21 = vld [vmem:[#allocation212_spill] sm:$0xff]  ;;  %v16417_v5 = vld [vmem:[#allocation215_spill] sm:$0xff] }
 0x549   :  { %16412 = vst [vmem:[#allocation152_spill] sm:$0xff] %v13788_v31  ;;  %16413 = vst [vmem:[#allocation153_spill] sm:$0xff] %v13790_v26  ;;  %v6239_v2 = vrot.slane %v16414_v30, %v16122_v25  ;;  %v6311_v49 = vrot.slane %v16415_v50, %v16122_v25  ;;  %4191 = vperm.xlu1 %9375, %v13317_v17   ;;  %4236 = vperm.xlu0 %9374, %v13330_v38   ;;  %v16419_v19 = vld [vmem:[#allocation64_spill] sm:$0xff]  ;;  %v16421_v38 = vld [vmem:[#allocation221_spill] sm:$0xff] }
 0x54a   :  { %v7506_v9 = vsel %vm7366_vm13, %v6447_v60, %v6438_v6  ;;  %v6383_v55 = vrot.slane %v16416_v21, %v16122_v25  ;;  %v6451_v27 = vrot.slane %v16417_v5, %v16120_v51  ;;  %v7384_v34 = vsel %vm7374_vm11, %v16419_v19, %v16418_v1  ;;  %v16420_v17 = vld [vmem:[#allocation32_spill] sm:$0xff]  ;;  %v16422_v50 = vld [vmem:[#allocation214_spill] sm:$0xff]  ;;  %v16423_v5 = vld [vmem:[#allocation217_spill] sm:$0xff] }
 0x54b   :  { %v6240_v35 = vsel %vm5069_vm12, %v6239_v2, %v6235_v16  ;;  %v6312_v15 = vsel %vm5069_vm12, %v6311_v49, %v6307_v20  ;;  %v6514_v30 = vrot.slane %v16420_v17, %v16120_v51  ;;  %v6586_v60 = vrot.slane %v16421_v38, %v16120_v51  ;;  %v16426_v16 = vld [vmem:[#allocation75_spill] sm:$0xff]  ;;  %v16428_v2 = vld [vmem:[#allocation74_spill] sm:$0xff] }
 0x54c   :  { %v6384_v6 = vsel %vm5069_vm12, %v6383_v55, %v6379_v61  ;;  %v6455_v21 = vrot.slane %v16422_v50, %v16122_v25  ;;  %v6505_v26 = vrot.slane %v16423_v5, %v16120_v51  ;;  %v13821_v31 = vpop.permute.xlu1 %4041  ;;  %v13823_v1 = vpop.permute.xlu0 %4092  ;;  %v16427_v20 = vrot.slane %v16426_v16, %v16120_v51  ;;  %v16430_v61 = vld [vmem:[#allocation218_spill] sm:$0xff]  ;;  %v16431_v17 = vld [vmem:[#allocation219_spill] sm:$0xff]  ;;  %v16432_v50 = vld [vmem:[#allocation220_spill] sm:$0xff] }
 0x54d   :  { %16424 = vst [vmem:[#allocation156_spill] sm:$0xff] %v13821_v31  ;;  %16425 = vst [vmem:[#allocation157_spill] sm:$0xff] %v13823_v1  ;;  %v16429_v49 = vrot.slane %v16428_v2, %v16122_v25  ;;  %v6518_v55 = vrot.slane %v16430_v61, %v16122_v25  ;;  %v6577_v38 = vrot.slane %v16431_v17, %v16120_v51  ;;  %4233 = vperm.xlu1 %9375, %v13341_v18   ;;  %v16433_v2 = vld [vmem:[#allocation216_spill] sm:$0xff]  ;;  %v16435_v17 = vld [vmem:[#allocation19_spill] sm:$0xff] }
 0x54e   :  { %v6590_v5 = vrot.slane %v16432_v50, %v16122_v25  ;;  %4284 = vperm.xlu0 %9374, %v13344_v39   ;;  %v7486_v16 = vsel %vm7368_vm14, %v6240_v35, %v7485_v12  ;;  %v6456_v1 = vsel %vm5069_vm12, %v6455_v21, %v6451_v27  ;;  %v6581_v42 = vrot.slane %v16435_v17, %v16122_v25  ;;  %v16436_v18 = vld [vmem:[#allocation223_spill] sm:$0xff] }
 0x54f   :  { %v5205_v19 = vsel %vm5069_vm12, %v16429_v49, %v16427_v20  ;;  %v6509_v20 = vrot.slane %v16433_v2, %v16122_v25  ;;  %v16434_v49 = vld [vmem:[#allocation65_spill] sm:$0xff]  ;;  %v6519_v31 = vsel %vm5069_vm12, %v6518_v55, %v6514_v30  ;;  %v6244_v39 = vrot.slane %v16436_v18, %v16120_v51  ;;  %v16445_v17 = vld [vmem:[#allocation227_spill] sm:$0xff] }
 0x550   :  { %v7385_v61 = vsel %vm7376_vm0, %v16434_v49, %v7384_v34  ;;  %v6591_v50 = vsel %vm5069_vm12, %v6590_v5, %v6586_v60  ;;  %v7493_v12 = vsel %vm7368_vm14, %v6312_v15, %v7492_v36  ;;  %v7500_v27 = vsel %vm7368_vm14, %v6384_v6, %v7499_v11  ;;  %v13855_v21 = vpop.permute.xlu1 %4089  ;;  %v13857_v2 = vpop.permute.xlu0 %4134  ;;  %v16439_v60 = vld [vmem:[#allocation222_spill] sm:$0xff]  ;;  %v16440_v5 = vld [vmem:[#allocation225_spill] sm:$0xff]  ;;  %v16441_v36 = vld [vmem:[#allocation131_spill] sm:$0xff] }
 0x551   :  { %v6510_v35 = vsel %vm5069_vm12, %v6509_v20, %v6505_v26  ;;  %16437 = vst [vmem:[#allocation159_spill] sm:$0xff] %v13855_v21  ;;  %16438 = vst [vmem:[#allocation158_spill] sm:$0xff] %v13857_v2  ;;  %v13860_v34 = vsel %vm7378_vm1, %v5205_v19, %v7385_v61  ;;  %v6582_v30 = vsel %vm5069_vm12, %v6581_v42, %v6577_v38  ;;  %4281 = vperm.xlu1 %9375, %v13363_v62   ;;  %v16442_v6 = vld [vmem:[#allocation66_spill] sm:$0xff]  ;;  %v16443_v19 = vld [vmem:[#allocation79_spill] sm:$0xff] }
 0x552   :  { %v6248_v55 = vrot.slane %v16439_v60, %v16122_v25  ;;  %v6316_v49 = vrot.slane %v16440_v5, %v16120_v51  ;;  %4818 = vperm.xlu0 %9374, %v16441_v36   ;;  %v7507_v11 = vsel %vm7368_vm14, %v6456_v1, %v7506_v9  ;;  %v7513_v26 = vsel %vm7366_vm13, %v6519_v31, %v6510_v35  ;;  %v16444_v20 = vld [vmem:[#allocation224_spill] sm:$0xff]  ;;  %v16446_v18 = vld [vmem:[#allocation229_spill] sm:$0xff]  ;;  %v16447_v9 = vld [vmem:[#allocation226_spill] sm:$0xff] }
 0x553   :  { %v7520_v15 = vsel %vm7366_vm13, %v6591_v50, %v6582_v30  ;;  %v7391_v42 = vsel %vm7374_vm11, %v16443_v19, %v16442_v6  ;;  %v6320_v61 = vrot.slane %v16444_v20, %v16122_v25  ;;  %v6388_v62 = vrot.slane %v16445_v17, %v16120_v51  ;;  %v16448_v1 = vld [vmem:[#allocation231_spill] sm:$0xff]  ;;  %v16449_v35 = vld [vmem:[#allocation233_spill] sm:$0xff]  ;;  %v16453_v19 = vld [vmem:[#allocation228_spill] sm:$0xff] }
 0x554   :  { %v6249_v38 = vsel %vm5069_vm12, %v6248_v55, %v6244_v39  ;;  %v6460_v60 = vrot.slane %v16446_v18, %v16120_v51  ;;  %v6392_v31 = vrot.slane %v16447_v9, %v16122_v25  ;;  %v6523_v50 = vrot.slane %v16448_v1, %v16120_v51  ;;  %v16450_v39 = vld [vmem:[#allocation237_spill] sm:$0xff]  ;;  %v13890_v5 = vpop.permute.xlu1 %4131  ;;  %v13892_v36 = vpop.permute.xlu0 %4182  ;;  %v16454_v17 = vld [vmem:[#allocation91_spill] sm:$0xff]  ;;  %v16456_v9 = vld [vmem:[#allocation90_spill] sm:$0xff] }
 0x555   :  { %v6595_v30 = vrot.slane %v16449_v35, %v16120_v51  ;;  %v6658_v55 = vrot.slane %v16450_v39, %v16120_v51  ;;  %16451 = vst [vmem:[#allocation161_spill] sm:$0xff] %v13890_v5  ;;  %16452 = vst [vmem:[#allocation160_spill] sm:$0xff] %v13892_v36  ;;  %v6321_v6 = vsel %vm5069_vm12, %v6320_v61, %v6316_v49  ;;  %4815 = vperm.xlu1 %9375, %v13386_v33   ;;  %v16458_v39 = vld [vmem:[#allocation230_spill] sm:$0xff]  ;;  %v16459_v49 = vld [vmem:[#allocation232_spill] sm:$0xff] }
 0x556   :  { %v6464_v20 = vrot.slane %v16453_v19, %v16122_v25  ;;  %4866 = vperm.xlu0 %9374, %v13389_v29   ;;  %v16455_v18 = vrot.slane %v16454_v17, %v16120_v51  ;;  %v16457_v1 = vrot.slane %v16456_v9, %v16122_v25  ;;  %v6527_v36 = vrot.slane %v16458_v39, %v16122_v25  ;;  %v16460_v19 = vld [vmem:[#allocation235_spill] sm:$0xff]  ;;  %v16461_v33 = vld [vmem:[#allocation236_spill] sm:$0xff]  ;;  %v16463_v5 = vld [vmem:[#allocation234_spill] sm:$0xff] }
 0x557   :  { %v6599_v61 = vrot.slane %v16459_v49, %v16122_v25  ;;  %v6649_v2 = vrot.slane %v16460_v19, %v16120_v51  ;;  %v6662_v29 = vrot.slane %v16461_v33, %v16122_v25  ;;  %v13915_v21 = vsel %vm7370_vm15, %v6249_v38, %v7486_v16 }
 0x558   :  { %v5277_v35 = vsel %vm5069_vm12, %v16457_v1, %v16455_v18  ;;  %v6393_v17 = vsel %vm5069_vm12, %v6392_v31, %v6388_v62  ;;  %v6465_v9 = vsel %vm5069_vm12, %v6464_v20, %v6460_v60  ;;  %v16462_v18 = vld [vmem:[#allocation71_spill] sm:$0xff]  ;;  %v6528_v39 = vsel %vm5069_vm12, %v6527_v36, %v6523_v50  ;;  %v13926_v33 = vpop.permute.xlu1 %4179  ;;  %v13928_v16 = vpop.permute.xlu0 %4224 }
 0x559   :  { %v7392_v1 = vsel %vm7376_vm0, %v16462_v18, %v7391_v42  ;;  %v6600_v49 = vsel %vm5069_vm12, %v6599_v61, %v6595_v30  ;;  %v6653_v19 = vrot.slane %v16463_v5, %v16122_v25  ;;  %v6663_v54 = vsel %vm5069_vm12, %v6662_v29, %v6658_v55  ;;  %16464 = vst [vmem:[#allocation163_spill] sm:$0xff] %v13926_v33  ;;  %v16466_v62 = vld [vmem:[#allocation239_spill] sm:$0xff]  ;;  %v16476_v18 = vld [vmem:[#allocation242_spill] sm:$0xff]  ;;  %v16587_v33 = vld [vmem:[#allocation300_spill] sm:$0xff] }
 0x55a   :  { %16465 = vst [vmem:[#allocation162_spill] sm:$0xff] %v13928_v16  ;;  %v13931_v38 = vsel %vm7370_vm15, %v6321_v6, %v7493_v12  ;;  %v6721_v60 = vrot.slane %v16466_v62, %v16120_v51  ;;  %4863 = vperm.xlu1 %9375, %v13392_v22   ;;  %4908 = vperm.xlu0 %9374, %v13402_v48   ;;  %v16467_v12 = vld [vmem:[#allocation241_spill] sm:$0xff]  ;;  %v16478_v62 = vld [vmem:[#allocation39_spill] sm:$0xff] }
 0x55b   :  { %v13938_v42 = vsel %vm7378_vm1, %v5277_v35, %v7392_v1  ;;  %v13941_v31 = vsel %vm7370_vm15, %v6393_v17, %v7500_v27  ;;  %v13944_v50 = vsel %vm7370_vm15, %v6465_v9, %v7507_v11  ;;  %v6654_v30 = vsel %vm5069_vm12, %v6653_v19, %v6649_v2  ;;  %v16468_v27 = vld [vmem:[#allocation238_spill] sm:$0xff]  ;;  %v16469_v11 = vld [vmem:[#allocation240_spill] sm:$0xff]  ;;  %v16470_v2 = vld [vmem:[#allocation243_spill] sm:$0xff] }
 0x55c   :  { %v6730_v55 = vrot.slane %v16467_v12, %v16120_v51  ;;  %v13950_v5 = vsel %vm7368_vm14, %v6528_v39, %v7513_v26  ;;  %v13953_v22 = vsel %vm7368_vm14, %v6600_v49, %v7520_v15  ;;  %v13956_v48 = vsel %vm7366_vm13, %v6663_v54, %v6654_v30  ;;  %v16471_v35 = vld [vmem:[#allocation38_spill] sm:$0xff]  ;;  %v13966_v26 = vpop.permute.xlu1 %4221  ;;  %v13968_v29 = vpop.permute.xlu0 %4272  ;;  %v16474_v15 = vld [vmem:[#allocation80_spill] sm:$0xff]  ;;  %v16477_v39 = vld [vmem:[#allocation249_spill] sm:$0xff] }
 0x55d   :  { %v6725_v36 = vrot.slane %v16468_v27, %v16122_v25  ;;  %v6734_v6 = vrot.slane %v16469_v11, %v16122_v25  ;;  %v5731_v20 = vrot.slane %v16470_v2, %v16120_v51  ;;  %v5794_v61 = vrot.slane %v16471_v35, %v16120_v51  ;;  %16472 = vst [vmem:[#allocation165_spill] sm:$0xff] %v13966_v26  ;;  %v16475_v17 = vld [vmem:[#allocation82_spill] sm:$0xff]  ;;  %v16479_v12 = vld [vmem:[#allocation245_spill] sm:$0xff]  ;;  %v16481_v11 = vld [vmem:[#allocation247_spill] sm:$0xff] }
 0x55e   :  { %16473 = vst [vmem:[#allocation164_spill] sm:$0xff] %v13968_v29  ;;  %v7398_v54 = vsel %vm7374_vm11, %v16475_v17, %v16474_v15  ;;  %v5735_v1 = vrot.slane %v16476_v18, %v16122_v25  ;;  %v5866_v49 = vrot.slane %v16477_v39, %v16120_v51  ;;  %4905 = vperm.xlu1 %9375, %v13411_v63   ;;  %v16482_v35 = vld [vmem:[#allocation248_spill] sm:$0xff]  ;;  %v16483_v63 = vld [vmem:[#allocation107_spill] sm:$0xff]  ;;  %v16485_v17 = vld [vmem:[#allocation106_spill] sm:$0xff] }
 0x55f   :  { %v6726_v9 = vsel %vm5069_vm12, %v6725_v36, %v6721_v60  ;;  %4956 = vperm.xlu0 %9374, %v13431_v44   ;;  %v6735_v19 = vsel %vm5069_vm12, %v6734_v6, %v6730_v55  ;;  %v5785_v30 = vrot.slane %v16478_v62, %v16120_v51  ;;  %v5798_v27 = vrot.slane %v16479_v12, %v16122_v25  ;;  %v16480_v60 = vld [vmem:[#allocation251_spill] sm:$0xff]  ;;  %v16487_v18 = vld [vmem:[#allocation84_spill] sm:$0xff] }
 0x560   :  { %v6253_v36 = vrot.slane %v16480_v60, %v16120_v51  ;;  %v5857_v2 = vrot.slane %v16481_v11, %v16120_v51  ;;  %v5870_v15 = vrot.slane %v16482_v35, %v16122_v25  ;;  %v16484_v44 = vrot.slane %v16483_v63, %v16120_v51  ;;  %v16488_v12 = vld [vmem:[#allocation244_spill] sm:$0xff]  ;;  %v16489_v35 = vld [vmem:[#allocation250_spill] sm:$0xff]  ;;  %v14006_v16 = vpop.permute.xlu1 %4269  ;;  %v14008_v63 = vpop.permute.xlu0 %4626 }
 0x561   :  { %v16486_v55 = vrot.slane %v16485_v17, %v16122_v25  ;;  %v7399_v39 = vsel %vm7376_vm0, %v16487_v18, %v7398_v54  ;;  %v5736_v62 = vsel %vm5069_vm12, %v5735_v1, %v5731_v20  ;;  %v5789_v60 = vrot.slane %v16488_v12, %v16122_v25  ;;  %16490 = vst [vmem:[#allocation166_spill] sm:$0xff] %v14006_v16 }
 0x562   :  { %v5799_v11 = vsel %vm5069_vm12, %v5798_v27, %v5794_v61  ;;  %v6257_v29 = vrot.slane %v16489_v35, %v16122_v25  ;;  %16491 = vst [vmem:[#allocation175_spill] sm:$0xff] %v14008_v63  ;;  %v14011_v17 = vsel %vm7366_vm13, %v6735_v19, %v6726_v9  ;;  %v5871_v20 = vsel %vm5069_vm12, %v5870_v15, %v5866_v49  ;;  %v16493_v27 = vld [vmem:[#allocation253_spill] sm:$0xff]  ;;  %v16500_v35 = vld [vmem:[#allocation34_spill] sm:$0xff] }
 0x563   :  { %v5349_v6 = vsel %vm5069_vm12, %v16486_v55, %v16484_v44  ;;  %v16492_v44 = vld [vmem:[#allocation246_spill] sm:$0xff]  ;;  %4953 = vperm.xlu1 %9375, %v13434_v28   ;;  %4998 = vperm.xlu0 %9374, %v13444_v43   ;;  %v5790_v61 = vsel %vm5069_vm12, %v5789_v60, %v5785_v30  ;;  %v6325_v55 = vrot.slane %v16493_v27, %v16120_v51  ;;  %v16494_v43 = vld [vmem:[#allocation255_spill] sm:$0xff]  ;;  %v16495_v30 = vld [vmem:[#allocation252_spill] sm:$0xff] }
 0x564   :  { %v5861_v54 = vrot.slane %v16492_v44, %v16122_v25  ;;  %v6258_v1 = vsel %vm5069_vm12, %v6257_v29, %v6253_v36  ;;  %v14023_v18 = vsel %vm7378_vm1, %v5349_v6, %v7399_v39  ;;  %v14027_v9 = vsel %vm7368_vm14, %v5736_v62, %v13718_v3  ;;  %v16496_v15 = vld [vmem:[#allocation257_spill] sm:$0xff]  ;;  %v16497_v3 = vld [vmem:[#allocation259_spill] sm:$0xff]  ;;  %v14044_v62 = vpop.permute.xlu1 %4623  ;;  %v14046_v12 = vpop.permute.xlu0 %4674  ;;  %v16499_v60 = vld [vmem:[#allocation254_spill] sm:$0xff] }
 0x565   :  { %v14030_v49 = vsel %vm7366_vm13, %v5799_v11, %v5790_v61  ;;  %v6397_v19 = vrot.slane %v16494_v43, %v16120_v51  ;;  %v6329_v36 = vrot.slane %v16495_v30, %v16122_v25  ;;  %v6469_v6 = vrot.slane %v16496_v15, %v16120_v51  ;;  %16498 = vst [vmem:[#allocation167_spill] sm:$0xff] %v14046_v12  ;;  %v16502_v27 = vld [vmem:[#allocation258_spill] sm:$0xff]  ;;  %v16504_v30 = vld [vmem:[#allocation260_spill] sm:$0xff] }
 0x566   :  { %v5862_v28 = vsel %vm5069_vm12, %v5861_v54, %v5857_v2  ;;  %v6532_v39 = vrot.slane %v16497_v3, %v16120_v51  ;;  %v14050_v2 = vsel %vm7372_vm2, %v6258_v1, %v13915_v21  ;;  %v6401_v11 = vrot.slane %v16499_v60, %v16122_v25  ;;  %v16503_v21 = vld [vmem:[#allocation33_spill] sm:$0xff]  ;;  %v16505_v3 = vld [vmem:[#allocation123_spill] sm:$0xff] }
 0x567   :  { %v14036_v29 = vsel %vm7366_vm13, %v5871_v20, %v5862_v28  ;;  %v6604_v44 = vrot.slane %v16500_v35, %v16120_v51  ;;  %4995 = vperm.xlu1 %9375, %v13466_v46   ;;  %5046 = vperm.xlu0 %9374, %v13469_v57   ;;  %v6330_v54 = vsel %vm5069_vm12, %v6329_v36, %v6325_v55  ;;  %v16501_v20 = vld [vmem:[#allocation256_spill] sm:$0xff]  ;;  %v16507_v57 = vld [vmem:[#allocation122_spill] sm:$0xff]  ;;  %v16509_v60 = vld [vmem:[#allocation95_spill] sm:$0xff] }
 0x568   :  { %v6473_v61 = vrot.slane %v16501_v20, %v16122_v25  ;;  %v6536_v28 = vrot.slane %v16502_v27, %v16122_v25  ;;  %v6667_v1 = vrot.slane %v16503_v21, %v16120_v51  ;;  %v6402_v43 = vsel %vm5069_vm12, %v6401_v11, %v6397_v19  ;;  %v16510_v35 = vld [vmem:[#allocation93_spill] sm:$0xff]  ;;  %v14086_v26 = vpop.permute.xlu0 %4716 }
 0x569   :  { %v6608_v15 = vrot.slane %v16504_v30, %v16122_v25  ;;  %v16506_v46 = vrot.slane %v16505_v3, %v16120_v51  ;;  %v16508_v55 = vrot.slane %v16507_v57, %v16122_v25  ;;  %v7405_v20 = vsel %vm7374_vm11, %v16510_v35, %v16509_v60  ;;  %v16511_v19 = vld [vmem:[#allocation261_spill] sm:$0xff]  ;;  %v16512_v30 = vld [vmem:[#allocation263_spill] sm:$0xff]  ;;  %v14084_v3 = vpop.permute.xlu1 %4671  ;;  %16514 = vst [vmem:[#allocation174_spill] sm:$0xff] %v14086_v26  ;;  %v16519_v35 = vld [vmem:[#allocation266_spill] sm:$0xff] }
 0x56a   :  { %v6474_v27 = vsel %vm5069_vm12, %v6473_v61, %v6469_v6  ;;  %v6537_v21 = vsel %vm5069_vm12, %v6536_v28, %v6532_v39  ;;  %v6671_v11 = vrot.slane %v16511_v19, %v16122_v25  ;;  %v6739_v16 = vrot.slane %v16512_v30, %v16120_v51  ;;  %16513 = vst [vmem:[#allocation173_spill] sm:$0xff] %v14084_v3  ;;  %v16515_v6 = vld [vmem:[#allocation96_spill] sm:$0xff]  ;;  %v16525_v30 = vld [vmem:[#allocation29_spill] sm:$0xff] }
 0x56b   :  { %v5421_v36 = vsel %vm5069_vm12, %v16508_v55, %v16506_v46  ;;  %v14090_v46 = vsel %vm7372_vm2, %v6330_v54, %v13931_v38  ;;  %v6609_v57 = vsel %vm5069_vm12, %v6608_v15, %v6604_v44  ;;  %5043 = vperm.xlu1 %9375, %v13487_v53   ;;  %4242 = vperm.xlu0 %9374, %v13490_v41   ;;  %v14099_v61 = vsel %vm639_vm6, %v13793_v10, 0.0  ;;  %v16516_v54 = vld [vmem:[#allocation262_spill] sm:$0xff]  ;;  %v16517_v53 = vld [vmem:[#allocation267_spill] sm:$0xff]  ;;  %v16518_v55 = vld [vmem:[#allocation265_spill] sm:$0xff] }
 0x56c   :  { %v7406_v39 = vsel %vm7376_vm0, %v16515_v6, %v7405_v20  ;;  %v14103_v28 = vsel %vm7372_vm2, %v6402_v43, %v13941_v31  ;;  %v6672_v38 = vsel %vm5069_vm12, %v6671_v11, %v6667_v1  ;;  %v6743_v44 = vrot.slane %v16516_v54, %v16122_v25  ;;  %v16520_v20 = vld [vmem:[#allocation271_spill] sm:$0xff]  ;;  %v16523_v19 = vld [vmem:[#allocation264_spill] sm:$0xff]  ;;  %v16524_v11 = vld [vmem:[#allocation273_spill] sm:$0xff] }
 0x56d   :  { %v6802_v15 = vrot.slane %v16517_v53, %v16120_v51  ;;  %v14112_v41 = vsel %vm7372_vm2, %v6474_v27, %v13944_v50  ;;  %v14116_v10 = vsel %vm7370_vm15, %v6537_v21, %v13950_v5  ;;  %v6793_v31 = vrot.slane %v16518_v55, %v16120_v51  ;;  %v14132_v5 = vpop.permute.xlu1 %4713  ;;  %v14134_v21 = vpop.permute.xlu0 %4764 }
 0x56e   :  { %v14121_v43 = vsel %vm7378_vm1, %v5421_v36, %v7406_v39  ;;  %v14125_v1 = vsel %vm7370_vm15, %v6609_v57, %v13953_v22  ;;  %v6744_v60 = vsel %vm5069_vm12, %v6743_v44, %v6739_v16  ;;  %v6806_v50 = vrot.slane %v16519_v35, %v16122_v25  ;;  %16521 = vst [vmem:[#allocation177_spill] sm:$0xff] %v14132_v5  ;;  %v16526_v39 = vld [vmem:[#allocation269_spill] sm:$0xff]  ;;  %v16528_v44 = vld [vmem:[#allocation275_spill] sm:$0xff] }
 0x56f   :  { %v6874_v27 = vrot.slane %v16520_v20, %v16120_v51  ;;  %16522 = vst [vmem:[#allocation168_spill] sm:$0xff] %v14134_v21  ;;  %v14138_v36 = vsel %vm7368_vm14, %v6672_v38, %v13956_v48  ;;  %v6797_v22 = vrot.slane %v16523_v19, %v16122_v25  ;;  %v5740_v16 = vrot.slane %v16524_v11, %v16120_v51  ;;  %v16527_v38 = vld [vmem:[#allocation270_spill] sm:$0xff]  ;;  %v16530_v20 = vld [vmem:[#allocation101_spill] sm:$0xff]  ;;  %v16532_v19 = vld [vmem:[#allocation268_spill] sm:$0xff] }
 0x570   :  { %4239 = vperm.xlu1 %9375, %v16525_v30   ;;  %4290 = vperm.xlu0 %9374, %v13514_v40   ;;  %v14148_v57 = vsel %vm639_vm6, %v13860_v34, 0.0  ;;  %v6807_v6 = vsel %vm5069_vm12, %v6806_v50, %v6802_v15  ;;  %v6865_v48 = vrot.slane %v16526_v39, %v16120_v51  ;;  %v6878_v54 = vrot.slane %v16527_v38, %v16122_v25  ;;  %v16529_v34 = vld [vmem:[#allocation272_spill] sm:$0xff]  ;;  %v16531_v15 = vld [vmem:[#allocation102_spill] sm:$0xff] }
 0x571   :  { %v5803_v53 = vrot.slane %v16528_v44, %v16120_v51  ;;  %v14159_v55 = vsel %vm7368_vm14, %v6744_v60, %v14011_v17  ;;  %v6798_v40 = vsel %vm5069_vm12, %v6797_v22, %v6793_v31  ;;  %v5744_v35 = vrot.slane %v16529_v34, %v16122_v25  ;;  %v16533_v39 = vld [vmem:[#allocation274_spill] sm:$0xff]  ;;  %v14172_v44 = vpop.permute.xlu1 %4761  ;;  %v14174_v17 = vpop.permute.xlu0 %4806  ;;  %v16536_v31 = vld [vmem:[#allocation139_spill] sm:$0xff] }
 0x572   :  { %v7412_v50 = vsel %vm7374_vm11, %v16531_v15, %v16530_v20  ;;  %v6869_v11 = vrot.slane %v16532_v19, %v16122_v25  ;;  %v6879_v30 = vsel %vm5069_vm12, %v6878_v54, %v6874_v27  ;;  %v5807_v38 = vrot.slane %v16533_v39, %v16122_v25  ;;  %16534 = vst [vmem:[#allocation172_spill] sm:$0xff] %v14172_v44  ;;  %v16538_v22 = vld [vmem:[#allocation138_spill] sm:$0xff]  ;;  %v16540_v54 = vld [vmem:[#allocation277_spill] sm:$0xff] }
 0x573   :  { %16535 = vst [vmem:[#allocation176_spill] sm:$0xff] %v14174_v17  ;;  %v16537_v60 = vrot.slane %v16536_v31, %v16120_v51  ;;  %v16539_v34 = vrot.slane %v16538_v22, %v16122_v25  ;;  %v14184_v15 = vsel %vm7366_vm13, %v6807_v6, %v6798_v40  ;;  %v5745_v27 = vsel %vm5069_vm12, %v5744_v35, %v5740_v16  ;;  %v16541_v6 = vld [vmem:[#allocation281_spill] sm:$0xff]  ;;  %v16542_v22 = vld [vmem:[#allocation108_spill] sm:$0xff]  ;;  %v16557_v17 = vld [vmem:[#allocation155_spill] sm:$0xff] }
 0x574   :  { %v5875_v19 = vrot.slane %v16540_v54, %v16120_v51  ;;  %4287 = vperm.xlu1 %9375, %v13517_v32   ;;  %4914 = vperm.xlu0 %9374, %v13532_v59   ;;  %v14193_v39 = vsel %vm639_vm6, %v13938_v42, 0.0  ;;  %v6870_v31 = vsel %vm5069_vm12, %v6869_v11, %v6865_v48  ;;  %v5938_v40 = vrot.slane %v16541_v6, %v16120_v51  ;;  %v16543_v32 = vld [vmem:[#allocation276_spill] sm:$0xff]  ;;  %v16588_v44 = vld [vmem:[#allocation302_spill] sm:$0xff] }
 0x575   :  { %v5493_v20 = vsel %vm5069_vm12, %v16539_v34, %v16537_v60  ;;  %v5808_v60 = vsel %vm5069_vm12, %v5807_v38, %v5803_v53  ;;  %v7413_v16 = vsel %vm7376_vm0, %v16542_v22, %v7412_v50  ;;  %v14202_v35 = vsel %vm7366_vm13, %v6879_v30, %v6870_v31  ;;  %v16544_v34 = vld [vmem:[#allocation285_spill] sm:$0xff]  ;;  %v16545_v53 = vld [vmem:[#allocation279_spill] sm:$0xff]  ;;  %v16546_v50 = vld [vmem:[#allocation280_spill] sm:$0xff]  ;;  %v14219_v6 = vpop.permute.xlu1 %4803  ;;  %v14221_v22 = vpop.permute.xlu0 %4854 }
 0x576   :  { %v5879_v59 = vrot.slane %v16543_v32, %v16122_v25  ;;  %v6010_v42 = vrot.slane %v16544_v34, %v16120_v51  ;;  %v7414_v54 = vsel %vm7378_vm1, %v5493_v20, %v7413_v16  ;;  %v14211_v48 = vsel %vm7370_vm15, %v5745_v27, %v14027_v9  ;;  %v16547_v30 = vld [vmem:[#allocation283_spill] sm:$0xff]  ;;  %16548 = vst [vmem:[#allocation179_spill] sm:$0xff] %v14219_v6  ;;  %v16550_v27 = vld [vmem:[#allocation284_spill] sm:$0xff]  ;;  %v16551_v34 = vld [vmem:[#allocation278_spill] sm:$0xff] }
 0x577   :  { %v5929_v11 = vrot.slane %v16545_v53, %v16120_v51  ;;  %v5942_v38 = vrot.slane %v16546_v50, %v16122_v25  ;;  %v6001_v31 = vrot.slane %v16547_v30, %v16120_v51  ;;  %16549 = vst [vmem:[#allocation178_spill] sm:$0xff] %v14221_v22  ;;  %v14225_v20 = vsel %vm7368_vm14, %v5808_v60, %v14030_v49  ;;  %v16552_v49 = vld [vmem:[#allocation282_spill] sm:$0xff] }
 0x578   :  { %v5880_v9 = vsel %vm5069_vm12, %v5879_v59, %v5875_v19  ;;  %v6014_v16 = vrot.slane %v16550_v27, %v16122_v25  ;;  %4911 = vperm.xlu1 %9375, %v13535_v56   ;;  %4962 = vperm.xlu0 %9374, %v13552_v37   ;;  %v14234_v32 = vsel %vm639_vm6, %v14023_v18, 0.0  ;;  %v5933_v53 = vrot.slane %v16551_v34, %v16122_v25  ;;  %v16553_v19 = vld [vmem:[#allocation25_spill] sm:$0xff]  ;;  %v16554_v59 = vld [vmem:[#allocation119_spill] sm:$0xff]  ;;  %v16559_v6 = vld [vmem:[#allocation154_spill] sm:$0xff] }
 0x579   :  { %v5943_v50 = vsel %vm5069_vm12, %v5942_v38, %v5938_v40  ;;  %v6005_v60 = vrot.slane %v16552_v49, %v16122_v25  ;;  %v7419_v30 = vsel %vm7374_vm11, %v16554_v59, %v16553_v19  ;;  %v16555_v37 = vld [vmem:[#allocation287_spill] sm:$0xff]  ;;  %v16556_v18 = vld [vmem:[#allocation289_spill] sm:$0xff]  ;;  %v16558_v34 = vrot.slane %v16557_v17, %v16120_v51  ;;  %v14262_v19 = vpop.permute.xlu1 %4851  ;;  %v14264_v59 = vpop.permute.xlu0 %4896 }
 0x57a   :  { %v6015_v56 = vsel %vm5069_vm12, %v6014_v16, %v6010_v42  ;;  %v6262_v27 = vrot.slane %v16555_v37, %v16120_v51  ;;  %v6334_v22 = vrot.slane %v16556_v18, %v16120_v51  ;;  %v16560_v40 = vrot.slane %v16559_v6, %v16122_v25  ;;  %16561 = vst [vmem:[#allocation181_spill] sm:$0xff] %v14262_v19  ;;  %v16563_v37 = vld [vmem:[#allocation128_spill] sm:$0xff]  ;;  %v16564_v18 = vld [vmem:[#allocation286_spill] sm:$0xff]  ;;  %v16580_v19 = vld [vmem:[#allocation301_spill] sm:$0xff] }
 0x57b   :  { %v14258_v49 = vsel %vm7368_vm14, %v5880_v9, %v14036_v29  ;;  %v5934_v42 = vsel %vm5069_vm12, %v5933_v53, %v5929_v11  ;;  %v6006_v16 = vsel %vm5069_vm12, %v6005_v60, %v6001_v31  ;;  %16562 = vst [vmem:[#allocation169_spill] sm:$0xff] %v14264_v59  ;;  %v7420_v17 = vsel %vm7376_vm0, %v16563_v37, %v7419_v30  ;;  %v16566_v29 = vld [vmem:[#allocation293_spill] sm:$0xff]  ;;  %v16567_v60 = vld [vmem:[#allocation295_spill] sm:$0xff] }
 0x57c   :  { %v5565_v38 = vsel %vm5069_vm12, %v16560_v40, %v16558_v34  ;;  %v6266_v6 = vrot.slane %v16564_v18, %v16122_v25  ;;  %v16565_v34 = vld [vmem:[#allocation288_spill] sm:$0xff]  ;;  %v6541_v9 = vrot.slane %v16566_v29, %v16120_v51  ;;  %4959 = vperm.xlu1 %9375, %v13565_v23   ;;  %5004 = vperm.xlu0 %9374, %v13568_v24   ;;  %v14278_v11 = vsel %vm639_vm6, %v14121_v43, 0.0  ;;  %v16568_v24 = vld [vmem:[#allocation290_spill] sm:$0xff] }
 0x57d   :  { %v6338_v40 = vrot.slane %v16565_v34, %v16122_v25  ;;  %v14281_v31 = vsel %vm7366_vm13, %v5943_v50, %v5934_v42  ;;  %v14284_v53 = vsel %vm7366_vm13, %v6015_v56, %v6006_v16  ;;  %v6613_v30 = vrot.slane %v16567_v60, %v16120_v51  ;;  %v16569_v50 = vld [vmem:[#allocation292_spill] sm:$0xff]  ;;  %v16570_v56 = vld [vmem:[#allocation26_spill] sm:$0xff]  ;;  %v16571_v34 = vld [vmem:[#allocation291_spill] sm:$0xff] }
 0x57e   :  { %v7421_v37 = vsel %vm7378_vm1, %v5565_v38, %v7420_v17  ;;  %v14290_v18 = vsel %vm5069_vm12, %v6266_v6, %v6262_v27  ;;  %v6410_v43 = vrot.slane %v16568_v24, %v16122_v25  ;;  %v6545_v42 = vrot.slane %v16569_v50, %v16122_v25  ;;  %v16572_v38 = vld [vmem:[#allocation294_spill] sm:$0xff]  ;;  %v16573_v27 = vld [vmem:[#allocation297_spill] sm:$0xff]  ;;  %v16576_v60 = vld [vmem:[#allocation40_spill] sm:$0xff] }
 0x57f   :  { %v14293_v23 = vsel %vm5069_vm12, %v6338_v40, %v6334_v22  ;;  %v6406_v16 = vrot.slane %v16570_v56, %v16120_v51  ;;  %v6482_v29 = vrot.slane %v16571_v34, %v16122_v25  ;;  %v6617_v17 = vrot.slane %v16572_v38, %v16122_v25  ;;  %v14307_v22 = vpop.permute.xlu1 %4893  ;;  %v14309_v40 = vpop.permute.xlu0 %4944  ;;  %v16577_v56 = vld [vmem:[#allocation299_spill] sm:$0xff]  ;;  %v16578_v34 = vld [vmem:[#allocation14_spill] sm:$0xff] }
 0x580   :  { %v6676_v6 = vrot.slane %v16573_v27, %v16120_v51  ;;  %16574 = vst [vmem:[#allocation180_spill] sm:$0xff] %v14307_v22  ;;  %16575 = vst [vmem:[#allocation191_spill] sm:$0xff] %v14309_v40  ;;  %v6478_v24 = vrot.slane %v16576_v60, %v16120_v51  ;;  %v6546_v50 = vsel %vm5069_vm12, %v6545_v42, %v6541_v9  ;;  %5001 = vperm.xlu1 %9375, %v13571_v47   ;;  %v16579_v22 = vld [vmem:[#allocation296_spill] sm:$0xff]  ;;  %v16581_v9 = vld [vmem:[#allocation303_spill] sm:$0xff] }
 0x581   :  { %v6748_v59 = vrot.slane %v16577_v56, %v16120_v51  ;;  %5052 = vperm.xlu0 %9374, %v16578_v34   ;;  %v14319_v38 = vsel %vm639_vm6, %v7414_v54, 0.0  ;;  %v6618_v27 = vsel %vm5069_vm12, %v6617_v17, %v6613_v30  ;;  %v6680_v40 = vrot.slane %v16579_v22, %v16122_v25  ;;  %v16582_v56 = vld [vmem:[#allocation298_spill] sm:$0xff]  ;;  %v16586_v22 = vld [vmem:[#allocation136_spill] sm:$0xff] }
 0x582   :  { %v6811_v60 = vrot.slane %v16580_v19, %v16120_v51  ;;  %v6883_v42 = vrot.slane %v16581_v9, %v16120_v51  ;;  %v6752_v21 = vrot.slane %v16582_v56, %v16122_v25  ;;  %v16583_v47 = vld [vmem:[#allocation306_spill] sm:$0xff]  ;;  %v16584_v54 = vrot.slane %v16374_v13, %v16120_v51 }
 0x583   :  { %v6946_v34 = vrot.slane %v16583_v47, %v16120_v51  ;;  %v16585_v30 = vrot.slane %v16368_v7, %v16122_v25  ;;  %v7426_v19 = vsel %vm7374_vm11, %v13626_v0, %v16586_v22  ;;  %v6681_v9 = vsel %vm5069_vm12, %v6680_v40, %v6676_v6  ;;  %v14347_v26 = vpop.permute.xlu1 %4941  ;;  %v14349_v13 = vpop.permute.xlu0 %4986  ;;  %v16592_v6 = vld [vmem:[#allocation305_spill] sm:$0xff] }
 0x584   :  { %v6815_v56 = vrot.slane %v16587_v33, %v16122_v25  ;;  %v6887_v47 = vrot.slane %v16588_v44, %v16122_v25  ;;  %16589 = vst [vmem:[#allocation170_spill] sm:$0xff] %v14347_v26  ;;  %16590 = vst [vmem:[#allocation183_spill] sm:$0xff] %v14349_v13  ;;  %v7427_v7 = vsel %vm7376_vm0, %v13681_v45, %v7426_v19  ;;  %5049 = vperm.xlu1 %9375, %v13613_v14   ;;  %v16593_v33 = vld [vmem:[#allocation141_spill] sm:$0xff] }
 0x585   :  { %v5637_v17 = vsel %vm5069_vm12, %v16585_v30, %v16584_v54  ;;  %v6753_v54 = vsel %vm5069_vm12, %v6752_v21, %v6748_v59  ;;  %v16591_v30 = vld [vmem:[#allocation31_spill] sm:$0xff]  ;;  %v6950_v40 = vrot.slane %v16592_v6, %v16122_v25  ;;  %5010 = vperm.xlu0 %9374, %v16593_v33   ;;  %v14361_v44 = vsel %vm639_vm6, %v7421_v37, 0.0 }
 0x586   :  { %v6937_v0 = vrot.slane %v16591_v30, %v16120_v51  ;;  %v14364_v22 = vsel %vm5069_vm12, %v6410_v43, %v6406_v16  ;;  %v6816_v45 = vsel %vm5069_vm12, %v6815_v56, %v6811_v60  ;;  %v6888_v21 = vsel %vm5069_vm12, %v6887_v47, %v6883_v42  ;;  %v16594_v30 = vld [vmem:[#allocation304_spill] sm:$0xff]  ;;  %v16601_v47 = vld [vmem:[#allocation15_spill] sm:$0xff] }
 0x587   :  { %v7428_v59 = vsel %vm7378_vm1, %v5637_v17, %v7427_v7  ;;  %v14370_v19 = vsel %vm5069_vm12, %v6482_v29, %v6478_v24  ;;  %v14374_v14 = vsel %vm7372_vm2, %v6546_v50, %v14116_v10  ;;  %v6941_v37 = vrot.slane %v16594_v30, %v16122_v25  ;;  %v16595_v10 = vld [vmem:[#allocation310_spill] sm:$0xff]  ;;  %v14393_v50 = vpop.permute.xlu1 %4983  ;;  %v5035_v60 = vpop.permute.xlu0 %5034  ;;  %v16599_v17 = vld [vmem:[#allocation309_spill] sm:$0xff] }
 0x588   :  { %v6951_v6 = vsel %vm5069_vm12, %v6950_v40, %v6946_v34  ;;  %v14381_v43 = vsel %vm7372_vm2, %v6618_v27, %v14125_v1  ;;  %v14385_v16 = vsel %vm7370_vm15, %v6681_v9, %v14138_v36  ;;  %v14389_v29 = vsel %vm7370_vm15, %v6753_v54, %v14159_v55  ;;  %16596 = vst [vmem:[#allocation185_spill] sm:$0xff] %v14393_v50  ;;  %v16598_v34 = vld [vmem:[#allocation307_spill] sm:$0xff]  ;;  %v16603_v54 = vld [vmem:[#allocation314_spill] sm:$0xff] }
 0x589   :  { %v5749_v24 = vrot.slane %v16595_v10, %v16120_v51  ;;  %v14397_v42 = vsel %vm7368_vm14, %v6816_v45, %v14184_v15  ;;  %v14401_v1 = vsel %vm7368_vm14, %v6888_v21, %v14202_v35  ;;  %v6942_v36 = vsel %vm5069_vm12, %v6941_v37, %v6937_v0  ;;  %5007 = vperm.xlu1 %9375, %v13649_v4   ;;  %v16600_v35 = vld [vmem:[#allocation312_spill] sm:$0xff]  ;;  %v16604_v45 = vld [vmem:[#allocation311_spill] sm:$0xff] }
 0x58a   :  { %5058 = vperm.xlu0 %9374, %v13652_v52   ;;  %v14407_v55 = vsel %vm639_vm6, %v7428_v59, 0.0  ;;  %v14410_v27 = vsel %vm7366_vm13, %v6951_v6, %v6942_v36  ;;  %v7013_v15 = vrot.slane %v16598_v34, %v16122_v25  ;;  %v5753_v9 = vrot.slane %v16599_v17, %v16122_v25  ;;  %v16602_v52 = vld [vmem:[#allocation16_spill] sm:$0xff]  ;;  %v16607_v10 = vld [vmem:[#allocation187_spill] sm:$0xff]  ;;  %v16609_v34 = vld [vmem:[#allocation186_spill] sm:$0xff] }
 0x58b   :  { %16597 = vst [vmem:[#allocation189_spill] sm:$0xff] %v14407_v55  ;;  %v5812_v56 = vrot.slane %v16600_v35, %v16120_v51  ;;  %v7009_v4 = vrot.slane %v16601_v47, %v16120_v51  ;;  %v7018_v7 = vrot.slane %v16602_v52, %v16120_v51  ;;  %v5884_v0 = vrot.slane %v16603_v54, %v16120_v51  ;;  %v16605_v59 = vld [vmem:[#allocation316_spill] sm:$0xff]  ;;  %v5032_v37 = vpop.permute.xlu1 %5031  ;;  %v14432_v6 = vpop.permute.xlu0 %4050  ;;  %v16613_v54 = vld [vmem:[#allocation145_spill] sm:$0xff]  ;;  %v16638_v50 = vld [vmem:[#allocation335_spill] sm:$0xff] }
 0x58c   :  { %v7433_v40 = vsel %vm7374_vm11, %v13703_v8, %v13700_v58  ;;  %v5754_v33 = vsel %vm5069_vm12, %v5753_v9, %v5749_v24  ;;  %v5816_v21 = vrot.slane %v16604_v45, %v16122_v25  ;;  %v5947_v30 = vrot.slane %v16605_v59, %v16120_v51  ;;  %16606 = vst [vmem:[#allocation190_spill] sm:$0xff] %v14432_v6  ;;  %v16611_v58 = vld [vmem:[#allocation313_spill] sm:$0xff]  ;;  %v16612_v24 = vld [vmem:[#allocation318_spill] sm:$0xff]  ;;  %v16614_v45 = vld [vmem:[#allocation308_spill] sm:$0xff] }
 0x58d   :  { %v16608_v36 = vrot.slane %v16607_v10, %v16120_v51  ;;  %v16610_v17 = vrot.slane %v16609_v34, %v16122_v25  ;;  %v5888_v8 = vrot.slane %v16611_v58, %v16122_v25  ;;  %v6019_v9 = vrot.slane %v16612_v24, %v16120_v51  ;;  %5055 = vperm.xlu1 %9375, %v16613_v54   ;;  %v16615_v34 = vld [vmem:[#allocation315_spill] sm:$0xff]  ;;  %v16617_v24 = vld [vmem:[#allocation317_spill] sm:$0xff] }
 0x58e   :  { %v7328_v47 = vrot.slane %v5035_v60, %v16122_v25  ;;  %v7324_v52 = vrot.slane %v5032_v37, %v16120_v51  ;;  %v7022_v59 = vrot.slane %v16614_v45, %v16122_v25  ;;  %v5817_v10 = vsel %vm5069_vm12, %v5816_v21, %v5812_v56  ;;  %v16654_v55 = vld [vmem:[#allocation351_spill] sm:$0xff]  ;;  %v16663_v6 = vld [vmem:[#allocation349_spill] sm:$0xff] }
 0x58f   :  { %v5709_v35 = vsel %vm5069_vm12, %v16610_v17, %v16608_v36  ;;  %v5951_v36 = vrot.slane %v16615_v34, %v16122_v25  ;;  %v16616_v17 = vld [vmem:[#allocation146_spill] sm:$0xff]  ;;  %v5889_v13 = vsel %vm5069_vm12, %v5888_v8, %v5884_v0  ;;  %v6023_v60 = vrot.slane %v16617_v24, %v16122_v25  ;;  %v14475_v8 = vpop.permute.xlu0 %4098 }
 0x590   :  { %v7434_v58 = vsel %vm7376_vm0, %v16616_v17, %v7433_v40  ;;  %v14459_v37 = vsel %vm5069_vm12, %v7328_v47, %v7324_v52  ;;  %v14463_v45 = vsel %vm5069_vm12, %v7013_v15, %v7009_v4  ;;  %v14466_v56 = vsel %vm5069_vm12, %v7022_v59, %v7018_v7  ;;  %v14473_v40 = vpop.permute.xlu1 %4047  ;;  %16622 = vst [vmem:[#allocation193_spill] sm:$0xff] %v14475_v8  ;;  %v16624_v15 = vld [vmem:[#allocation328_spill] sm:$0xff]  ;;  %v16625_v7 = vld [vmem:[#allocation330_spill] sm:$0xff] }
 0x591   :  { %16618 = vst [vmem:[#allocation171_spill] sm:$0xff] %v14459_v37  ;;  %v7435_v54 = vsel %vm7378_vm1, %v5709_v35, %v7434_v58  ;;  %16619 = vst [vmem:[#allocation182_spill] sm:$0xff] %v14463_v45  ;;  %v14470_v21 = vsel %vm7372_vm2, %v5754_v33, %v14211_v48  ;;  %v5952_v0 = vsel %vm5069_vm12, %v5951_v36, %v5947_v30  ;;  %v16623_v35 = vld [vmem:[#allocation24_spill] sm:$0xff]  ;;  %v16628_v36 = vld [vmem:[#allocation326_spill] sm:$0xff] }
 0x592   :  { %16620 = vst [vmem:[#allocation184_spill] sm:$0xff] %v14466_v56  ;;  %16621 = vst [vmem:[#allocation188_spill] sm:$0xff] %v14473_v40  ;;  %v6024_v47 = vsel %vm5069_vm12, %v6023_v60, %v6019_v9  ;;  %v6271_v52 = vrot.slane %v16623_v35, %v16120_v51  ;;  %v6343_v4 = vrot.slane %v16624_v15, %v16120_v51  ;;  %v16626_v30 = vld [vmem:[#allocation12_spill] sm:$0xff]  ;;  %v14495_v34 = vsel %vm639_vm6, %v7435_v54, 0.0  ;;  %v16629_v58 = vld [vmem:[#allocation327_spill] sm:$0xff] }
 0x593   :  { %v6415_v59 = vrot.slane %v16625_v7, %v16120_v51  ;;  %v14486_v48 = vsel %vm7370_vm15, %v5817_v10, %v14225_v20  ;;  %v14490_v33 = vsel %vm7370_vm15, %v5889_v13, %v14258_v49  ;;  %v6487_v9 = vrot.slane %v16626_v30, %v16120_v51  ;;  %16627 = vst [vmem:[#allocation195_spill] sm:$0xff] %v14495_v34  ;;  %v16630_v60 = vld [vmem:[#allocation329_spill] sm:$0xff]  ;;  %v16631_v10 = vld [vmem:[#allocation43_spill] sm:$0xff]  ;;  %v16644_v45 = vld [vmem:[#allocation334_spill] sm:$0xff] }
 0x594   :  { %v6275_v17 = vrot.slane %v16628_v36, %v16122_v25  ;;  %v6347_v24 = vrot.slane %v16629_v58, %v16122_v25  ;;  %v6419_v20 = vrot.slane %v16630_v60, %v16122_v25  ;;  %v6550_v35 = vrot.slane %v16631_v10, %v16120_v51  ;;  %v16632_v54 = vld [vmem:[#allocation331_spill] sm:$0xff]  ;;  %v16633_v7 = vld [vmem:[#allocation333_spill] sm:$0xff]  ;;  %v14513_v36 = vpop.permute.xlu1 %4095  ;;  %v14515_v58 = vpop.permute.xlu0 %4140 }
 0x595   :  { %v7458_v49 = vsel %vm7368_vm14, %v5952_v0, %v14281_v31  ;;  %v7465_v13 = vsel %vm7368_vm14, %v6024_v47, %v14284_v53  ;;  %v6491_v15 = vrot.slane %v16632_v54, %v16122_v25  ;;  %v6685_v30 = vrot.slane %v16633_v7, %v16120_v51  ;;  %16634 = vst [vmem:[#allocation192_spill] sm:$0xff] %v14513_v36  ;;  %v16636_v53 = vld [vmem:[#allocation30_spill] sm:$0xff]  ;;  %v16637_v54 = vld [vmem:[#allocation332_spill] sm:$0xff]  ;;  %v16655_v34 = vld [vmem:[#allocation353_spill] sm:$0xff] }
 0x596   :  { %16635 = vst [vmem:[#allocation199_spill] sm:$0xff] %v14515_v58  ;;  %v14518_v60 = vsel %vm5069_vm12, %v6275_v17, %v6271_v52  ;;  %v14521_v10 = vsel %vm5069_vm12, %v6347_v24, %v6343_v4  ;;  %v14524_v31 = vsel %vm5069_vm12, %v6419_v20, %v6415_v59  ;;  %v6554_v0 = vrot.slane %v16636_v53, %v16122_v25  ;;  %v16639_v52 = vld [vmem:[#allocation337_spill] sm:$0xff]  ;;  %v16640_v59 = vld [vmem:[#allocation28_spill] sm:$0xff]  ;;  %v16641_v20 = vld [vmem:[#allocation339_spill] sm:$0xff] }
 0x597   :  { %v14529_v47 = vsel %vm5069_vm12, %v6491_v15, %v6487_v9  ;;  %v6689_v7 = vrot.slane %v16637_v54, %v16122_v25  ;;  %v6757_v26 = vrot.slane %v16638_v50, %v16120_v51  ;;  %v6820_v17 = vrot.slane %v16639_v52, %v16120_v51  ;;  %v16642_v9 = vld [vmem:[#allocation21_spill] sm:$0xff]  ;;  %v16643_v54 = vld [vmem:[#allocation42_spill] sm:$0xff] }
 0x598   :  { %v14538_v4 = vsel %vm5069_vm12, %v6554_v0, %v6550_v35  ;;  %v6626_v24 = vrot.slane %v16640_v59, %v16122_v25  ;;  %v6892_v53 = vrot.slane %v16641_v20, %v16120_v51  ;;  %v6955_v15 = vrot.slane %v16642_v9, %v16120_v51  ;;  %v16645_v35 = vld [vmem:[#allocation336_spill] sm:$0xff]  ;;  %v14553_v8 = vpop.permute.xlu1 %4137  ;;  %v14555_v59 = vpop.permute.xlu0 %4188  ;;  %v16648_v20 = vld [vmem:[#allocation338_spill] sm:$0xff] }
 0x599   :  { %v6622_v56 = vrot.slane %v16643_v54, %v16120_v51  ;;  %v6690_v50 = vsel %vm5069_vm12, %v6689_v7, %v6685_v30  ;;  %v6761_v52 = vrot.slane %v16644_v45, %v16122_v25  ;;  %v6824_v0 = vrot.slane %v16645_v35, %v16122_v25  ;;  %16646 = vst [vmem:[#allocation194_spill] sm:$0xff] %v14553_v8  ;;  %v16649_v9 = vld [vmem:[#allocation340_spill] sm:$0xff]  ;;  %v16651_v30 = vld [vmem:[#allocation354_spill] sm:$0xff] }
 0x59a   :  { %16647 = vst [vmem:[#allocation203_spill] sm:$0xff] %v14555_v59  ;;  %v6896_v58 = vrot.slane %v16648_v20, %v16122_v25  ;;  %v6959_v36 = vrot.slane %v16649_v9, %v16122_v25  ;;  %v16650_v54 = vld [vmem:[#allocation352_spill] sm:$0xff]  ;;  %v5893_v7 = vrot.slane %v16651_v30, %v16120_v51  ;;  %v16653_v59 = vld [vmem:[#allocation17_spill] sm:$0xff]  ;;  %v5897_v30 = vrot.slane %v16655_v34, %v16122_v25 }
 0x59b   :  { %v5821_v37 = vrot.slane %v16650_v54, %v16120_v51  ;;  %v6762_v45 = vsel %vm5069_vm12, %v6761_v52, %v6757_v26  ;;  %v6825_v35 = vsel %vm5069_vm12, %v6824_v0, %v6820_v17  ;;  %v16652_v8 = vld [vmem:[#allocation356_spill] sm:$0xff]  ;;  %v6028_v12 = vrot.slane %v16653_v59, %v16120_v51  ;;  %v16656_v26 = vld [vmem:[#allocation342_spill] sm:$0xff]  ;;  %v16659_v59 = vld [vmem:[#allocation357_spill] sm:$0xff] }
 0x59c   :  { %v5956_v3 = vrot.slane %v16652_v8, %v16120_v51  ;;  %v6897_v20 = vsel %vm5069_vm12, %v6896_v58, %v6892_v53  ;;  %v6960_v9 = vsel %vm5069_vm12, %v6959_v36, %v6955_v15  ;;  %v5825_v54 = vrot.slane %v16654_v55, %v16122_v25  ;;  %v16657_v17 = vld [vmem:[#allocation350_spill] sm:$0xff]  ;;  %v16658_v8 = vld [vmem:[#allocation355_spill] sm:$0xff]  ;;  %v14585_v53 = vpop.permute.xlu1 %4185  ;;  %v4231_v36 = vpop.permute.xlu0 %4230 }
 0x59d   :  { %v7027_v52 = vrot.slane %v16656_v26, %v16120_v51  ;;  %v5758_v0 = vrot.slane %v16657_v17, %v16120_v51  ;;  %v5960_v5 = vrot.slane %v16658_v8, %v16122_v25  ;;  %v6032_v58 = vrot.slane %v16659_v59, %v16122_v25  ;;  %16660 = vst [vmem:[#allocation48_spill] sm:$0xff] %v14585_v53  ;;  %v16662_v17 = vld [vmem:[#allocation341_spill] sm:$0xff] }
 0x59e   :  { %v14588_v55 = vsel %vm5069_vm12, %v6626_v24, %v6622_v56  ;;  %v14592_v34 = vsel %vm7372_vm2, %v6690_v50, %v14385_v16  ;;  %v5826_v15 = vsel %vm5069_vm12, %v5825_v54, %v5821_v37  ;;  %v5898_v26 = vsel %vm5069_vm12, %v5897_v30, %v5893_v7  ;;  %v16672_v54 = vld [vmem:[#allocation53_spill] sm:$0xff]  ;;  %v16673_v30 = vld [vmem:[#allocation50_spill] sm:$0xff] }
 0x59f   :  { %16661 = vst [vmem:[#allocation197_spill] sm:$0xff] %v14592_v34  ;;  %v7031_v8 = vrot.slane %v16662_v17, %v16122_v25  ;;  %v5762_v59 = vrot.slane %v16663_v6, %v16122_v25  ;;  %v5961_v53 = vsel %vm5069_vm12, %v5960_v5, %v5956_v3  ;;  %v6033_v40 = vsel %vm5069_vm12, %v6032_v58, %v6028_v12 }
 0x5a0   :  { %v14604_v56 = vsel %vm7372_vm2, %v6762_v45, %v14389_v29  ;;  %v7543_v16 = vsel %vm7370_vm15, %v6825_v35, %v14397_v42  ;;  %v7550_v37 = vsel %vm7370_vm15, %v6897_v20, %v14401_v1  ;;  %v7556_v24 = vsel %vm7368_vm14, %v6960_v9, %v14410_v27  ;;  %v4228_v29 = vpop.permute.xlu1 %4227  ;;  %v4279_v42 = vpop.permute.xlu0 %4278  ;;  %v16669_v45 = vld [vmem:[#allocation45_spill] sm:$0xff] }
 0x5a1   :  { %16664 = vst [vmem:[#allocation198_spill] sm:$0xff] %v14604_v56  ;;  %v14613_v50 = vsel %vm5069_vm12, %v7031_v8, %v7027_v52  ;;  %v14616_v3 = vsel %vm5069_vm12, %v5762_v59, %v5758_v0  ;;  %v14620_v12 = vsel %vm7372_vm2, %v5826_v15, %v14486_v48  ;;  %v14624_v5 = vsel %vm7372_vm2, %v5898_v26, %v14490_v33  ;;  %v16670_v35 = vld [vmem:[#allocation49_spill] sm:$0xff]  ;;  %v16671_v33 = vld [vmem:[#allocation51_spill] sm:$0xff]  ;;  %v16678_v26 = vld [vmem:[#allocation76_spill] sm:$0xff] }
 0x5a2   :  { %16665 = vst [vmem:[#allocation201_spill] sm:$0xff] %v14613_v50  ;;  %16666 = vst [vmem:[#allocation202_spill] sm:$0xff] %v14620_v12  ;;  %v14627_v1 = vsel %vm7370_vm15, %v5961_v53, %v7458_v49  ;;  %v14630_v27 = vsel %vm7370_vm15, %v6033_v40, %v7465_v13  ;;  %v6122_v6 = vrot.slane %v4231_v36, %v16122_v25  ;;  %v16674_v13 = vld [vmem:[#allocation54_spill] sm:$0xff]  ;;  %v16675_v0 = vld [vmem:[#allocation61_spill] sm:$0xff] }
 0x5a3   :  { %16667 = vst [vmem:[#allocation207_spill] sm:$0xff] %v14624_v5  ;;  %16668 = vst [vmem:[#allocation196_spill] sm:$0xff] %v14630_v27  ;;  %v6118_v7 = vrot.slane %v4228_v29, %v16120_v51  ;;  %v6284_v48 = vrot.slane %v16669_v45, %v16122_v25  ;;  %v6280_v20 = vrot.slane %v16670_v35, %v16120_v51  ;;  %v16677_v36 = vld [vmem:[#allocation62_spill] sm:$0xff]  ;;  %v16679_v8 = vld [vmem:[#allocation81_spill] sm:$0xff] }
 0x5a4   :  { %v6563_v58 = vrot.slane %v16675_v0, %v16122_v25  ;;  %v6559_v15 = vrot.slane %v16677_v36, %v16120_v51  ;;  %v6829_v17 = vrot.slane %v16678_v26, %v16120_v51  ;;  %v6901_v59 = vrot.slane %v16679_v8, %v16120_v51  ;;  %v16680_v29 = vld [vmem:[#allocation85_spill] sm:$0xff]  ;;  %v4276_v35 = vpop.permute.xlu1 %4275  ;;  %v14659_v9 = vpop.permute.xlu0 %4722  ;;  %v16682_v0 = vld [vmem:[#allocation67_spill] sm:$0xff]  ;;  %v16684_v26 = vld [vmem:[#allocation70_spill] sm:$0xff] }
 0x5a5   :  { %v14649_v53 = vsel %vm5069_vm12, %v6122_v6, %v6118_v7  ;;  %v6964_v45 = vrot.slane %v16680_v29, %v16120_v51  ;;  %16681 = vst [vmem:[#allocation59_spill] sm:$0xff] %v14659_v9  ;;  %v6631_v49 = vrot.slane %v16682_v0, %v16120_v51  ;;  %v16683_v6 = vld [vmem:[#allocation69_spill] sm:$0xff]  ;;  %v6194_v36 = vrot.slane %v4279_v42, %v16122_v25  ;;  %v16685_v8 = vld [vmem:[#allocation78_spill] sm:$0xff]  ;;  %v16687_v27 = vld [vmem:[#allocation83_spill] sm:$0xff] }
 0x5a6   :  { %16676 = vst [vmem:[#allocation200_spill] sm:$0xff] %v14649_v53  ;;  %v6694_v7 = vrot.slane %v16683_v6, %v16120_v51  ;;  %v6190_v40 = vrot.slane %v4276_v35, %v16120_v51  ;;  %v6766_v52 = vrot.slane %v16684_v26, %v16120_v51  ;;  %v6833_v53 = vrot.slane %v16685_v8, %v16122_v25  ;;  %v16686_v29 = vld [vmem:[#allocation77_spill] sm:$0xff]  ;;  %v16688_v0 = vld [vmem:[#allocation60_spill] sm:$0xff] }
 0x5a7   :  { %v6905_v50 = vrot.slane %v16686_v29, %v16122_v25  ;;  %v6968_v5 = vrot.slane %v16687_v27, %v16122_v25  ;;  %v6635_v56 = vrot.slane %v16688_v0, %v16122_v25  ;;  %v16689_v6 = vld [vmem:[#allocation57_spill] sm:$0xff]  ;;  %v16690_v35 = vld [vmem:[#allocation68_spill] sm:$0xff] }
 0x5a8   :  { %v6698_v42 = vrot.slane %v16689_v6, %v16122_v25  ;;  %v6770_v9 = vrot.slane %v16690_v35, %v16122_v25  ;;  %v14682_v26 = vsel %vm5069_vm12, %v6194_v36, %v6190_v40  ;;  %v6834_v8 = vsel %vm5069_vm12, %v6833_v53, %v6829_v17  ;;  %v16692_v27 = vld [vmem:[#allocation72_spill] sm:$0xff]  ;;  %v14689_v63 = vpop.permute.xlu1 %4719  ;;  %v14692_v0 = vpop.permute.xlu0 %4770  ;;  %v16693_v6 = vld [vmem:[#allocation63_spill] sm:$0xff] }
 0x5a9   :  { %16691 = vst [vmem:[#allocation58_spill] sm:$0xff] %v14682_v26  ;;  %v6906_v12 = vsel %vm5069_vm12, %v6905_v50, %v6901_v59  ;;  %v6969_v29 = vsel %vm5069_vm12, %v6968_v5, %v6964_v45  ;;  %v7036_v34 = vrot.slane %v16692_v27, %v16120_v51  ;;  %7633 = vadd.xlane.f32.xlu0 %v14148_v57  ;;  %v16694_v40 = vld [vmem:[#allocation56_spill] sm:$0xff]  ;;  %v16695_v57 = vld [vmem:[#allocation73_spill] sm:$0xff]  ;;  %v16696_v45 = vld [vmem:[#allocation110_spill] sm:$0xff] }
 0x5aa   :  { %v14699_v53 = vsel %vm5069_vm12, %v6563_v58, %v6559_v15  ;;  %v14702_v50 = vsel %vm5069_vm12, %v6635_v56, %v6631_v49  ;;  %v14705_v5 = vsel %vm5069_vm12, %v6698_v42, %v6694_v7  ;;  %v14708_v17 = vsel %vm5069_vm12, %v6770_v9, %v6766_v52  ;;  %v16698_v49 = vld [vmem:[#allocation114_spill] sm:$0xff]  ;;  %v16701_v42 = vld [vmem:[#allocation100_spill] sm:$0xff] }
 0x5ab   :  { %v7040_v59 = vrot.slane %v16695_v57, %v16122_v25  ;;  %v7306_v27 = vrot.slane %v16696_v45, %v16120_v51  ;;  %v14715_v35 = vsel %vm7372_vm2, %v6834_v8, %v7543_v16  ;;  %v14718_v58 = vsel %vm7372_vm2, %v6906_v12, %v7550_v37  ;;  %v16700_v52 = vld [vmem:[#allocation98_spill] sm:$0xff]  ;;  %v16702_v16 = vld [vmem:[#allocation111_spill] sm:$0xff]  ;;  %v16704_v12 = vld [vmem:[#allocation109_spill] sm:$0xff] }
 0x5ac   :  { %v14721_v56 = vsel %vm7370_vm15, %v6969_v29, %v7556_v24  ;;  %v5965_v15 = vrot.slane %v16698_v49, %v16120_v51  ;;  %v7301_v7 = vrot.slane %v16700_v52, %v16122_v25  ;;  %v7297_v57 = vrot.slane %v16701_v42, %v16120_v51  ;;  %v14734_v37 = vpop.permute.xlu1 %4767  ;;  %v14737_v24 = vpop.permute.xlu0 %4812  ;;  %v16706_v45 = vld [vmem:[#allocation105_spill] sm:$0xff] }
 0x5ad   :  { %16697 = vst [vmem:[#allocation205_spill] sm:$0xff] %v14721_v56  ;;  %v14726_v9 = vsel %vm5069_vm12, %v7040_v59, %v7036_v34  ;;  %v7310_v8 = vrot.slane %v16702_v16, %v16122_v25  ;;  %7636 = vadd.xlane.f32.xlu0 %v14193_v39  ;;  %16703 = vst [vmem:[#allocation52_spill] sm:$0xff] %v14737_v24  ;;  %v5767_v29 = vrot.slane %v16704_v12, %v16120_v51  ;;  %v16705_v34 = vld [vmem:[#allocation113_spill] sm:$0xff]  ;;  %v16708_v39 = vld [vmem:[#allocation104_spill] sm:$0xff] }
 0x5ae   :  { %16699 = vst [vmem:[#allocation206_spill] sm:$0xff] %v14726_v9  ;;  %v5830_v59 = vrot.slane %v16705_v34, %v16120_v51  ;;  %v5969_v49 = vrot.slane %v16706_v45, %v16122_v25  ;;  %v6285_v52 = vsel %vm5069_vm12, %v6284_v48, %v6280_v20  ;;  %v16707_v16 = vld [vmem:[#allocation117_spill] sm:$0xff]  ;;  %v6037_v26 = vrot.slane %v16708_v39, %v16120_v51  ;;  %v16709_v9 = vld [vmem:[#allocation103_spill] sm:$0xff]  ;;  %v16710_v56 = vld [vmem:[#allocation112_spill] sm:$0xff] }
 0x5af   :  { %v7311_v42 = vsel %vm5069_vm12, %v7310_v8, %v7306_v27  ;;  %v5902_v36 = vrot.slane %v16707_v16, %v16120_v51  ;;  %v7489_v12 = vsel %vm7374_vm11, %v14290_v18, %v14050_v2  ;;  %v5771_v34 = vrot.slane %v16709_v9, %v16122_v25  ;;  %v16711_v8 = vld [vmem:[#allocation115_spill] sm:$0xff]  ;;  %v16712_v39 = vld [vmem:[#allocation116_spill] sm:$0xff] }
 0x5b0   :  { %v5834_v45 = vrot.slane %v16710_v56, %v16122_v25  ;;  %v5970_v48 = vsel %vm5069_vm12, %v5969_v49, %v5965_v15  ;;  %v7490_v20 = vsel %vm7376_vm0, %v14518_v60, %v7489_v12  ;;  %v7302_v27 = vsel %vm5069_vm12, %v7301_v7, %v7297_v57  ;;  %v14766_v2 = vpop.permute.xlu1 %4809  ;;  %v14769_v18 = vpop.permute.xlu0 %4860 }
 0x5b1   :  { %v5906_v16 = vrot.slane %v16711_v8, %v16122_v25  ;;  %v6041_v24 = vrot.slane %v16712_v39, %v16122_v25  ;;  %7642 = vadd.xlane.f32.xlu0 %v14278_v11  ;;  %v7491_v56 = vsel %vm7378_vm1, %v6285_v52, %v7490_v20  ;;  %v14773_v15 = vsel %vm7366_vm13, %v7311_v42, %v7302_v27  ;;  %v16716_v42 = vld [vmem:[#allocation125_spill] sm:$0xff] }
 0x5b2   :  { %v14776_v60 = vsel %vm5069_vm12, %v5771_v34, %v5767_v29  ;;  %v14779_v9 = vsel %vm5069_vm12, %v5834_v45, %v5830_v59  ;;  %7630 = vadd.xlane.f32.xlu1 %v14099_v61  ;;  %v16713_v7 = vrot.slane %v16674_v13, %v16120_v51  ;;  %v16714_v11 = vrot.slane %v16673_v30, %v16122_v25  ;;  %v16715_v13 = vld [vmem:[#allocation37_spill] sm:$0xff] }
 0x5b3   :  { %v14790_v49 = vsel %vm5069_vm12, %v5906_v16, %v5902_v36  ;;  %v14794_v29 = vsel %vm7372_vm2, %v5970_v48, %v14627_v1  ;;  %v14797_v59 = vsel %vm5069_vm12, %v6041_v24, %v6037_v26  ;;  %v7503_v61 = vsel %vm7374_vm11, %v14364_v22, %v14103_v28  ;;  %v16717_v24 = vld [vmem:[#allocation126_spill] sm:$0xff]  ;;  %v16719_v48 = vld [vmem:[#allocation124_spill] sm:$0xff]  ;;  %v16721_v27 = vld [vmem:[#allocation133_spill] sm:$0xff] }
 0x5b4   :  { %v6429_v57 = vsel %vm5069_vm12, %v16714_v11, %v16713_v7  ;;  %v6703_v52 = vrot.slane %v16715_v13, %v16120_v51  ;;  %v7677_v30 = vsel %vm639_vm6, %v7491_v56, 0.0  ;;  %v7504_v36 = vsel %vm7376_vm0, %v14524_v31, %v7503_v61  ;;  %v16718_v28 = vld [vmem:[#allocation130_spill] sm:$0xff]  ;;  %v14816_v34 = vpop.permute.xlu1 %4857  ;;  %v14818_v45 = vpop.permute.xlu0 %4902  ;;  %v16724_v7 = vld [vmem:[#allocation129_spill] sm:$0xff] }
 0x5b5   :  { %v7496_v1 = vsel %vm7374_vm11, %v14293_v23, %v14090_v46  ;;  %v6572_v26 = vrot.slane %v16716_v42, %v16122_v25  ;;  %v6568_v12 = vrot.slane %v16717_v24, %v16120_v51  ;;  %v6775_v22 = vrot.slane %v16718_v28, %v16120_v51  ;;  %7678 = vadd.xlane.f32.xlu0 %v7677_v30  ;;  %v16720_v46 = vld [vmem:[#allocation23_spill] sm:$0xff]  ;;  %v16726_v13 = vld [vmem:[#allocation134_spill] sm:$0xff] }
 0x5b6   :  { %v7505_v31 = vsel %vm7378_vm1, %v6429_v57, %v7504_v36  ;;  %v6644_v20 = vrot.slane %v16719_v48, %v16122_v25  ;;  %v6707_v23 = vrot.slane %v16720_v46, %v16122_v25  ;;  %v6838_v8 = vrot.slane %v16721_v27, %v16120_v51  ;;  %7639 = vadd.xlane.f32.xlu1 %v14234_v32  ;;  %v16725_v57 = vld [vmem:[#allocation121_spill] sm:$0xff]  ;;  %v16727_v36 = vld [vmem:[#allocation36_spill] sm:$0xff] }
 0x5b7   :  { %v16722_v16 = vrot.slane %v16672_v54, %v16120_v51  ;;  %v16723_v39 = vrot.slane %v16671_v33, %v16122_v25  ;;  %v6640_v11 = vrot.slane %v16724_v7, %v16120_v51  ;;  %v6779_v61 = vrot.slane %v16725_v57, %v16122_v25  ;;  %v16728_v48 = vld [vmem:[#allocation132_spill] sm:$0xff]  ;;  %v16734_v57 = vld [vmem:[#allocation150_spill] sm:$0xff] }
 0x5b8   :  { %v6910_v30 = vrot.slane %v16726_v13, %v16120_v51  ;;  %v7510_v32 = vsel %vm7374_vm11, %v14370_v19, %v14112_v41  ;;  %v6708_v54 = vsel %vm5069_vm12, %v6707_v23, %v6703_v52  ;;  %v6842_v33 = vrot.slane %v16727_v36, %v16122_v25  ;;  %v14855_v27 = vpop.permute.xlu1 %4899  ;;  %v14857_v41 = vpop.permute.xlu0 %4950  ;;  %v16729_v23 = vld [vmem:[#allocation135_spill] sm:$0xff] }
 0x5b9   :  { %v6357_v56 = vsel %vm5069_vm12, %v16723_v39, %v16722_v16  ;;  %v7683_v42 = vsel %vm639_vm6, %v7505_v31, 0.0  ;;  %v7497_v24 = vsel %vm7376_vm0, %v14521_v10, %v7496_v1  ;;  %v14851_v28 = vsel %vm5069_vm12, %v6779_v61, %v6775_v22  ;;  %v16730_v1 = vld [vmem:[#allocation152_spill] sm:$0xff] }
 0x5ba   :  { %v6914_v46 = vrot.slane %v16728_v48, %v16122_v25  ;;  %7684 = vadd.xlane.f32.xlu0 %v7683_v42  ;;  %v7498_v19 = vsel %vm7378_vm1, %v6357_v56, %v7497_v24  ;;  %v6573_v52 = vsel %vm5069_vm12, %v6572_v26, %v6568_v12  ;;  %v6843_v31 = vsel %vm5069_vm12, %v6842_v33, %v6838_v8  ;;  %v16731_v56 = vld [vmem:[#allocation41_spill] sm:$0xff] }
 0x5bb   :  { %v6977_v10 = vrot.slane %v16729_v23, %v16122_v25  ;;  %v5776_v22 = vrot.slane %v16730_v1, %v16120_v51  ;;  %7645 = vadd.xlane.f32.xlu1 %v14319_v38  ;;  %v7517_v16 = vsel %vm7374_vm11, %v14538_v4, %v14374_v14  ;;  %v6973_v26 = vrot.slane %v16731_v56, %v16120_v51  ;;  %v16735_v4 = vld [vmem:[#allocation151_spill] sm:$0xff] }
 0x5bc   :  { %v14871_v39 = vsel %vm5069_vm12, %v6914_v46, %v6910_v30  ;;  %v7518_v12 = vsel %vm7376_vm0, %v14699_v53, %v7517_v16  ;;  %v16732_v8 = vrot.slane %v16694_v40, %v16120_v51  ;;  %v16733_v7 = vrot.slane %v16693_v6, %v16122_v25  ;;  %v16736_v53 = vld [vmem:[#allocation148_spill] sm:$0xff]  ;;  %v14894_v42 = vpop.permute.xlu1 %4947  ;;  %v4993_v6 = vpop.permute.xlu0 %4992  ;;  %v16768_v56 = vld [vmem:[#allocation203_spill] sm:$0xff] }
 0x5bd   :  { %v7315_v14 = vrot.slane %v16734_v57, %v16120_v51  ;;  %v5780_v61 = vrot.slane %v16735_v4, %v16122_v25  ;;  %v7680_v13 = vsel %vm639_vm6, %v7498_v19, 0.0  ;;  %v7519_v30 = vsel %vm7378_vm1, %v6573_v52, %v7518_v12  ;;  %v16737_v40 = vld [vmem:[#allocation156_spill] sm:$0xff] }
 0x5be   :  { %v6501_v38 = vsel %vm5069_vm12, %v16733_v7, %v16732_v8  ;;  %v7319_v36 = vrot.slane %v16736_v53, %v16122_v25  ;;  %v5839_v33 = vrot.slane %v16737_v40, %v16120_v51  ;;  %7648 = vadd.xlane.f32.xlu0 %v14361_v44  ;;  %v7511_v24 = vsel %vm7376_vm0, %v14529_v47, %v7510_v32  ;;  %v16738_v44 = vld [vmem:[#allocation153_spill] sm:$0xff]  ;;  %v16741_v57 = vld [vmem:[#allocation188_spill] sm:$0xff] }
 0x5bf   :  { %v6645_v48 = vsel %vm5069_vm12, %v6644_v20, %v6640_v11  ;;  %v6712_v46 = vrot.slane %v14044_v62, %v16120_v51  ;;  %7681 = vadd.xlane.f32.xlu1 %v7680_v13  ;;  %v7512_v19 = vsel %vm7378_vm1, %v6501_v38, %v7511_v24  ;;  %v7524_v52 = vsel %vm7374_vm11, %v14588_v55, %v14381_v43  ;;  %v16739_v11 = vld [vmem:[#allocation175_spill] sm:$0xff]  ;;  %v16740_v38 = vld [vmem:[#allocation197_spill] sm:$0xff] }
 0x5c0   :  { %v5781_v1 = vsel %vm5069_vm12, %v5780_v61, %v5776_v22  ;;  %v5843_v16 = vrot.slane %v16738_v44, %v16122_v25  ;;  %v7689_v12 = vsel %vm639_vm6, %v7519_v30, 0.0  ;;  %v7525_v47 = vsel %vm7376_vm0, %v14702_v50, %v7524_v52  ;;  %v4990_v8 = vpop.permute.xlu1 %4989  ;;  %v5041_v7 = vpop.permute.xlu0 %5040  ;;  %v16743_v40 = vld [vmem:[#allocation157_spill] sm:$0xff]  ;;  %v16746_v52 = vld [vmem:[#allocation195_spill] sm:$0xff] }
 0x5c1   :  { %v7440_v62 = vsel %vm7374_vm11, %v14616_v3, %v14470_v21  ;;  %v7320_v20 = vsel %vm5069_vm12, %v7319_v36, %v7315_v14  ;;  %v6716_v32 = vrot.slane %v16739_v11, %v16122_v25  ;;  %v7526_v43 = vsel %vm7378_vm1, %v6645_v48, %v7525_v47 }
 0x5c2   :  { %v7441_v55 = vsel %vm7376_vm0, %v14776_v60, %v7440_v62  ;;  %v5844_v22 = vsel %vm5069_vm12, %v5843_v16, %v5839_v33  ;;  %7690 = vadd.xlane.f32.xlu0 %v7689_v12  ;;  %v7686_v50 = vsel %vm639_vm6, %v7512_v19, 0.0  ;;  %v7531_v21 = vsel %vm7374_vm11, %v14705_v5, %v16740_v38  ;;  %v16742_v5 = vld [vmem:[#allocation202_spill] sm:$0xff]  ;;  %v16753_v38 = vld [vmem:[#allocation59_spill] sm:$0xff] }
 0x5c3   :  { %v7442_v3 = vsel %vm7378_vm1, %v5781_v1, %v7441_v55  ;;  %v5848_v14 = vrot.slane %v16741_v57, %v16120_v51  ;;  %v7265_v4 = vrot.slane %v4993_v6, %v16122_v25  ;;  %v7261_v60 = vrot.slane %v4990_v8, %v16120_v51  ;;  %7687 = vadd.xlane.f32.xlu1 %v7686_v50  ;;  %v16744_v6 = vld [vmem:[#allocation190_spill] sm:$0xff]  ;;  %v16749_v55 = vld [vmem:[#allocation167_spill] sm:$0xff]  ;;  %v16750_v8 = vld [vmem:[#allocation173_spill] sm:$0xff] }
 0x5c4   :  { %v6717_v61 = vsel %vm5069_vm12, %v6716_v32, %v6712_v46  ;;  %v7591_v13 = vsel %vm7368_vm14, %v7320_v20, %v14773_v15  ;;  %v7532_v30 = vsel %vm7376_vm0, %v6708_v54, %v7531_v21  ;;  %v7692_v53 = vsel %vm639_vm6, %v7526_v43, 0.0  ;;  %v16745_v15 = vld [vmem:[#allocation177_spill] sm:$0xff]  ;;  %v5038_v19 = vpop.permute.xlu1 %5037  ;;  %v4147_v1 = vpop.permute.xlu0 %4146  ;;  %v16752_v50 = vld [vmem:[#allocation171_spill] sm:$0xff] }
 0x5c5   :  { %v7447_v36 = vsel %vm7374_vm11, %v14779_v9, %v16742_v5  ;;  %v5915_v33 = vrot.slane %v16743_v40, %v16122_v25  ;;  %v5852_v24 = vrot.slane %v16744_v6, %v16122_v25  ;;  %v14944_v48 = vsel %vm5069_vm12, %v7265_v4, %v7261_v60  ;;  %v16747_v20 = vld [vmem:[#allocation189_spill] sm:$0xff]  ;;  %v16754_v4 = vld [vmem:[#allocation194_spill] sm:$0xff] }
 0x5c6   :  { %v7656_v46 = vsel %vm639_vm6, %v7442_v3, 0.0  ;;  %v6847_v54 = vrot.slane %v16745_v15, %v16120_v51  ;;  %7654 = vadd.xlane.f32.xlu0 %v16746_v52  ;;  %v7533_v9 = vsel %vm7378_vm1, %v6717_v61, %v7532_v30  ;;  %v7448_v44 = vsel %vm7376_vm0, %v5844_v22, %v7447_v36  ;;  %v16748_v32 = vld [vmem:[#allocation161_spill] sm:$0xff]  ;;  %v16755_v36 = vld [vmem:[#allocation159_spill] sm:$0xff]  ;;  %v16756_v6 = vld [vmem:[#allocation158_spill] sm:$0xff] }
 0x5c7   :  { %v7545_v16 = vsel %vm7374_vm11, %v6843_v31, %v14715_v35  ;;  %v6856_v12 = vrot.slane %v14689_v63, %v16120_v51  ;;  %v7337_v47 = vrot.slane %v5041_v7, %v16122_v25  ;;  %v7333_v62 = vrot.slane %v5038_v19, %v16120_v51  ;;  %7651 = vadd.xlane.f32.xlu1 %v16747_v20  ;;  %v16751_v31 = vld [vmem:[#allocation174_spill] sm:$0xff]  ;;  %v16757_v19 = vld [vmem:[#allocation192_spill] sm:$0xff] }
 0x5c8   :  { %v5853_v11 = vsel %vm5069_vm12, %v5852_v24, %v5848_v14  ;;  %v5974_v43 = vrot.slane %v16748_v32, %v16120_v51  ;;  %v6788_v22 = vrot.slane %v16749_v55, %v16122_v25  ;;  %v6784_v35 = vrot.slane %v16750_v8, %v16120_v51  ;;  %v4144_v30 = vpop.permute.xlu1 %4143  ;;  %v14980_v5 = vpop.permute.xlu0 %4194  ;;  %v16760_v55 = vld [vmem:[#allocation193_spill] sm:$0xff] }
 0x5c9   :  { %v6851_v63 = vrot.slane %v16751_v31, %v16122_v25  ;;  %v7592_v7 = vsel %vm7370_vm15, %v16752_v50, %v7591_v13  ;;  %v6860_v21 = vrot.slane %v16753_v38, %v16122_v25  ;;  %v7338_v3 = vsel %vm5069_vm12, %v7337_v47, %v7333_v62 }
 0x5ca   :  { %v7695_v57 = vsel %vm639_vm6, %v7533_v9, 0.0  ;;  %v5983_v60 = vrot.slane %v16754_v4, %v16120_v51  ;;  %v14978_v61 = vsel %vm7372_vm2, %v7338_v3, %v7592_v7  ;;  %v7449_v13 = vsel %vm7378_vm1, %v5853_v11, %v7448_v44  ;;  %v16758_v9 = vld [vmem:[#allocation199_spill] sm:$0xff]  ;;  %v16759_v44 = vld [vmem:[#allocation198_spill] sm:$0xff] }
 0x5cb   :  { %v6852_v14 = vsel %vm5069_vm12, %v6851_v63, %v6847_v54  ;;  %7696 = vadd.xlane.f32.xlu0 %v7695_v57  ;;  %v5911_v40 = vrot.slane %v16755_v36, %v16120_v51  ;;  %v5978_v24 = vrot.slane %v16756_v6, %v16122_v25  ;;  %v5992_v15 = vrot.slane %v4144_v30, %v16120_v51  ;;  %v16762_v57 = vld [vmem:[#allocation207_spill] sm:$0xff]  ;;  %v16765_v6 = vld [vmem:[#allocation160_spill] sm:$0xff] }
 0x5cc   :  { %7693 = vadd.xlane.f32.xlu1 %v7692_v53  ;;  %v6861_v54 = vsel %vm5069_vm12, %v6860_v21, %v6856_v12  ;;  %v5920_v52 = vrot.slane %v16757_v19, %v16120_v51  ;;  %v5987_v47 = vrot.slane %v16758_v9, %v16122_v25  ;;  %v6789_v62 = vsel %vm5069_vm12, %v6788_v22, %v6784_v35  ;;  %v4192_v63 = vpop.permute.xlu1 %4191  ;;  %v15004_v22 = vpop.permute.xlu0 %4236 }
 0x5cd   :  { %v7538_v20 = vsel %vm7374_vm11, %v14708_v17, %v16759_v44  ;;  %v5979_v11 = vsel %vm5069_vm12, %v5978_v24, %v5974_v43  ;;  %v5996_v32 = vrot.slane %v4147_v1, %v16122_v25  ;;  %v7659_v53 = vsel %vm639_vm6, %v7449_v13, 0.0  ;;  %v16761_v43 = vld [vmem:[#allocation172_spill] sm:$0xff] }
 0x5ce   :  { %v7546_v12 = vsel %vm7376_vm0, %v6852_v14, %v7545_v16  ;;  %v5924_v8 = vrot.slane %v16760_v55, %v16122_v25  ;;  %v5988_v31 = vsel %vm5069_vm12, %v5987_v47, %v5983_v60  ;;  %v7539_v17 = vsel %vm7376_vm0, %v14851_v28, %v7538_v20  ;;  %v16767_v20 = vld [vmem:[#allocation179_spill] sm:$0xff]  ;;  %v16769_v55 = vld [vmem:[#allocation196_spill] sm:$0xff] }
 0x5cf   :  { %7660 = vadd.xlane.f32.xlu0 %v7659_v53  ;;  %v7547_v35 = vsel %vm7378_vm1, %v6861_v54, %v7546_v12  ;;  %v5916_v1 = vsel %vm5069_vm12, %v5915_v33, %v5911_v40  ;;  %v6919_v50 = vrot.slane %v16761_v43, %v16120_v51  ;;  %v7540_v16 = vsel %vm7378_vm1, %v6789_v62, %v7539_v17  ;;  %v16763_v33 = vld [vmem:[#allocation163_spill] sm:$0xff]  ;;  %v16766_v54 = vld [vmem:[#allocation48_spill] sm:$0xff] }
 0x5d0   :  { %7657 = vadd.xlane.f32.xlu1 %v7656_v46  ;;  %v5997_v7 = vsel %vm5069_vm12, %v5996_v32, %v5992_v15  ;;  %v6928_v38 = vrot.slane %v14734_v37, %v16120_v51  ;;  %v7461_v21 = vsel %vm7374_vm11, %v5979_v11, %v14794_v29  ;;  %v5925_v3 = vsel %vm5069_vm12, %v5924_v8, %v5920_v52  ;;  %v16764_v46 = vld [vmem:[#allocation168_spill] sm:$0xff]  ;;  %v15030_v29 = vpop.permute.xlu1 %4233  ;;  %v15032_v13 = vpop.permute.xlu0 %4284 }
 0x5d1   :  { %v7454_v28 = vsel %vm7374_vm11, %v14790_v49, %v16762_v57  ;;  %v6046_v14 = vrot.slane %v16763_v33, %v16120_v51  ;;  %v6923_v4 = vrot.slane %v16764_v46, %v16122_v25  ;;  %v7701_v60 = vsel %vm639_vm6, %v7547_v35, 0.0  ;;  %v16771_v35 = vld [vmem:[#allocation13_spill] sm:$0xff] }
 0x5d2   :  { %v7462_v30 = vsel %vm7376_vm0, %v5988_v31, %v7461_v21  ;;  %v6932_v37 = vrot.slane %v14692_v0, %v16122_v25  ;;  %v7698_v49 = vsel %vm639_vm6, %v7540_v16, 0.0  ;;  %v7455_v40 = vsel %vm7376_vm0, %v5916_v1, %v7454_v28  ;;  %v16770_v31 = vld [vmem:[#allocation176_spill] sm:$0xff]  ;;  %v16772_v1 = vld [vmem:[#allocation137_spill] sm:$0xff] }
 0x5d3   :  { %7702 = vadd.xlane.f32.xlu0 %v7701_v60  ;;  %v7463_v36 = vsel %vm7378_vm1, %v5997_v7, %v7462_v30  ;;  %v6050_v24 = vrot.slane %v16765_v6, %v16122_v25  ;;  %v6924_v15 = vsel %vm5069_vm12, %v6923_v4, %v6919_v50  ;;  %v6055_v19 = vrot.slane %v16766_v54, %v16120_v51  ;;  %v16773_v50 = vld [vmem:[#allocation52_spill] sm:$0xff] }
 0x5d4   :  { %7699 = vadd.xlane.f32.xlu1 %v7698_v49  ;;  %v7456_v0 = vsel %vm7378_vm1, %v5925_v3, %v7455_v40  ;;  %v6978_v52 = vsel %vm5069_vm12, %v6977_v10, %v6973_v26  ;;  %v6064_v9 = vrot.slane %v4192_v63, %v16120_v51  ;;  %v6933_v47 = vsel %vm5069_vm12, %v6932_v37, %v6928_v38  ;;  %v15065_v53 = vpop.permute.xlu1 %4281  ;;  %v16775_v3 = vld [vmem:[#allocation181_spill] sm:$0xff]  ;;  %v16776_v37 = vld [vmem:[#allocation178_spill] sm:$0xff] }
 0x5d5   :  { %v7552_v62 = vsel %vm7374_vm11, %v14871_v39, %v14718_v58  ;;  %v6051_v44 = vsel %vm5069_vm12, %v6050_v24, %v6046_v14  ;;  %v6982_v11 = vrot.slane %v16767_v20, %v16120_v51  ;;  %v6059_v32 = vrot.slane %v16768_v56, %v16122_v25  ;;  %v4819_v58 = vpop.permute.xlu0 %4818  ;;  %v16777_v24 = vld [vmem:[#allocation182_spill] sm:$0xff] }
 0x5d6   :  { %v7665_v23 = vsel %vm639_vm6, %v7463_v36, 0.0  ;;  %v6991_v10 = vrot.slane %v14766_v2, %v16120_v51  ;;  %v6068_v26 = vrot.slane %v14980_v5, %v16122_v25  ;;  %v7662_v39 = vsel %vm639_vm6, %v7456_v0, 0.0  ;;  %v16780_v20 = vld [vmem:[#allocation206_spill] sm:$0xff] }
 0x5d7   :  { %7666 = vadd.xlane.f32.xlu0 %v7665_v23  ;;  %v7553_v12 = vsel %vm7376_vm0, %v6924_v15, %v7552_v62  ;;  %v7467_v8 = vsel %vm7372_vm2, %v14797_v59, %v16769_v55  ;;  %v6986_v63 = vrot.slane %v16770_v31, %v16122_v25  ;;  %v6060_v2 = vsel %vm5069_vm12, %v6059_v32, %v6055_v19  ;;  %v16774_v59 = vld [vmem:[#allocation205_spill] sm:$0xff]  ;;  %v16778_v15 = vld [vmem:[#allocation184_spill] sm:$0xff]  ;;  %v16781_v55 = vld [vmem:[#allocation322_spill] sm:$0xff] }
 0x5d8   :  { %7663 = vadd.xlane.f32.xlu1 %v7662_v39  ;;  %v7554_v5 = vsel %vm7378_vm1, %v6933_v47, %v7553_v12  ;;  %v7049_v17 = vrot.slane %v16771_v35, %v16122_v25  ;;  %v7045_v43 = vrot.slane %v16772_v1, %v16120_v51  ;;  %v6995_v16 = vrot.slane %v16773_v50, %v16122_v25  ;;  %v4816_v46 = vpop.permute.xlu1 %4815  ;;  %v16782_v31 = vld [vmem:[#allocation27_spill] sm:$0xff] }
 0x5d9   :  { %v6069_v7 = vsel %vm5069_vm12, %v6068_v26, %v6064_v9  ;;  %v7558_v38 = vsel %vm7372_vm2, %v6978_v52, %v16774_v59  ;;  %v6987_v21 = vsel %vm5069_vm12, %v6986_v63, %v6982_v11  ;;  %v7054_v57 = vrot.slane %v16775_v3, %v16120_v51  ;;  %v4867_v4 = vpop.permute.xlu0 %4866  ;;  %v16779_v52 = vld [vmem:[#allocation201_spill] sm:$0xff] }
 0x5da   :  { %v7468_v28 = vsel %vm7374_vm11, %v6051_v44, %v7467_v8  ;;  %v6996_v33 = vsel %vm5069_vm12, %v6995_v16, %v6991_v10  ;;  %v7063_v14 = vrot.slane %v14816_v34, %v16120_v51  ;;  %v7704_v60 = vsel %vm639_vm6, %v7554_v5, 0.0  ;;  %v16783_v5 = vld [vmem:[#allocation320_spill] sm:$0xff]  ;;  %v16786_v59 = vld [vmem:[#allocation325_spill] sm:$0xff] }
 0x5db   :  { %v7469_v30 = vsel %vm7376_vm0, %v6060_v2, %v7468_v28  ;;  %v7058_v49 = vrot.slane %v16776_v37, %v16122_v25  ;;  %v7004_v36 = vrot.slane %v4819_v58, %v16122_v25  ;;  %v7000_v40 = vrot.slane %v4816_v46, %v16120_v51  ;;  %v16785_v16 = vld [vmem:[#allocation324_spill] sm:$0xff] }
 0x5dc   :  { %7705 = vadd.xlane.f32.xlu1 %v7704_v60  ;;  %v7470_v6 = vsel %vm7378_vm1, %v6069_v7, %v7469_v30  ;;  %v7562_v34 = vsel %vm7366_vm13, %v16778_v15, %v16777_v24  ;;  %v7050_v54 = vsel %vm5069_vm12, %v7049_v17, %v7045_v43  ;;  %v7067_v19 = vrot.slane %v14769_v18, %v16122_v25  ;;  %v4864_v32 = vpop.permute.xlu1 %4863  ;;  %v16784_v17 = vld [vmem:[#allocation321_spill] sm:$0xff] }
 0x5dd   :  { %v7559_v0 = vsel %vm7374_vm11, %v6987_v21, %v7558_v38  ;;  %v7563_v9 = vsel %vm7368_vm14, %v16779_v52, %v7562_v34  ;;  %v7059_v47 = vsel %vm5069_vm12, %v7058_v49, %v7054_v57  ;;  %v7005_v62 = vsel %vm5069_vm12, %v7004_v36, %v7000_v40  ;;  %v15114_v23 = vpop.permute.xlu0 %4908  ;;  %v16787_v21 = vld [vmem:[#allocation20_spill] sm:$0xff]  ;;  %v16790_v36 = vld [vmem:[#allocation22_spill] sm:$0xff] }
 0x5de   :  { %v7560_v44 = vsel %vm7376_vm0, %v6996_v33, %v7559_v0  ;;  %v7564_v11 = vsel %vm7370_vm15, %v16780_v20, %v7563_v9  ;;  %v7068_v56 = vsel %vm5069_vm12, %v7067_v19, %v7063_v14  ;;  %v7668_v18 = vsel %vm639_vm6, %v7470_v6, 0.0  ;;  %v16788_v14 = vld [vmem:[#allocation319_spill] sm:$0xff]  ;;  %v16791_v6 = vld [vmem:[#allocation344_spill] sm:$0xff]  ;;  %v16793_v52 = vld [vmem:[#allocation18_spill] sm:$0xff] }
 0x5df   :  { %v7561_v10 = vsel %vm7378_vm1, %v7005_v62, %v7560_v44  ;;  %v7565_v26 = vsel %vm7372_vm2, %v7050_v54, %v7564_v11  ;;  %v7076_v58 = vrot.slane %v4867_v4, %v16122_v25  ;;  %v7072_v39 = vrot.slane %v4864_v32, %v16120_v51  ;;  %v16789_v4 = vld [vmem:[#allocation323_spill] sm:$0xff]  ;;  %v16794_v11 = vld [vmem:[#allocation346_spill] sm:$0xff]  ;;  %v16795_v32 = vld [vmem:[#allocation348_spill] sm:$0xff] }
 0x5e0   :  { %7669 = vadd.xlane.f32.xlu1 %v7668_v18  ;;  %v7707_v12 = vsel %vm639_vm6, %v7561_v10, 0.0  ;;  %v6082_v8 = vrot.slane %v16781_v55, %v16120_v51  ;;  %v6154_v63 = vrot.slane %v16782_v31, %v16120_v51  ;;  %v7566_v2 = vsel %vm7374_vm11, %v7059_v47, %v7565_v26  ;;  %v15139_v57 = vpop.permute.xlu1 %4905  ;;  %v16792_v54 = vld [vmem:[#allocation343_spill] sm:$0xff] }
 0x5e1   :  { %7708 = vadd.xlane.f32.xlu0 %v7707_v12  ;;  %v6073_v35 = vrot.slane %v16783_v5, %v16120_v51  ;;  %v6086_v1 = vrot.slane %v16784_v17, %v16122_v25  ;;  %v7077_v43 = vsel %vm5069_vm12, %v7076_v58, %v7072_v39  ;;  %v7567_v50 = vsel %vm7376_vm0, %v7068_v56, %v7566_v2  ;;  %v15141_v28 = vpop.permute.xlu0 %4956  ;;  %v16796_v26 = vld [vmem:[#allocation47_spill] sm:$0xff]  ;;  %v16797_v39 = vld [vmem:[#allocation44_spill] sm:$0xff] }
 0x5e2   :  { %v6145_v7 = vrot.slane %v16785_v16, %v16120_v51  ;;  %v6158_v38 = vrot.slane %v16786_v59, %v16122_v25  ;;  %v7090_v3 = vrot.slane %v16787_v21, %v16120_v51  ;;  %v7568_v33 = vsel %vm7378_vm1, %v7077_v43, %v7567_v50  ;;  %v16798_v55 = vld [vmem:[#allocation87_spill] sm:$0xff]  ;;  %v16802_v50 = vld [vmem:[#allocation46_spill] sm:$0xff] }
 0x5e3   :  { %v6077_v46 = vrot.slane %v16788_v14, %v16122_v25  ;;  %v6149_v60 = vrot.slane %v16789_v4, %v16122_v25  ;;  %v7710_v30 = vsel %vm639_vm6, %v7568_v33, 0.0  ;;  %v6087_v37 = vsel %vm5069_vm12, %v6086_v1, %v6082_v8  ;;  %v16800_v5 = vld [vmem:[#allocation347_spill] sm:$0xff]  ;;  %v16805_v4 = vld [vmem:[#allocation118_spill] sm:$0xff] }
 0x5e4   :  { %v6159_v49 = vsel %vm5069_vm12, %v6158_v38, %v6154_v63  ;;  %v7081_v40 = vrot.slane %v16790_v36, %v16120_v51  ;;  %v7094_v24 = vrot.slane %v16791_v6, %v16122_v25  ;;  %7711 = vadd.xlane.f32.xlu1 %v7710_v30  ;;  %v7085_v19 = vrot.slane %v16792_v54, %v16122_v25  ;;  %v15162_v47 = vpop.permute.xlu1 %4953  ;;  %v16799_v63 = vld [vmem:[#allocation345_spill] sm:$0xff]  ;;  %v16801_v17 = vld [vmem:[#allocation127_spill] sm:$0xff]  ;;  %v16804_v38 = vld [vmem:[#allocation120_spill] sm:$0xff] }
 0x5e5   :  { %v6078_v15 = vsel %vm5069_vm12, %v6077_v46, %v6073_v35  ;;  %v6150_v34 = vsel %vm5069_vm12, %v6149_v60, %v6145_v7  ;;  %v6091_v9 = vrot.slane %v16793_v52, %v16120_v51  ;;  %v15164_v62 = vpop.permute.xlu0 %4998  ;;  %v7153_v56 = vrot.slane %v16794_v11, %v16120_v51  ;;  %v16803_v7 = vld [vmem:[#allocation86_spill] sm:$0xff]  ;;  %v16806_v30 = vld [vmem:[#allocation143_spill] sm:$0xff]  ;;  %v16810_v52 = vld [vmem:[#allocation140_spill] sm:$0xff] }
 0x5e6   :  { %v7095_v0 = vsel %vm5069_vm12, %v7094_v24, %v7090_v3  ;;  %v7471_v44 = vsel %vm7366_vm13, %v6087_v37, %v6078_v15  ;;  %v7478_v20 = vsel %vm7366_vm13, %v6159_v49, %v6150_v34  ;;  %v7162_v18 = vrot.slane %v16795_v32, %v16120_v51  ;;  %v16808_v24 = vld [vmem:[#allocation165_spill] sm:$0xff]  ;;  %v16809_v54 = vld [vmem:[#allocation94_spill] sm:$0xff] }
 0x5e7   :  { %v7086_v10 = vsel %vm5069_vm12, %v7085_v19, %v7081_v40  ;;  %v6095_v58 = vrot.slane %v16796_v26, %v16122_v25  ;;  %v6163_v12 = vrot.slane %v16797_v39, %v16120_v51  ;;  %v7099_v8 = vrot.slane %v16798_v55, %v16120_v51  ;;  %v16807_v40 = vld [vmem:[#allocation35_spill] sm:$0xff]  ;;  %v16813_v55 = vld [vmem:[#allocation88_spill] sm:$0xff] }
 0x5e8   :  { %v7569_v31 = vsel %vm7366_vm13, %v7095_v0, %v7086_v10  ;;  %v7157_v2 = vrot.slane %v16799_v63, %v16122_v25  ;;  %v7166_v35 = vrot.slane %v16800_v5, %v16122_v25  ;;  %v6100_v1 = vrot.slane %v16801_v17, %v16120_v51  ;;  %v15193_v3 = vpop.permute.xlu1 %4995  ;;  %v16815_v17 = vld [vmem:[#allocation164_spill] sm:$0xff] }
 0x5e9   :  { %v6096_v43 = vsel %vm5069_vm12, %v6095_v58, %v6091_v9  ;;  %v6167_v16 = vrot.slane %v16802_v50, %v16122_v25  ;;  %v7103_v59 = vrot.slane %v16803_v7, %v16122_v25  ;;  %v6172_v21 = vrot.slane %v16804_v38, %v16120_v51  ;;  %v15195_v33 = vpop.permute.xlu0 %5046  ;;  %v16816_v50 = vld [vmem:[#allocation142_spill] sm:$0xff] }
 0x5ea   :  { %v15198_v14 = vsel %vm5069_vm12, %v7157_v2, %v7153_v56  ;;  %v15201_v46 = vsel %vm5069_vm12, %v7166_v35, %v7162_v18  ;;  %v6104_v60 = vrot.slane %v16805_v4, %v16122_v25  ;;  %v7108_v37 = vrot.slane %v16806_v30, %v16120_v51  ;;  %v16811_v56 = vld [vmem:[#allocation162_spill] sm:$0xff]  ;;  %v16814_v2 = vld [vmem:[#allocation144_spill] sm:$0xff] }
 0x5eb   :  { %v6168_v49 = vsel %vm5069_vm12, %v6167_v16, %v6163_v12  ;;  %v7104_v36 = vsel %vm5069_vm12, %v7103_v59, %v7099_v8  ;;  %v6176_v6 = vrot.slane %v16807_v40, %v16122_v25  ;;  %v6109_v15 = vrot.slane %v16808_v24, %v16120_v51  ;;  %v16812_v18 = vld [vmem:[#allocation166_spill] sm:$0xff]  ;;  %v16817_v59 = vld [vmem:[#allocation180_spill] sm:$0xff] }
 0x5ec   :  { %v7472_v34 = vsel %vm7368_vm14, %v6096_v43, %v7471_v44  ;;  %v7171_v19 = vrot.slane %v16809_v54, %v16120_v51  ;;  %v6105_v0 = vsel %vm5069_vm12, %v6104_v60, %v6100_v1  ;;  %v7112_v9 = vrot.slane %v16810_v52, %v16122_v25  ;;  %v15226_v44 = vpop.permute.xlu1 %5043 }
 0x5ed   :  { %v6177_v11 = vsel %vm5069_vm12, %v6176_v6, %v6172_v21  ;;  %v6113_v32 = vrot.slane %v16811_v56, %v16122_v25  ;;  %v6181_v10 = vrot.slane %v16812_v18, %v16120_v51  ;;  %v6127_v26 = vrot.slane %v15030_v29, %v16120_v51  ;;  %v4243_v58 = vpop.permute.xlu0 %4242  ;;  %v16818_v6 = vld [vmem:[#allocation169_spill] sm:$0xff] }
 0x5ee   :  { %v7479_v39 = vsel %vm7368_vm14, %v6168_v49, %v7478_v20  ;;  %v7570_v12 = vsel %vm7368_vm14, %v7104_v36, %v7569_v31  ;;  %v7175_v8 = vrot.slane %v16813_v55, %v16122_v25  ;;  %v7113_v63 = vsel %vm5069_vm12, %v7112_v9, %v7108_v37  ;;  %v16821_v55 = vld [vmem:[#allocation170_spill] sm:$0xff] }
 0x5ef   :  { %v7180_v5 = vrot.slane %v16814_v2, %v16120_v51  ;;  %v6114_v35 = vsel %vm5069_vm12, %v6113_v32, %v6109_v15  ;;  %v6185_v29 = vrot.slane %v16815_v17, %v16122_v25  ;;  %v6131_v1 = vrot.slane %v15004_v22, %v16122_v25 }
 0x5f0   :  { %v7176_v20 = vsel %vm5069_vm12, %v7175_v8, %v7171_v19  ;;  %v7473_v31 = vsel %vm7370_vm15, %v6105_v0, %v7472_v34  ;;  %v7480_v43 = vsel %vm7370_vm15, %v6177_v11, %v7479_v39  ;;  %v7184_v16 = vrot.slane %v16816_v50, %v16122_v25  ;;  %v4240_v22 = vpop.permute.xlu1 %4239  ;;  %v16819_v34 = vld [vmem:[#allocation200_spill] sm:$0xff]  ;;  %v16820_v39 = vld [vmem:[#allocation191_spill] sm:$0xff] }
 0x5f1   :  { %v6186_v7 = vsel %vm5069_vm12, %v6185_v29, %v6181_v10  ;;  %v7117_v38 = vrot.slane %v16817_v59, %v16120_v51  ;;  %v6132_v21 = vsel %vm5069_vm12, %v6131_v1, %v6127_v26  ;;  %v6199_v4 = vrot.slane %v15065_v53, %v16120_v51  ;;  %v4291_v60 = vpop.permute.xlu0 %4290 }
 0x5f2   :  { %v7571_v30 = vsel %vm7370_vm15, %v7113_v63, %v7570_v12  ;;  %v7474_v37 = vsel %vm7372_vm2, %v6114_v35, %v7473_v31  ;;  %v6140_v49 = vrot.slane %v4243_v58, %v16122_v25  ;;  %v6136_v36 = vrot.slane %v4240_v22, %v16120_v51  ;;  %v16822_v63 = vld [vmem:[#allocation58_spill] sm:$0xff] }
 0x5f3   :  { %v7185_v40 = vsel %vm5069_vm12, %v7184_v16, %v7180_v5  ;;  %v7121_v24 = vrot.slane %v16818_v6, %v16122_v25  ;;  %v6203_v15 = vrot.slane %v15032_v13, %v16122_v25  ;;  %v7475_v53 = vsel %vm7374_vm11, %v16819_v34, %v7474_v37  ;;  %v16823_v34 = vld [vmem:[#allocation89_spill] sm:$0xff] }
 0x5f4   :  { %v7481_v54 = vsel %vm7372_vm2, %v6186_v7, %v7480_v43  ;;  %v7126_v19 = vrot.slane %v14855_v27, %v16120_v51  ;;  %v6141_v0 = vsel %vm5069_vm12, %v6140_v49, %v6136_v36  ;;  %v7476_v52 = vsel %vm7376_vm0, %v6132_v21, %v7475_v53  ;;  %v4288_v13 = vpop.permute.xlu1 %4287 }
 0x5f5   :  { %v7122_v9 = vsel %vm5069_vm12, %v7121_v24, %v7117_v38  ;;  %v6204_v11 = vsel %vm5069_vm12, %v6203_v15, %v6199_v4  ;;  %v7135_v56 = vrot.slane %v15139_v57, %v16120_v51  ;;  %v4915_v32 = vpop.permute.xlu0 %4914  ;;  %v7477_v18 = vsel %vm7378_vm1, %v6141_v0, %v7476_v52 }
 0x5f6   :  { %v7130_v10 = vrot.slane %v14818_v45, %v16122_v25  ;;  %v6212_v27 = vrot.slane %v4291_v60, %v16122_v25  ;;  %v6208_v26 = vrot.slane %v4288_v13, %v16120_v51  ;;  %v7671_v58 = vsel %vm639_vm6, %v7477_v18, 0.0 }
 0x5f7   :  { %v7193_v12 = vrot.slane %v16820_v39, %v16122_v25  ;;  %v7189_v8 = vrot.slane %v16821_v55, %v16120_v51  ;;  %v7139_v57 = vrot.slane %v15114_v23, %v16122_v25  ;;  %7672 = vadd.xlane.f32.xlu0 %v7671_v58  ;;  %v7482_v2 = vsel %vm7374_vm11, %v16822_v63, %v7481_v54  ;;  %v16828_v58 = vld [vmem:[#allocation147_spill] sm:$0xff] }
 0x5f8   :  { %v7131_v45 = vsel %vm5069_vm12, %v7130_v10, %v7126_v19  ;;  %v7198_v5 = vrot.slane %v14894_v42, %v16120_v51  ;;  %v6213_v35 = vsel %vm5069_vm12, %v6212_v27, %v6208_v26  ;;  %v7483_v17 = vsel %vm7376_vm0, %v6204_v11, %v7482_v2  ;;  %v4912_v31 = vpop.permute.xlu1 %4911  ;;  %v16824_v19 = vld [vmem:[#allocation149_spill] sm:$0xff] }
 0x5f9   :  { %v7572_v29 = vsel %vm7372_vm2, %v7122_v9, %v7571_v30  ;;  %v7140_v1 = vsel %vm5069_vm12, %v7139_v57, %v7135_v56  ;;  %v7207_v23 = vrot.slane %v15162_v47, %v16120_v51  ;;  %v4963_v43 = vpop.permute.xlu0 %4962  ;;  %v7484_v50 = vsel %vm7378_vm1, %v6213_v35, %v7483_v17  ;;  %v16825_v56 = vld [vmem:[#allocation97_spill] sm:$0xff]  ;;  %v16830_v57 = vld [vmem:[#allocation183_spill] sm:$0xff] }
 0x5fa   :  { %v7202_v16 = vrot.slane %v14857_v41, %v16122_v25  ;;  %v7148_v42 = vrot.slane %v4915_v32, %v16122_v25  ;;  %v7144_v7 = vrot.slane %v4912_v31, %v16120_v51  ;;  %v7674_v59 = vsel %vm639_vm6, %v7484_v50, 0.0  ;;  %v16826_v32 = vld [vmem:[#allocation99_spill] sm:$0xff]  ;;  %v16827_v10 = vld [vmem:[#allocation185_spill] sm:$0xff] }
 0x5fb   :  { %v7576_v38 = vsel %vm7366_vm13, %v15201_v46, %v15198_v14  ;;  %v7194_v21 = vsel %vm5069_vm12, %v7193_v12, %v7189_v8  ;;  %v7211_v47 = vrot.slane %v15141_v28, %v16122_v25  ;;  %7675 = vadd.xlane.f32.xlu1 %v7674_v59  ;;  %v7573_v4 = vsel %vm7374_vm11, %v7131_v45, %v7572_v29  ;;  %v16829_v12 = vld [vmem:[#allocation92_spill] sm:$0xff] }
 0x5fc   :  { %v7577_v41 = vsel %vm7368_vm14, %v7176_v20, %v7576_v38  ;;  %v7203_v22 = vsel %vm5069_vm12, %v7202_v16, %v7198_v5  ;;  %v7149_v60 = vsel %vm5069_vm12, %v7148_v42, %v7144_v7  ;;  %v7574_v30 = vsel %vm7376_vm0, %v7140_v1, %v7573_v4  ;;  %v4960_v46 = vpop.permute.xlu1 %4959 }
 0x5fd   :  { %v7578_v37 = vsel %vm7370_vm15, %v7185_v40, %v7577_v41  ;;  %v7212_v14 = vsel %vm5069_vm12, %v7211_v47, %v7207_v23  ;;  %v5005_v49 = vpop.permute.xlu0 %5004  ;;  %v7575_v36 = vsel %vm7378_vm1, %v7149_v60, %v7574_v30  ;;  %v7220_v6 = vrot.slane %v4963_v43, %v16122_v25 }
 0x5fe   :  { %v7579_v28 = vsel %vm7372_vm2, %v7194_v21, %v7578_v37  ;;  %v7216_v20 = vrot.slane %v4960_v46, %v16120_v51  ;;  %v7713_v24 = vsel %vm639_vm6, %v7575_v36, 0.0  ;;  %v7234_v40 = vrot.slane %v16823_v34, %v16120_v51  ;;  %v7725_v34 = vld [vmem:[#allocation2] sm:$0xff] }
 0x5ff   :  { %7714 = vadd.xlane.f32.xlu0 %v7713_v24  ;;  %v7580_v15 = vsel %vm7374_vm11, %v7203_v22, %v7579_v28  ;;  %v7243_v0 = vrot.slane %v16824_v19, %v16120_v51  ;;  %v7225_v13 = vrot.slane %v16825_v56, %v16120_v51  ;;  %v7238_v18 = vrot.slane %v16826_v32, %v16122_v25 }
 0x600   :  { %v7221_v53 = vsel %vm5069_vm12, %v7220_v6, %v7216_v20  ;;  %v7581_v54 = vsel %vm7376_vm0, %v7212_v14, %v7580_v15  ;;  %v5002_v52 = vpop.permute.xlu1 %5001  ;;  %v7252_v27 = vrot.slane %v16827_v10, %v16120_v51  ;;  %v7247_v39 = vrot.slane %v16828_v58, %v16122_v25 }
 0x601   :  { %v5053_v9 = vpop.permute.xlu0 %5052  ;;  %v7582_v11 = vsel %vm7378_vm1, %v7221_v53, %v7581_v54  ;;  %v7229_v55 = vrot.slane %v16829_v12, %v16122_v25  ;;  %v7239_v8 = vsel %vm5069_vm12, %v7238_v18, %v7234_v40  ;;  %v7256_v63 = vrot.slane %v16830_v57, %v16122_v25  ;;  %v7726_v40 = vld [vmem:[#allocation2 + $0x8] sm:$0xff] }
 0x602   :  { %v7716_v26 = vsel %vm639_vm6, %v7582_v11, 0.0  ;;  %v7270_v2 = vrot.slane %v15193_v3, %v16120_v51  ;;  %v7248_v45 = vsel %vm5069_vm12, %v7247_v39, %v7243_v0  ;;  %v7279_v5 = vrot.slane %v5002_v52, %v16120_v51 }
 0x603   :  { %7717 = vadd.xlane.f32.xlu1 %v7716_v26  ;;  %v7230_v29 = vsel %vm5069_vm12, %v7229_v55, %v7225_v13  ;;  %v7257_v1 = vsel %vm5069_vm12, %v7256_v63, %v7252_v27  ;;  %v7274_v23 = vrot.slane %v15164_v62, %v16122_v25  ;;  %v7283_v43 = vrot.slane %v5005_v49, %v16122_v25 }
 0x604   :  { %v5050_v35 = vpop.permute.xlu1 %5049  ;;  %v7583_v31 = vsel %vm7366_vm13, %v7239_v8, %v7230_v29  ;;  %v7342_v16 = vrot.slane %v15226_v44, %v16120_v51  ;;  %v7346_v21 = vrot.slane %v15195_v33, %v16122_v25  ;;  %v7355_v41 = vrot.slane %v5053_v9, %v16122_v25 }
 0x605   :  { %v5011_v17 = vpop.permute.xlu0 %5010  ;;  %v7584_v50 = vsel %vm7368_vm14, %v7248_v45, %v7583_v31  ;;  %v7275_v3 = vsel %vm5069_vm12, %v7274_v23, %v7270_v2  ;;  %v7284_v7 = vsel %vm5069_vm12, %v7283_v43, %v7279_v5  ;;  %v7351_v59 = vrot.slane %v5050_v35, %v16120_v51 }
 0x606   :  { %v7585_v42 = vsel %vm7370_vm15, %v7257_v1, %v7584_v50  ;;  %v7292_v47 = vrot.slane %v5011_v17, %v16122_v25  ;;  %v7347_v60 = vsel %vm5069_vm12, %v7346_v21, %v7342_v16  ;;  %v9282_v53 = vpack.c.bf16 %v7726_v40, %v7725_v34 }
 0x607   :  { %v7586_v62 = vsel %vm7372_vm2, %v14944_v48, %v7585_v42  ;;  %v7356_v48 = vsel %vm5069_vm12, %v7355_v41, %v7351_v59  ;;  %v7594_v28 = vsel %vm7374_vm11, %v7347_v60, %v14978_v61 }
 0x608   :  { %v5008_v38 = vpop.permute.xlu1 %5007  ;;  %v7587_v22 = vsel %vm7374_vm11, %v7275_v3, %v7586_v62  ;;  %v7595_v20 = vsel %vm7376_vm0, %v7356_v48, %v7594_v28  ;;  %9283 = vmatprep.subr.bf16.mxu0 %v9282_v53 }
 0x609   :  { %v7288_v4 = vrot.slane %v5008_v38, %v16120_v51  ;;  %v5059_v44 = vpop.permute.xlu0 %5058  ;;  %v7588_v37 = vsel %vm7376_vm0, %v7284_v7, %v7587_v22  ;;  %9285 = vmatpush3.bf16.msra.mxu0 %v9282_v53 }
 0x60a   :  { %v7364_v46 = vrot.slane %v5059_v44, %v16122_v25 }
 0x60b   :  { %v7293_v30 = vsel %vm5069_vm12, %v7292_v47, %v7288_v4 }
 0x60c   :  { %v5056_v14 = vpop.permute.xlu1 %5055  ;;  %v7589_v33 = vsel %vm7378_vm1, %v7293_v30, %v7588_v37 }
 0x60d   :  { %v7360_v49 = vrot.slane %v5056_v14, %v16120_v51  ;;  %v7719_v36 = vsel %vm639_vm6, %v7589_v33, 0.0 }
 0x60e   :  { %7720 = vadd.xlane.f32.xlu0 %v7719_v36 }
 0x60f   :  { %v7365_v6 = vsel %vm5069_vm12, %v7364_v46, %v7360_v49 }
 0x610   :  { %v7596_v24 = vsel %vm7378_vm1, %v7365_v6, %v7595_v20 }
 0x611   :  { %v7722_v15 = vsel %vm639_vm6, %v7596_v24, 0.0 }
 0x612   :  { %7723 = vadd.xlane.f32.xlu1 %v7722_v15 }
 0x636   :  { %v7634_v54 = vpop.xlane.xlu0 %7633 }
 0x637   :  { %v7773_v3 = vrot.slane %v7634_v54, %v16122_v25 }
 0x63a   :  { %v7637_v0 = vpop.xlane.xlu0 %7636 }
 0x63b   :  { %v7778_v29 = vrot.slane %v7637_v0, %v16120_v51 }
 0x63e   :  { %v7643_v9 = vpop.xlane.xlu0 %7642 }
 0x63f   :  { %v7631_v19 = vpop.xlane.xlu1 %7630  ;;  %v7787_v31 = vrot.slane %v7643_v9, %v16120_v51 }
 0x640   :  { %v7769_v1 = vrot.slane %v7631_v19, %v16120_v51 }
 0x642   :  { %v15379_v11 = vpop.xlane.xlu0 %7678  ;;  %v7774_v47 = vsel %vm5069_vm12, %v7773_v3, %v7769_v1  ;;  %v8013_v3 = vld [vmem:[%s15631_s3] sm:$0xff] }
 0x643   :  { %v7640_v52 = vpop.xlane.xlu1 %7639 }
 0x644   :  { %v7782_v35 = vrot.slane %v7640_v52, %v16122_v25 }
 0x646   :  { %v7783_v16 = vsel %vm5069_vm12, %v7782_v35, %v7778_v29 }
 0x647   :  { %v15383_v13 = vpop.xlane.xlu0 %7684  ;;  %v7910_v44 = vsel %vm7366_vm13, %v7783_v16, %v7774_v47  ;;  %v9111_v47 = vld [vmem:[%s15630_s2] ss:$0 sm:$0xff] }
 0x648   :  { %v7646_v61 = vpop.xlane.xlu1 %7645  ;;  %v7850_v53 = vrot.slane %v15383_v13, %v16120_v51 }
 0x649   :  { %v7791_v17 = vrot.slane %v7646_v61, %v16122_v25 }
 0x64b   :  { %v7649_v18 = vpop.xlane.xlu0 %7648  ;;  %v7792_v59 = vsel %vm5069_vm12, %v7791_v17, %v7787_v31 }
 0x64c   :  { %v15381_v56 = vpop.xlane.xlu1 %7681  ;;  %v7796_v42 = vrot.slane %v7649_v18, %v16120_v51  ;;  %v7911_v37 = vsel %vm7368_vm14, %v7792_v59, %v7910_v44  ;;  %v8453_v59 = vld [vmem:[%s15639_s11] sm:$0xff] }
 0x64d   :  { %v7845_v54 = vrot.slane %v15381_v56, %v16122_v25 }
 0x64f   :  { %v15387_v27 = vpop.xlane.xlu0 %7690 }
 0x650   :  { %v15385_v32 = vpop.xlane.xlu1 %7687  ;;  %v7859_v52 = vrot.slane %v15387_v27, %v16120_v51 }
 0x651   :  { %v7854_v34 = vrot.slane %v15385_v32, %v16122_v25  ;;  %v7841_v32 = vrot.slane %v15379_v11, %v16120_v51 }
 0x653   :  { %v7655_v58 = vpop.xlane.xlu0 %7654  ;;  %v7855_v18 = vsel %vm5069_vm12, %v7854_v34, %v7850_v53  ;;  %v7846_v27 = vsel %vm5069_vm12, %v7845_v54, %v7841_v32  ;;  %v8126_v34 = vld [vmem:[%s15633_s5 + $0x30] sm:$0xff]  ;;  %v8235_v53 = vld [vmem:[%s15635_s7] sm:$0xff]  ;;  %v8236_v54 = vld [vmem:[%s15635_s7 + $0x8] sm:$0xff] }
 0x654   :  { %v7652_v10 = vpop.xlane.xlu1 %7651  ;;  %v7805_v38 = vrot.slane %v7655_v58, %v16120_v51  ;;  %v7917_v11 = vsel %vm7366_vm13, %v7855_v18, %v7846_v27  ;;  %vm8031_vm13 = vcmask 1045504   ;;  %v8130_v32 = vld [vmem:[%s15633_s5 + $0x50] sm:$0xff]  ;;  %v8131_v18 = vld [vmem:[%s15633_s5 + $0x58] sm:$0x3] }
 0x655   :  { %v7800_v23 = vrot.slane %v7652_v10, %v16122_v25 }
 0x657   :  { %v7801_v4 = vsel %vm5069_vm12, %v7800_v23, %v7796_v42  ;;  %v8016_v42 = vld [vmem:[%s15631_s3 + $0x18] sm:$0x3f] }
 0x658   :  { %v15389_v12 = vpop.xlane.xlu0 %7696  ;;  %v7912_v14 = vsel %vm7370_vm15, %v7801_v4, %v7911_v37 }
 0x659   :  { %v7694_v26 = vpop.xlane.xlu1 %7693  ;;  %v7868_v13 = vrot.slane %v15389_v12, %v16120_v51 }
 0x65a   :  { %v7863_v40 = vrot.slane %v7694_v26, %v16122_v25 }
 0x65c   :  { %v7661_v8 = vpop.xlane.xlu0 %7660  ;;  %v7864_v56 = vsel %vm5069_vm12, %v7863_v40, %v7859_v52  ;;  %v8127_v40 = vld [vmem:[%s15633_s5 + $0x38] sm:$0xff]  ;;  %v8128_v52 = vld [vmem:[%s15633_s5 + $0x40] sm:$0xff] }
 0x65d   :  { %v7658_v39 = vpop.xlane.xlu1 %7657  ;;  %v7814_v41 = vrot.slane %v7661_v8, %v16120_v51 }
 0x65e   :  { %v7809_v43 = vrot.slane %v7658_v39, %v16122_v25 }
 0x660   :  { %v7703_v63 = vpop.xlane.xlu0 %7702  ;;  %v7810_v22 = vsel %vm5069_vm12, %v7809_v43, %v7805_v38  ;;  %v8120_v38 = vld [vmem:[%s15633_s5] sm:$0xff] }
 0x661   :  { %v7700_v55 = vpop.xlane.xlu1 %7699  ;;  %v7913_v28 = vsel %vm7372_vm2, %v7810_v22, %v7912_v14  ;;  %v7877_v26 = vrot.slane %v7703_v63, %v16120_v51 }
 0x662   :  { %v7872_v19 = vrot.slane %v7700_v55, %v16122_v25 }
 0x664   :  { %v7667_v45 = vpop.xlane.xlu0 %7666  ;;  %v7873_v39 = vsel %vm5069_vm12, %v7872_v19, %v7868_v13  ;;  %v9322_v19 = vpack.c.bf16 %v8236_v54, %v8235_v53  ;;  %v9316_v13 = vpack.c.bf16 %v8131_v18, %v8130_v32  ;;  %v8454_v18 = vld [vmem:[%s15639_s11 + $0x8] sm:$0x3] }
 0x665   :  { %v7664_v57 = vpop.xlane.xlu1 %7663  ;;  %v7823_v60 = vrot.slane %v7667_v45, %v16120_v51 }
 0x666   :  { %v7818_v7 = vrot.slane %v7664_v57, %v16122_v25 }
 0x668   :  { %v7819_v48 = vsel %vm5069_vm12, %v7818_v7, %v7814_v41 }
 0x669   :  { %v7706_v2 = vpop.xlane.xlu1 %7705  ;;  %v7914_v6 = vsel %vm7374_vm11, %v7819_v48, %v7913_v28  ;;  %v8123_v28 = vld [vmem:[%s15633_s5 + $0x18] sm:$0xff] }
 0x66a   :  { %v7881_v9 = vrot.slane %v7706_v2, %v16122_v25  ;;  %v7918_v2 = vsel %vm7368_vm14, %v7864_v56, %v7917_v11  ;;  %vm8024_vm14 = vcmask 244736   ;;  %v9116_v56 = vld [vmem:[%s15632_s4] ss:$0 sm:$0xff] }
 0x66b   :  { %v7919_v63 = vsel %vm7370_vm15, %v7873_v39, %v7918_v2 }
 0x66c   :  { %v7882_v8 = vsel %vm5069_vm12, %v7881_v9, %v7877_v26  ;;  %v8129_v9 = vld [vmem:[%s15633_s5 + $0x48] sm:$0xff] }
 0x66d   :  { %v7670_v5 = vpop.xlane.xlu1 %7669  ;;  %v7920_v17 = vsel %vm7372_vm2, %v7882_v8, %v7919_v63 }
 0x66e   :  { %v7709_v50 = vpop.xlane.xlu0 %7708  ;;  %v7827_v62 = vrot.slane %v7670_v5, %v16122_v25 }
 0x66f   :  { %v7886_v55 = vrot.slane %v7709_v50, %v16120_v51 }
 0x670   :  { %v7828_v46 = vsel %vm5069_vm12, %v7827_v62, %v7823_v60  ;;  %v8121_v62 = vld [vmem:[%s15633_s5 + $0x8] sm:$0xff] }
 0x671   :  { %v7712_v21 = vpop.xlane.xlu1 %7711  ;;  %v7915_v24 = vsel %vm7376_vm0, %v7828_v46, %v7914_v6  ;;  %v8124_v6 = vld [vmem:[%s15633_s5 + $0x20] sm:$0xff] }
 0x672   :  { %v7890_v10 = vrot.slane %v7712_v21, %v16122_v25  ;;  %v9296_v21 = vpack.c.bf16 %v8121_v62, %v8120_v38  ;;  %v9122_v38 = vld [vmem:[#allocation5] ss:$0 sm:$0xff] }
 0x674   :  { %v7891_v45 = vsel %vm5069_vm12, %v7890_v10, %v7886_v55  ;;  %9297 = vmatprep.subr.bf16.mxu0 %v9296_v21 }
 0x675   :  { %v7921_v23 = vsel %vm7374_vm11, %v7891_v45, %v7920_v17  ;;  %v8239_v17 = vld [vmem:[%s15635_s7 + $0x20] sm:$0xff] }
 0x684   :  { %v7673_v30 = vpop.xlane.xlu0 %7672 }
 0x685   :  { %v7832_v49 = vrot.slane %v7673_v30, %v16120_v51 }
 0x688   :  { %v7676_v33 = vpop.xlane.xlu1 %7675 }
 0x689   :  { %v7836_v36 = vrot.slane %v7676_v33, %v16122_v25 }
 0x68b   :  { %v7837_v20 = vsel %vm5069_vm12, %v7836_v36, %v7832_v49  ;;  %v8122_v36 = vld [vmem:[%s15633_s5 + $0x10] sm:$0xff] }
 0x68c   :  { %v7916_v15 = vsel %vm7378_vm1, %v7837_v20, %v7915_v24  ;;  %v7715_v61 = vpop.xlane.xlu0 %7714  ;;  %v9300_v20 = vpack.c.bf16 %v8123_v28, %v8122_v36  ;;  %v8125_v24 = vld [vmem:[%s15633_s5 + $0x28] sm:$0xff]  ;;  %v8351_v28 = vld [vmem:[%s15637_s9 + $0x18] sm:$0x3f] }
 0x68d   :  { %9196 = vmatprep.mubr.msk.f32.mxu0 %vm639_vm6, %v7916_v15  ;;  %v7895_v12 = vrot.slane %v7715_v61, %v16120_v51  ;;  %v9304_v15 = vpack.c.bf16 %v8125_v24, %v8124_v6  ;;  %v9312_v61 = vpack.c.bf16 %v8129_v9, %v8128_v52 }
 0x690   :  { %v7718_v0 = vpop.xlane.xlu1 %7717 }
 0x691   :  { %v7899_v58 = vrot.slane %v7718_v0, %v16122_v25  ;;  %v9308_v0 = vpack.c.bf16 %v8127_v40, %v8126_v34 }
 0x693   :  { %v7900_v5 = vsel %vm5069_vm12, %v7899_v58, %v7895_v12 }
 0x694   :  { %v7922_v43 = vsel %vm7376_vm0, %v7900_v5, %v7921_v23  ;;  %v8237_v5 = vld [vmem:[%s15635_s7 + $0x10] sm:$0xff] }
 0x69b   :  { %v7721_v57 = vpop.xlane.xlu0 %7720 }
 0x69c   :  { %v7904_v29 = vrot.slane %v7721_v57, %v16120_v51  ;;  %v8014_v51 = vld [vmem:[%s15631_s3 + $0x8] sm:$0xff] }
 0x69d   :  { %v9286_v16 = vpack.c.bf16 %v8014_v51, %v8013_v3  ;;  %v8243_v3 = vld [vmem:[%s15635_s7 + $0x40] sm:$0xff]  ;;  %v8244_v51 = vld [vmem:[%s15635_s7 + $0x48] sm:$0xff] }
 0x69f   :  { %v7724_v35 = vpop.xlane.xlu1 %7723  ;;  %9287 = vmatprep.subr.bf16.mxu1 %v9286_v16 }
 0x6a0   :  { %v7908_v1 = vrot.slane %v7724_v35, %v16122_v25  ;;  %v8015_v25 = vld [vmem:[%s15631_s3 + $0x10] sm:$0xff]  ;;  %9289 = vmatpush3.bf16.msra.mxu1 %v9286_v16  ;;  %v8238_v35 = vld [vmem:[%s15635_s7 + $0x18] sm:$0xff] }
 0x6a1   :  { %v9290_v7 = vpack.c.bf16 %v8016_v42, %v8015_v25  ;;  %v9338_v25 = vpack.c.bf16 %v8244_v51, %v8243_v3  ;;  %v8245_v16 = vld [vmem:[%s15635_s7 + $0x50] sm:$0xff]  ;;  %v8246_v42 = vld [vmem:[%s15635_s7 + $0x58] sm:$0x3] }
 0x6a2   :  { %v7909_v31 = vsel %vm5069_vm12, %v7908_v1, %v7904_v29  ;;  %v9326_v29 = vpack.c.bf16 %v8238_v35, %v8237_v5  ;;  %v8240_v1 = vld [vmem:[%s15635_s7 + $0x28] sm:$0xff] }
 0x6a3   :  { %v7923_v50 = vsel %vm7378_vm1, %v7909_v31, %v7922_v43  ;;  %v9330_v23 = vpack.c.bf16 %v8240_v1, %v8239_v17  ;;  %v8241_v31 = vld [vmem:[%s15635_s7 + $0x30] sm:$0xff]  ;;  %v8242_v43 = vld [vmem:[%s15635_s7 + $0x38] sm:$0xff]  ;;  %vm8462_vm1 = vcmask 80896  }
 0x6a4   :  { %9197 = vmatmul.mubr.msk.f32.vlgmr.msra.gmra.mrb[0].mxu0 %vm639_vm6, %v7923_v50  ;;  %vm9500_vm6 = vmmov 1   ;;  %v9334_v50 = vpack.c.bf16 %v8242_v43, %v8241_v31 }
 0x6a5   :  { %vm15474_vm12 = vmpackc.low %vm8031_vm13, %vm9500_vm6  ;;  %9299 = vmatpush3.bf16.msra.mxu0 %v9296_v21 }
 0x6a6   :  { %9292 = vmatprep.subr.msk.bf16.mxu1 %vm15474_vm12, %v9290_v7  ;;  %9301 = vmatprep.subr.bf16.mxu0 %v9300_v20  ;;  %vm15530_vm4 = vmpackc.low %vm8146_vm3, %vm9500_vm6 }
 0x6a7   :  { %9295 = vmatpush3.bf16.msk.msra.mxu1 %vm15474_vm12, %v9290_v7  ;;  %v9342_v7 = vpack.c.bf16 %v8246_v42, %v8245_v16 }
 0x6a8   :  { %9323 = vmatprep.subr.bf16.mxu1 %v9322_v19 }
 0x6a9   :  { %9303 = vmatpush3.bf16.msra.mxu0 %v9300_v20  ;;  %v9128_v20 = vld [vmem:[#allocation7] ss:$0 sm:$0xff] }
 0x6aa   :  { %9305 = vmatprep.subr.bf16.mxu0 %v9304_v15 }
 0x6ad   :  { %9307 = vmatpush3.bf16.msra.mxu0 %v9304_v15 }
 0x6ae   :  { %9309 = vmatprep.subr.bf16.mxu0 %v9308_v0 }
 0x6b1   :  { %9311 = vmatpush3.bf16.msra.mxu0 %v9308_v0 }
 0x6b2   :  { %9313 = vmatprep.subr.bf16.mxu0 %v9312_v61 }
 0x6b5   :  { %9315 = vmatpush3.bf16.msra.mxu0 %v9312_v61 }
 0x6b6   :  { %9318 = vmatprep.subr.msk.bf16.mxu0 %vm15530_vm4, %v9316_v13 }
 0x6b9   :  { %9321 = vmatpush3.bf16.msk.msra.mxu0 %vm15530_vm4, %v9316_v13  ;;  %v9358_v13 = vpack.c.bf16 %v8454_v18, %v8453_v59 }
 0x777   :  { %v9198_v4 = vpop.f32.mrb[0].mxu0 }
 0x778   :  { %v8000_v41 = vadd.f32 %v9198_v4, %v9111_v47  ;;  %v7994_v44 = vpop.f32.mrb[1].mxu0 }
 0x779   :  { %v7995_v22 = vadd.f32 %v9111_v47, %v7994_v44 }
 0x77a   :  { %v8007_v60 = vmul.f32 1.442695, %v8000_v41  ;;  %vm8004_vm2 = vcmp.gt.f32.partialorder %v8000_v41, 0.0 }
 0x77b   :  { %v8005_v30 = vmul.f32 1.442695, %v7995_v22  ;;  %vm8003_vm15 = vcmp.gt.f32.partialorder %v7995_v22, 0.0 }
 0x77c   :  { %9378 = vpow2.f32 %v8007_v60 }
 0x77d   :  { %9380 = vpow2.f32 %v8005_v30 }
 0x786   :  { %v9379_v37 = vpop.eup %9378 }
 0x787   :  { %v9381_v48 = vpop.eup %9380  ;;  %v9115_v14 = vadd.f32 -1.0, %v9379_v37 }
 0x788   :  { %v9114_v33 = vadd.f32 -1.0, %v9381_v48 }
 0x789   :  { %v8012_v49 = vsel %vm8004_vm2, %v8000_v41, %v9115_v14 }
 0x78a   :  { %v8011_v46 = vsel %vm8003_vm15, %v7995_v22, %v9114_v33  ;;  %v8348_v33 = vld [vmem:[%s15637_s9] sm:$0xff] }
 0x78b   :  { %9207 = vmatprep.mubr.msk.f32.mxu1 %vm8024_vm14, %v8011_v46  ;;  %v8349_v46 = vld [vmem:[%s15637_s9 + $0x8] sm:$0xff] }
 0x78c   :  { %9208 = vmatmul.mubr.msk.f32.vlgmr.msra.gmra.mrb[0].mxu1 %vm8024_vm14, %v8012_v49  ;;  %v8350_v49 = vld [vmem:[%s15637_s9 + $0x10] sm:$0xff]  ;;  %v9348_v36 = vpack.c.bf16 %v8349_v46, %v8348_v33 }
 0x78d   :  { %9325 = vmatpush3.bf16.msra.mxu1 %v9322_v19  ;;  %v9352_v6 = vpack.c.bf16 %v8351_v28, %v8350_v49 }
 0x78e   :  { %9327 = vmatprep.subr.bf16.mxu1 %v9326_v29  ;;  %9349 = vmatprep.subr.bf16.mxu0 %v9348_v36 }
 0x791   :  { %9329 = vmatpush3.bf16.msra.mxu1 %v9326_v29 }
 0x792   :  { %9331 = vmatprep.subr.bf16.mxu1 %v9330_v23 }
 0x795   :  { %9333 = vmatpush3.bf16.msra.mxu1 %v9330_v23 }
 0x796   :  { %9335 = vmatprep.subr.bf16.mxu1 %v9334_v50 }
 0x799   :  { %9337 = vmatpush3.bf16.msra.mxu1 %v9334_v50 }
 0x79a   :  { %9339 = vmatprep.subr.bf16.mxu1 %v9338_v25 }
 0x79d   :  { %9341 = vmatpush3.bf16.msra.mxu1 %v9338_v25 }
 0x79e   :  { %9344 = vmatprep.subr.msk.bf16.mxu1 %vm15530_vm4, %v9342_v7 }
 0x7a1   :  { %9347 = vmatpush3.bf16.msk.msra.mxu1 %vm15530_vm4, %v9342_v7 }
 0x7a2   :  { %9360 = vmatprep.subr.msk.bf16.mxu1 %vm15530_vm4, %v9358_v13 }
 0x85f   :  { %v9209_v26 = vpop.f32.mrb[0].mxu1 }
 0x860   :  { %v8107_v58 = vadd.f32 %v9209_v26, %v9116_v56  ;;  %v8101_v27 = vpop.f32.mrb[1].mxu1 }
 0x861   :  { %v8102_v39 = vadd.f32 %v9116_v56, %v8101_v27  ;;  %v9134_v56 = vld [vmem:[%s15638_s10] ss:$0 sm:$0xff] }
 0x862   :  { %v8114_v55 = vmul.f32 1.442695, %v8107_v58  ;;  %vm8111_vm8 = vcmp.gt.f32.partialorder %v8107_v58, 0.0 }
 0x863   :  { %v8112_v11 = vmul.f32 1.442695, %v8102_v39  ;;  %vm8110_vm7 = vcmp.gt.f32.partialorder %v8102_v39, 0.0 }
 0x864   :  { %9382 = vpow2.f32 %v8114_v55 }
 0x865   :  { %9384 = vpow2.f32 %v8112_v11 }
 0x86e   :  { %v9383_v8 = vpop.eup %9382 }
 0x86f   :  { %v9385_v12 = vpop.eup %9384  ;;  %v9121_v57 = vadd.f32 -1.0, %v9383_v8 }
 0x870   :  { %v9120_v2 = vadd.f32 -1.0, %v9385_v12 }
 0x871   :  { %v8119_v63 = vsel %vm8111_vm8, %v8107_v58, %v9121_v57 }
 0x872   :  { %v8118_v45 = vsel %vm8110_vm7, %v8102_v39, %v9120_v2 }
 0x873   :  { %9234 = vmatprep.mubr.msk.f32.mxu0 %vm8139_vm5, %v8118_v45 }
 0x874   :  { %9235 = vmatmul.mubr.msk.f32.vlgmr.msra.gmra.mrb[2].mxu0 %vm8139_vm5, %v8119_v63  ;;  %v9140_v63 = vld [vmem:[%s15640_s12] ss:$0 sm:$0xff] }
 0x875   :  { %9351 = vmatpush3.bf16.msra.mxu0 %v9348_v36 }
 0x876   :  { %9354 = vmatprep.subr.msk.bf16.mxu0 %vm15474_vm12, %v9352_v6 }
 0x879   :  { %9357 = vmatpush3.bf16.msk.msra.mxu0 %vm15474_vm12, %v9352_v6 }
 0x947   :  { %v9236_v62 = vpop.f32.mrb[2].mxu0 }
 0x948   :  { %v8222_v21 = vadd.f32 %v9236_v62, %v9122_v38  ;;  %v8216_v47 = vpop.f32.mrb[3].mxu0 }
 0x949   :  { %v8217_v4 = vadd.f32 %v9122_v38, %v8216_v47 }
 0x94a   :  { %v8229_v41 = vmul.f32 1.442695, %v8222_v21  ;;  %vm8226_vm10 = vcmp.gt.f32.partialorder %v8222_v21, 0.0 }
 0x94b   :  { %v8227_v44 = vmul.f32 1.442695, %v8217_v4  ;;  %vm8225_vm9 = vcmp.gt.f32.partialorder %v8217_v4, 0.0 }
 0x94c   :  { %9386 = vpow2.f32 %v8229_v41 }
 0x94d   :  { %9388 = vpow2.f32 %v8227_v44 }
 0x956   :  { %v9387_v22 = vpop.eup %9386 }
 0x957   :  { %v9389_v60 = vpop.eup %9388  ;;  %v9127_v30 = vadd.f32 -1.0, %v9387_v22 }
 0x958   :  { %v9126_v37 = vadd.f32 -1.0, %v9389_v60 }
 0x959   :  { %v8234_v14 = vsel %vm8226_vm10, %v8222_v21, %v9127_v30 }
 0x95a   :  { %v8233_v48 = vsel %vm8225_vm9, %v8217_v4, %v9126_v37 }
 0x95b   :  { %9261 = vmatprep.mubr.msk.f32.mxu1 %vm8139_vm5, %v8233_v48 }
 0x95c   :  { %9262 = vmatmul.mubr.msk.f32.vlgmr.msra.gmra.mrb[2].mxu1 %vm8139_vm5, %v8234_v14 }
 0x95d   :  { %9363 = vmatpush3.bf16.msk.msra.mxu1 %vm15530_vm4, %v9358_v13 }
 0xa2f   :  { %v9263_v24 = vpop.f32.mrb[2].mxu1 }
 0xa30   :  { %v8335_v15 = vadd.f32 %v9263_v24, %v9128_v20  ;;  %v8329_v34 = vpop.f32.mrb[3].mxu1 }
 0xa31   :  { %v8330_v40 = vadd.f32 %v9128_v20, %v8329_v34 }
 0xa32   :  { %v8342_v53 = vmul.f32 1.442695, %v8335_v15  ;;  %vm8339_vm0 = vcmp.gt.f32.partialorder %v8335_v15, 0.0 }
 0xa33   :  { %v8340_v54 = vmul.f32 1.442695, %v8330_v40  ;;  %vm8338_vm11 = vcmp.gt.f32.partialorder %v8330_v40, 0.0 }
 0xa34   :  { %9390 = vpow2.f32 %v8342_v53 }
 0xa35   :  { %9392 = vpow2.f32 %v8340_v54 }
 0xa3e   :  { %v9391_v19 = vpop.eup %9390 }
 0xa3f   :  { %v9393_v0 = vpop.eup %9392  ;;  %v9133_v52 = vadd.f32 -1.0, %v9391_v19 }
 0xa40   :  { %v9132_v9 = vadd.f32 -1.0, %v9393_v0 }
 0xa41   :  { %v8347_v32 = vsel %vm8339_vm0, %v8335_v15, %v9133_v52 }
 0xa42   :  { %v8346_v61 = vsel %vm8338_vm11, %v8330_v40, %v9132_v9 }
 0xa43   :  { %9272 = vmatprep.mubr.msk.f32.mxu0 %vm8024_vm14, %v8346_v61 }
 0xa44   :  { %9273 = vmatmul.mubr.msk.f32.vlgmr.msra.gmra.mrb[4].mxu0 %vm8024_vm14, %v8347_v32 }
 0xb17   :  { %v9274_v26 = vpop.f32.mrb[4].mxu0 }
 0xb18   :  { %v8440_v58 = vadd.f32 %v9274_v26, %v9134_v56  ;;  %v8434_v27 = vpop.f32.mrb[5].mxu0 }
 0xb19   :  { %v8435_v39 = vadd.f32 %v9134_v56, %v8434_v27 }
 0xb1a   :  { %v8447_v55 = vmul.f32 1.442695, %v8440_v58  ;;  %vm8444_vm6 = vcmp.gt.f32.partialorder %v8440_v58, 0.0 }
 0xb1b   :  { %v8445_v11 = vmul.f32 1.442695, %v8435_v39  ;;  %vm8443_vm13 = vcmp.gt.f32.partialorder %v8435_v39, 0.0 }
 0xb1c   :  { %9394 = vpow2.f32 %v8447_v55 }
 0xb1d   :  { %9396 = vpow2.f32 %v8445_v11 }
 0xb26   :  { %v9395_v8 = vpop.eup %9394 }
 0xb27   :  { %v9397_v12 = vpop.eup %9396  ;;  %v9139_v57 = vadd.f32 -1.0, %v9395_v8 }
 0xb28   :  { %v9138_v2 = vadd.f32 -1.0, %v9397_v12 }
 0xb29   :  { %v8452_v45 = vsel %vm8444_vm6, %v8440_v58, %v9139_v57 }
 0xb2a   :  { %v8451_v10 = vsel %vm8443_vm13, %v8435_v39, %v9138_v2 }
 0xb2b   :  { %9279 = vmatprep.mubr.msk.f32.mxu1 %vm8462_vm1, %v8451_v10 }
 0xb2c   :  { %9280 = vmatmul.mubr.msk.f32.vlgmr.msra.gmra.mrb[4].mxu1 %vm8462_vm1, %v8452_v45 }
 0xbff   :  { %v9281_v5 = vpop.f32.mrb[4].mxu1 }
 0xc00   :  { %v8544_v35 = vadd.f32 %v9281_v5, %v9140_v63  ;;  %v8538_v17 = vpop.f32.mrb[5].mxu1 }
 0xc01   :  { %v8539_v29 = vadd.f32 %v9140_v63, %v8538_v17 }
 0xc02   :  { %8548 = vst [vmem:[#allocation8 + $0x8] sm:$0xff] %v8544_v35 }
 0xc03   :  { %8547 = vst [vmem:[#allocation8] sm:$0xff] %v8539_v29 }
 0xc04   :  { %9475 = shalt.err (!%p9472_p0)
}
 0xc05   :  { %s9476_s12 = scalar_lea.hbm %s15641_s13, 256 }
 0xc06   :  { %p9477_p1 = scmp.ne.s32.totalorder %s15641_s13, %s9476_s12  ;;  %p9480_p2 = scmp.lt.u32.totalorder %s9476_s12, %s15641_s13 }
 0xc08   :  { %p9482_p3 = pnand %p9480_p2, %p9477_p1 }
 0xc0a   :  { %9485 = shalt.err (!%p9482_p3)
}
 0xc0b   :  { %8560 = dma.vmem_to_hbm [thread:$0]  %s8555_s22, 256, %s15641_s13, [#allocation4], %s9494_s6, %s9494_s6, %s9495_s26  }
 0xc0c   :  { %9490 = dma.done.wait [#allocation4], 256  }
 0xc0d   :  { %9491 = vsyncadd [#allocation4], 4294967040 }
 0xc0e   :  { %8564 = vsyncpa [#allocation3], 1 }
 0xc0f   :  { %8565 = vsyncpa [#allocation6], 1 }
 0xc10   :  { %8566 = vsyncpa [#allocation4], 1 }

</bundles_post_ra>
